<compile_context>
chip_gen: v7x
topology: tpu7x:2x2x1
jax: 0.10.0
libtpu: 0.0.40
codegen_flags: <defaults>
</compile_context>

<pallas_src>
import jax
import jax.numpy as jnp
import numpy as np
from jax.experimental import pallas as pl
from jax.experimental.pallas import tpu as pltpu

EMB = 128            # emb_dim
HID = 2 * EMB        # frag_mlp hidden / lin1 width
ATOM_FEAT = 45
ATOM_PAD = 64        # layer-0 feature pad (64 instead of 128: less wasted MXU K work)
N_LAYERS = 4         # FragNet.forward uses layer1..layer4

# per-chunk padded block sizes (bf16-friendly: sublane multiples of 16, lanes 64/128)
N_BLK = 128          # atoms per graph-chunk (padded)
F_BLK = 64           # fragments per graph-chunk (padded)
B_BLK = 16           # graphs per chunk

CHUNKS_PER_STEP = 4  # chunks processed per grid step (amortize per-step overhead)


# ----------------------------------------------------------------------------
# Pallas kernel: CHUNKS_PER_STEP graph-chunks of the full FragNetFineTune forward
# ----------------------------------------------------------------------------
def fragnet_kernel(
    x_ref,            # (CPS, N_BLK, ATOM_PAD) bf16  atom features (zero padded)
    A_ref,            # (CPS, N_BLK, N_BLK)    bf16  normalized atom adjacency (+ self loops)
    FmP_ref,          # (CPS, F_BLK, N_BLK)    bf16  fused (frag adjacency @ atom->frag scatter)
    pa_ref,           # (CPS, B_BLK, N_BLK)    bf16  atom pooling by graph
    pf_ref,           # (CPS, B_BLK, F_BLK)    bf16  fragment pooling by graph
    Wa0_ref, ba0_ref,   # (ATOM_PAD,128) bf16, (1,128) f32   layer-0 atom_embed
    Wa_ref, ba_ref,     # (3,128,128)  bf16, (3,1,128) f32    layer-1..3 atom_embed
    Wf1_ref, bf1_ref,   # (4,128,256)  bf16, (4,1,256) f32    frag_mlp linear 1
    Wf2_ref, bf2_ref,   # (4,256,128)  bf16, (4,1,128) f32    frag_mlp linear 2
    Wl1a_ref, Wl1f_ref, bl1_ref,  # (128,256) bf16 x2, (1,256) f32   lin1 split
    Wo_ref, bo_ref,     # (256,128) bf16 (col 0 real), (1,128) f32   out
    out_ref,            # (CPS, B_BLK, 128) f32  — ONLY column 0 holds the real logit
):
    bf16 = jnp.bfloat16
    f32 = jnp.float32

    # Static (unrolled) loop over the chunks packed into this grid step: the
    # independent chunks' matmul chains interleave, hiding MXU pop latency and
    # amortizing per-step overhead.  Per-chunk operators are indexed at each use
    # (not hoisted) so they can be re-loaded from VMEM instead of pinning vregs.
    for c in range(CHUNKS_PER_STEP):
        x_atoms = x_ref[c]                    # (N_BLK, ATOM_PAD) bf16
        x_frags = None

        for l in range(N_LAYERS):
            Wa = Wa0_ref[...] if l == 0 else Wa_ref[l - 1]
            ba = ba0_ref[...] if l == 0 else ba_ref[l - 1]
            # atom_embed (bias add in f32 on the VPU)
            h = jnp.dot(x_atoms, Wa, preferred_element_type=f32) + ba
            # normalized GCN message passing (dense block-diagonal adjacency)
            x_new = jnp.dot(A_ref[c], h.astype(bf16), preferred_element_type=f32)
            # fused atom->fragment scatter + fragment message passing: (Fm @ P) @ x_new
            frag_sum = jnp.dot(FmP_ref[c], x_new.astype(bf16),
                               preferred_element_type=f32)
            # frag_mlp: Linear(128,256) -> ReLU -> Linear(256,128)
            hf = jnp.maximum(
                jnp.dot(frag_sum.astype(bf16), Wf1_ref[l],
                        preferred_element_type=f32) + bf1_ref[l], 0.0)
            xf_new = (jnp.dot(hf.astype(bf16), Wf2_ref[l],
                              preferred_element_type=f32) + bf2_ref[l])
            # FragNet applies ReLU after every layer (f32 VPU, re-cast for the MXU)
            x_atoms = jnp.maximum(x_new, 0.0).astype(bf16)
            x_frags = jnp.maximum(xf_new, 0.0).astype(bf16)

        # graph pooling (scatter_add over batch indices as dense matmul)
        atoms_pooled = jnp.dot(pa_ref[c], x_atoms, preferred_element_type=f32)
        frags_pooled = jnp.dot(pf_ref[c], x_frags, preferred_element_type=f32)

        # lin1 over concat([atoms_pooled, frags_pooled]) == split-weight matmuls
        z = (jnp.dot(atoms_pooled.astype(bf16), Wl1a_ref[...],
                     preferred_element_type=f32)
             + jnp.dot(frags_pooled.astype(bf16), Wl1f_ref[...],
                       preferred_element_type=f32)
             + bl1_ref[...])
        z = jnp.maximum(z, 0.0)
        out_ref[c] = (jnp.dot(z.astype(bf16), Wo_ref[...],
                              preferred_element_type=f32) + bo_ref[...])


def run_fragnet_kernel(chunk_arrays, weight_arrays, *, num_chunks):
    assert num_chunks % CHUNKS_PER_STEP == 0
    num_steps = num_chunks // CHUNKS_PER_STEP

    def chunk_spec(a):
        blk = (CHUNKS_PER_STEP,) + tuple(a.shape[1:])
        return pl.BlockSpec(blk, lambda c, nd=a.ndim: (c,) + (0,) * (nd - 1))

    def weight_spec(a):
        return pl.BlockSpec(tuple(a.shape), lambda c, nd=a.ndim: (0,) * nd)

    in_specs = ([chunk_spec(a) for a in chunk_arrays]
                + [weight_spec(a) for a in weight_arrays])
    out_specs = pl.BlockSpec((CHUNKS_PER_STEP, B_BLK, EMB), lambda c: (c, 0, 0))
    out_shape = jax.ShapeDtypeStruct((num_chunks, B_BLK, EMB), jnp.float32)

    # ---- cost estimate (per-chunk MXU flops x num_chunks, all bytes touched) ----
    per_chunk_flops = 0
    for l in range(N_LAYERS):
        k0 = ATOM_PAD if l == 0 else EMB
        per_chunk_flops += 2 * N_BLK * k0 * EMB       # atom_embed
        per_chunk_flops += 2 * N_BLK * N_BLK * EMB    # A @ h
        per_chunk_flops += 2 * F_BLK * N_BLK * EMB    # (Fm @ P) @ x_new   (fused)
        per_chunk_flops += 2 * F_BLK * EMB * HID      # frag_mlp linear 1
        per_chunk_flops += 2 * F_BLK * HID * EMB      # frag_mlp linear 2
    per_chunk_flops += 2 * B_BLK * N_BLK * EMB        # atom pooling
    per_chunk_flops += 2 * B_BLK * F_BLK * EMB        # frag pooling
    per_chunk_flops += 2 * B_BLK * EMB * HID * 2      # lin1 (split weights)
    per_chunk_flops += 2 * B_BLK * HID * EMB          # out
    flops = per_chunk_flops * num_chunks
    bytes_accessed = sum(int(np.prod(a.shape)) * a.dtype.itemsize
                         for a in list(chunk_arrays) + list(weight_arrays))
    bytes_accessed += num_chunks * B_BLK * EMB * 4

    # ---- VMEM budget from the batched block sizes (double-buffered), 48 MiB cap
    #      (v7x has only 64 MiB VMEM per TC; leave headroom for Mosaic scratch) ----
    blk_bytes = CHUNKS_PER_STEP * sum(int(np.prod(a.shape[1:])) * a.dtype.itemsize
                                      for a in chunk_arrays)
    wt_bytes = sum(int(np.prod(a.shape)) * a.dtype.itemsize for a in weight_arrays)
    out_blk = CHUNKS_PER_STEP * B_BLK * EMB * 4
    vmem_limit = int(min(48 << 20,
                         max(4 * (2 * blk_bytes + 2 * wt_bytes + 2 * out_blk),
                             32 << 20)))

    return pl.pallas_call(
        fragnet_kernel,
        grid=(num_steps,),
        in_specs=in_specs,
        out_specs=out_specs,
        out_shape=out_shape,
        compiler_params=pltpu.CompilerParams(
            dimension_semantics=("parallel",),   # even split across v7x's 2 TCs
            vmem_limit_bytes=vmem_limit),
        cost_estimate=pl.CostEstimate(
            flops=int(flops), transcendentals=0,
            bytes_accessed=int(bytes_accessed)),
    )(*chunk_arrays, *weight_arrays)


# ----------------------------------------------------------------------------
# Parameter init (deterministic, PyTorch-Linear-style uniform)
# ----------------------------------------------------------------------------
def linear_params(key, fan_in, fan_out):
    kw, kb = jax.random.split(key)
    bound = 1.0 / np.sqrt(fan_in)
    W = jax.random.uniform(kw, (fan_in, fan_out), jnp.float32, -bound, bound)
    b = jax.random.uniform(kb, (fan_out,), jnp.float32, -bound, bound)
    return W, b


def pad_to(x, shape):
    pads = [(0, s - d) for d, s in zip(x.shape, shape)]
    return jnp.pad(x, pads)


# ----------------------------------------------------------------------------
# Graph-chunk construction (host-side glue): B_BLK small molecules per chunk,
# block-diagonal dense operators, plus the raw indices for the reference.
# ----------------------------------------------------------------------------
def build_chunk(seed, n_graphs):
    rng = np.random.default_rng(int(seed))
    n_at = rng.integers(6, 9, size=n_graphs)      # 6..8 atoms per graph
    n_fr = rng.integers(2, 5, size=n_graphs)      # 2..4 fragments per graph
    atom_off = np.concatenate([[0], np.cumsum(n_at)]).astype(np.int64)
    frag_off = np.concatenate([[0], np.cumsum(n_fr)]).astype(np.int64)
    N, Fg = int(atom_off[-1]), int(frag_off[-1])
    assert N <= N_BLK and Fg <= F_BLK

    src, tgt, a2f, fsrc, ftgt, ab, fb = [], [], [], [], [], [], []
    for g in range(n_graphs):
        na, nf = int(n_at[g]), int(n_fr[g])
        ne, nfe = 2 * na, 2 * nf
        src.append(rng.integers(0, na, size=ne) + atom_off[g])
        tgt.append(rng.integers(0, na, size=ne) + atom_off[g])
        a2f.append(rng.integers(0, nf, size=na) + frag_off[g])
        fsrc.append(rng.integers(0, nf, size=nfe) + frag_off[g])
        ftgt.append(rng.integers(0, nf, size=nfe) + frag_off[g])
        ab.append(np.full(na, g, np.int64))
        fb.append(np.full(nf, g, np.int64))
    src = np.concatenate(src); tgt = np.concatenate(tgt)
    a2f = np.concatenate(a2f); fsrc = np.concatenate(fsrc); ftgt = np.concatenate(ftgt)
    ab = np.concatenate(ab); fb = np.concatenate(fb)

    x_atoms = rng.standard_normal((N, ATOM_FEAT)).astype(np.float32)

    # add_self_loops + GCN normalization (matches the torch code path)
    src_sl = np.concatenate([src, np.arange(N)])
    tgt_sl = np.concatenate([tgt, np.arange(N)])
    deg = np.zeros(N, np.float32); np.add.at(deg, src_sl, 1.0)
    dis = np.where(deg > 0, deg ** -0.5, 0.0).astype(np.float32)
    norm = (dis[src_sl] * dis[tgt_sl]).astype(np.float32)

    # dense block-local gather/scatter operators
    A = np.zeros((N_BLK, N_BLK), np.float32); np.add.at(A, (tgt_sl, src_sl), norm)
    P = np.zeros((F_BLK, N_BLK), np.float32); np.add.at(P, (a2f, np.arange(N)), 1.0)
    Fm = np.zeros((F_BLK, F_BLK), np.float32); np.add.at(Fm, (ftgt, fsrc), 1.0)
    FmP = (Fm @ P).astype(np.float32)   # fold frag adjacency into the scatter (host f32)
    pa = np.zeros((B_BLK, N_BLK), np.float32); np.add.at(pa, (ab, np.arange(N)), 1.0)
    pf = np.zeros((B_BLK, F_BLK), np.float32); np.add.at(pf, (fb, np.arange(Fg)), 1.0)
    xp = np.zeros((N_BLK, ATOM_PAD), np.float32); xp[:N, :ATOM_FEAT] = x_atoms

    return dict(xp=xp, A=A, FmP=FmP, pa=pa, pf=pf,
                x_atoms=x_atoms, src_sl=src_sl, tgt_sl=tgt_sl, norm=norm,
                a2f=a2f, fsrc=fsrc, ftgt=ftgt, ab=ab, fb=fb,
                N=N, Fg=Fg, n_graphs=n_graphs)


# ----------------------------------------------------------------------------
# References
# ----------------------------------------------------------------------------
def reference_f32(ch, layers, lin1, out_p):
    """Pure-f32, index-based (scatter_add) reference per chunk — original semantics."""
    N, Fg, B = ch["N"], ch["Fg"], ch["n_graphs"]
    x = jnp.asarray(ch["x_atoms"])
    src_sl = jnp.asarray(ch["src_sl"]); tgt_sl = jnp.asarray(ch["tgt_sl"])
    norm = jnp.asarray(ch["norm"])
    a2f = jnp.asarray(ch["a2f"]); fsrc = jnp.asarray(ch["fsrc"]); ftgt = jnp.asarray(ch["ftgt"])
    ab = jnp.asarray(ch["ab"]); fb = jnp.asarray(ch["fb"])
    xfr = None
    for (Wa, ba, Wf1, bf1, Wf2, bf2) in layers:
        h = x @ Wa + ba
        msg = h[src_sl] * norm[:, None]
        x_new = jnp.zeros((N, EMB), jnp.float32).at[tgt_sl].add(msg)
        xf = jnp.zeros((Fg, EMB), jnp.float32).at[a2f].add(x_new)
        fsum = jnp.zeros((Fg, EMB), jnp.float32).at[ftgt].add(xf[fsrc])
        hf = jax.nn.relu(fsum @ Wf1 + bf1)
        xfn = hf @ Wf2 + bf2
        x = jax.nn.relu(x_new)
        xfr = jax.nn.relu(xfn)
    ap = jnp.zeros((B, EMB), jnp.float32).at[ab].add(x)
    fp = jnp.zeros((B, EMB), jnp.float32).at[fb].add(xfr)
    Wl1, bl1 = lin1; Wo, bo = out_p
    z = jax.nn.relu(jnp.concatenate([ap, fp], axis=1) @ Wl1 + bl1)
    return z @ Wo + bo


def dense_mixed_reference(xp, A, FmP, pa, pf, wts):
    """Plain-JAX mirror of the kernel (same bf16/f32 dtype flow, fused FmP) per chunk."""
    (Wa0, ba0, WaS, baS, Wf1S, bf1S, Wf2S, bf2S, Wl1a, Wl1f, bl1, Wo, bo) = wts
    bf16, f32 = jnp.bfloat16, jnp.float32
    x = xp
    xfr = None
    for l in range(N_LAYERS):
        Wa = Wa0 if l == 0 else WaS[l - 1]
        ba = ba0 if l == 0 else baS[l - 1]
        h = jnp.dot(x, Wa, preferred_element_type=f32) + ba
        x_new = jnp.dot(A, h.astype(bf16), preferred_element_type=f32)
        frag_sum = jnp.dot(FmP, x_new.astype(bf16), preferred_element_type=f32)
        hf = jnp.maximum(jnp.dot(frag_sum.astype(bf16), Wf1S[l],
                                 preferred_element_type=f32) + bf1S[l], 0.0)
        xf_new = jnp.dot(hf.astype(bf16), Wf2S[l], preferred_element_type=f32) + bf2S[l]
        x = jnp.maximum(x_new, 0.0).astype(bf16)
        xfr = jnp.maximum(xf_new, 0.0).astype(bf16)
    ap = jnp.dot(pa, x, preferred_element_type=f32)
    fp = jnp.dot(pf, xfr, preferred_element_type=f32)
    z = jnp.maximum(jnp.dot(ap.astype(bf16), Wl1a, preferred_element_type=f32)
                    + jnp.dot(fp.astype(bf16), Wl1f, preferred_element_type=f32)
                    + bl1, 0.0)
    return jnp.dot(z.astype(bf16), Wo, preferred_element_type=f32) + bo


# ----------------------------------------------------------------------------
if __name__ == "__main__":
    key = jax.random.PRNGKey(0)
    k_graph, k_param = jax.random.split(key)

    # grid = NUM_CHUNKS / CHUNKS_PER_STEP = 4: even and >=2 steps per TC on v7x,
    # so megacore sharding and DMA/compute pipelining both engage.
    NUM_CHUNKS = 16

    # ---- parameters (only those used by the real forward path) ----
    wkeys = jax.random.split(k_param, 3 * N_LAYERS + 2)
    layers = []
    for l in range(N_LAYERS):
        a_in = ATOM_FEAT if l == 0 else EMB
        Wa, ba = linear_params(wkeys[3 * l + 0], a_in, EMB)
        Wf1, bf1 = linear_params(wkeys[3 * l + 1], EMB, HID)
        Wf2, bf2 = linear_params(wkeys[3 * l + 2], HID, EMB)
        layers.append((Wa, ba, Wf1, bf1, Wf2, bf2))
    W_lin1, b_lin1 = linear_params(wkeys[3 * N_LAYERS], HID, HID)
    W_out, b_out = linear_params(wkeys[3 * N_LAYERS + 1], HID, 1)

    bf16 = jnp.bfloat16
    Wa0 = pad_to(layers[0][0], (ATOM_PAD, EMB)).astype(bf16)        # (64,128)
    ba0 = layers[0][1].reshape(1, EMB)                              # f32
    Wa_stack = jnp.stack([layers[l][0] for l in range(1, N_LAYERS)]).astype(bf16)
    ba_stack = jnp.stack([layers[l][1].reshape(1, EMB) for l in range(1, N_LAYERS)])
    Wf1_stack = jnp.stack([layers[l][2] for l in range(N_LAYERS)]).astype(bf16)
    bf1_stack = jnp.stack([layers[l][3].reshape(1, HID) for l in range(N_LAYERS)])
    Wf2_stack = jnp.stack([layers[l][4] for l in range(N_LAYERS)]).astype(bf16)
    bf2_stack = jnp.stack([layers[l][5].reshape(1, EMB) for l in range(N_LAYERS)])
    Wl1a = W_lin1[:EMB].astype(bf16)
    Wl1f = W_lin1[EMB:].astype(bf16)
    bl1 = b_lin1.reshape(1, HID)
    Wo_pad = pad_to(W_out, (HID, EMB)).astype(bf16)
    bo_pad = pad_to(b_out.reshape(1, 1), (1, EMB))

    weight_arrays = [Wa0, ba0, Wa_stack, ba_stack, Wf1_stack, bf1_stack,
                     Wf2_stack, bf2_stack, Wl1a, Wl1f, bl1, Wo_pad, bo_pad]

    # ---- graph chunks (topology/features from numpy RNG seeded off PRNGKey(0)) ----
    chunk_seeds = np.asarray(
        jax.random.randint(k_graph, (NUM_CHUNKS,), 0, np.iinfo(np.int32).max))
    chunks = [build_chunk(chunk_seeds[c], B_BLK) for c in range(NUM_CHUNKS)]

    x_stack = jnp.stack([c["xp"] for c in chunks]).astype(bf16)       # (C,128,64)
    A_stack = jnp.stack([c["A"] for c in chunks]).astype(bf16)        # (C,128,128)
    FmP_stack = jnp.stack([c["FmP"] for c in chunks]).astype(bf16)    # (C,64,128)
    pa_stack = jnp.stack([c["pa"] for c in chunks]).astype(bf16)      # (C,16,128)
    pf_stack = jnp.stack([c["pf"] for c in chunks]).astype(bf16)      # (C,16,64)
    chunk_arrays = [x_stack, A_stack, FmP_stack, pa_stack, pf_stack]

    # ---- run kernel ----
    out = run_fragnet_kernel(chunk_arrays, weight_arrays, num_chunks=NUM_CHUNKS)
    out = jax.block_until_ready(out)                                  # (C, B_BLK, 128)
    logits = np.asarray(out[:, :, 0]).reshape(-1, 1)                  # (C*B_BLK, 1)

    # ---- tight check: kernel == plain-JAX mirror of the same bf16/f32 math ----
    mixed = jnp.stack([dense_mixed_reference(
        x_stack[c], A_stack[c], FmP_stack[c], pa_stack[c], pf_stack[c],
        weight_arrays) for c in range(NUM_CHUNKS)])
    mixed = jax.block_until_ready(mixed)
    np.testing.assert_allclose(np.asarray(out), np.asarray(mixed),
                               rtol=1e-2, atol=1e-2)

    # ---- semantics check vs. the original f32 index-based forward (bf16-loose) ----
    ref = jnp.concatenate([reference_f32(chunks[c], layers,
                                         (W_lin1, b_lin1), (W_out, b_out))
                           for c in range(NUM_CHUNKS)], axis=0)
    ref = jax.block_until_ready(ref)
    np.testing.assert_allclose(logits, np.asarray(ref), rtol=0.2, atol=0.5)

    print("KERNEL_OK")
</pallas_src>

<mosaic_0001>
module attributes {stable_mosaic.version = 11 : i64} {
  func.func @fragnet_kernel(%arg0: i32, %arg1: memref<4x128x64xbf16, #tpu.memory_space<vmem>>, %arg2: memref<4x128x128xbf16, #tpu.memory_space<vmem>>, %arg3: memref<4x64x128xbf16, #tpu.memory_space<vmem>>, %arg4: memref<4x16x128xbf16, #tpu.memory_space<vmem>>, %arg5: memref<4x16x64xbf16, #tpu.memory_space<vmem>>, %arg6: memref<64x128xbf16, #tpu.memory_space<vmem>>, %arg7: memref<1x128xf32, #tpu.memory_space<vmem>>, %arg8: memref<3x128x128xbf16, #tpu.memory_space<vmem>>, %arg9: memref<3x1x128xf32, #tpu.memory_space<vmem>>, %arg10: memref<4x128x256xbf16, #tpu.memory_space<vmem>>, %arg11: memref<4x1x256xf32, #tpu.memory_space<vmem>>, %arg12: memref<4x256x128xbf16, #tpu.memory_space<vmem>>, %arg13: memref<4x1x128xf32, #tpu.memory_space<vmem>>, %arg14: memref<128x256xbf16, #tpu.memory_space<vmem>>, %arg15: memref<128x256xbf16, #tpu.memory_space<vmem>>, %arg16: memref<1x256xf32, #tpu.memory_space<vmem>>, %arg17: memref<256x128xbf16, #tpu.memory_space<vmem>>, %arg18: memref<1x128xf32, #tpu.memory_space<vmem>>, %arg19: memref<4x16x128xf32, #tpu.memory_space<vmem>>) attributes {dimension_semantics = [#tpu.dimension_semantics<parallel>], iteration_bounds = array<i64: 4>, scalar_prefetch = 0 : i64, scratch_operands = 0 : i64, tpu.core_type = #tpu.core_type<tc>, window_params = [{transform_indices = @transform_0, window_bounds = array<i64: 4, 128, 64>}, {transform_indices = @transform_1, window_bounds = array<i64: 4, 128, 128>}, {transform_indices = @transform_2, window_bounds = array<i64: 4, 64, 128>}, {transform_indices = @transform_3, window_bounds = array<i64: 4, 16, 128>}, {transform_indices = @transform_4, window_bounds = array<i64: 4, 16, 64>}, {pipeline_mode = #tpu.pipeline_mode<synchronous>, transform_indices = @transform_5, window_bounds = array<i64: 64, 128>}, {pipeline_mode = #tpu.pipeline_mode<synchronous>, transform_indices = @transform_6, window_bounds = array<i64: 1, 128>}, {pipeline_mode = #tpu.pipeline_mode<synchronous>, transform_indices = @transform_7, window_bounds = array<i64: 3, 128, 128>}, {pipeline_mode = #tpu.pipeline_mode<synchronous>, transform_indices = @transform_8, window_bounds = array<i64: 3, 1, 128>}, {pipeline_mode = #tpu.pipeline_mode<synchronous>, transform_indices = @transform_9, window_bounds = array<i64: 4, 128, 256>}, {pipeline_mode = #tpu.pipeline_mode<synchronous>, transform_indices = @transform_10, window_bounds = array<i64: 4, 1, 256>}, {pipeline_mode = #tpu.pipeline_mode<synchronous>, transform_indices = @transform_11, window_bounds = array<i64: 4, 256, 128>}, {pipeline_mode = #tpu.pipeline_mode<synchronous>, transform_indices = @transform_12, window_bounds = array<i64: 4, 1, 128>}, {pipeline_mode = #tpu.pipeline_mode<synchronous>, transform_indices = @transform_13, window_bounds = array<i64: 128, 256>}, {pipeline_mode = #tpu.pipeline_mode<synchronous>, transform_indices = @transform_14, window_bounds = array<i64: 128, 256>}, {pipeline_mode = #tpu.pipeline_mode<synchronous>, transform_indices = @transform_15, window_bounds = array<i64: 1, 256>}, {pipeline_mode = #tpu.pipeline_mode<synchronous>, transform_indices = @transform_16, window_bounds = array<i64: 256, 128>}, {pipeline_mode = #tpu.pipeline_mode<synchronous>, transform_indices = @transform_17, window_bounds = array<i64: 1, 128>}, {transform_indices = @transform_18, window_bounds = array<i64: 4, 16, 128>}]} {
    %c0 = arith.constant 0 : index
    %c0_0 = arith.constant 0 : index
    %c0_1 = arith.constant 0 : index
    %0 = vector.load %arg1[%c0, %c0_0, %c0_1] : memref<4x128x64xbf16, #tpu.memory_space<vmem>>, vector<1x128x64xbf16>
    %1 = vector.shape_cast %0 : vector<1x128x64xbf16> to vector<128x64xbf16>
    %c0_2 = arith.constant 0 : index
    %c0_3 = arith.constant 0 : index
    %2 = vector.load %arg6[%c0_2, %c0_3] : memref<64x128xbf16, #tpu.memory_space<vmem>>, vector<64x128xbf16>
    %c0_4 = arith.constant 0 : index
    %c0_5 = arith.constant 0 : index
    %3 = vector.load %arg7[%c0_4, %c0_5] : memref<1x128xf32, #tpu.memory_space<vmem>>, vector<1x128xf32>
    %cst = arith.constant dense<0.000000e+00> : vector<128x128xf32>
    %4 = tpu.matmul %1, %2, %cst {dimension_numbers = #tpu.dot_dimension_numbers<[1], [0], [0], [1], [0, 0, 1, 1], [], []>} : vector<128x64xbf16>, vector<64x128xbf16>, vector<128x128xf32> -> vector<128x128xf32>
    %5 = vector.broadcast %3 : vector<1x128xf32> to vector<128x128xf32>
    %6 = arith.addf %4, %5 : vector<128x128xf32>
    %c0_6 = arith.constant 0 : index
    %c0_7 = arith.constant 0 : index
    %c0_8 = arith.constant 0 : index
    %7 = vector.load %arg2[%c0_6, %c0_7, %c0_8] : memref<4x128x128xbf16, #tpu.memory_space<vmem>>, vector<1x128x128xbf16>
    %8 = vector.shape_cast %7 : vector<1x128x128xbf16> to vector<128x128xbf16>
    %9 = arith.truncf %6 : vector<128x128xf32> to vector<128x128xbf16>
    %cst_9 = arith.constant dense<0.000000e+00> : vector<128x128xf32>
    %10 = tpu.matmul %8, %9, %cst_9 {dimension_numbers = #tpu.dot_dimension_numbers<[1], [0], [0], [1], [0, 0, 1, 1], [], []>} : vector<128x128xbf16>, vector<128x128xbf16>, vector<128x128xf32> -> vector<128x128xf32>
    %cst_10 = arith.constant 0.000000e+00 : f32
    %11 = vector.broadcast %cst_10 : f32 to vector<128x128xf32>
    %12 = arith.maximumf %10, %11 : vector<128x128xf32>
    %13 = arith.truncf %12 : vector<128x128xf32> to vector<128x128xbf16>
    %c0_11 = arith.constant 0 : index
    %c0_12 = arith.constant 0 : index
    %c0_13 = arith.constant 0 : index
    %14 = vector.load %arg8[%c0_11, %c0_12, %c0_13] : memref<3x128x128xbf16, #tpu.memory_space<vmem>>, vector<1x128x128xbf16>
    %15 = vector.shape_cast %14 : vector<1x128x128xbf16> to vector<128x128xbf16>
    %c0_14 = arith.constant 0 : index
    %c0_15 = arith.constant 0 : index
    %c0_16 = arith.constant 0 : index
    %16 = vector.load %arg9[%c0_14, %c0_15, %c0_16] : memref<3x1x128xf32, #tpu.memory_space<vmem>>, vector<1x1x128xf32>
    %17 = vector.shape_cast %16 : vector<1x1x128xf32> to vector<1x128xf32>
    %cst_17 = arith.constant dense<0.000000e+00> : vector<128x128xf32>
    %18 = tpu.matmul %13, %15, %cst_17 {dimension_numbers = #tpu.dot_dimension_numbers<[1], [0], [0], [1], [0, 0, 1, 1], [], []>} : vector<128x128xbf16>, vector<128x128xbf16>, vector<128x128xf32> -> vector<128x128xf32>
    %19 = vector.broadcast %17 : vector<1x128xf32> to vector<128x128xf32>
    %20 = arith.addf %18, %19 : vector<128x128xf32>
    %c0_18 = arith.constant 0 : index
    %c0_19 = arith.constant 0 : index
    %c0_20 = arith.constant 0 : index
    %21 = vector.load %arg2[%c0_18, %c0_19, %c0_20] : memref<4x128x128xbf16, #tpu.memory_space<vmem>>, vector<1x128x128xbf16>
    %22 = vector.shape_cast %21 : vector<1x128x128xbf16> to vector<128x128xbf16>
    %23 = arith.truncf %20 : vector<128x128xf32> to vector<128x128xbf16>
    %cst_21 = arith.constant dense<0.000000e+00> : vector<128x128xf32>
    %24 = tpu.matmul %22, %23, %cst_21 {dimension_numbers = #tpu.dot_dimension_numbers<[1], [0], [0], [1], [0, 0, 1, 1], [], []>} : vector<128x128xbf16>, vector<128x128xbf16>, vector<128x128xf32> -> vector<128x128xf32>
    %cst_22 = arith.constant 0.000000e+00 : f32
    %25 = vector.broadcast %cst_22 : f32 to vector<128x128xf32>
    %26 = arith.maximumf %24, %25 : vector<128x128xf32>
    %27 = arith.truncf %26 : vector<128x128xf32> to vector<128x128xbf16>
    %c1 = arith.constant 1 : index
    %c0_23 = arith.constant 0 : index
    %c0_24 = arith.constant 0 : index
    %28 = vector.load %arg8[%c1, %c0_23, %c0_24] : memref<3x128x128xbf16, #tpu.memory_space<vmem>>, vector<1x128x128xbf16>
    %29 = vector.shape_cast %28 : vector<1x128x128xbf16> to vector<128x128xbf16>
    %c1_25 = arith.constant 1 : index
    %c0_26 = arith.constant 0 : index
    %c0_27 = arith.constant 0 : index
    %30 = vector.load %arg9[%c1_25, %c0_26, %c0_27] : memref<3x1x128xf32, #tpu.memory_space<vmem>>, vector<1x1x128xf32>
    %31 = vector.shape_cast %30 : vector<1x1x128xf32> to vector<1x128xf32>
    %cst_28 = arith.constant dense<0.000000e+00> : vector<128x128xf32>
    %32 = tpu.matmul %27, %29, %cst_28 {dimension_numbers = #tpu.dot_dimension_numbers<[1], [0], [0], [1], [0, 0, 1, 1], [], []>} : vector<128x128xbf16>, vector<128x128xbf16>, vector<128x128xf32> -> vector<128x128xf32>
    %33 = vector.broadcast %31 : vector<1x128xf32> to vector<128x128xf32>
    %34 = arith.addf %32, %33 : vector<128x128xf32>
    %c0_29 = arith.constant 0 : index
    %c0_30 = arith.constant 0 : index
    %c0_31 = arith.constant 0 : index
    %35 = vector.load %arg2[%c0_29, %c0_30, %c0_31] : memref<4x128x128xbf16, #tpu.memory_space<vmem>>, vector<1x128x128xbf16>
    %36 = vector.shape_cast %35 : vector<1x128x128xbf16> to vector<128x128xbf16>
    %37 = arith.truncf %34 : vector<128x128xf32> to vector<128x128xbf16>
    %cst_32 = arith.constant dense<0.000000e+00> : vector<128x128xf32>
    %38 = tpu.matmul %36, %37, %cst_32 {dimension_numbers = #tpu.dot_dimension_numbers<[1], [0], [0], [1], [0, 0, 1, 1], [], []>} : vector<128x128xbf16>, vector<128x128xbf16>, vector<128x128xf32> -> vector<128x128xf32>
    %cst_33 = arith.constant 0.000000e+00 : f32
    %39 = vector.broadcast %cst_33 : f32 to vector<128x128xf32>
    %40 = arith.maximumf %38, %39 : vector<128x128xf32>
    %41 = arith.truncf %40 : vector<128x128xf32> to vector<128x128xbf16>
    %c2 = arith.constant 2 : index
    %c0_34 = arith.constant 0 : index
    %c0_35 = arith.constant 0 : index
    %42 = vector.load %arg8[%c2, %c0_34, %c0_35] : memref<3x128x128xbf16, #tpu.memory_space<vmem>>, vector<1x128x128xbf16>
    %43 = vector.shape_cast %42 : vector<1x128x128xbf16> to vector<128x128xbf16>
    %c2_36 = arith.constant 2 : index
    %c0_37 = arith.constant 0 : index
    %c0_38 = arith.constant 0 : index
    %44 = vector.load %arg9[%c2_36, %c0_37, %c0_38] : memref<3x1x128xf32, #tpu.memory_space<vmem>>, vector<1x1x128xf32>
    %45 = vector.shape_cast %44 : vector<1x1x128xf32> to vector<1x128xf32>
    %cst_39 = arith.constant dense<0.000000e+00> : vector<128x128xf32>
    %46 = tpu.matmul %41, %43, %cst_39 {dimension_numbers = #tpu.dot_dimension_numbers<[1], [0], [0], [1], [0, 0, 1, 1], [], []>} : vector<128x128xbf16>, vector<128x128xbf16>, vector<128x128xf32> -> vector<128x128xf32>
    %47 = vector.broadcast %45 : vector<1x128xf32> to vector<128x128xf32>
    %48 = arith.addf %46, %47 : vector<128x128xf32>
    %c0_40 = arith.constant 0 : index
    %c0_41 = arith.constant 0 : index
    %c0_42 = arith.constant 0 : index
    %49 = vector.load %arg2[%c0_40, %c0_41, %c0_42] : memref<4x128x128xbf16, #tpu.memory_space<vmem>>, vector<1x128x128xbf16>
    %50 = vector.shape_cast %49 : vector<1x128x128xbf16> to vector<128x128xbf16>
    %51 = arith.truncf %48 : vector<128x128xf32> to vector<128x128xbf16>
    %cst_43 = arith.constant dense<0.000000e+00> : vector<128x128xf32>
    %52 = tpu.matmul %50, %51, %cst_43 {dimension_numbers = #tpu.dot_dimension_numbers<[1], [0], [0], [1], [0, 0, 1, 1], [], []>} : vector<128x128xbf16>, vector<128x128xbf16>, vector<128x128xf32> -> vector<128x128xf32>
    %c0_44 = arith.constant 0 : index
    %c0_45 = arith.constant 0 : index
    %c0_46 = arith.constant 0 : index
    %53 = vector.load %arg3[%c0_44, %c0_45, %c0_46] : memref<4x64x128xbf16, #tpu.memory_space<vmem>>, vector<1x64x128xbf16>
    %54 = vector.shape_cast %53 : vector<1x64x128xbf16> to vector<64x128xbf16>
    %55 = arith.truncf %52 : vector<128x128xf32> to vector<128x128xbf16>
    %cst_47 = arith.constant dense<0.000000e+00> : vector<64x128xf32>
    %56 = tpu.matmul %54, %55, %cst_47 {dimension_numbers = #tpu.dot_dimension_numbers<[1], [0], [0], [1], [0, 0, 1, 1], [], []>} : vector<64x128xbf16>, vector<128x128xbf16>, vector<64x128xf32> -> vector<64x128xf32>
    %57 = arith.truncf %56 : vector<64x128xf32> to vector<64x128xbf16>
    %c3 = arith.constant 3 : index
    %c0_48 = arith.constant 0 : index
    %c0_49 = arith.constant 0 : index
    %58 = vector.load %arg10[%c3, %c0_48, %c0_49] : memref<4x128x256xbf16, #tpu.memory_space<vmem>>, vector<1x128x256xbf16>
    %59 = vector.shape_cast %58 : vector<1x128x256xbf16> to vector<128x256xbf16>
    %cst_50 = arith.constant dense<0.000000e+00> : vector<64x256xf32>
    %60 = tpu.matmul %57, %59, %cst_50 {dimension_numbers = #tpu.dot_dimension_numbers<[1], [0], [0], [1], [0, 0, 1, 1], [], []>} : vector<64x128xbf16>, vector<128x256xbf16>, vector<64x256xf32> -> vector<64x256xf32>
    %c3_51 = arith.constant 3 : index
    %c0_52 = arith.constant 0 : index
    %c0_53 = arith.constant 0 : index
    %61 = vector.load %arg11[%c3_51, %c0_52, %c0_53] : memref<4x1x256xf32, #tpu.memory_space<vmem>>, vector<1x1x256xf32>
    %62 = vector.shape_cast %61 : vector<1x1x256xf32> to vector<1x256xf32>
    %63 = vector.broadcast %62 : vector<1x256xf32> to vector<64x256xf32>
    %64 = arith.addf %60, %63 : vector<64x256xf32>
    %cst_54 = arith.constant 0.000000e+00 : f32
    %65 = vector.broadcast %cst_54 : f32 to vector<64x256xf32>
    %66 = arith.maximumf %64, %65 : vector<64x256xf32>
    %67 = arith.truncf %66 : vector<64x256xf32> to vector<64x256xbf16>
    %c3_55 = arith.constant 3 : index
    %c0_56 = arith.constant 0 : index
    %c0_57 = arith.constant 0 : index
    %68 = vector.load %arg12[%c3_55, %c0_56, %c0_57] : memref<4x256x128xbf16, #tpu.memory_space<vmem>>, vector<1x256x128xbf16>
    %69 = vector.shape_cast %68 : vector<1x256x128xbf16> to vector<256x128xbf16>
    %cst_58 = arith.constant dense<0.000000e+00> : vector<64x128xf32>
    %70 = tpu.matmul %67, %69, %cst_58 {dimension_numbers = #tpu.dot_dimension_numbers<[1], [0], [0], [1], [0, 0, 1, 1], [], []>} : vector<64x256xbf16>, vector<256x128xbf16>, vector<64x128xf32> -> vector<64x128xf32>
    %c3_59 = arith.constant 3 : index
    %c0_60 = arith.constant 0 : index
    %c0_61 = arith.constant 0 : index
    %71 = vector.load %arg13[%c3_59, %c0_60, %c0_61] : memref<4x1x128xf32, #tpu.memory_space<vmem>>, vector<1x1x128xf32>
    %72 = vector.shape_cast %71 : vector<1x1x128xf32> to vector<1x128xf32>
    %73 = vector.broadcast %72 : vector<1x128xf32> to vector<64x128xf32>
    %74 = arith.addf %70, %73 : vector<64x128xf32>
    %cst_62 = arith.constant 0.000000e+00 : f32
    %75 = vector.broadcast %cst_62 : f32 to vector<128x128xf32>
    %76 = arith.maximumf %52, %75 : vector<128x128xf32>
    %77 = arith.truncf %76 : vector<128x128xf32> to vector<128x128xbf16>
    %cst_63 = arith.constant 0.000000e+00 : f32
    %78 = vector.broadcast %cst_63 : f32 to vector<64x128xf32>
    %79 = arith.maximumf %74, %78 : vector<64x128xf32>
    %80 = arith.truncf %79 : vector<64x128xf32> to vector<64x128xbf16>
    %c0_64 = arith.constant 0 : index
    %c0_65 = arith.constant 0 : index
    %c0_66 = arith.constant 0 : index
    %81 = vector.load %arg4[%c0_64, %c0_65, %c0_66] : memref<4x16x128xbf16, #tpu.memory_space<vmem>>, vector<1x16x128xbf16>
    %82 = vector.shape_cast %81 : vector<1x16x128xbf16> to vector<16x128xbf16>
    %cst_67 = arith.constant dense<0.000000e+00> : vector<16x128xf32>
    %83 = tpu.matmul %82, %77, %cst_67 {dimension_numbers = #tpu.dot_dimension_numbers<[1], [0], [0], [1], [0, 0, 1, 1], [], []>} : vector<16x128xbf16>, vector<128x128xbf16>, vector<16x128xf32> -> vector<16x128xf32>
    %c0_68 = arith.constant 0 : index
    %c0_69 = arith.constant 0 : index
    %c0_70 = arith.constant 0 : index
    %84 = vector.load %arg5[%c0_68, %c0_69, %c0_70] : memref<4x16x64xbf16, #tpu.memory_space<vmem>>, vector<1x16x64xbf16>
    %85 = vector.shape_cast %84 : vector<1x16x64xbf16> to vector<16x64xbf16>
    %cst_71 = arith.constant dense<0.000000e+00> : vector<16x128xf32>
    %86 = tpu.matmul %85, %80, %cst_71 {dimension_numbers = #tpu.dot_dimension_numbers<[1], [0], [0], [1], [0, 0, 1, 1], [], []>} : vector<16x64xbf16>, vector<64x128xbf16>, vector<16x128xf32> -> vector<16x128xf32>
    %87 = arith.truncf %83 : vector<16x128xf32> to vector<16x128xbf16>
    %c0_72 = arith.constant 0 : index
    %c0_73 = arith.constant 0 : index
    %88 = vector.load %arg14[%c0_72, %c0_73] : memref<128x256xbf16, #tpu.memory_space<vmem>>, vector<128x256xbf16>
    %cst_74 = arith.constant dense<0.000000e+00> : vector<16x256xf32>
    %89 = tpu.matmul %87, %88, %cst_74 {dimension_numbers = #tpu.dot_dimension_numbers<[1], [0], [0], [1], [0, 0, 1, 1], [], []>} : vector<16x128xbf16>, vector<128x256xbf16>, vector<16x256xf32> -> vector<16x256xf32>
    %90 = arith.truncf %86 : vector<16x128xf32> to vector<16x128xbf16>
    %c0_75 = arith.constant 0 : index
    %c0_76 = arith.constant 0 : index
    %91 = vector.load %arg15[%c0_75, %c0_76] : memref<128x256xbf16, #tpu.memory_space<vmem>>, vector<128x256xbf16>
    %cst_77 = arith.constant dense<0.000000e+00> : vector<16x256xf32>
    %92 = tpu.matmul %90, %91, %cst_77 {dimension_numbers = #tpu.dot_dimension_numbers<[1], [0], [0], [1], [0, 0, 1, 1], [], []>} : vector<16x128xbf16>, vector<128x256xbf16>, vector<16x256xf32> -> vector<16x256xf32>
    %93 = arith.addf %89, %92 : vector<16x256xf32>
    %c0_78 = arith.constant 0 : index
    %c0_79 = arith.constant 0 : index
    %94 = vector.load %arg16[%c0_78, %c0_79] : memref<1x256xf32, #tpu.memory_space<vmem>>, vector<1x256xf32>
    %95 = vector.broadcast %94 : vector<1x256xf32> to vector<16x256xf32>
    %96 = arith.addf %93, %95 : vector<16x256xf32>
    %cst_80 = arith.constant 0.000000e+00 : f32
    %97 = vector.broadcast %cst_80 : f32 to vector<16x256xf32>
    %98 = arith.maximumf %96, %97 : vector<16x256xf32>
    %99 = arith.truncf %98 : vector<16x256xf32> to vector<16x256xbf16>
    %c0_81 = arith.constant 0 : index
    %c0_82 = arith.constant 0 : index
    %100 = vector.load %arg17[%c0_81, %c0_82] : memref<256x128xbf16, #tpu.memory_space<vmem>>, vector<256x128xbf16>
    %cst_83 = arith.constant dense<0.000000e+00> : vector<16x128xf32>
    %101 = tpu.matmul %99, %100, %cst_83 {dimension_numbers = #tpu.dot_dimension_numbers<[1], [0], [0], [1], [0, 0, 1, 1], [], []>} : vector<16x256xbf16>, vector<256x128xbf16>, vector<16x128xf32> -> vector<16x128xf32>
    %c0_84 = arith.constant 0 : index
    %c0_85 = arith.constant 0 : index
    %102 = vector.load %arg18[%c0_84, %c0_85] : memref<1x128xf32, #tpu.memory_space<vmem>>, vector<1x128xf32>
    %103 = vector.broadcast %102 : vector<1x128xf32> to vector<16x128xf32>
    %104 = arith.addf %101, %103 : vector<16x128xf32>
    %c0_86 = arith.constant 0 : index
    %c0_87 = arith.constant 0 : index
    %c0_88 = arith.constant 0 : index
    %105 = vector.load %arg19[%c0_86, %c0_87, %c0_88] : memref<4x16x128xf32, #tpu.memory_space<vmem>>, vector<1x16x128xf32>
    %106 = vector.shape_cast %105 : vector<1x16x128xf32> to vector<16x128xf32>
    %107 = vector.shape_cast %104 : vector<16x128xf32> to vector<1x16x128xf32>
    tpu.vector_store %arg19[%c0_86, %c0_87, %c0_88], %107 {strides = array<i32>} : memref<4x16x128xf32, #tpu.memory_space<vmem>>, vector<1x16x128xf32>,
    %c1_89 = arith.constant 1 : index
    %c0_90 = arith.constant 0 : index
    %c0_91 = arith.constant 0 : index
    %108 = vector.load %arg1[%c1_89, %c0_90, %c0_91] : memref<4x128x64xbf16, #tpu.memory_space<vmem>>, vector<1x128x64xbf16>
    %109 = vector.shape_cast %108 : vector<1x128x64xbf16> to vector<128x64xbf16>
    %c0_92 = arith.constant 0 : index
    %c0_93 = arith.constant 0 : index
    %110 = vector.load %arg6[%c0_92, %c0_93] : memref<64x128xbf16, #tpu.memory_space<vmem>>, vector<64x128xbf16>
    %c0_94 = arith.constant 0 : index
    %c0_95 = arith.constant 0 : index
    %111 = vector.load %arg7[%c0_94, %c0_95] : memref<1x128xf32, #tpu.memory_space<vmem>>, vector<1x128xf32>
    %cst_96 = arith.constant dense<0.000000e+00> : vector<128x128xf32>
    %112 = tpu.matmul %109, %110, %cst_96 {dimension_numbers = #tpu.dot_dimension_numbers<[1], [0], [0], [1], [0, 0, 1, 1], [], []>} : vector<128x64xbf16>, vector<64x128xbf16>, vector<128x128xf32> -> vector<128x128xf32>
    %113 = vector.broadcast %111 : vector<1x128xf32> to vector<128x128xf32>
    %114 = arith.addf %112, %113 : vector<128x128xf32>
    %c1_97 = arith.constant 1 : index
    %c0_98 = arith.constant 0 : index
    %c0_99 = arith.constant 0 : index
    %115 = vector.load %arg2[%c1_97, %c0_98, %c0_99] : memref<4x128x128xbf16, #tpu.memory_space<vmem>>, vector<1x128x128xbf16>
    %116 = vector.shape_cast %115 : vector<1x128x128xbf16> to vector<128x128xbf16>
    %117 = arith.truncf %114 : vector<128x128xf32> to vector<128x128xbf16>
    %cst_100 = arith.constant dense<0.000000e+00> : vector<128x128xf32>
    %118 = tpu.matmul %116, %117, %cst_100 {dimension_numbers = #tpu.dot_dimension_numbers<[1], [0], [0], [1], [0, 0, 1, 1], [], []>} : vector<128x128xbf16>, vector<128x128xbf16>, vector<128x128xf32> -> vector<128x128xf32>
    %cst_101 = arith.constant 0.000000e+00 : f32
    %119 = vector.broadcast %cst_101 : f32 to vector<128x128xf32>
    %120 = arith.maximumf %118, %119 : vector<128x128xf32>
    %121 = arith.truncf %120 : vector<128x128xf32> to vector<128x128xbf16>
    %c0_102 = arith.constant 0 : index
    %c0_103 = arith.constant 0 : index
    %c0_104 = arith.constant 0 : index
    %122 = vector.load %arg8[%c0_102, %c0_103, %c0_104] : memref<3x128x128xbf16, #tpu.memory_space<vmem>>, vector<1x128x128xbf16>
    %123 = vector.shape_cast %122 : vector<1x128x128xbf16> to vector<128x128xbf16>
    %c0_105 = arith.constant 0 : index
    %c0_106 = arith.constant 0 : index
    %c0_107 = arith.constant 0 : index
    %124 = vector.load %arg9[%c0_105, %c0_106, %c0_107] : memref<3x1x128xf32, #tpu.memory_space<vmem>>, vector<1x1x128xf32>
    %125 = vector.shape_cast %124 : vector<1x1x128xf32> to vector<1x128xf32>
    %cst_108 = arith.constant dense<0.000000e+00> : vector<128x128xf32>
    %126 = tpu.matmul %121, %123, %cst_108 {dimension_numbers = #tpu.dot_dimension_numbers<[1], [0], [0], [1], [0, 0, 1, 1], [], []>} : vector<128x128xbf16>, vector<128x128xbf16>, vector<128x128xf32> -> vector<128x128xf32>
    %127 = vector.broadcast %125 : vector<1x128xf32> to vector<128x128xf32>
    %128 = arith.addf %126, %127 : vector<128x128xf32>
    %c1_109 = arith.constant 1 : index
    %c0_110 = arith.constant 0 : index
    %c0_111 = arith.constant 0 : index
    %129 = vector.load %arg2[%c1_109, %c0_110, %c0_111] : memref<4x128x128xbf16, #tpu.memory_space<vmem>>, vector<1x128x128xbf16>
    %130 = vector.shape_cast %129 : vector<1x128x128xbf16> to vector<128x128xbf16>
    %131 = arith.truncf %128 : vector<128x128xf32> to vector<128x128xbf16>
    %cst_112 = arith.constant dense<0.000000e+00> : vector<128x128xf32>
    %132 = tpu.matmul %130, %131, %cst_112 {dimension_numbers = #tpu.dot_dimension_numbers<[1], [0], [0], [1], [0, 0, 1, 1], [], []>} : vector<128x128xbf16>, vector<128x128xbf16>, vector<128x128xf32> -> vector<128x128xf32>
    %cst_113 = arith.constant 0.000000e+00 : f32
    %133 = vector.broadcast %cst_113 : f32 to vector<128x128xf32>
    %134 = arith.maximumf %132, %133 : vector<128x128xf32>
    %135 = arith.truncf %134 : vector<128x128xf32> to vector<128x128xbf16>
    %c1_114 = arith.constant 1 : index
    %c0_115 = arith.constant 0 : index
    %c0_116 = arith.constant 0 : index
    %136 = vector.load %arg8[%c1_114, %c0_115, %c0_116] : memref<3x128x128xbf16, #tpu.memory_space<vmem>>, vector<1x128x128xbf16>
    %137 = vector.shape_cast %136 : vector<1x128x128xbf16> to vector<128x128xbf16>
    %c1_117 = arith.constant 1 : index
    %c0_118 = arith.constant 0 : index
    %c0_119 = arith.constant 0 : index
    %138 = vector.load %arg9[%c1_117, %c0_118, %c0_119] : memref<3x1x128xf32, #tpu.memory_space<vmem>>, vector<1x1x128xf32>
    %139 = vector.shape_cast %138 : vector<1x1x128xf32> to vector<1x128xf32>
    %cst_120 = arith.constant dense<0.000000e+00> : vector<128x128xf32>
    %140 = tpu.matmul %135, %137, %cst_120 {dimension_numbers = #tpu.dot_dimension_numbers<[1], [0], [0], [1], [0, 0, 1, 1], [], []>} : vector<128x128xbf16>, vector<128x128xbf16>, vector<128x128xf32> -> vector<128x128xf32>
    %141 = vector.broadcast %139 : vector<1x128xf32> to vector<128x128xf32>
    %142 = arith.addf %140, %141 : vector<128x128xf32>
    %c1_121 = arith.constant 1 : index
    %c0_122 = arith.constant 0 : index
    %c0_123 = arith.constant 0 : index
    %143 = vector.load %arg2[%c1_121, %c0_122, %c0_123] : memref<4x128x128xbf16, #tpu.memory_space<vmem>>, vector<1x128x128xbf16>
    %144 = vector.shape_cast %143 : vector<1x128x128xbf16> to vector<128x128xbf16>
    %145 = arith.truncf %142 : vector<128x128xf32> to vector<128x128xbf16>
    %cst_124 = arith.constant dense<0.000000e+00> : vector<128x128xf32>
    %146 = tpu.matmul %144, %145, %cst_124 {dimension_numbers = #tpu.dot_dimension_numbers<[1], [0], [0], [1], [0, 0, 1, 1], [], []>} : vector<128x128xbf16>, vector<128x128xbf16>, vector<128x128xf32> -> vector<128x128xf32>
    %cst_125 = arith.constant 0.000000e+00 : f32
    %147 = vector.broadcast %cst_125 : f32 to vector<128x128xf32>
    %148 = arith.maximumf %146, %147 : vector<128x128xf32>
    %149 = arith.truncf %148 : vector<128x128xf32> to vector<128x128xbf16>
    %c2_126 = arith.constant 2 : index
    %c0_127 = arith.constant 0 : index
    %c0_128 = arith.constant 0 : index
    %150 = vector.load %arg8[%c2_126, %c0_127, %c0_128] : memref<3x128x128xbf16, #tpu.memory_space<vmem>>, vector<1x128x128xbf16>
    %151 = vector.shape_cast %150 : vector<1x128x128xbf16> to vector<128x128xbf16>
    %c2_129 = arith.constant 2 : index
    %c0_130 = arith.constant 0 : index
    %c0_131 = arith.constant 0 : index
    %152 = vector.load %arg9[%c2_129, %c0_130, %c0_131] : memref<3x1x128xf32, #tpu.memory_space<vmem>>, vector<1x1x128xf32>
    %153 = vector.shape_cast %152 : vector<1x1x128xf32> to vector<1x128xf32>
    %cst_132 = arith.constant dense<0.000000e+00> : vector<128x128xf32>
    %154 = tpu.matmul %149, %151, %cst_132 {dimension_numbers = #tpu.dot_dimension_numbers<[1], [0], [0], [1], [0, 0, 1, 1], [], []>} : vector<128x128xbf16>, vector<128x128xbf16>, vector<128x128xf32> -> vector<128x128xf32>
    %155 = vector.broadcast %153 : vector<1x128xf32> to vector<128x128xf32>
    %156 = arith.addf %154, %155 : vector<128x128xf32>
    %c1_133 = arith.constant 1 : index
    %c0_134 = arith.constant 0 : index
    %c0_135 = arith.constant 0 : index
    %157 = vector.load %arg2[%c1_133, %c0_134, %c0_135] : memref<4x128x128xbf16, #tpu.memory_space<vmem>>, vector<1x128x128xbf16>
    %158 = vector.shape_cast %157 : vector<1x128x128xbf16> to vector<128x128xbf16>
    %159 = arith.truncf %156 : vector<128x128xf32> to vector<128x128xbf16>
    %cst_136 = arith.constant dense<0.000000e+00> : vector<128x128xf32>
    %160 = tpu.matmul %158, %159, %cst_136 {dimension_numbers = #tpu.dot_dimension_numbers<[1], [0], [0], [1], [0, 0, 1, 1], [], []>} : vector<128x128xbf16>, vector<128x128xbf16>, vector<128x128xf32> -> vector<128x128xf32>
    %c1_137 = arith.constant 1 : index
    %c0_138 = arith.constant 0 : index
    %c0_139 = arith.constant 0 : index
    %161 = vector.load %arg3[%c1_137, %c0_138, %c0_139] : memref<4x64x128xbf16, #tpu.memory_space<vmem>>, vector<1x64x128xbf16>
    %162 = vector.shape_cast %161 : vector<1x64x128xbf16> to vector<64x128xbf16>
    %163 = arith.truncf %160 : vector<128x128xf32> to vector<128x128xbf16>
    %cst_140 = arith.constant dense<0.000000e+00> : vector<64x128xf32>
    %164 = tpu.matmul %162, %163, %cst_140 {dimension_numbers = #tpu.dot_dimension_numbers<[1], [0], [0], [1], [0, 0, 1, 1], [], []>} : vector<64x128xbf16>, vector<128x128xbf16>, vector<64x128xf32> -> vector<64x128xf32>
    %165 = arith.truncf %164 : vector<64x128xf32> to vector<64x128xbf16>
    %c3_141 = arith.constant 3 : index
    %c0_142 = arith.constant 0 : index
    %c0_143 = arith.constant 0 : index
    %166 = vector.load %arg10[%c3_141, %c0_142, %c0_143] : memref<4x128x256xbf16, #tpu.memory_space<vmem>>, vector<1x128x256xbf16>
    %167 = vector.shape_cast %166 : vector<1x128x256xbf16> to vector<128x256xbf16>
    %cst_144 = arith.constant dense<0.000000e+00> : vector<64x256xf32>
    %168 = tpu.matmul %165, %167, %cst_144 {dimension_numbers = #tpu.dot_dimension_numbers<[1], [0], [0], [1], [0, 0, 1, 1], [], []>} : vector<64x128xbf16>, vector<128x256xbf16>, vector<64x256xf32> -> vector<64x256xf32>
    %c3_145 = arith.constant 3 : index
    %c0_146 = arith.constant 0 : index
    %c0_147 = arith.constant 0 : index
    %169 = vector.load %arg11[%c3_145, %c0_146, %c0_147] : memref<4x1x256xf32, #tpu.memory_space<vmem>>, vector<1x1x256xf32>
    %170 = vector.shape_cast %169 : vector<1x1x256xf32> to vector<1x256xf32>
    %171 = vector.broadcast %170 : vector<1x256xf32> to vector<64x256xf32>
    %172 = arith.addf %168, %171 : vector<64x256xf32>
    %cst_148 = arith.constant 0.000000e+00 : f32
    %173 = vector.broadcast %cst_148 : f32 to vector<64x256xf32>
    %174 = arith.maximumf %172, %173 : vector<64x256xf32>
    %175 = arith.truncf %174 : vector<64x256xf32> to vector<64x256xbf16>
    %c3_149 = arith.constant 3 : index
    %c0_150 = arith.constant 0 : index
    %c0_151 = arith.constant 0 : index
    %176 = vector.load %arg12[%c3_149, %c0_150, %c0_151] : memref<4x256x128xbf16, #tpu.memory_space<vmem>>, vector<1x256x128xbf16>
    %177 = vector.shape_cast %176 : vector<1x256x128xbf16> to vector<256x128xbf16>
    %cst_152 = arith.constant dense<0.000000e+00> : vector<64x128xf32>
    %178 = tpu.matmul %175, %177, %cst_152 {dimension_numbers = #tpu.dot_dimension_numbers<[1], [0], [0], [1], [0, 0, 1, 1], [], []>} : vector<64x256xbf16>, vector<256x128xbf16>, vector<64x128xf32> -> vector<64x128xf32>
    %c3_153 = arith.constant 3 : index
    %c0_154 = arith.constant 0 : index
    %c0_155 = arith.constant 0 : index
    %179 = vector.load %arg13[%c3_153, %c0_154, %c0_155] : memref<4x1x128xf32, #tpu.memory_space<vmem>>, vector<1x1x128xf32>
    %180 = vector.shape_cast %179 : vector<1x1x128xf32> to vector<1x128xf32>
    %181 = vector.broadcast %180 : vector<1x128xf32> to vector<64x128xf32>
    %182 = arith.addf %178, %181 : vector<64x128xf32>
    %cst_156 = arith.constant 0.000000e+00 : f32
    %183 = vector.broadcast %cst_156 : f32 to vector<128x128xf32>
    %184 = arith.maximumf %160, %183 : vector<128x128xf32>
    %185 = arith.truncf %184 : vector<128x128xf32> to vector<128x128xbf16>
    %cst_157 = arith.constant 0.000000e+00 : f32
    %186 = vector.broadcast %cst_157 : f32 to vector<64x128xf32>
    %187 = arith.maximumf %182, %186 : vector<64x128xf32>
    %188 = arith.truncf %187 : vector<64x128xf32> to vector<64x128xbf16>
    %c1_158 = arith.constant 1 : index
    %c0_159 = arith.constant 0 : index
    %c0_160 = arith.constant 0 : index
    %189 = vector.load %arg4[%c1_158, %c0_159, %c0_160] : memref<4x16x128xbf16, #tpu.memory_space<vmem>>, vector<1x16x128xbf16>
    %190 = vector.shape_cast %189 : vector<1x16x128xbf16> to vector<16x128xbf16>
    %cst_161 = arith.constant dense<0.000000e+00> : vector<16x128xf32>
    %191 = tpu.matmul %190, %185, %cst_161 {dimension_numbers = #tpu.dot_dimension_numbers<[1], [0], [0], [1], [0, 0, 1, 1], [], []>} : vector<16x128xbf16>, vector<128x128xbf16>, vector<16x128xf32> -> vector<16x128xf32>
    %c1_162 = arith.constant 1 : index
    %c0_163 = arith.constant 0 : index
    %c0_164 = arith.constant 0 : index
    %192 = vector.load %arg5[%c1_162, %c0_163, %c0_164] : memref<4x16x64xbf16, #tpu.memory_space<vmem>>, vector<1x16x64xbf16>
    %193 = vector.shape_cast %192 : vector<1x16x64xbf16> to vector<16x64xbf16>
    %cst_165 = arith.constant dense<0.000000e+00> : vector<16x128xf32>
    %194 = tpu.matmul %193, %188, %cst_165 {dimension_numbers = #tpu.dot_dimension_numbers<[1], [0], [0], [1], [0, 0, 1, 1], [], []>} : vector<16x64xbf16>, vector<64x128xbf16>, vector<16x128xf32> -> vector<16x128xf32>
    %195 = arith.truncf %191 : vector<16x128xf32> to vector<16x128xbf16>
    %c0_166 = arith.constant 0 : index
    %c0_167 = arith.constant 0 : index
    %196 = vector.load %arg14[%c0_166, %c0_167] : memref<128x256xbf16, #tpu.memory_space<vmem>>, vector<128x256xbf16>
    %cst_168 = arith.constant dense<0.000000e+00> : vector<16x256xf32>
    %197 = tpu.matmul %195, %196, %cst_168 {dimension_numbers = #tpu.dot_dimension_numbers<[1], [0], [0], [1], [0, 0, 1, 1], [], []>} : vector<16x128xbf16>, vector<128x256xbf16>, vector<16x256xf32> -> vector<16x256xf32>
    %198 = arith.truncf %194 : vector<16x128xf32> to vector<16x128xbf16>
    %c0_169 = arith.constant 0 : index
    %c0_170 = arith.constant 0 : index
    %199 = vector.load %arg15[%c0_169, %c0_170] : memref<128x256xbf16, #tpu.memory_space<vmem>>, vector<128x256xbf16>
    %cst_171 = arith.constant dense<0.000000e+00> : vector<16x256xf32>
    %200 = tpu.matmul %198, %199, %cst_171 {dimension_numbers = #tpu.dot_dimension_numbers<[1], [0], [0], [1], [0, 0, 1, 1], [], []>} : vector<16x128xbf16>, vector<128x256xbf16>, vector<16x256xf32> -> vector<16x256xf32>
    %201 = arith.addf %197, %200 : vector<16x256xf32>
    %c0_172 = arith.constant 0 : index
    %c0_173 = arith.constant 0 : index
    %202 = vector.load %arg16[%c0_172, %c0_173] : memref<1x256xf32, #tpu.memory_space<vmem>>, vector<1x256xf32>
    %203 = vector.broadcast %202 : vector<1x256xf32> to vector<16x256xf32>
    %204 = arith.addf %201, %203 : vector<16x256xf32>
    %cst_174 = arith.constant 0.000000e+00 : f32
    %205 = vector.broadcast %cst_174 : f32 to vector<16x256xf32>
    %206 = arith.maximumf %204, %205 : vector<16x256xf32>
    %207 = arith.truncf %206 : vector<16x256xf32> to vector<16x256xbf16>
    %c0_175 = arith.constant 0 : index
    %c0_176 = arith.constant 0 : index
    %208 = vector.load %arg17[%c0_175, %c0_176] : memref<256x128xbf16, #tpu.memory_space<vmem>>, vector<256x128xbf16>
    %cst_177 = arith.constant dense<0.000000e+00> : vector<16x128xf32>
    %209 = tpu.matmul %207, %208, %cst_177 {dimension_numbers = #tpu.dot_dimension_numbers<[1], [0], [0], [1], [0, 0, 1, 1], [], []>} : vector<16x256xbf16>, vector<256x128xbf16>, vector<16x128xf32> -> vector<16x128xf32>
    %c0_178 = arith.constant 0 : index
    %c0_179 = arith.constant 0 : index
    %210 = vector.load %arg18[%c0_178, %c0_179] : memref<1x128xf32, #tpu.memory_space<vmem>>, vector<1x128xf32>
    %211 = vector.broadcast %210 : vector<1x128xf32> to vector<16x128xf32>
    %212 = arith.addf %209, %211 : vector<16x128xf32>
    %c1_180 = arith.constant 1 : index
    %c0_181 = arith.constant 0 : index
    %c0_182 = arith.constant 0 : index
    %213 = vector.load %arg19[%c1_180, %c0_181, %c0_182] : memref<4x16x128xf32, #tpu.memory_space<vmem>>, vector<1x16x128xf32>
    %214 = vector.shape_cast %213 : vector<1x16x128xf32> to vector<16x128xf32>
    %215 = vector.shape_cast %212 : vector<16x128xf32> to vector<1x16x128xf32>
    tpu.vector_store %arg19[%c1_180, %c0_181, %c0_182], %215 {strides = array<i32>} : memref<4x16x128xf32, #tpu.memory_space<vmem>>, vector<1x16x128xf32>,
    %c2_183 = arith.constant 2 : index
    %c0_184 = arith.constant 0 : index
    %c0_185 = arith.constant 0 : index
    %216 = vector.load %arg1[%c2_183, %c0_184, %c0_185] : memref<4x128x64xbf16, #tpu.memory_space<vmem>>, vector<1x128x64xbf16>
    %217 = vector.shape_cast %216 : vector<1x128x64xbf16> to vector<128x64xbf16>
    %c0_186 = arith.constant 0 : index
    %c0_187 = arith.constant 0 : index
    %218 = vector.load %arg6[%c0_186, %c0_187] : memref<64x128xbf16, #tpu.memory_space<vmem>>, vector<64x128xbf16>
    %c0_188 = arith.constant 0 : index
    %c0_189 = arith.constant 0 : index
    %219 = vector.load %arg7[%c0_188, %c0_189] : memref<1x128xf32, #tpu.memory_space<vmem>>, vector<1x128xf32>
    %cst_190 = arith.constant dense<0.000000e+00> : vector<128x128xf32>
    %220 = tpu.matmul %217, %218, %cst_190 {dimension_numbers = #tpu.dot_dimension_numbers<[1], [0], [0], [1], [0, 0, 1, 1], [], []>} : vector<128x64xbf16>, vector<64x128xbf16>, vector<128x128xf32> -> vector<128x128xf32>
    %221 = vector.broadcast %219 : vector<1x128xf32> to vector<128x128xf32>
    %222 = arith.addf %220, %221 : vector<128x128xf32>
    %c2_191 = arith.constant 2 : index
    %c0_192 = arith.constant 0 : index
    %c0_193 = arith.constant 0 : index
    %223 = vector.load %arg2[%c2_191, %c0_192, %c0_193] : memref<4x128x128xbf16, #tpu.memory_space<vmem>>, vector<1x128x128xbf16>
    %224 = vector.shape_cast %223 : vector<1x128x128xbf16> to vector<128x128xbf16>
    %225 = arith.truncf %222 : vector<128x128xf32> to vector<128x128xbf16>
    %cst_194 = arith.constant dense<0.000000e+00> : vector<128x128xf32>
    %226 = tpu.matmul %224, %225, %cst_194 {dimension_numbers = #tpu.dot_dimension_numbers<[1], [0], [0], [1], [0, 0, 1, 1], [], []>} : vector<128x128xbf16>, vector<128x128xbf16>, vector<128x128xf32> -> vector<128x128xf32>
    %cst_195 = arith.constant 0.000000e+00 : f32
    %227 = vector.broadcast %cst_195 : f32 to vector<128x128xf32>
    %228 = arith.maximumf %226, %227 : vector<128x128xf32>
    %229 = arith.truncf %228 : vector<128x128xf32> to vector<128x128xbf16>
    %c0_196 = arith.constant 0 : index
    %c0_197 = arith.constant 0 : index
    %c0_198 = arith.constant 0 : index
    %230 = vector.load %arg8[%c0_196, %c0_197, %c0_198] : memref<3x128x128xbf16, #tpu.memory_space<vmem>>, vector<1x128x128xbf16>
    %231 = vector.shape_cast %230 : vector<1x128x128xbf16> to vector<128x128xbf16>
    %c0_199 = arith.constant 0 : index
    %c0_200 = arith.constant 0 : index
    %c0_201 = arith.constant 0 : index
    %232 = vector.load %arg9[%c0_199, %c0_200, %c0_201] : memref<3x1x128xf32, #tpu.memory_space<vmem>>, vector<1x1x128xf32>
    %233 = vector.shape_cast %232 : vector<1x1x128xf32> to vector<1x128xf32>
    %cst_202 = arith.constant dense<0.000000e+00> : vector<128x128xf32>
    %234 = tpu.matmul %229, %231, %cst_202 {dimension_numbers = #tpu.dot_dimension_numbers<[1], [0], [0], [1], [0, 0, 1, 1], [], []>} : vector<128x128xbf16>, vector<128x128xbf16>, vector<128x128xf32> -> vector<128x128xf32>
    %235 = vector.broadcast %233 : vector<1x128xf32> to vector<128x128xf32>
    %236 = arith.addf %234, %235 : vector<128x128xf32>
    %c2_203 = arith.constant 2 : index
    %c0_204 = arith.constant 0 : index
    %c0_205 = arith.constant 0 : index
    %237 = vector.load %arg2[%c2_203, %c0_204, %c0_205] : memref<4x128x128xbf16, #tpu.memory_space<vmem>>, vector<1x128x128xbf16>
    %238 = vector.shape_cast %237 : vector<1x128x128xbf16> to vector<128x128xbf16>
    %239 = arith.truncf %236 : vector<128x128xf32> to vector<128x128xbf16>
    %cst_206 = arith.constant dense<0.000000e+00> : vector<128x128xf32>
    %240 = tpu.matmul %238, %239, %cst_206 {dimension_numbers = #tpu.dot_dimension_numbers<[1], [0], [0], [1], [0, 0, 1, 1], [], []>} : vector<128x128xbf16>, vector<128x128xbf16>, vector<128x128xf32> -> vector<128x128xf32>
    %cst_207 = arith.constant 0.000000e+00 : f32
    %241 = vector.broadcast %cst_207 : f32 to vector<128x128xf32>
    %242 = arith.maximumf %240, %241 : vector<128x128xf32>
    %243 = arith.truncf %242 : vector<128x128xf32> to vector<128x128xbf16>
    %c1_208 = arith.constant 1 : index
    %c0_209 = arith.constant 0 : index
    %c0_210 = arith.constant 0 : index
    %244 = vector.load %arg8[%c1_208, %c0_209, %c0_210] : memref<3x128x128xbf16, #tpu.memory_space<vmem>>, vector<1x128x128xbf16>
    %245 = vector.shape_cast %244 : vector<1x128x128xbf16> to vector<128x128xbf16>
    %c1_211 = arith.constant 1 : index
    %c0_212 = arith.constant 0 : index
    %c0_213 = arith.constant 0 : index
    %246 = vector.load %arg9[%c1_211, %c0_212, %c0_213] : memref<3x1x128xf32, #tpu.memory_space<vmem>>, vector<1x1x128xf32>
    %247 = vector.shape_cast %246 : vector<1x1x128xf32> to vector<1x128xf32>
    %cst_214 = arith.constant dense<0.000000e+00> : vector<128x128xf32>
    %248 = tpu.matmul %243, %245, %cst_214 {dimension_numbers = #tpu.dot_dimension_numbers<[1], [0], [0], [1], [0, 0, 1, 1], [], []>} : vector<128x128xbf16>, vector<128x128xbf16>, vector<128x128xf32> -> vector<128x128xf32>
    %249 = vector.broadcast %247 : vector<1x128xf32> to vector<128x128xf32>
    %250 = arith.addf %248, %249 : vector<128x128xf32>
    %c2_215 = arith.constant 2 : index
    %c0_216 = arith.constant 0 : index
    %c0_217 = arith.constant 0 : index
    %251 = vector.load %arg2[%c2_215, %c0_216, %c0_217] : memref<4x128x128xbf16, #tpu.memory_space<vmem>>, vector<1x128x128xbf16>
    %252 = vector.shape_cast %251 : vector<1x128x128xbf16> to vector<128x128xbf16>
    %253 = arith.truncf %250 : vector<128x128xf32> to vector<128x128xbf16>
    %cst_218 = arith.constant dense<0.000000e+00> : vector<128x128xf32>
    %254 = tpu.matmul %252, %253, %cst_218 {dimension_numbers = #tpu.dot_dimension_numbers<[1], [0], [0], [1], [0, 0, 1, 1], [], []>} : vector<128x128xbf16>, vector<128x128xbf16>, vector<128x128xf32> -> vector<128x128xf32>
    %cst_219 = arith.constant 0.000000e+00 : f32
    %255 = vector.broadcast %cst_219 : f32 to vector<128x128xf32>
    %256 = arith.maximumf %254, %255 : vector<128x128xf32>
    %257 = arith.truncf %256 : vector<128x128xf32> to vector<128x128xbf16>
    %c2_220 = arith.constant 2 : index
    %c0_221 = arith.constant 0 : index
    %c0_222 = arith.constant 0 : index
    %258 = vector.load %arg8[%c2_220, %c0_221, %c0_222] : memref<3x128x128xbf16, #tpu.memory_space<vmem>>, vector<1x128x128xbf16>
    %259 = vector.shape_cast %258 : vector<1x128x128xbf16> to vector<128x128xbf16>
    %c2_223 = arith.constant 2 : index
    %c0_224 = arith.constant 0 : index
    %c0_225 = arith.constant 0 : index
    %260 = vector.load %arg9[%c2_223, %c0_224, %c0_225] : memref<3x1x128xf32, #tpu.memory_space<vmem>>, vector<1x1x128xf32>
    %261 = vector.shape_cast %260 : vector<1x1x128xf32> to vector<1x128xf32>
    %cst_226 = arith.constant dense<0.000000e+00> : vector<128x128xf32>
    %262 = tpu.matmul %257, %259, %cst_226 {dimension_numbers = #tpu.dot_dimension_numbers<[1], [0], [0], [1], [0, 0, 1, 1], [], []>} : vector<128x128xbf16>, vector<128x128xbf16>, vector<128x128xf32> -> vector<128x128xf32>
    %263 = vector.broadcast %261 : vector<1x128xf32> to vector<128x128xf32>
    %264 = arith.addf %262, %263 : vector<128x128xf32>
    %c2_227 = arith.constant 2 : index
    %c0_228 = arith.constant 0 : index
    %c0_229 = arith.constant 0 : index
    %265 = vector.load %arg2[%c2_227, %c0_228, %c0_229] : memref<4x128x128xbf16, #tpu.memory_space<vmem>>, vector<1x128x128xbf16>
    %266 = vector.shape_cast %265 : vector<1x128x128xbf16> to vector<128x128xbf16>
    %267 = arith.truncf %264 : vector<128x128xf32> to vector<128x128xbf16>
    %cst_230 = arith.constant dense<0.000000e+00> : vector<128x128xf32>
    %268 = tpu.matmul %266, %267, %cst_230 {dimension_numbers = #tpu.dot_dimension_numbers<[1], [0], [0], [1], [0, 0, 1, 1], [], []>} : vector<128x128xbf16>, vector<128x128xbf16>, vector<128x128xf32> -> vector<128x128xf32>
    %c2_231 = arith.constant 2 : index
    %c0_232 = arith.constant 0 : index
    %c0_233 = arith.constant 0 : index
    %269 = vector.load %arg3[%c2_231, %c0_232, %c0_233] : memref<4x64x128xbf16, #tpu.memory_space<vmem>>, vector<1x64x128xbf16>
    %270 = vector.shape_cast %269 : vector<1x64x128xbf16> to vector<64x128xbf16>
    %271 = arith.truncf %268 : vector<128x128xf32> to vector<128x128xbf16>
    %cst_234 = arith.constant dense<0.000000e+00> : vector<64x128xf32>
    %272 = tpu.matmul %270, %271, %cst_234 {dimension_numbers = #tpu.dot_dimension_numbers<[1], [0], [0], [1], [0, 0, 1, 1], [], []>} : vector<64x128xbf16>, vector<128x128xbf16>, vector<64x128xf32> -> vector<64x128xf32>
    %273 = arith.truncf %272 : vector<64x128xf32> to vector<64x128xbf16>
    %c3_235 = arith.constant 3 : index
    %c0_236 = arith.constant 0 : index
    %c0_237 = arith.constant 0 : index
    %274 = vector.load %arg10[%c3_235, %c0_236, %c0_237] : memref<4x128x256xbf16, #tpu.memory_space<vmem>>, vector<1x128x256xbf16>
    %275 = vector.shape_cast %274 : vector<1x128x256xbf16> to vector<128x256xbf16>
    %cst_238 = arith.constant dense<0.000000e+00> : vector<64x256xf32>
    %276 = tpu.matmul %273, %275, %cst_238 {dimension_numbers = #tpu.dot_dimension_numbers<[1], [0], [0], [1], [0, 0, 1, 1], [], []>} : vector<64x128xbf16>, vector<128x256xbf16>, vector<64x256xf32> -> vector<64x256xf32>
    %c3_239 = arith.constant 3 : index
    %c0_240 = arith.constant 0 : index
    %c0_241 = arith.constant 0 : index
    %277 = vector.load %arg11[%c3_239, %c0_240, %c0_241] : memref<4x1x256xf32, #tpu.memory_space<vmem>>, vector<1x1x256xf32>
    %278 = vector.shape_cast %277 : vector<1x1x256xf32> to vector<1x256xf32>
    %279 = vector.broadcast %278 : vector<1x256xf32> to vector<64x256xf32>
    %280 = arith.addf %276, %279 : vector<64x256xf32>
    %cst_242 = arith.constant 0.000000e+00 : f32
    %281 = vector.broadcast %cst_242 : f32 to vector<64x256xf32>
    %282 = arith.maximumf %280, %281 : vector<64x256xf32>
    %283 = arith.truncf %282 : vector<64x256xf32> to vector<64x256xbf16>
    %c3_243 = arith.constant 3 : index
    %c0_244 = arith.constant 0 : index
    %c0_245 = arith.constant 0 : index
    %284 = vector.load %arg12[%c3_243, %c0_244, %c0_245] : memref<4x256x128xbf16, #tpu.memory_space<vmem>>, vector<1x256x128xbf16>
    %285 = vector.shape_cast %284 : vector<1x256x128xbf16> to vector<256x128xbf16>
    %cst_246 = arith.constant dense<0.000000e+00> : vector<64x128xf32>
    %286 = tpu.matmul %283, %285, %cst_246 {dimension_numbers = #tpu.dot_dimension_numbers<[1], [0], [0], [1], [0, 0, 1, 1], [], []>} : vector<64x256xbf16>, vector<256x128xbf16>, vector<64x128xf32> -> vector<64x128xf32>
    %c3_247 = arith.constant 3 : index
    %c0_248 = arith.constant 0 : index
    %c0_249 = arith.constant 0 : index
    %287 = vector.load %arg13[%c3_247, %c0_248, %c0_249] : memref<4x1x128xf32, #tpu.memory_space<vmem>>, vector<1x1x128xf32>
    %288 = vector.shape_cast %287 : vector<1x1x128xf32> to vector<1x128xf32>
    %289 = vector.broadcast %288 : vector<1x128xf32> to vector<64x128xf32>
    %290 = arith.addf %286, %289 : vector<64x128xf32>
    %cst_250 = arith.constant 0.000000e+00 : f32
    %291 = vector.broadcast %cst_250 : f32 to vector<128x128xf32>
    %292 = arith.maximumf %268, %291 : vector<128x128xf32>
    %293 = arith.truncf %292 : vector<128x128xf32> to vector<128x128xbf16>
    %cst_251 = arith.constant 0.000000e+00 : f32
    %294 = vector.broadcast %cst_251 : f32 to vector<64x128xf32>
    %295 = arith.maximumf %290, %294 : vector<64x128xf32>
    %296 = arith.truncf %295 : vector<64x128xf32> to vector<64x128xbf16>
    %c2_252 = arith.constant 2 : index
    %c0_253 = arith.constant 0 : index
    %c0_254 = arith.constant 0 : index
    %297 = vector.load %arg4[%c2_252, %c0_253, %c0_254] : memref<4x16x128xbf16, #tpu.memory_space<vmem>>, vector<1x16x128xbf16>
    %298 = vector.shape_cast %297 : vector<1x16x128xbf16> to vector<16x128xbf16>
    %cst_255 = arith.constant dense<0.000000e+00> : vector<16x128xf32>
    %299 = tpu.matmul %298, %293, %cst_255 {dimension_numbers = #tpu.dot_dimension_numbers<[1], [0], [0], [1], [0, 0, 1, 1], [], []>} : vector<16x128xbf16>, vector<128x128xbf16>, vector<16x128xf32> -> vector<16x128xf32>
    %c2_256 = arith.constant 2 : index
    %c0_257 = arith.constant 0 : index
    %c0_258 = arith.constant 0 : index
    %300 = vector.load %arg5[%c2_256, %c0_257, %c0_258] : memref<4x16x64xbf16, #tpu.memory_space<vmem>>, vector<1x16x64xbf16>
    %301 = vector.shape_cast %300 : vector<1x16x64xbf16> to vector<16x64xbf16>
    %cst_259 = arith.constant dense<0.000000e+00> : vector<16x128xf32>
    %302 = tpu.matmul %301, %296, %cst_259 {dimension_numbers = #tpu.dot_dimension_numbers<[1], [0], [0], [1], [0, 0, 1, 1], [], []>} : vector<16x64xbf16>, vector<64x128xbf16>, vector<16x128xf32> -> vector<16x128xf32>
    %303 = arith.truncf %299 : vector<16x128xf32> to vector<16x128xbf16>
    %c0_260 = arith.constant 0 : index
    %c0_261 = arith.constant 0 : index
    %304 = vector.load %arg14[%c0_260, %c0_261] : memref<128x256xbf16, #tpu.memory_space<vmem>>, vector<128x256xbf16>
    %cst_262 = arith.constant dense<0.000000e+00> : vector<16x256xf32>
    %305 = tpu.matmul %303, %304, %cst_262 {dimension_numbers = #tpu.dot_dimension_numbers<[1], [0], [0], [1], [0, 0, 1, 1], [], []>} : vector<16x128xbf16>, vector<128x256xbf16>, vector<16x256xf32> -> vector<16x256xf32>
    %306 = arith.truncf %302 : vector<16x128xf32> to vector<16x128xbf16>
    %c0_263 = arith.constant 0 : index
    %c0_264 = arith.constant 0 : index
    %307 = vector.load %arg15[%c0_263, %c0_264] : memref<128x256xbf16, #tpu.memory_space<vmem>>, vector<128x256xbf16>
    %cst_265 = arith.constant dense<0.000000e+00> : vector<16x256xf32>
    %308 = tpu.matmul %306, %307, %cst_265 {dimension_numbers = #tpu.dot_dimension_numbers<[1], [0], [0], [1], [0, 0, 1, 1], [], []>} : vector<16x128xbf16>, vector<128x256xbf16>, vector<16x256xf32> -> vector<16x256xf32>
    %309 = arith.addf %305, %308 : vector<16x256xf32>
    %c0_266 = arith.constant 0 : index
    %c0_267 = arith.constant 0 : index
    %310 = vector.load %arg16[%c0_266, %c0_267] : memref<1x256xf32, #tpu.memory_space<vmem>>, vector<1x256xf32>
    %311 = vector.broadcast %310 : vector<1x256xf32> to vector<16x256xf32>
    %312 = arith.addf %309, %311 : vector<16x256xf32>
    %cst_268 = arith.constant 0.000000e+00 : f32
    %313 = vector.broadcast %cst_268 : f32 to vector<16x256xf32>
    %314 = arith.maximumf %312, %313 : vector<16x256xf32>
    %315 = arith.truncf %314 : vector<16x256xf32> to vector<16x256xbf16>
    %c0_269 = arith.constant 0 : index
    %c0_270 = arith.constant 0 : index
    %316 = vector.load %arg17[%c0_269, %c0_270] : memref<256x128xbf16, #tpu.memory_space<vmem>>, vector<256x128xbf16>
    %cst_271 = arith.constant dense<0.000000e+00> : vector<16x128xf32>
    %317 = tpu.matmul %315, %316, %cst_271 {dimension_numbers = #tpu.dot_dimension_numbers<[1], [0], [0], [1], [0, 0, 1, 1], [], []>} : vector<16x256xbf16>, vector<256x128xbf16>, vector<16x128xf32> -> vector<16x128xf32>
    %c0_272 = arith.constant 0 : index
    %c0_273 = arith.constant 0 : index
    %318 = vector.load %arg18[%c0_272, %c0_273] : memref<1x128xf32, #tpu.memory_space<vmem>>, vector<1x128xf32>
    %319 = vector.broadcast %318 : vector<1x128xf32> to vector<16x128xf32>
    %320 = arith.addf %317, %319 : vector<16x128xf32>
    %c2_274 = arith.constant 2 : index
    %c0_275 = arith.constant 0 : index
    %c0_276 = arith.constant 0 : index
    %321 = vector.load %arg19[%c2_274, %c0_275, %c0_276] : memref<4x16x128xf32, #tpu.memory_space<vmem>>, vector<1x16x128xf32>
    %322 = vector.shape_cast %321 : vector<1x16x128xf32> to vector<16x128xf32>
    %323 = vector.shape_cast %320 : vector<16x128xf32> to vector<1x16x128xf32>
    tpu.vector_store %arg19[%c2_274, %c0_275, %c0_276], %323 {strides = array<i32>} : memref<4x16x128xf32, #tpu.memory_space<vmem>>, vector<1x16x128xf32>,
    %c3_277 = arith.constant 3 : index
    %c0_278 = arith.constant 0 : index
    %c0_279 = arith.constant 0 : index
    %324 = vector.load %arg1[%c3_277, %c0_278, %c0_279] : memref<4x128x64xbf16, #tpu.memory_space<vmem>>, vector<1x128x64xbf16>
    %325 = vector.shape_cast %324 : vector<1x128x64xbf16> to vector<128x64xbf16>
    %c0_280 = arith.constant 0 : index
    %c0_281 = arith.constant 0 : index
    %326 = vector.load %arg6[%c0_280, %c0_281] : memref<64x128xbf16, #tpu.memory_space<vmem>>, vector<64x128xbf16>
    %c0_282 = arith.constant 0 : index
    %c0_283 = arith.constant 0 : index
    %327 = vector.load %arg7[%c0_282, %c0_283] : memref<1x128xf32, #tpu.memory_space<vmem>>, vector<1x128xf32>
    %cst_284 = arith.constant dense<0.000000e+00> : vector<128x128xf32>
    %328 = tpu.matmul %325, %326, %cst_284 {dimension_numbers = #tpu.dot_dimension_numbers<[1], [0], [0], [1], [0, 0, 1, 1], [], []>} : vector<128x64xbf16>, vector<64x128xbf16>, vector<128x128xf32> -> vector<128x128xf32>
    %329 = vector.broadcast %327 : vector<1x128xf32> to vector<128x128xf32>
    %330 = arith.addf %328, %329 : vector<128x128xf32>
    %c3_285 = arith.constant 3 : index
    %c0_286 = arith.constant 0 : index
    %c0_287 = arith.constant 0 : index
    %331 = vector.load %arg2[%c3_285, %c0_286, %c0_287] : memref<4x128x128xbf16, #tpu.memory_space<vmem>>, vector<1x128x128xbf16>
    %332 = vector.shape_cast %331 : vector<1x128x128xbf16> to vector<128x128xbf16>
    %333 = arith.truncf %330 : vector<128x128xf32> to vector<128x128xbf16>
    %cst_288 = arith.constant dense<0.000000e+00> : vector<128x128xf32>
    %334 = tpu.matmul %332, %333, %cst_288 {dimension_numbers = #tpu.dot_dimension_numbers<[1], [0], [0], [1], [0, 0, 1, 1], [], []>} : vector<128x128xbf16>, vector<128x128xbf16>, vector<128x128xf32> -> vector<128x128xf32>
    %cst_289 = arith.constant 0.000000e+00 : f32
    %335 = vector.broadcast %cst_289 : f32 to vector<128x128xf32>
    %336 = arith.maximumf %334, %335 : vector<128x128xf32>
    %337 = arith.truncf %336 : vector<128x128xf32> to vector<128x128xbf16>
    %c0_290 = arith.constant 0 : index
    %c0_291 = arith.constant 0 : index
    %c0_292 = arith.constant 0 : index
    %338 = vector.load %arg8[%c0_290, %c0_291, %c0_292] : memref<3x128x128xbf16, #tpu.memory_space<vmem>>, vector<1x128x128xbf16>
    %339 = vector.shape_cast %338 : vector<1x128x128xbf16> to vector<128x128xbf16>
    %c0_293 = arith.constant 0 : index
    %c0_294 = arith.constant 0 : index
    %c0_295 = arith.constant 0 : index
    %340 = vector.load %arg9[%c0_293, %c0_294, %c0_295] : memref<3x1x128xf32, #tpu.memory_space<vmem>>, vector<1x1x128xf32>
    %341 = vector.shape_cast %340 : vector<1x1x128xf32> to vector<1x128xf32>
    %cst_296 = arith.constant dense<0.000000e+00> : vector<128x128xf32>
    %342 = tpu.matmul %337, %339, %cst_296 {dimension_numbers = #tpu.dot_dimension_numbers<[1], [0], [0], [1], [0, 0, 1, 1], [], []>} : vector<128x128xbf16>, vector<128x128xbf16>, vector<128x128xf32> -> vector<128x128xf32>
    %343 = vector.broadcast %341 : vector<1x128xf32> to vector<128x128xf32>
    %344 = arith.addf %342, %343 : vector<128x128xf32>
    %c3_297 = arith.constant 3 : index
    %c0_298 = arith.constant 0 : index
    %c0_299 = arith.constant 0 : index
    %345 = vector.load %arg2[%c3_297, %c0_298, %c0_299] : memref<4x128x128xbf16, #tpu.memory_space<vmem>>, vector<1x128x128xbf16>
    %346 = vector.shape_cast %345 : vector<1x128x128xbf16> to vector<128x128xbf16>
    %347 = arith.truncf %344 : vector<128x128xf32> to vector<128x128xbf16>
    %cst_300 = arith.constant dense<0.000000e+00> : vector<128x128xf32>
    %348 = tpu.matmul %346, %347, %cst_300 {dimension_numbers = #tpu.dot_dimension_numbers<[1], [0], [0], [1], [0, 0, 1, 1], [], []>} : vector<128x128xbf16>, vector<128x128xbf16>, vector<128x128xf32> -> vector<128x128xf32>
    %cst_301 = arith.constant 0.000000e+00 : f32
    %349 = vector.broadcast %cst_301 : f32 to vector<128x128xf32>
    %350 = arith.maximumf %348, %349 : vector<128x128xf32>
    %351 = arith.truncf %350 : vector<128x128xf32> to vector<128x128xbf16>
    %c1_302 = arith.constant 1 : index
    %c0_303 = arith.constant 0 : index
    %c0_304 = arith.constant 0 : index
    %352 = vector.load %arg8[%c1_302, %c0_303, %c0_304] : memref<3x128x128xbf16, #tpu.memory_space<vmem>>, vector<1x128x128xbf16>
    %353 = vector.shape_cast %352 : vector<1x128x128xbf16> to vector<128x128xbf16>
    %c1_305 = arith.constant 1 : index
    %c0_306 = arith.constant 0 : index
    %c0_307 = arith.constant 0 : index
    %354 = vector.load %arg9[%c1_305, %c0_306, %c0_307] : memref<3x1x128xf32, #tpu.memory_space<vmem>>, vector<1x1x128xf32>
    %355 = vector.shape_cast %354 : vector<1x1x128xf32> to vector<1x128xf32>
    %cst_308 = arith.constant dense<0.000000e+00> : vector<128x128xf32>
    %356 = tpu.matmul %351, %353, %cst_308 {dimension_numbers = #tpu.dot_dimension_numbers<[1], [0], [0], [1], [0, 0, 1, 1], [], []>} : vector<128x128xbf16>, vector<128x128xbf16>, vector<128x128xf32> -> vector<128x128xf32>
    %357 = vector.broadcast %355 : vector<1x128xf32> to vector<128x128xf32>
    %358 = arith.addf %356, %357 : vector<128x128xf32>
    %c3_309 = arith.constant 3 : index
    %c0_310 = arith.constant 0 : index
    %c0_311 = arith.constant 0 : index
    %359 = vector.load %arg2[%c3_309, %c0_310, %c0_311] : memref<4x128x128xbf16, #tpu.memory_space<vmem>>, vector<1x128x128xbf16>
    %360 = vector.shape_cast %359 : vector<1x128x128xbf16> to vector<128x128xbf16>
    %361 = arith.truncf %358 : vector<128x128xf32> to vector<128x128xbf16>
    %cst_312 = arith.constant dense<0.000000e+00> : vector<128x128xf32>
    %362 = tpu.matmul %360, %361, %cst_312 {dimension_numbers = #tpu.dot_dimension_numbers<[1], [0], [0], [1], [0, 0, 1, 1], [], []>} : vector<128x128xbf16>, vector<128x128xbf16>, vector<128x128xf32> -> vector<128x128xf32>
    %cst_313 = arith.constant 0.000000e+00 : f32
    %363 = vector.broadcast %cst_313 : f32 to vector<128x128xf32>
    %364 = arith.maximumf %362, %363 : vector<128x128xf32>
    %365 = arith.truncf %364 : vector<128x128xf32> to vector<128x128xbf16>
    %c2_314 = arith.constant 2 : index
    %c0_315 = arith.constant 0 : index
    %c0_316 = arith.constant 0 : index
    %366 = vector.load %arg8[%c2_314, %c0_315, %c0_316] : memref<3x128x128xbf16, #tpu.memory_space<vmem>>, vector<1x128x128xbf16>
    %367 = vector.shape_cast %366 : vector<1x128x128xbf16> to vector<128x128xbf16>
    %c2_317 = arith.constant 2 : index
    %c0_318 = arith.constant 0 : index
    %c0_319 = arith.constant 0 : index
    %368 = vector.load %arg9[%c2_317, %c0_318, %c0_319] : memref<3x1x128xf32, #tpu.memory_space<vmem>>, vector<1x1x128xf32>
    %369 = vector.shape_cast %368 : vector<1x1x128xf32> to vector<1x128xf32>
    %cst_320 = arith.constant dense<0.000000e+00> : vector<128x128xf32>
    %370 = tpu.matmul %365, %367, %cst_320 {dimension_numbers = #tpu.dot_dimension_numbers<[1], [0], [0], [1], [0, 0, 1, 1], [], []>} : vector<128x128xbf16>, vector<128x128xbf16>, vector<128x128xf32> -> vector<128x128xf32>
    %371 = vector.broadcast %369 : vector<1x128xf32> to vector<128x128xf32>
    %372 = arith.addf %370, %371 : vector<128x128xf32>
    %c3_321 = arith.constant 3 : index
    %c0_322 = arith.constant 0 : index
    %c0_323 = arith.constant 0 : index
    %373 = vector.load %arg2[%c3_321, %c0_322, %c0_323] : memref<4x128x128xbf16, #tpu.memory_space<vmem>>, vector<1x128x128xbf16>
    %374 = vector.shape_cast %373 : vector<1x128x128xbf16> to vector<128x128xbf16>
    %375 = arith.truncf %372 : vector<128x128xf32> to vector<128x128xbf16>
    %cst_324 = arith.constant dense<0.000000e+00> : vector<128x128xf32>
    %376 = tpu.matmul %374, %375, %cst_324 {dimension_numbers = #tpu.dot_dimension_numbers<[1], [0], [0], [1], [0, 0, 1, 1], [], []>} : vector<128x128xbf16>, vector<128x128xbf16>, vector<128x128xf32> -> vector<128x128xf32>
    %c3_325 = arith.constant 3 : index
    %c0_326 = arith.constant 0 : index
    %c0_327 = arith.constant 0 : index
    %377 = vector.load %arg3[%c3_325, %c0_326, %c0_327] : memref<4x64x128xbf16, #tpu.memory_space<vmem>>, vector<1x64x128xbf16>
    %378 = vector.shape_cast %377 : vector<1x64x128xbf16> to vector<64x128xbf16>
    %379 = arith.truncf %376 : vector<128x128xf32> to vector<128x128xbf16>
    %cst_328 = arith.constant dense<0.000000e+00> : vector<64x128xf32>
    %380 = tpu.matmul %378, %379, %cst_328 {dimension_numbers = #tpu.dot_dimension_numbers<[1], [0], [0], [1], [0, 0, 1, 1], [], []>} : vector<64x128xbf16>, vector<128x128xbf16>, vector<64x128xf32> -> vector<64x128xf32>
    %381 = arith.truncf %380 : vector<64x128xf32> to vector<64x128xbf16>
    %c3_329 = arith.constant 3 : index
    %c0_330 = arith.constant 0 : index
    %c0_331 = arith.constant 0 : index
    %382 = vector.load %arg10[%c3_329, %c0_330, %c0_331] : memref<4x128x256xbf16, #tpu.memory_space<vmem>>, vector<1x128x256xbf16>
    %383 = vector.shape_cast %382 : vector<1x128x256xbf16> to vector<128x256xbf16>
    %cst_332 = arith.constant dense<0.000000e+00> : vector<64x256xf32>
    %384 = tpu.matmul %381, %383, %cst_332 {dimension_numbers = #tpu.dot_dimension_numbers<[1], [0], [0], [1], [0, 0, 1, 1], [], []>} : vector<64x128xbf16>, vector<128x256xbf16>, vector<64x256xf32> -> vector<64x256xf32>
    %c3_333 = arith.constant 3 : index
    %c0_334 = arith.constant 0 : index
    %c0_335 = arith.constant 0 : index
    %385 = vector.load %arg11[%c3_333, %c0_334, %c0_335] : memref<4x1x256xf32, #tpu.memory_space<vmem>>, vector<1x1x256xf32>
    %386 = vector.shape_cast %385 : vector<1x1x256xf32> to vector<1x256xf32>
    %387 = vector.broadcast %386 : vector<1x256xf32> to vector<64x256xf32>
    %388 = arith.addf %384, %387 : vector<64x256xf32>
    %cst_336 = arith.constant 0.000000e+00 : f32
    %389 = vector.broadcast %cst_336 : f32 to vector<64x256xf32>
    %390 = arith.maximumf %388, %389 : vector<64x256xf32>
    %391 = arith.truncf %390 : vector<64x256xf32> to vector<64x256xbf16>
    %c3_337 = arith.constant 3 : index
    %c0_338 = arith.constant 0 : index
    %c0_339 = arith.constant 0 : index
    %392 = vector.load %arg12[%c3_337, %c0_338, %c0_339] : memref<4x256x128xbf16, #tpu.memory_space<vmem>>, vector<1x256x128xbf16>
    %393 = vector.shape_cast %392 : vector<1x256x128xbf16> to vector<256x128xbf16>
    %cst_340 = arith.constant dense<0.000000e+00> : vector<64x128xf32>
    %394 = tpu.matmul %391, %393, %cst_340 {dimension_numbers = #tpu.dot_dimension_numbers<[1], [0], [0], [1], [0, 0, 1, 1], [], []>} : vector<64x256xbf16>, vector<256x128xbf16>, vector<64x128xf32> -> vector<64x128xf32>
    %c3_341 = arith.constant 3 : index
    %c0_342 = arith.constant 0 : index
    %c0_343 = arith.constant 0 : index
    %395 = vector.load %arg13[%c3_341, %c0_342, %c0_343] : memref<4x1x128xf32, #tpu.memory_space<vmem>>, vector<1x1x128xf32>
    %396 = vector.shape_cast %395 : vector<1x1x128xf32> to vector<1x128xf32>
    %397 = vector.broadcast %396 : vector<1x128xf32> to vector<64x128xf32>
    %398 = arith.addf %394, %397 : vector<64x128xf32>
    %cst_344 = arith.constant 0.000000e+00 : f32
    %399 = vector.broadcast %cst_344 : f32 to vector<128x128xf32>
    %400 = arith.maximumf %376, %399 : vector<128x128xf32>
    %401 = arith.truncf %400 : vector<128x128xf32> to vector<128x128xbf16>
    %cst_345 = arith.constant 0.000000e+00 : f32
    %402 = vector.broadcast %cst_345 : f32 to vector<64x128xf32>
    %403 = arith.maximumf %398, %402 : vector<64x128xf32>
    %404 = arith.truncf %403 : vector<64x128xf32> to vector<64x128xbf16>
    %c3_346 = arith.constant 3 : index
    %c0_347 = arith.constant 0 : index
    %c0_348 = arith.constant 0 : index
    %405 = vector.load %arg4[%c3_346, %c0_347, %c0_348] : memref<4x16x128xbf16, #tpu.memory_space<vmem>>, vector<1x16x128xbf16>
    %406 = vector.shape_cast %405 : vector<1x16x128xbf16> to vector<16x128xbf16>
    %cst_349 = arith.constant dense<0.000000e+00> : vector<16x128xf32>
    %407 = tpu.matmul %406, %401, %cst_349 {dimension_numbers = #tpu.dot_dimension_numbers<[1], [0], [0], [1], [0, 0, 1, 1], [], []>} : vector<16x128xbf16>, vector<128x128xbf16>, vector<16x128xf32> -> vector<16x128xf32>
    %c3_350 = arith.constant 3 : index
    %c0_351 = arith.constant 0 : index
    %c0_352 = arith.constant 0 : index
    %408 = vector.load %arg5[%c3_350, %c0_351, %c0_352] : memref<4x16x64xbf16, #tpu.memory_space<vmem>>, vector<1x16x64xbf16>
    %409 = vector.shape_cast %408 : vector<1x16x64xbf16> to vector<16x64xbf16>
    %cst_353 = arith.constant dense<0.000000e+00> : vector<16x128xf32>
    %410 = tpu.matmul %409, %404, %cst_353 {dimension_numbers = #tpu.dot_dimension_numbers<[1], [0], [0], [1], [0, 0, 1, 1], [], []>} : vector<16x64xbf16>, vector<64x128xbf16>, vector<16x128xf32> -> vector<16x128xf32>
    %411 = arith.truncf %407 : vector<16x128xf32> to vector<16x128xbf16>
    %c0_354 = arith.constant 0 : index
    %c0_355 = arith.constant 0 : index
    %412 = vector.load %arg14[%c0_354, %c0_355] : memref<128x256xbf16, #tpu.memory_space<vmem>>, vector<128x256xbf16>
    %cst_356 = arith.constant dense<0.000000e+00> : vector<16x256xf32>
    %413 = tpu.matmul %411, %412, %cst_356 {dimension_numbers = #tpu.dot_dimension_numbers<[1], [0], [0], [1], [0, 0, 1, 1], [], []>} : vector<16x128xbf16>, vector<128x256xbf16>, vector<16x256xf32> -> vector<16x256xf32>
    %414 = arith.truncf %410 : vector<16x128xf32> to vector<16x128xbf16>
    %c0_357 = arith.constant 0 : index
    %c0_358 = arith.constant 0 : index
    %415 = vector.load %arg15[%c0_357, %c0_358] : memref<128x256xbf16, #tpu.memory_space<vmem>>, vector<128x256xbf16>
    %cst_359 = arith.constant dense<0.000000e+00> : vector<16x256xf32>
    %416 = tpu.matmul %414, %415, %cst_359 {dimension_numbers = #tpu.dot_dimension_numbers<[1], [0], [0], [1], [0, 0, 1, 1], [], []>} : vector<16x128xbf16>, vector<128x256xbf16>, vector<16x256xf32> -> vector<16x256xf32>
    %417 = arith.addf %413, %416 : vector<16x256xf32>
    %c0_360 = arith.constant 0 : index
    %c0_361 = arith.constant 0 : index
    %418 = vector.load %arg16[%c0_360, %c0_361] : memref<1x256xf32, #tpu.memory_space<vmem>>, vector<1x256xf32>
    %419 = vector.broadcast %418 : vector<1x256xf32> to vector<16x256xf32>
    %420 = arith.addf %417, %419 : vector<16x256xf32>
    %cst_362 = arith.constant 0.000000e+00 : f32
    %421 = vector.broadcast %cst_362 : f32 to vector<16x256xf32>
    %422 = arith.maximumf %420, %421 : vector<16x256xf32>
    %423 = arith.truncf %422 : vector<16x256xf32> to vector<16x256xbf16>
    %c0_363 = arith.constant 0 : index
    %c0_364 = arith.constant 0 : index
    %424 = vector.load %arg17[%c0_363, %c0_364] : memref<256x128xbf16, #tpu.memory_space<vmem>>, vector<256x128xbf16>
    %cst_365 = arith.constant dense<0.000000e+00> : vector<16x128xf32>
    %425 = tpu.matmul %423, %424, %cst_365 {dimension_numbers = #tpu.dot_dimension_numbers<[1], [0], [0], [1], [0, 0, 1, 1], [], []>} : vector<16x256xbf16>, vector<256x128xbf16>, vector<16x128xf32> -> vector<16x128xf32>
    %c0_366 = arith.constant 0 : index
    %c0_367 = arith.constant 0 : index
    %426 = vector.load %arg18[%c0_366, %c0_367] : memref<1x128xf32, #tpu.memory_space<vmem>>, vector<1x128xf32>
    %427 = vector.broadcast %426 : vector<1x128xf32> to vector<16x128xf32>
    %428 = arith.addf %425, %427 : vector<16x128xf32>
    %c3_368 = arith.constant 3 : index
    %c0_369 = arith.constant 0 : index
    %c0_370 = arith.constant 0 : index
    %429 = vector.load %arg19[%c3_368, %c0_369, %c0_370] : memref<4x16x128xf32, #tpu.memory_space<vmem>>, vector<1x16x128xf32>
    %430 = vector.shape_cast %429 : vector<1x16x128xf32> to vector<16x128xf32>
    %431 = vector.shape_cast %428 : vector<16x128xf32> to vector<1x16x128xf32>
    tpu.vector_store %arg19[%c3_368, %c0_369, %c0_370], %431 {strides = array<i32>} : memref<4x16x128xf32, #tpu.memory_space<vmem>>, vector<1x16x128xf32>,
    return
  }
  func.func @transform_0(%arg0: i32) -> (i32, i32, i32) {
    %c0_i32 = arith.constant 0 : i32
    %c0_i32_0 = arith.constant 0 : i32
    %c0_i32_1 = arith.constant 0 : i32
    return %arg0, %c0_i32, %c0_i32_0 : i32, i32, i32
  }
  func.func @transform_1(%arg0: i32) -> (i32, i32, i32) {
    %c0_i32 = arith.constant 0 : i32
    %c0_i32_0 = arith.constant 0 : i32
    %c0_i32_1 = arith.constant 0 : i32
    return %arg0, %c0_i32, %c0_i32_0 : i32, i32, i32
  }
  func.func @transform_2(%arg0: i32) -> (i32, i32, i32) {
    %c0_i32 = arith.constant 0 : i32
    %c0_i32_0 = arith.constant 0 : i32
    %c0_i32_1 = arith.constant 0 : i32
    return %arg0, %c0_i32, %c0_i32_0 : i32, i32, i32
  }
  func.func @transform_3(%arg0: i32) -> (i32, i32, i32) {
    %c0_i32 = arith.constant 0 : i32
    %c0_i32_0 = arith.constant 0 : i32
    %c0_i32_1 = arith.constant 0 : i32
    return %arg0, %c0_i32, %c0_i32_0 : i32, i32, i32
  }
  func.func @transform_4(%arg0: i32) -> (i32, i32, i32) {
    %c0_i32 = arith.constant 0 : i32
    %c0_i32_0 = arith.constant 0 : i32
    %c0_i32_1 = arith.constant 0 : i32
    return %arg0, %c0_i32, %c0_i32_0 : i32, i32, i32
  }
  func.func @transform_5(%arg0: i32) -> (i32, i32) {
    %c0_i32 = arith.constant 0 : i32
    %c0_i32_0 = arith.constant 0 : i32
    %c0_i32_1 = arith.constant 0 : i32
    return %c0_i32, %c0_i32_0 : i32, i32
  }
  func.func @transform_6(%arg0: i32) -> (i32, i32) {
    %c0_i32 = arith.constant 0 : i32
    %c0_i32_0 = arith.constant 0 : i32
    %c0_i32_1 = arith.constant 0 : i32
    return %c0_i32, %c0_i32_0 : i32, i32
  }
  func.func @transform_7(%arg0: i32) -> (i32, i32, i32) {
    %c0_i32 = arith.constant 0 : i32
    %c0_i32_0 = arith.constant 0 : i32
    %c0_i32_1 = arith.constant 0 : i32
    %c0_i32_2 = arith.constant 0 : i32
    return %c0_i32, %c0_i32_0, %c0_i32_1 : i32, i32, i32
  }
  func.func @transform_8(%arg0: i32) -> (i32, i32, i32) {
    %c0_i32 = arith.constant 0 : i32
    %c0_i32_0 = arith.constant 0 : i32
    %c0_i32_1 = arith.constant 0 : i32
    %c0_i32_2 = arith.constant 0 : i32
    return %c0_i32, %c0_i32_0, %c0_i32_1 : i32, i32, i32
  }
  func.func @transform_9(%arg0: i32) -> (i32, i32, i32) {
    %c0_i32 = arith.constant 0 : i32
    %c0_i32_0 = arith.constant 0 : i32
    %c0_i32_1 = arith.constant 0 : i32
    %c0_i32_2 = arith.constant 0 : i32
    return %c0_i32, %c0_i32_0, %c0_i32_1 : i32, i32, i32
  }
  func.func @transform_10(%arg0: i32) -> (i32, i32, i32) {
    %c0_i32 = arith.constant 0 : i32
    %c0_i32_0 = arith.constant 0 : i32
    %c0_i32_1 = arith.constant 0 : i32
    %c0_i32_2 = arith.constant 0 : i32
    return %c0_i32, %c0_i32_0, %c0_i32_1 : i32, i32, i32
  }
  func.func @transform_11(%arg0: i32) -> (i32, i32, i32) {
    %c0_i32 = arith.constant 0 : i32
    %c0_i32_0 = arith.constant 0 : i32
    %c0_i32_1 = arith.constant 0 : i32
    %c0_i32_2 = arith.constant 0 : i32
    return %c0_i32, %c0_i32_0, %c0_i32_1 : i32, i32, i32
  }
  func.func @transform_12(%arg0: i32) -> (i32, i32, i32) {
    %c0_i32 = arith.constant 0 : i32
    %c0_i32_0 = arith.constant 0 : i32
    %c0_i32_1 = arith.constant 0 : i32
    %c0_i32_2 = arith.constant 0 : i32
    return %c0_i32, %c0_i32_0, %c0_i32_1 : i32, i32, i32
  }
  func.func @transform_13(%arg0: i32) -> (i32, i32) {
    %c0_i32 = arith.constant 0 : i32
    %c0_i32_0 = arith.constant 0 : i32
    %c0_i32_1 = arith.constant 0 : i32
    return %c0_i32, %c0_i32_0 : i32, i32
  }
  func.func @transform_14(%arg0: i32) -> (i32, i32) {
    %c0_i32 = arith.constant 0 : i32
    %c0_i32_0 = arith.constant 0 : i32
    %c0_i32_1 = arith.constant 0 : i32
    return %c0_i32, %c0_i32_0 : i32, i32
  }
  func.func @transform_15(%arg0: i32) -> (i32, i32) {
    %c0_i32 = arith.constant 0 : i32
    %c0_i32_0 = arith.constant 0 : i32
    %c0_i32_1 = arith.constant 0 : i32
    return %c0_i32, %c0_i32_0 : i32, i32
  }
  func.func @transform_16(%arg0: i32) -> (i32, i32) {
    %c0_i32 = arith.constant 0 : i32
    %c0_i32_0 = arith.constant 0 : i32
    %c0_i32_1 = arith.constant 0 : i32
    return %c0_i32, %c0_i32_0 : i32, i32
  }
  func.func @transform_17(%arg0: i32) -> (i32, i32) {
    %c0_i32 = arith.constant 0 : i32
    %c0_i32_0 = arith.constant 0 : i32
    %c0_i32_1 = arith.constant 0 : i32
    return %c0_i32, %c0_i32_0 : i32, i32
  }
  func.func @transform_18(%arg0: i32) -> (i32, i32, i32) {
    %c0_i32 = arith.constant 0 : i32
    %c0_i32_0 = arith.constant 0 : i32
    %c0_i32_1 = arith.constant 0 : i32
    return %arg0, %c0_i32, %c0_i32_0 : i32, i32, i32
  }
}

</mosaic_0001>

<bundles_post_ra>
// kernel: tpu_custom_call.1
= control target key start
LH: loop header
LB: loop body
LE: loop exit
PB: predicated region body
PF: predicated region fallthrough
CT: control target
= control target key end

     0   :  { %s15838_s0 = inlined_call_operand.vmem [shape: bf16[16,128,64], index: 0, kind: input, shape index: {}]   ;;  %s15839_s1 = inlined_call_operand.vmem [shape: bf16[16,128,128], index: 1, kind: input, shape index: {}]   ;;  %s15840_s2 = inlined_call_operand.vmem [shape: bf16[16,64,128], index: 2, kind: input, shape index: {}]   ;;  %s15841_s3 = inlined_call_operand.hbm [shape: bf16[16,16,128], index: 3, kind: input, shape index: {}]   ;;  %s15842_s4 = inlined_call_operand.hbm [shape: bf16[16,16,64], index: 4, kind: input, shape index: {}]   ;;  %s15843_s5 = inlined_call_operand.hbm [shape: bf16[64,128], index: 5, kind: input, shape index: {}]   ;;  %s15844_s6 = inlined_call_operand.vmem [shape: f32[1,128], index: 6, kind: input, shape index: {}]   ;;  %s15845_s7 = inlined_call_operand.hbm [shape: bf16[3,128,128], index: 7, kind: input, shape index: {}]   ;;  %s15846_s8 = inlined_call_operand.vmem [shape: f32[3,1,128], index: 8, kind: input, shape index: {}]   ;;  %s15847_s9 = inlined_call_operand.hbm [shape: bf16[4,128,256], index: 9, kind: input, shape index: {}]   ;;  %s15848_s10 = inlined_call_operand.vmem [shape: f32[4,1,256], index: 10, kind: input, shape index: {}]   ;;  %s15849_s11 = inlined_call_operand.hbm [shape: bf16[4,256,128], index: 11, kind: input, shape index: {}]   ;;  %s15850_s12 = inlined_call_operand.vmem [shape: f32[4,1,128], index: 12, kind: input, shape index: {}]   ;;  %s15851_s13 = inlined_call_operand.hbm [shape: bf16[128,256], index: 13, kind: input, shape index: {}]   ;;  %s15852_s14 = inlined_call_operand.hbm [shape: bf16[128,256], index: 14, kind: input, shape index: {}]   ;;  %s15853_s15 = inlined_call_operand.vmem [shape: f32[1,256], index: 15, kind: input, shape index: {}]   ;;  %s15854_s16 = inlined_call_operand.hbm [shape: bf16[256,128], index: 16, kind: input, shape index: {}]   ;;  %s15855_s17 = inlined_call_operand.vmem [shape: f32[1,128], index: 17, kind: input, shape index: {}]   ;;  %s15856_s18 = inlined_call_operand.hbm [shape: f32[16,16,128], index: 18, kind: output, shape index: {}]  }
   0x1   :  { %15871 = sst [smem:[#allocation25_spill]] %s15838_s0 }
   0x2   :  { %15872 = sst [smem:[#allocation26_spill]] %s15839_s1 }
   0x3   :  { %15873 = sst [smem:[#allocation27_spill]] %s15840_s2 }
   0x4   :  { %15874 = sst [smem:[#allocation28_spill]] %s15843_s5 }
   0x5   :  { %15875 = sst [smem:[#allocation29_spill]] %s15844_s6 }
   0x6   :  { %15876 = sst [smem:[#allocation30_spill]] %s15845_s7 }
   0x7   :  { %15877 = sst [smem:[#allocation31_spill]] %s15846_s8 }
   0x8   :  { %15878 = sst [smem:[#allocation32_spill]] %s15847_s9 }
   0x9   :  { %15879 = sst [smem:[#allocation33_spill]] %s15848_s10 }
   0xa   :  { %15880 = sst [smem:[#allocation34_spill]] %s15849_s11 }
   0xb   :  { %15881 = sst [smem:[#allocation35_spill]] %s15850_s12 }
   0xc   :  { %15882 = sst [smem:[#allocation36_spill]] %s15851_s13 }
   0xd   :  { %15883 = sst [smem:[#allocation37_spill]] %s15852_s14 }
   0xe   :  { %15884 = sst [smem:[#allocation38_spill]] %s15853_s15 }
   0xf   :  { %15885 = sst [smem:[#allocation39_spill]] %s15854_s16 }
  0x10   :  { %15886 = sst [smem:[#allocation40_spill]] %s15855_s17 }
  0x11   :  { %15887 = sst [smem:[#allocation41_spill]] %s15856_s18 }
  0x12   :  { %23 = vsyncpa [#allocation3], 0 }
  0x13   :  { %25 = vsyncpa [#allocation3 + $0x1], 0 }
  0x14   :  { %26 = vsyncpa [#allocation6], 0 }
  0x15   :  { %28 = vsyncpa [#allocation6 + $0x1], 0 }
  0x16   :  { %29 = vsyncpa [#allocation9], 0 }
  0x17   :  { %30 = vsyncpa [#allocation12], 0 }
  0x18   :  { %31 = vsyncpa [#allocation15], 0 }
  0x19   :  { %32 = vsyncpa [#allocation4], 0 }
  0x1a   :  { %34 = vsyncpa [#allocation4 + $0x1], 0  ;;  %s14753_s27 = smov 0   ;;  %s14755_s28 = smov 0  }
  0x1b   :  { %s14757_s29 = smov 0   ;;  %s14759_s30 = smov 0  }
  0x1c LB: > { %s14639_s0 = smov [#allocation7]   ;;  %s14774_s1 = sadd.s32 4294967295, %s14637_s30   ;;  %s14637_s30 = sphi %s14759_s30, %s15929_s30   ;;  %s14633_s29 = sphi %s14757_s29, %s15928_s29   ;;  %s14629_s28 = sphi %s14755_s28, %s15927_s28   ;;  %s14625_s27 = sphi %s14753_s27, %s15926_s27  }
  0x1d   : > { %s486_s19 = sshll.u32 %s14639_s0, 4  ;;  %p10681_p0 = scmp.ge.s32.totalorder %s14637_s30, 1  ;;  %s14779_s19 = int_to_ptr.vmem [resolvable:$true] %s486_s19 }
  0x1e   : > { %p15864_p1 = scmp.eq.s32.totalorder %s14774_s1, 0  ;;  %p474_p2 = scmp.lt.s32.totalorder %s14637_s30, 5 }
  0x1f   : > { %s14640_s21 = smov [#allocation8]   ;;  %s14641_s23 = smov [#allocation11]  }
  0x20   : > { %p14781_p3 = pnand %p10681_p0, %p474_p2  ;;  %s502_s22 = sshll.u32 %s14640_s21, 4  ;;  %s14793_s22 = int_to_ptr.vmem [resolvable:$true] %s502_s22 }
  0x21   : > { %s534_s24 = sshll.u32 %s14641_s23, 4  ;;  %s15890_s5 = sld [smem:[#allocation28_spill]]  ;;  %s14795_s24 = int_to_ptr.vmem [resolvable:$true] %s534_s24 }
  0x22   : > { %s15888_s20 = scalar_select %p14781_p3, 1, 0 }
  0x23   : > { %p13581_p4 = pneg %p14781_p3 }
  0x25   : > { %p14789_p5 = pnand %p13581_p4, %p15864_p1 }
  0x27   : > { %s14295_s0 = scalar_lea.hbm %s15890_s5, 512  ;;  %p14805_p7 = pneg %p14789_p5 }
  0x28   : > { %p14296_p6 = scmp.ne.s32.totalorder %s15890_s5, %s14295_s0  ;;  %p14302_p10 = scmp.lt.u32.totalorder %s14295_s0, %s15890_s5 }
  0x2a   : > { %p14298_p8 = pnand %p14805_p7, %p14296_p6 }
  0x2c   : > { %p14299_p9 = pneg %p14298_p8 }
  0x2e   : > { %p14304_p11 = pnand %p14302_p10, %p14299_p9 }
  0x30   : > { %14307 = shalt.err (!%p14304_p11)
}
  0x31   : > { %s14308_s17 = scalar_lea.vmem %s14779_s19, 512  ;;  %p14316_p2 = scmp.lt.s32.totalorder %s14779_s19, %s14779_s19 }
  0x32   : > { %p14309_p12 = scmp.ne.s32.totalorder %s14779_s19, %s14308_s17  ;;  %p14317_p4 = scmp.lt.s32.totalorder %s14308_s17, %s14308_s17 }
  0x34   : > { %p14311_p13 = pnand %p14309_p12, %p14805_p7  ;;  %p14318_p6 = por %p14317_p4, %p14316_p2 }
  0x36   : > { %p14312_p0 = pneg %p14311_p13 }
  0x38   : > { %p14319_p8 = pnand %p14318_p6, %p14312_p0 }
  0x3a   : > { %14322 = shalt.err (!%p14319_p8)
}
  0x3b   : > { %s15866_s18 = smov 64   ;;  %s15868_s15 = smov 4  }
  0x3c   : > { %13584 = dma.hbm_to_vmem [thread:$0]  (!%p14789_p5), %s15890_s5, 512, %s14779_s19, [#allocation6], %s15866_s18, %s15866_s18, %s15868_s15  }
  0x3d   : > { %s15892_s7 = sld [smem:[#allocation30_spill]] }
  0x43   : > { %s14323_s17 = scalar_lea.hbm %s15892_s7, 3072 }
  0x44   : > { %p14324_p9 = scmp.ne.s32.totalorder %s15892_s7, %s14323_s17  ;;  %p14330_p12 = scmp.lt.u32.totalorder %s14323_s17, %s15892_s7 }
  0x46   : > { %p14326_p10 = pnand %p14324_p9, %p14805_p7 }
  0x48   : > { %p14327_p11 = pneg %p14326_p10 }
  0x4a   : > { %p14332_p13 = pnand %p14330_p12, %p14327_p11 }
  0x4c   : > { %14335 = shalt.err (!%p14332_p13)
}
  0x4d   : > { %s14336_s19 = scalar_lea.vmem %s14793_s22, 3072  ;;  %p14344_p6 = scmp.lt.s32.totalorder %s14793_s22, %s14793_s22 }
  0x4e   : > { %p14337_p0 = scmp.ne.s32.totalorder %s14793_s22, %s14336_s19  ;;  %p14345_p8 = scmp.lt.s32.totalorder %s14336_s19, %s14336_s19 }
  0x50   : > { %p14339_p2 = pnand %p14337_p0, %p14805_p7  ;;  %p14346_p9 = por %p14345_p8, %p14344_p6 }
  0x52   : > { %p14340_p4 = pneg %p14339_p2 }
  0x54   : > { %p14347_p10 = pnand %p14346_p9, %p14340_p4 }
  0x56   : > { %14350 = shalt.err (!%p14347_p10)
}
  0x57   : > { %13587 = dma.hbm_to_vmem [thread:$0]  (!%p14789_p5), %s15892_s7, 3072, %s14793_s22, [#allocation9], %s15866_s18, %s15866_s18, %s15868_s15  }
  0x58   : > { %s15893_s11 = sld [smem:[#allocation34_spill]] }
  0x5e   : > { %s14351_s25 = scalar_lea.hbm %s15893_s11, 8192 }
  0x5f   : > { %p14352_p11 = scmp.ne.s32.totalorder %s15893_s11, %s14351_s25  ;;  %p14358_p0 = scmp.lt.u32.totalorder %s14351_s25, %s15893_s11 }
  0x61   : > { %p14354_p12 = pnand %p14352_p11, %p14805_p7 }
  0x63   : > { %p14355_p13 = pneg %p14354_p12 }
  0x65   : > { %p14360_p2 = pnand %p14358_p0, %p14355_p13 }
  0x67   : > { %14363 = shalt.err (!%p14360_p2)
}
  0x68   : > { %s14364_s22 = scalar_lea.vmem %s14795_s24, 8192  ;;  %p14372_p9 = scmp.lt.s32.totalorder %s14795_s24, %s14795_s24 }
  0x69   : > { %p14365_p4 = scmp.ne.s32.totalorder %s14795_s24, %s14364_s22  ;;  %p14373_p10 = scmp.lt.s32.totalorder %s14364_s22, %s14364_s22 }
  0x6b   : > { %p14367_p6 = pnand %p14365_p4, %p14805_p7  ;;  %p14374_p11 = por %p14373_p10, %p14372_p9 }
  0x6d   : > { %p14368_p8 = pneg %p14367_p6 }
  0x6f   : > { %p14375_p12 = pnand %p14374_p11, %p14368_p8 }
  0x71   : > { %14378 = shalt.err (!%p14375_p12)
}
  0x72   : > { %13593 = dma.hbm_to_vmem [thread:$0]  (!%p14789_p5), %s15893_s11, 8192, %s14795_s24, [#allocation12], %s15866_s18, %s15866_s18, %s15868_s15  }
  0x73   : > { %s14644_s8 = smov [#allocation14]   ;;  %s14645_s12 = smov [#allocation10]  }
  0x74   : > { %s563_s10 = sshll.u32 %s14644_s8, 4  ;;  %s518_s25 = sshll.u32 %s14645_s12, 4  ;;  %s564_s10 = int_to_ptr.vmem [resolvable:$true] %s563_s10  ;;  %s519_s25 = int_to_ptr.vmem [resolvable:$true] %s518_s25 }
  0x75   : > { %s15894_s14 = sld [smem:[#allocation37_spill]] }
  0x7b   : > { %s14379_s23 = scalar_lea.hbm %s15894_s14, 2048 }
  0x7c   : > { %p14380_p13 = scmp.ne.s32.totalorder %s15894_s14, %s14379_s23  ;;  %p14386_p4 = scmp.lt.u32.totalorder %s14379_s23, %s15894_s14 }
  0x7e   : > { %p14382_p0 = pnand %p14380_p13, %p14805_p7 }
  0x80   : > { %p14383_p2 = pneg %p14382_p0 }
  0x82   : > { %p14388_p6 = pnand %p14386_p4, %p14383_p2 }
  0x84   : > { %14391 = shalt.err (!%p14388_p6)
}
  0x85   : > { %s14392_s24 = scalar_lea.vmem %s564_s10, 2048  ;;  %p14400_p11 = scmp.lt.s32.totalorder %s564_s10, %s564_s10 }
  0x86   : > { %p14393_p8 = scmp.ne.s32.totalorder %s564_s10, %s14392_s24  ;;  %p14401_p12 = scmp.lt.s32.totalorder %s14392_s24, %s14392_s24 }
  0x88   : > { %p14395_p9 = pnand %p14393_p8, %p14805_p7  ;;  %p14402_p1 = por %p14401_p12, %p14400_p11 }
  0x8a   : > { %p14396_p10 = pneg %p14395_p9 }
  0x8c   : > { %p14403_p3 = pnand %p14402_p1, %p14396_p10 }
  0x8e   : > { %14406 = shalt.err (!%p14403_p3)
}
  0x8f   : > { %s14646_s6 = smov 128   ;;  %s14647_s8 = smov 8  }
  0x90   : > { %13599 = dma.hbm_to_vmem [thread:$0]  (!%p14789_p5), %s15894_s14, 2048, %s564_s10, [#allocation15], %s14646_s6, %s14646_s6, %s14647_s8  }
  0x91   : > { %s15895_s9 = sld [smem:[#allocation32_spill]] }
  0x97   : > { %s14407_s23 = scalar_lea.hbm %s15895_s9, 8192 }
  0x98   : > { %p14408_p1 = scmp.ne.s32.totalorder %s15895_s9, %s14407_s23  ;;  %p14414_p0 = scmp.lt.u32.totalorder %s14407_s23, %s15895_s9 }
  0x9a   : > { %p14410_p3 = pnand %p14408_p1, %p14805_p7 }
  0x9c   : > { %p14411_p13 = pneg %p14410_p3 }
  0x9e   : > { %p14416_p2 = pnand %p14414_p0, %p14411_p13 }
  0xa0   : > { %14419 = shalt.err (!%p14416_p2)
}
  0xa1   : > { %s14420_s5 = scalar_lea.vmem %s519_s25, 8192  ;;  %p14428_p9 = scmp.lt.s32.totalorder %s519_s25, %s519_s25 }
  0xa2   : > { %p14421_p4 = scmp.ne.s32.totalorder %s519_s25, %s14420_s5  ;;  %p14429_p10 = scmp.lt.s32.totalorder %s14420_s5, %s14420_s5 }
  0xa4   : > { %p14423_p6 = pnand %p14421_p4, %p14805_p7  ;;  %p14430_p11 = por %p14429_p10, %p14428_p9 }
  0xa6   : > { %p14424_p8 = pneg %p14423_p6 }
  0xa8   : > { %p14431_p12 = pnand %p14430_p11, %p14424_p8 }
  0xaa   : > { %14434 = shalt.err (!%p14431_p12)
}
  0xab   : > { %13590 = dma.hbm_to_vmem [thread:$0]  (!%p14789_p5), %s15895_s9, 8192, %s519_s25, [#allocation9], %s14646_s6, %s14646_s6, %s14647_s8  }
  0xac   : > { %s14648_s26 = smov [#allocation13]   ;;  %s14649_s23 = smov [#allocation16]  }
  0xad   : > { %s550_s0 = sshll.u32 %s14648_s26, 4  ;;  %s579_s17 = sshll.u32 %s14649_s23, 4  ;;  %s551_s0 = int_to_ptr.vmem [resolvable:$true] %s550_s0  ;;  %s580_s17 = int_to_ptr.vmem [resolvable:$true] %s579_s17 }
  0xae   : > { %s15896_s13 = sld [smem:[#allocation36_spill]] }
  0xb4   : > { %s14435_s24 = scalar_lea.hbm %s15896_s13, 2048 }
  0xb5   : > { %p14436_p1 = scmp.ne.s32.totalorder %s15896_s13, %s14435_s24  ;;  %p14442_p0 = scmp.lt.u32.totalorder %s14435_s24, %s15896_s13 }
  0xb7   : > { %p14438_p3 = pnand %p14436_p1, %p14805_p7 }
  0xb9   : > { %p14439_p13 = pneg %p14438_p3 }
  0xbb   : > { %p14444_p2 = pnand %p14442_p0, %p14439_p13 }
  0xbd   : > { %14447 = shalt.err (!%p14444_p2)
}
  0xbe   : > { %s14448_s25 = scalar_lea.vmem %s551_s0, 2048  ;;  %p14456_p9 = scmp.lt.s32.totalorder %s551_s0, %s551_s0 }
  0xbf   : > { %p14449_p4 = scmp.ne.s32.totalorder %s551_s0, %s14448_s25  ;;  %p14457_p10 = scmp.lt.s32.totalorder %s14448_s25, %s14448_s25 }
  0xc1   : > { %p14451_p6 = pnand %p14449_p4, %p14805_p7  ;;  %p14458_p11 = por %p14457_p10, %p14456_p9 }
  0xc3   : > { %p14452_p8 = pneg %p14451_p6 }
  0xc5   : > { %p14459_p12 = pnand %p14458_p11, %p14452_p8 }
  0xc7   : > { %14462 = shalt.err (!%p14459_p12)
}
  0xc8   : > { %13596 = dma.hbm_to_vmem [thread:$0]  (!%p14789_p5), %s15896_s13, 2048, %s551_s0, [#allocation12], %s14646_s6, %s14646_s6, %s14647_s8  }
  0xc9   : > { %s15897_s16 = sld [smem:[#allocation39_spill]] }
  0xcf   : > { %s14463_s23 = scalar_lea.hbm %s15897_s16, 2048 }
  0xd0   : > { %p14464_p1 = scmp.ne.s32.totalorder %s15897_s16, %s14463_s23  ;;  %p14470_p0 = scmp.lt.u32.totalorder %s14463_s23, %s15897_s16 }
  0xd2   : > { %p14466_p3 = pnand %p14464_p1, %p14805_p7 }
  0xd4   : > { %p14467_p13 = pneg %p14466_p3 }
  0xd6   : > { %p14472_p2 = pnand %p14470_p0, %p14467_p13 }
  0xd8   : > { %14475 = shalt.err (!%p14472_p2)
}
  0xd9   : > { %s14476_s10 = scalar_lea.vmem %s580_s17, 2048  ;;  %p14484_p9 = scmp.lt.s32.totalorder %s580_s17, %s580_s17 }
  0xda   : > { %p14477_p4 = scmp.ne.s32.totalorder %s580_s17, %s14476_s10  ;;  %p14485_p10 = scmp.lt.s32.totalorder %s14476_s10, %s14476_s10 }
  0xdc   : > { %p14479_p6 = pnand %p14477_p4, %p14805_p7  ;;  %p14486_p11 = por %p14485_p10, %p14484_p9 }
  0xde   : > { %p14480_p8 = pneg %p14479_p6 }
  0xe0   : > { %p14487_p12 = pnand %p14486_p11, %p14480_p8 }
  0xe2   : > { %14490 = shalt.err (!%p14487_p12)
}
  0xe3   : > { %s15898_s6 = smov 4   ;;  %s15899_s8 = smov 64  }
  0xe4   : > { %13602 = dma.hbm_to_vmem [thread:$0]  (!%p14789_p5), %s15897_s16, 2048, %s580_s17, [#allocation15], %s15899_s8, %s15899_s8, %s15898_s6  }
  0xe5   : > { %s10680_s2 = sadd.s32 4294967294, %s14637_s30   ;;  %s14967_s21 = sadd.s32 1, %s14637_s30  }
  0xe6   : > { %s125_s18 = sadd.s32 1, %s14633_s29  ;;  %s122_s15 = ssub.s32 %s14637_s30, %s14967_s21 }
  0xe7   : > { %p132_p7 = scmp.ne.s32.totalorder %s14633_s29, %s14629_s28  ;;  %p123_p1 = scmp.eq.s32.totalorder %s122_s15, 0 }
  0xe8   : > { %p133_p3 = scmp.eq.s32.totalorder %s14637_s30, 0  ;;  %p138_p13 = scmp.ne.s32.totalorder %s14629_s28, %s14625_s27 }
  0xe9   : > { %p461_p0 = scmp.eq.s32.totalorder %s14774_s1, 3  ;;  %p15900_p4 = scmp.eq.s32.totalorder %s14774_s1, 0 }
  0xea   : > { %s14979_s12 = scalar_select %p123_p1, %s14633_s29, %s125_s18  }
  0xeb   : > { %p134_p2 = por %p133_p3, %p132_p7  ;;  %p14983_p6 = por %p15900_p4, %p138_p13 }
  0xec   : > { %p14987_p5 = por %p461_p0, %p132_p7  ;;  %p467_p8 = scmp.eq.s32.totalorder %s10680_s2, 3 }
  0xed   : > { %p13621_p9 = scmp.lt.s32.totalorder %s14637_s30, 4  ;;  %s626_s23 = sand.u32 1, %s14633_s29  }
  0xee   : > { %s15902_s17 = scalar_select %p14987_p5, 1, 0 }
  0xef   : > { %p14993_p10 = por %p467_p8, %p138_p13  ;;  %s14997_s19 = sshll.u32 %s626_s23, 5 }
  0xf0   : > { %s11459_s24 = sshll.u32 %s14637_s30, 9  ;;  %s630_s25 = scalar_lea.vmem [#allocation2], %s14997_s19 }
  0xf1   : > { %s15903_s22 = scalar_select %p14993_p10, 1, 0 }
  0xf2   : > { %s15003_s0 = scalar_lea.hbm %s15841_s3, %s11459_s24  ;;  %s638_s2 = sshll.u32 %s630_s25, 4  ;;  %s15010_s2 = int_to_ptr.vmem [resolvable:$true] %s638_s2 }
  0xf3   : > { %p15006_p11 = pnand %p13621_p9, %p134_p2  ;;  %s15015_s5 = scalar_lea.hbm %s15842_s4, %s11459_s24 }
  0xf4   : > { %s15017_s10 = scalar_lea.sflag [#allocation3], %s626_s23  ;;  %s14491_s9 = scalar_lea.hbm %s15003_s0, 512 }
  0xf5   : > { %p14492_p12 = scmp.ne.s32.totalorder %s15003_s0, %s14491_s9  ;;  %p14493_p7 = pneg %p15006_p11 }
  0xf6   : > { %s14496_s13 = scalar_lea.hbm %s15841_s3, 2048  ;;  %p14497_p13 = scmp.lt.u32.totalorder %s15003_s0, %s15841_s3 }
  0xf7   : > { %p14494_p1 = pnand %p14493_p7, %p14492_p12  ;;  %p14498_p0 = scmp.lt.u32.totalorder %s14496_s13, %s14491_s9 }
  0xf8   : > { %p14500_p4 = scmp.lt.u32.totalorder %s14491_s9, %s15003_s0 }
  0xf9   : > { %p14495_p3 = pneg %p14494_p1  ;;  %p14499_p2 = por %p14498_p0, %p14497_p13 }
  0xfb   : > { %p14501_p8 = por %p14500_p4, %p14499_p2 }
  0xfd   : > { %p14502_p9 = pnand %p14501_p8, %p14495_p3 }
  0xff   : > { %14505 = shalt.err (!%p14502_p9)
}
 0x100   : > { %s14506_s7 = scalar_lea.vmem %s15010_s2, 512  ;;  %s14650_s11 = smov [#allocation2]  }
 0x101   : > { %p14507_p12 = scmp.ne.s32.totalorder %s15010_s2, %s14506_s7  ;;  %s14511_s23 = sshll.u32 %s14650_s11, 4  ;;  %s14512_s23 = int_to_ptr.vmem [resolvable:$false] %s14511_s23 }
 0x102   : > { %s14513_s14 = scalar_lea.vmem %s14512_s23, 1024  ;;  %p14514_p5 = scmp.lt.s32.totalorder %s15010_s2, %s14512_s23 }
 0x103   : > { %p14509_p1 = pnand %p14507_p12, %p14493_p7  ;;  %p14515_p13 = scmp.lt.s32.totalorder %s14513_s14, %s14506_s7 }
 0x105   : > { %p14510_p10 = pneg %p14509_p1  ;;  %p14516_p0 = por %p14515_p13, %p14514_p5 }
 0x107   : > { %p14517_p2 = pnand %p14516_p0, %p14510_p10 }
 0x109   : > { %14520 = shalt.err (!%p14517_p2)
}
 0x10a   : > { %13606 = dma.hbm_to_vmem [thread:$0]  (!%p15006_p11), %s15003_s0, 512, %s15010_s2, %s15017_s10, %s15899_s8, %s15899_s8, %s15898_s6  }
 0x10b   : > { %s652_s9 = scalar_lea.vmem [#allocation5], %s14997_s19  ;;  %s648_s16 = sand.u32 1, %s14637_s30  }
 0x10c   : > { %s660_s13 = sshll.u32 %s652_s9, 4  ;;  %s15052_s24 = scalar_lea.sflag [#allocation6], %s648_s16  ;;  %s15050_s13 = int_to_ptr.vmem [resolvable:$true] %s660_s13 }
 0x10d   : > { %s14521_s15 = scalar_lea.hbm %s15015_s5, 512  ;;  %s14526_s11 = scalar_lea.hbm %s15842_s4, 2048 }
 0x10e   : > { %p14522_p5 = scmp.ne.s32.totalorder %s15015_s5, %s14521_s15  ;;  %p14527_p4 = scmp.lt.u32.totalorder %s15015_s5, %s15842_s4 }
 0x10f   : > { %p14528_p8 = scmp.lt.u32.totalorder %s14526_s11, %s14521_s15  ;;  %p14530_p12 = scmp.lt.u32.totalorder %s14521_s15, %s15015_s5 }
 0x110   : > { %p14524_p10 = pnand %p14522_p5, %p14493_p7 }
 0x111   : > { %p14529_p9 = por %p14528_p8, %p14527_p4 }
 0x112   : > { %p14525_p3 = pneg %p14524_p10 }
 0x113   : > { %p14531_p1 = por %p14530_p12, %p14529_p9 }
 0x115   : > { %p14532_p13 = pnand %p14531_p1, %p14525_p3 }
 0x117   : > { %14535 = shalt.err (!%p14532_p13)
}
 0x118   : > { %s14536_s19 = scalar_lea.vmem %s15050_s13, 512  ;;  %s14651_s0 = smov [#allocation5]  }
 0x119   : > { %p14537_p0 = scmp.ne.s32.totalorder %s15050_s13, %s14536_s19  ;;  %s14541_s2 = sshll.u32 %s14651_s0, 4  ;;  %s14542_s2 = int_to_ptr.vmem [resolvable:$false] %s14541_s2 }
 0x11a   : > { %s14543_s10 = scalar_lea.vmem %s14542_s2, 1024  ;;  %p14544_p10 = scmp.lt.s32.totalorder %s15050_s13, %s14542_s2 }
 0x11b   : > { %p14539_p2 = pnand %p14537_p0, %p14493_p7  ;;  %p14545_p4 = scmp.lt.s32.totalorder %s14543_s10, %s14536_s19 }
 0x11d   : > { %p14540_p5 = pneg %p14539_p2  ;;  %p14546_p8 = por %p14545_p4, %p14544_p10 }
 0x11f   : > { %p14547_p9 = pnand %p14546_p8, %p14540_p5 }
 0x121   : > { %14550 = shalt.err (!%p14547_p9)
}
 0x122   : > { %13609 = dma.hbm_to_vmem [thread:$0]  (!%p15006_p11), %s15015_s5, 512, %s15050_s13, %s15052_s24, %s15899_s8, %s15899_s8, %s15898_s6  }
 0x123   : > { %p15905_p7 = scmp.ne.s32.totalorder %s15888_s20, 0 }
 0x124   : > { %s15084_s9 = sand.u32 (!%p15905_p7), 1, %s14629_s28  }
 0x125   : > { %672 = sbr.rel (%p15905_p7) target bundleno = 12904 (0x3268), region = 92  ;;  %s10699_s16 = sshll.u32 (!%p15905_p7), %s15084_s9, 5 }
 0x126   : > { %s675_s15 = scalar_lea.sflag (!%p15905_p7), [#allocation3], %s15084_s9  ;;  %s15088_s25 = scalar_lea.vmem (!%p15905_p7), [#allocation2], %s10699_s16 }
 0x12c   : > { %14596 = dma.done.wait (%p14983_p6), %s675_s15, 512  }
 0x12d   : > { %14598 = vsyncadd (%p14983_p6), %s675_s15, 4294966784  ;;  %s683_s6 = sand.u32 1, %s14774_s1   ;;  %s15095_s8 = scalar_lea.vmem [#allocation5], %s10699_s16 }
 0x12e   : > { %s684_s20 = scalar_lea.sflag [#allocation6], %s683_s6 }
 0x12f   : > { %14600 = dma.done.wait (%p14983_p6), %s684_s20, 512  }
 0x130   : > { %14602 = vsyncadd (%p14983_p6), %s684_s20, 4294966784  ;;  %p15906_p11 = scmp.eq.s32.totalorder %s14774_s1, 0 }
 0x132   : > { %14604 = dma.done.wait (%p15906_p11), [#allocation6], 512   ;;  %p15907_p3 = pmov %p15906_p11 }
 0x134   : > { %14606 = vsyncadd (%p15907_p3), [#allocation6], 4294966784  ;;  %p15908_p12 = pmov %p15907_p3 }
 0x135   : > { %p15909_p1 = pmov %p15907_p3 }
 0x136   : > { %14608 = dma.done.wait (%p15908_p12), [#allocation9], 11264  }
 0x137   : > { %14610 = vsyncadd (%p15909_p1), [#allocation9], 4294956032  ;;  %p15910_p13 = pmov %p15909_p1 }
 0x138   : > { %p15911_p0 = pmov %p15909_p1 }
 0x139   : > { %14612 = dma.done.wait (%p15910_p13), [#allocation12], 10240  }
 0x13a   : > { %14614 = vsyncadd (%p15911_p0), [#allocation12], 4294957056  ;;  %p15912_p6 = pmov %p15911_p0 }
 0x13b   : > { %p15913_p2 = pmov %p15911_p0 }
 0x13c   : > { %14616 = dma.done.wait (%p15912_p6), [#allocation15], 4096  }
 0x13d   : > { %14618 = vsyncadd (%p15913_p2), [#allocation15], 4294963200  ;;  %s10709_s26 = sshll.u32 %s14774_s1, 2  ;;  %v13678_v0 = vld [vmem:[#allocation7] sm:$0xff]   ;;  %v13679_v1 = vld [vmem:[#allocation7 + $0x8] sm:$0xff]   ;;  %s15914_s24 = sld [smem:[#allocation25_spill]] }
 0x13e   : > { %p792_p5 = scmp.lt.s32.totalorder %s10709_s26, 15  ;;  %12315 = vmatprep.subr.bf16.mxu1 %v13678_v0  ;;  %v13680_v2 = vld [vmem:[#allocation7 + $0x10] sm:$0xff]   ;;  %vm911_vm0 = vcmask 523264   ;;  %v13681_v4 = vld [vmem:[#allocation7 + $0x18] sm:$0xff]   ;;  %s15915_s14 = sld [smem:[#allocation26_spill]]  ;;  %v13698_v13 = vld [vmem:[#allocation8] sm:$0xff]  }
 0x13f   : > { %12316 = vmatpush3.bf16.msra.mxu1 %v13678_v0  ;;  %v13699_v14 = vld [vmem:[#allocation8 + $0x8] sm:$0xff]   ;;  %12371 = vmatprep.subr.bf16.mxu0 %v13698_v13  ;;  %v13700_v15 = vld [vmem:[#allocation8 + $0x10] sm:$0xff]   ;;  %v13701_v16 = vld [vmem:[#allocation8 + $0x18] sm:$0xff]   ;;  %s15916_s10 = sld [smem:[#allocation29_spill]]  ;;  %s15917_s6 = sld [smem:[#allocation31_spill]]  ;;  %vm14654_vm1 = vmmov 0  }
 0x140   : > { %s15931_s26 = smov (!%p792_p5, %s10709_s26), 15  ;;  %12317 = vmatprep.subr.bf16.mxu1 %v13679_v1  ;;  %12372 = vmatpush3.bf16.msra.mxu0 %v13698_v13  ;;  %v13702_v17 = vld [vmem:[#allocation8 + $0x20] sm:$0xff]   ;;  %v13703_v18 = vld [vmem:[#allocation8 + $0x28] sm:$0xff]   ;;  %s15919_s16 = sld [smem:[#allocation33_spill]] }
 0x141   : > { %s11462_s18 = sshll.u32 %s15931_s26, 6  ;;  %12373 = vmatprep.subr.bf16.mxu0 %v13699_v14  ;;  %s10708_s11 = sshll.u32 %s15084_s9, 6 }
 0x142   : > { %s15324_s2 = scalar_lea.vmem [#allocation17], %s10708_s11  ;;  %p15924_p4 = scmp.ne.s32.totalorder %s15902_s17, 0 }
 0x143   : > { %s15124_s7 = scalar_lea.vmem %s15914_s24, %s11462_s18  ;;  %12318 = vmatpush3.bf16.msra.mxu1 %v13679_v1  ;;  %s11464_s24 = sshll.u32 %s15931_s26, 5 }
 0x144   : > { %v13682_v3 = vld [vmem:[%s15124_s7] sm:$0xff]   ;;  %12319 = vmatprep.subr.bf16.mxu1 %v13680_v2  ;;  %s15131_s19 = scalar_lea.vmem %s15915_s14, %s11462_s18  ;;  %v13683_v5 = vld [vmem:[%s15124_s7 + $0x8] sm:$0xff]   ;;  %v13684_v6 = vld [vmem:[%s15124_s7 + $0x10] sm:$0xff]   ;;  %12374 = vmatpush3.bf16.msra.mxu0 %v13699_v14  ;;  %s15918_s14 = sld [smem:[#allocation27_spill]] }
 0x145   : > { %12323 = vmatprep.mubr.msk.bf16.mxu1 %vm911_vm0, %v13682_v3  ;;  %v13685_v7 = vld [vmem:[%s15124_s7 + $0x18] sm:$0xff]   ;;  %v13686_v8 = vld [vmem:[%s15124_s7 + $0x20] sm:$0xff]   ;;  %v13687_v9 = vld [vmem:[%s15124_s7 + $0x28] sm:$0xff]   ;;  %12375 = vmatprep.subr.bf16.mxu0 %v13700_v15  ;;  %s15920_s18 = sld [smem:[#allocation35_spill]]  ;;  %s15922_s26 = sld [smem:[#allocation40_spill]] }
 0x146   : > { %v13688_v10 = vld [vmem:[%s15124_s7 + $0x30] sm:$0xff]   ;;  %v13689_v11 = vld [vmem:[%s15124_s7 + $0x38] sm:$0xff]   ;;  %v15148_v12 = vld [vmem:[%s15131_s19] sm:$0xff]   ;;  %s10482_s15 = sshll.u32 %s15324_s2, 4  ;;  %s15793_s15 = int_to_ptr.vmem [resolvable:$true] %s10482_s15 }
 0x147   : > { %12320 = vmatpush3.bf16.msra.mxu1 %v13680_v2  ;;  %v10718_v19 = vld [vmem:[%s15916_s10] ss:$0 sm:$0xff]  ;;  %v15155_v60 = vld [vmem:[%s15131_s19 + $0x8] sm:$0xff]   ;;  %v15158_v61 = vld [vmem:[%s15131_s19 + $0x10] sm:$0xff]   ;;  %s14551_s13 = scalar_lea.vmem %s15793_s15, 1024 }
 0x148   : > { %12321 = vmatprep.subr.bf16.mxu1 %v13681_v4  ;;  %12376 = vmatpush3.bf16.msra.mxu0 %v13700_v15  ;;  %v15163_v62 = vld [vmem:[%s15131_s19 + $0x18] sm:$0xff]   ;;  %v15166_v63 = vld [vmem:[%s15131_s19 + $0x20] sm:$0xff]   ;;  %v15171_v0 = vld [vmem:[%s15131_s19 + $0x28] sm:$0xff]   ;;  %p14552_p10 = scmp.ne.s32.totalorder %s15793_s15, %s14551_s13 }
 0x149   : > { %12377 = vmatprep.subr.bf16.mxu0 %v13701_v16  ;;  %v15174_v1 = vld [vmem:[%s15131_s19 + $0x30] sm:$0xff]   ;;  %v15179_v2 = vld [vmem:[%s15131_s19 + $0x38] sm:$0xff]  }
 0x14a   : > { %v13704_v3 = vld [vmem:[#allocation8 + $0x30] sm:$0xff]   ;;  %s15222_s0 = scalar_lea.vmem %s15918_s14, %s11464_s24  ;;  %s15921_s24 = sld [smem:[#allocation38_spill]] }
 0x14b   : > { %12322 = vmatpush3.bf16.msra.mxu1 %v13681_v4  ;;  %v13705_v4 = vld [vmem:[#allocation8 + $0x38] sm:$0xff]   ;;  %s11466_s14 = sshll.u32 %s14774_s1, 10  ;;  %p14553_p8 = pnand %p14552_p10, %p15924_p4 }
 0x14c   : > { %12378 = vmatpush3.bf16.msra.mxu0 %v13701_v16  ;;  %s14655_s1 = smov [#allocation17]  }
 0x14d   : > { %12379 = vmatprep.subr.bf16.mxu0 %v13702_v17  ;;  %p14554_p9 = pneg %p14553_p8 }
 0x14e   : > { %12324 = vmatmul.mubr.msk.bf16.vlgmr.msra.gmra.mrb[0].mxu1 %vm911_vm0, %v13683_v5 }
 0x14f   : > { %12327 = vmatprep.mubr.msk.bf16.mxu1 %vm911_vm0, %v13684_v6 }
 0x150   : > { %12380 = vmatpush3.bf16.msra.mxu0 %v13702_v17 }
 0x151   : > { %12381 = vmatprep.subr.bf16.mxu0 %v13703_v18 }
 0x154   : > { %12382 = vmatpush3.bf16.msra.mxu0 %v13703_v18 }
 0x155   : > { %12383 = vmatprep.subr.bf16.mxu0 %v13704_v3 }
 0x156   : > { %12328 = vmatmul.mubr.msk.bf16.gmra.mrb[4].mxu1 %vm911_vm0, %v13685_v7 }
 0x157   : > { %12331 = vmatprep.mubr.msk.bf16.mxu1 %vm911_vm0, %v13686_v8 }
 0x158   : > { %12384 = vmatpush3.bf16.msra.mxu0 %v13704_v3 }
 0x159   : > { %12385 = vmatprep.subr.bf16.mxu0 %v13705_v4 }
 0x15c   : > { %12386 = vmatpush3.bf16.msra.mxu0 %v13705_v4 }
 0x15e   : > { %12332 = vmatmul.mubr.msk.bf16.gmra.mrb[8].mxu1 %vm911_vm0, %v13687_v9 }
 0x15f   : > { %12335 = vmatprep.mubr.msk.bf16.mxu1 %vm911_vm0, %v13688_v10 }
 0x166   : > { %12336 = vmatmul.mubr.msk.bf16.gmra.mrb[12].mxu1 %vm911_vm0, %v13689_v11 }
 0x167   : > { %12355 = vmatprep.mubr.bf16.mxu1 %v15148_v12 }
 0x221   : > { %v12325_v20 = vpop.f32.mrb[0].mxu1 }
 0x222   : > { %v970_v21 = vpop.f32.mrb[1].mxu1  ;;  %v979_v23 = vadd.f32 %v12325_v20, %v10718_v19 }
 0x223   : > { %v12326_v22 = vpop.f32.mrb[2].mxu1  ;;  %v971_v26 = vadd.f32 %v10718_v19, %v970_v21 }
 0x224   : > { %v982_v24 = vadd.f32 %v12326_v22, %v10718_v19  ;;  %v973_v25 = vpop.f32.mrb[3].mxu1 }
 0x225   : > { %v974_v27 = vadd.f32 %v10718_v19, %v973_v25 }
 0x226   : > { %v1050_v28 = vpack.c.bf16 %v982_v24, %v979_v23 }
 0x227   : > { %v1049_v29 = vpack.c.bf16 %v974_v27, %v971_v26 }
 0x229   : > { %v12329_v30 = vpop.f32.mrb[4].mxu1  ;;  %12339 = vmatprep.subr.bf16.mxu1 %v1049_v29 }
 0x22a   : > { %v986_v31 = vpop.f32.mrb[5].mxu1  ;;  %12340 = vmatpush3.bf16.msra.mxu1 %v1049_v29  ;;  %v995_v33 = vadd.f32 %v12329_v30, %v10718_v19 }
 0x22b   : > { %v12330_v32 = vpop.f32.mrb[6].mxu1  ;;  %12341 = vmatprep.subr.bf16.mxu1 %v1050_v28  ;;  %v987_v36 = vadd.f32 %v10718_v19, %v986_v31 }
 0x22c   : > { %v998_v34 = vadd.f32 %v12330_v32, %v10718_v19  ;;  %v989_v35 = vpop.f32.mrb[7].mxu1 }
 0x22d   : > { %v990_v37 = vadd.f32 %v10718_v19, %v989_v35 }
 0x22e   : > { %12342 = vmatpush3.bf16.msra.mxu1 %v1050_v28  ;;  %v1052_v38 = vpack.c.bf16 %v998_v34, %v995_v33 }
 0x22f   : > { %v1051_v39 = vpack.c.bf16 %v990_v37, %v987_v36 }
 0x231   : > { %v12333_v40 = vpop.f32.mrb[8].mxu1  ;;  %12343 = vmatprep.subr.bf16.mxu1 %v1051_v39 }
 0x232   : > { %v1002_v41 = vpop.f32.mrb[9].mxu1  ;;  %12344 = vmatpush3.bf16.msra.mxu1 %v1051_v39  ;;  %v1011_v43 = vadd.f32 %v12333_v40, %v10718_v19 }
 0x233   : > { %v12334_v42 = vpop.f32.mrb[10].mxu1  ;;  %12345 = vmatprep.subr.bf16.mxu1 %v1052_v38  ;;  %v1003_v46 = vadd.f32 %v10718_v19, %v1002_v41 }
 0x234   : > { %v1014_v44 = vadd.f32 %v12334_v42, %v10718_v19  ;;  %v1005_v45 = vpop.f32.mrb[11].mxu1 }
 0x235   : > { %v1006_v47 = vadd.f32 %v10718_v19, %v1005_v45  ;;  %v13706_v45 = vld [vmem:[#allocation8 + $0x40] sm:$0xff]  }
 0x236   : > { %12346 = vmatpush3.bf16.msra.mxu1 %v1052_v38  ;;  %v1054_v48 = vpack.c.bf16 %v1014_v44, %v1011_v43  ;;  %12435 = vmatprep.subr.bf16.mxu0 %v13706_v45 }
 0x237   : > { %v1053_v49 = vpack.c.bf16 %v1006_v47, %v1003_v46  ;;  %v13707_v46 = vld [vmem:[#allocation8 + $0x48] sm:$0xff]   ;;  %v13708_v47 = vld [vmem:[#allocation8 + $0x50] sm:$0xff]  }
 0x239   : > { %v12337_v50 = vpop.f32.mrb[12].mxu1  ;;  %12347 = vmatprep.subr.bf16.mxu1 %v1053_v49 }
 0x23a   : > { %v1018_v51 = vpop.f32.mrb[13].mxu1  ;;  %12348 = vmatpush3.bf16.msra.mxu1 %v1053_v49  ;;  %v1027_v53 = vadd.f32 %v12337_v50, %v10718_v19  ;;  %v13710_v49 = vld [vmem:[#allocation8 + $0x60] sm:$0xff]   ;;  %v13711_v50 = vld [vmem:[#allocation8 + $0x68] sm:$0xff]  }
 0x23b   : > { %v12338_v52 = vpop.f32.mrb[14].mxu1  ;;  %12349 = vmatprep.subr.bf16.mxu1 %v1054_v48  ;;  %v1019_v56 = vadd.f32 %v10718_v19, %v1018_v51 }
 0x23c   : > { %v1030_v54 = vadd.f32 %v12338_v52, %v10718_v19  ;;  %v1021_v55 = vpop.f32.mrb[15].mxu1  ;;  %v10747_v52 = vld [vmem:[%s15917_s6] ss:$0 sm:$0xff] }
 0x23d   : > { %v1022_v57 = vadd.f32 %v10718_v19, %v1021_v55 }
 0x23e   : > { %12350 = vmatpush3.bf16.msra.mxu1 %v1054_v48  ;;  %v1056_v58 = vpack.c.bf16 %v1030_v54, %v1027_v53  ;;  %v13709_v48 = vld [vmem:[#allocation8 + $0x58] sm:$0xff]  }
 0x23f   : > { %v1055_v59 = vpack.c.bf16 %v1022_v57, %v1019_v56 }
 0x241   : > { %12351 = vmatprep.subr.bf16.mxu1 %v1055_v59 }
 0x242   : > { %12352 = vmatpush3.bf16.msra.mxu1 %v1055_v59 }
 0x243   : > { %12353 = vmatprep.subr.bf16.mxu1 %v1056_v58 }
 0x246   : > { %12354 = vmatpush3.bf16.msra.mxu1 %v1056_v58 }
 0x249   : > { %12356 = vmatmul.mubr.bf16.vlgmr.msra.gmra.mrb[16].mxu1 %v15155_v60 }
 0x24a   : > { %12359 = vmatprep.mubr.bf16.mxu1 %v15158_v61 }
 0x251   : > { %12360 = vmatmul.mubr.bf16.gmra.mrb[20].mxu1 %v15163_v62 }
 0x252   : > { %12363 = vmatprep.mubr.bf16.mxu1 %v15166_v63 }
 0x259   : > { %12364 = vmatmul.mubr.bf16.gmra.mrb[24].mxu1 %v15171_v0 }
 0x25a   : > { %12367 = vmatprep.mubr.bf16.mxu1 %v15174_v1 }
 0x261   : > { %12368 = vmatmul.mubr.bf16.gmra.mrb[28].mxu1 %v15179_v2 }
 0x262   : > { %12419 = vmatprep.mubr.bf16.mxu1 %v15148_v12 }
 0x31c   : > { %v12357_v5 = vpop.f32.mrb[16].mxu1 }
 0x31d   : > { %v1139_v6 = vpop.f32.mrb[17].mxu1  ;;  %v1204_v8 = vmax.f32 %v12357_v5, 0.0 }
 0x31e   : > { %v12358_v7 = vpop.f32.mrb[18].mxu1  ;;  %v1202_v11 = vmax.f32 %v1139_v6, 0.0 }
 0x31f   : > { %v1205_v9 = vmax.f32 %v12358_v7, 0.0  ;;  %v1142_v10 = vpop.f32.mrb[19].mxu1 }
 0x320   : > { %v1203_v13 = vmax.f32 %v1142_v10, 0.0 }
 0x321   : > { %v1219_v14 = vpack.c.bf16 %v1205_v9, %v1204_v8 }
 0x322   : > { %v1218_v15 = vpack.c.bf16 %v1203_v13, %v1202_v11 }
 0x324   : > { %v12361_v16 = vpop.f32.mrb[20].mxu1  ;;  %12387 = vmatprep.mubr.bf16.mxu0 %v1218_v15 }
 0x325   : > { %v1155_v17 = vpop.f32.mrb[21].mxu1  ;;  %12388 = vmatmul.mubr.bf16.vlgmr.msra.gmra.mrb[0].mxu0 %v1219_v14  ;;  %v1208_v18 = vmax.f32 %v12361_v16, 0.0 }
 0x326   : > { %v12362_v12 = vpop.f32.mrb[22].mxu1  ;;  %v1206_v21 = vmax.f32 %v1155_v17, 0.0  ;;  %12436 = vmatpush3.bf16.msra.mxu0 %v13706_v45 }
 0x327   : > { %v1209_v19 = vmax.f32 %v12362_v12, 0.0  ;;  %v1158_v20 = vpop.f32.mrb[23].mxu1  ;;  %12437 = vmatprep.subr.bf16.mxu0 %v13707_v46 }
 0x328   : > { %v1207_v22 = vmax.f32 %v1158_v20, 0.0 }
 0x329   : > { %v1221_v23 = vpack.c.bf16 %v1209_v19, %v1208_v18 }
 0x32a   : > { %v1220_v24 = vpack.c.bf16 %v1207_v22, %v1206_v21  ;;  %12438 = vmatpush3.bf16.msra.mxu0 %v13707_v46 }
 0x32b   : > { %12439 = vmatprep.subr.bf16.mxu0 %v13708_v47 }
 0x32c   : > { %v12365_v25 = vpop.f32.mrb[24].mxu1  ;;  %12391 = vmatprep.mubr.bf16.mxu0 %v1220_v24 }
 0x32d   : > { %v1171_v26 = vpop.f32.mrb[25].mxu1  ;;  %12392 = vmatmul.mubr.bf16.gmra.mrb[4].mxu0 %v1221_v23  ;;  %v1212_v28 = vmax.f32 %v12365_v25, 0.0 }
 0x32e   : > { %v12366_v27 = vpop.f32.mrb[26].mxu1  ;;  %v1210_v31 = vmax.f32 %v1171_v26, 0.0  ;;  %12440 = vmatpush3.bf16.msra.mxu0 %v13708_v47 }
 0x32f   : > { %v1213_v29 = vmax.f32 %v12366_v27, 0.0  ;;  %v1174_v30 = vpop.f32.mrb[27].mxu1  ;;  %12441 = vmatprep.subr.bf16.mxu0 %v13709_v48 }
 0x330   : > { %v1211_v32 = vmax.f32 %v1174_v30, 0.0 }
 0x331   : > { %v1223_v33 = vpack.c.bf16 %v1213_v29, %v1212_v28 }
 0x332   : > { %v1222_v34 = vpack.c.bf16 %v1211_v32, %v1210_v31  ;;  %12442 = vmatpush3.bf16.msra.mxu0 %v13709_v48 }
 0x333   : > { %12443 = vmatprep.subr.bf16.mxu0 %v13710_v49 }
 0x334   : > { %v12369_v35 = vpop.f32.mrb[28].mxu1  ;;  %12395 = vmatprep.mubr.bf16.mxu0 %v1222_v34 }
 0x335   : > { %v1187_v36 = vpop.f32.mrb[29].mxu1  ;;  %12396 = vmatmul.mubr.bf16.gmra.mrb[8].mxu0 %v1223_v33  ;;  %v1216_v38 = vmax.f32 %v12369_v35, 0.0  ;;  %v15194_v35 = vld [vmem:[%s15131_s19] sm:$0xff]  }
 0x336   : > { %v12370_v37 = vpop.f32.mrb[30].mxu1  ;;  %v1214_v41 = vmax.f32 %v1187_v36, 0.0  ;;  %12444 = vmatpush3.bf16.msra.mxu0 %v13710_v49  ;;  %v13712_v36 = vld [vmem:[#allocation8 + $0x70] sm:$0xff]  }
 0x337   : > { %v1217_v39 = vmax.f32 %v12370_v37, 0.0  ;;  %v1190_v40 = vpop.f32.mrb[31].mxu1  ;;  %12445 = vmatprep.subr.bf16.mxu0 %v13711_v50  ;;  %v13713_v37 = vld [vmem:[#allocation8 + $0x78] sm:$0xff]  }
 0x338   : > { %v1215_v42 = vmax.f32 %v1190_v40, 0.0 }
 0x339   : > { %v1225_v43 = vpack.c.bf16 %v1217_v39, %v1216_v38 }
 0x33a   : > { %v1224_v44 = vpack.c.bf16 %v1215_v42, %v1214_v41  ;;  %12446 = vmatpush3.bf16.msra.mxu0 %v13711_v50 }
 0x33b   : > { %12447 = vmatprep.subr.bf16.mxu0 %v13712_v36 }
 0x33c   : > { %12399 = vmatprep.mubr.bf16.mxu0 %v1224_v44 }
 0x33d   : > { %12400 = vmatmul.mubr.bf16.gmra.mrb[12].mxu0 %v1225_v43 }
 0x33e   : > { %12448 = vmatpush3.bf16.msra.mxu0 %v13712_v36 }
 0x33f   : > { %12449 = vmatprep.subr.bf16.mxu0 %v13713_v37 }
 0x342   : > { %12450 = vmatpush3.bf16.msra.mxu0 %v13713_v37 }
 0x3f8   : > { %v12389_v51 = vpop.f32.mrb[0].mxu0 }
 0x3f9   : > { %v1331_v53 = vpop.f32.mrb[1].mxu0  ;;  %v1340_v55 = vadd.f32 %v12389_v51, %v10747_v52 }
 0x3fa   : > { %v12390_v54 = vpop.f32.mrb[2].mxu0  ;;  %v1332_v58 = vadd.f32 %v10747_v52, %v1331_v53 }
 0x3fb   : > { %v1343_v56 = vadd.f32 %v12390_v54, %v10747_v52  ;;  %v1334_v57 = vpop.f32.mrb[3].mxu0 }
 0x3fc   : > { %v1335_v59 = vadd.f32 %v10747_v52, %v1334_v57 }
 0x3fd   : > { %v1395_v3 = vpack.c.bf16 %v1343_v56, %v1340_v55 }
 0x3fe   : > { %v1394_v4 = vpack.c.bf16 %v1335_v59, %v1332_v58 }
 0x400   : > { %v12393_v5 = vpop.f32.mrb[4].mxu0  ;;  %12403 = vmatprep.subr.bf16.mxu1 %v1394_v4 }
 0x401   : > { %v1347_v6 = vpop.f32.mrb[5].mxu0  ;;  %12404 = vmatpush3.bf16.msra.mxu1 %v1394_v4  ;;  %v1356_v8 = vadd.f32 %v12393_v5, %v10747_v52 }
 0x402   : > { %v12394_v7 = vpop.f32.mrb[6].mxu0  ;;  %12405 = vmatprep.subr.bf16.mxu1 %v1395_v3  ;;  %v1348_v11 = vadd.f32 %v10747_v52, %v1347_v6 }
 0x403   : > { %v1359_v9 = vadd.f32 %v12394_v7, %v10747_v52  ;;  %v1350_v10 = vpop.f32.mrb[7].mxu0 }
 0x404   : > { %v1351_v13 = vadd.f32 %v10747_v52, %v1350_v10 }
 0x405   : > { %12406 = vmatpush3.bf16.msra.mxu1 %v1395_v3  ;;  %v1397_v14 = vpack.c.bf16 %v1359_v9, %v1356_v8 }
 0x406   : > { %v1396_v15 = vpack.c.bf16 %v1351_v13, %v1348_v11 }
 0x408   : > { %v12397_v16 = vpop.f32.mrb[8].mxu0  ;;  %12407 = vmatprep.subr.bf16.mxu1 %v1396_v15 }
 0x409   : > { %v1363_v17 = vpop.f32.mrb[9].mxu0  ;;  %12408 = vmatpush3.bf16.msra.mxu1 %v1396_v15  ;;  %v1372_v18 = vadd.f32 %v12397_v16, %v10747_v52 }
 0x40a   : > { %v12398_v12 = vpop.f32.mrb[10].mxu0  ;;  %12409 = vmatprep.subr.bf16.mxu1 %v1397_v14  ;;  %v1364_v21 = vadd.f32 %v10747_v52, %v1363_v17 }
 0x40b   : > { %v1375_v19 = vadd.f32 %v12398_v12, %v10747_v52  ;;  %v1366_v20 = vpop.f32.mrb[11].mxu0 }
 0x40c   : > { %v1367_v22 = vadd.f32 %v10747_v52, %v1366_v20 }
 0x40d   : > { %12410 = vmatpush3.bf16.msra.mxu1 %v1397_v14  ;;  %v1399_v23 = vpack.c.bf16 %v1375_v19, %v1372_v18 }
 0x40e   : > { %v1398_v24 = vpack.c.bf16 %v1367_v22, %v1364_v21  ;;  %v13714_v21 = vld [vmem:[#allocation8 + $0x80] sm:$0xff]   ;;  %v13715_v22 = vld [vmem:[#allocation8 + $0x88] sm:$0xff]  }
 0x40f   : > { %12499 = vmatprep.subr.bf16.mxu0 %v13714_v21 }
 0x410   : > { %v12401_v25 = vpop.f32.mrb[12].mxu0  ;;  %12411 = vmatprep.subr.bf16.mxu1 %v1398_v24 }
 0x411   : > { %v1379_v26 = vpop.f32.mrb[13].mxu0  ;;  %12412 = vmatpush3.bf16.msra.mxu1 %v1398_v24  ;;  %v1388_v28 = vadd.f32 %v12401_v25, %v10747_v52  ;;  %v13717_v24 = vld [vmem:[#allocation8 + $0x98] sm:$0xff]   ;;  %v13718_v25 = vld [vmem:[#allocation8 + $0xa0] sm:$0xff]  }
 0x412   : > { %v12402_v27 = vpop.f32.mrb[14].mxu0  ;;  %12413 = vmatprep.subr.bf16.mxu1 %v1399_v23  ;;  %v1380_v31 = vadd.f32 %v10747_v52, %v1379_v26  ;;  %v13719_v26 = vld [vmem:[#allocation8 + $0xa8] sm:$0xff]  }
 0x413   : > { %v1391_v29 = vadd.f32 %v12402_v27, %v10747_v52  ;;  %v1382_v30 = vpop.f32.mrb[15].mxu0 }
 0x414   : > { %v1383_v32 = vadd.f32 %v10747_v52, %v1382_v30 }
 0x415   : > { %12414 = vmatpush3.bf16.msra.mxu1 %v1399_v23  ;;  %v1401_v33 = vpack.c.bf16 %v1391_v29, %v1388_v28  ;;  %v13716_v23 = vld [vmem:[#allocation8 + $0x90] sm:$0xff]   ;;  %v10757_v28 = vld [vmem:[%s15917_s6 + $0x1] ss:$0 sm:$0xff] }
 0x416   : > { %v1400_v34 = vpack.c.bf16 %v1383_v32, %v1380_v31 }
 0x418   : > { %12415 = vmatprep.subr.bf16.mxu1 %v1400_v34 }
 0x419   : > { %12416 = vmatpush3.bf16.msra.mxu1 %v1400_v34 }
 0x41a   : > { %12417 = vmatprep.subr.bf16.mxu1 %v1401_v33 }
 0x41d   : > { %12418 = vmatpush3.bf16.msra.mxu1 %v1401_v33 }
 0x420   : > { %12420 = vmatmul.mubr.bf16.vlgmr.msra.gmra.mrb[32].mxu1 %v15155_v60 }
 0x421   : > { %12423 = vmatprep.mubr.bf16.mxu1 %v15158_v61 }
 0x428   : > { %12424 = vmatmul.mubr.bf16.gmra.mrb[36].mxu1 %v15163_v62 }
 0x429   : > { %12427 = vmatprep.mubr.bf16.mxu1 %v15166_v63 }
 0x430   : > { %12428 = vmatmul.mubr.bf16.gmra.mrb[40].mxu1 %v15171_v0 }
 0x431   : > { %12431 = vmatprep.mubr.bf16.mxu1 %v15174_v1 }
 0x438   : > { %12432 = vmatmul.mubr.bf16.gmra.mrb[44].mxu1 %v15179_v2 }
 0x439   : > { %12483 = vmatprep.mubr.bf16.mxu1 %v15194_v35 }
 0x4f3   : > { %v12421_v38 = vpop.f32.mrb[32].mxu1 }
 0x4f4   : > { %v1436_v39 = vpop.f32.mrb[33].mxu1  ;;  %v1501_v41 = vmax.f32 %v12421_v38, 0.0 }
 0x4f5   : > { %v12422_v40 = vpop.f32.mrb[34].mxu1  ;;  %v1499_v44 = vmax.f32 %v1436_v39, 0.0 }
 0x4f6   : > { %v1502_v42 = vmax.f32 %v12422_v40, 0.0  ;;  %v1439_v43 = vpop.f32.mrb[35].mxu1 }
 0x4f7   : > { %v1500_v45 = vmax.f32 %v1439_v43, 0.0 }
 0x4f8   : > { %v1516_v46 = vpack.c.bf16 %v1502_v42, %v1501_v41 }
 0x4f9   : > { %v1515_v47 = vpack.c.bf16 %v1500_v45, %v1499_v44 }
 0x4fb   : > { %v12425_v48 = vpop.f32.mrb[36].mxu1  ;;  %12451 = vmatprep.mubr.bf16.mxu0 %v1515_v47 }
 0x4fc   : > { %v1452_v49 = vpop.f32.mrb[37].mxu1  ;;  %12452 = vmatmul.mubr.bf16.vlgmr.msra.gmra.mrb[16].mxu0 %v1516_v46  ;;  %v1505_v51 = vmax.f32 %v12425_v48, 0.0 }
 0x4fd   : > { %v12426_v50 = vpop.f32.mrb[38].mxu1  ;;  %v1503_v54 = vmax.f32 %v1452_v49, 0.0  ;;  %12500 = vmatpush3.bf16.msra.mxu0 %v13714_v21 }
 0x4fe   : > { %v1506_v52 = vmax.f32 %v12426_v50, 0.0  ;;  %v1455_v53 = vpop.f32.mrb[39].mxu1  ;;  %12501 = vmatprep.subr.bf16.mxu0 %v13715_v22 }
 0x4ff   : > { %v1504_v55 = vmax.f32 %v1455_v53, 0.0 }
 0x500   : > { %v1518_v56 = vpack.c.bf16 %v1506_v52, %v1505_v51 }
 0x501   : > { %v1517_v57 = vpack.c.bf16 %v1504_v55, %v1503_v54  ;;  %12502 = vmatpush3.bf16.msra.mxu0 %v13715_v22 }
 0x502   : > { %12503 = vmatprep.subr.bf16.mxu0 %v13716_v23 }
 0x503   : > { %v12429_v58 = vpop.f32.mrb[40].mxu1  ;;  %12455 = vmatprep.mubr.bf16.mxu0 %v1517_v57 }
 0x504   : > { %v1468_v59 = vpop.f32.mrb[41].mxu1  ;;  %12456 = vmatmul.mubr.bf16.gmra.mrb[20].mxu0 %v1518_v56  ;;  %v1509_v4 = vmax.f32 %v12429_v58, 0.0 }
 0x505   : > { %v12430_v3 = vpop.f32.mrb[42].mxu1  ;;  %v1507_v7 = vmax.f32 %v1468_v59, 0.0  ;;  %12504 = vmatpush3.bf16.msra.mxu0 %v13716_v23 }
 0x506   : > { %v1510_v5 = vmax.f32 %v12430_v3, 0.0  ;;  %v1471_v6 = vpop.f32.mrb[43].mxu1  ;;  %12505 = vmatprep.subr.bf16.mxu0 %v13717_v24 }
 0x507   : > { %v1508_v8 = vmax.f32 %v1471_v6, 0.0 }
 0x508   : > { %v1520_v9 = vpack.c.bf16 %v1510_v5, %v1509_v4 }
 0x509   : > { %v1519_v10 = vpack.c.bf16 %v1508_v8, %v1507_v7  ;;  %12506 = vmatpush3.bf16.msra.mxu0 %v13717_v24 }
 0x50a   : > { %12507 = vmatprep.subr.bf16.mxu0 %v13718_v25 }
 0x50b   : > { %v12433_v11 = vpop.f32.mrb[44].mxu1  ;;  %12459 = vmatprep.mubr.bf16.mxu0 %v1519_v10 }
 0x50c   : > { %v1484_v13 = vpop.f32.mrb[45].mxu1  ;;  %12460 = vmatmul.mubr.bf16.gmra.mrb[24].mxu0 %v1520_v9  ;;  %v1513_v15 = vmax.f32 %v12433_v11, 0.0 }
 0x50d   : > { %v12434_v14 = vpop.f32.mrb[46].mxu1  ;;  %v1511_v12 = vmax.f32 %v1484_v13, 0.0  ;;  %12508 = vmatpush3.bf16.msra.mxu0 %v13718_v25  ;;  %v13720_v13 = vld [vmem:[#allocation8 + $0xb0] sm:$0xff]  }
 0x50e   : > { %v1514_v16 = vmax.f32 %v12434_v14, 0.0  ;;  %v1487_v17 = vpop.f32.mrb[47].mxu1  ;;  %12509 = vmatprep.subr.bf16.mxu0 %v13719_v26  ;;  %v13721_v14 = vld [vmem:[#allocation8 + $0xb8] sm:$0xff]  }
 0x50f   : > { %v1512_v18 = vmax.f32 %v1487_v17, 0.0 }
 0x510   : > { %v1522_v19 = vpack.c.bf16 %v1514_v16, %v1513_v15 }
 0x511   : > { %v1521_v20 = vpack.c.bf16 %v1512_v18, %v1511_v12  ;;  %12510 = vmatpush3.bf16.msra.mxu0 %v13719_v26 }
 0x512   : > { %12511 = vmatprep.subr.bf16.mxu0 %v13720_v13 }
 0x513   : > { %12463 = vmatprep.mubr.bf16.mxu0 %v1521_v20 }
 0x514   : > { %12464 = vmatmul.mubr.bf16.gmra.mrb[28].mxu0 %v1522_v19 }
 0x515   : > { %12512 = vmatpush3.bf16.msra.mxu0 %v13720_v13 }
 0x516   : > { %12513 = vmatprep.subr.bf16.mxu0 %v13721_v14 }
 0x519   : > { %12514 = vmatpush3.bf16.msra.mxu0 %v13721_v14 }
 0x5cf   : > { %v12453_v27 = vpop.f32.mrb[16].mxu0 }
 0x5d0   : > { %v1630_v29 = vpop.f32.mrb[17].mxu0  ;;  %v1639_v31 = vadd.f32 %v12453_v27, %v10757_v28 }
 0x5d1   : > { %v12454_v30 = vpop.f32.mrb[18].mxu0  ;;  %v1631_v34 = vadd.f32 %v10757_v28, %v1630_v29 }
 0x5d2   : > { %v1642_v32 = vadd.f32 %v12454_v30, %v10757_v28  ;;  %v1633_v33 = vpop.f32.mrb[19].mxu0 }
 0x5d3   : > { %v1634_v36 = vadd.f32 %v10757_v28, %v1633_v33 }
 0x5d4   : > { %v1694_v37 = vpack.c.bf16 %v1642_v32, %v1639_v31 }
 0x5d5   : > { %v1693_v38 = vpack.c.bf16 %v1634_v36, %v1631_v34 }
 0x5d7   : > { %v12457_v39 = vpop.f32.mrb[20].mxu0  ;;  %12467 = vmatprep.subr.bf16.mxu1 %v1693_v38 }
 0x5d8   : > { %v1646_v40 = vpop.f32.mrb[21].mxu0  ;;  %12468 = vmatpush3.bf16.msra.mxu1 %v1693_v38  ;;  %v1655_v42 = vadd.f32 %v12457_v39, %v10757_v28 }
 0x5d9   : > { %v12458_v41 = vpop.f32.mrb[22].mxu0  ;;  %12469 = vmatprep.subr.bf16.mxu1 %v1694_v37  ;;  %v1647_v45 = vadd.f32 %v10757_v28, %v1646_v40 }
 0x5da   : > { %v1658_v43 = vadd.f32 %v12458_v41, %v10757_v28  ;;  %v1649_v44 = vpop.f32.mrb[23].mxu0 }
 0x5db   : > { %v1650_v46 = vadd.f32 %v10757_v28, %v1649_v44 }
 0x5dc   : > { %12470 = vmatpush3.bf16.msra.mxu1 %v1694_v37  ;;  %v1696_v47 = vpack.c.bf16 %v1658_v43, %v1655_v42 }
 0x5dd   : > { %v1695_v48 = vpack.c.bf16 %v1650_v46, %v1647_v45 }
 0x5df   : > { %v12461_v49 = vpop.f32.mrb[24].mxu0  ;;  %12471 = vmatprep.subr.bf16.mxu1 %v1695_v48 }
 0x5e0   : > { %v1662_v50 = vpop.f32.mrb[25].mxu0  ;;  %12472 = vmatpush3.bf16.msra.mxu1 %v1695_v48  ;;  %v1671_v52 = vadd.f32 %v12461_v49, %v10757_v28 }
 0x5e1   : > { %v12462_v51 = vpop.f32.mrb[26].mxu0  ;;  %12473 = vmatprep.subr.bf16.mxu1 %v1696_v47  ;;  %v1663_v55 = vadd.f32 %v10757_v28, %v1662_v50 }
 0x5e2   : > { %v1674_v53 = vadd.f32 %v12462_v51, %v10757_v28  ;;  %v1665_v54 = vpop.f32.mrb[27].mxu0 }
 0x5e3   : > { %v1666_v56 = vadd.f32 %v10757_v28, %v1665_v54 }
 0x5e4   : > { %12474 = vmatpush3.bf16.msra.mxu1 %v1696_v47  ;;  %v1698_v57 = vpack.c.bf16 %v1674_v53, %v1671_v52 }
 0x5e5   : > { %v1697_v58 = vpack.c.bf16 %v1666_v56, %v1663_v55  ;;  %v10767_v55 = vld [vmem:[%s15917_s6 + $0x2] ss:$0 sm:$0xff] }
 0x5e7   : > { %v12465_v59 = vpop.f32.mrb[28].mxu0  ;;  %12475 = vmatprep.subr.bf16.mxu1 %v1697_v58 }
 0x5e8   : > { %v1678_v3 = vpop.f32.mrb[29].mxu0  ;;  %12476 = vmatpush3.bf16.msra.mxu1 %v1697_v58  ;;  %v1687_v5 = vadd.f32 %v12465_v59, %v10757_v28 }
 0x5e9   : > { %v12466_v4 = vpop.f32.mrb[30].mxu0  ;;  %12477 = vmatprep.subr.bf16.mxu1 %v1698_v57  ;;  %v1679_v8 = vadd.f32 %v10757_v28, %v1678_v3 }
 0x5ea   : > { %v1690_v6 = vadd.f32 %v12466_v4, %v10757_v28  ;;  %v1681_v7 = vpop.f32.mrb[31].mxu0 }
 0x5eb   : > { %v1682_v9 = vadd.f32 %v10757_v28, %v1681_v7 }
 0x5ec   : > { %12478 = vmatpush3.bf16.msra.mxu1 %v1698_v57  ;;  %v1700_v10 = vpack.c.bf16 %v1690_v6, %v1687_v5 }
 0x5ed   : > { %v1699_v11 = vpack.c.bf16 %v1682_v9, %v1679_v8 }
 0x5ef   : > { %12479 = vmatprep.subr.bf16.mxu1 %v1699_v11 }
 0x5f0   : > { %12480 = vmatpush3.bf16.msra.mxu1 %v1699_v11 }
 0x5f1   : > { %12481 = vmatprep.subr.bf16.mxu1 %v1700_v10 }
 0x5f4   : > { %12482 = vmatpush3.bf16.msra.mxu1 %v1700_v10 }
 0x5f7   : > { %12484 = vmatmul.mubr.bf16.vlgmr.msra.gmra.mrb[48].mxu1 %v15155_v60 }
 0x5f8   : > { %12487 = vmatprep.mubr.bf16.mxu1 %v15158_v61 }
 0x5ff   : > { %12488 = vmatmul.mubr.bf16.gmra.mrb[52].mxu1 %v15163_v62 }
 0x600   : > { %12491 = vmatprep.mubr.bf16.mxu1 %v15166_v63 }
 0x607   : > { %12492 = vmatmul.mubr.bf16.gmra.mrb[56].mxu1 %v15171_v0 }
 0x608   : > { %12495 = vmatprep.mubr.bf16.mxu1 %v15174_v1 }
 0x60f   : > { %12496 = vmatmul.mubr.bf16.gmra.mrb[60].mxu1 %v15179_v2 }
 0x610   : > { %12547 = vmatprep.mubr.bf16.mxu1 %v15194_v35 }
 0x6ca   : > { %v12485_v15 = vpop.f32.mrb[48].mxu1 }
 0x6cb   : > { %v1735_v16 = vpop.f32.mrb[49].mxu1  ;;  %v1800_v12 = vmax.f32 %v12485_v15, 0.0 }
 0x6cc   : > { %v12486_v17 = vpop.f32.mrb[50].mxu1  ;;  %v1798_v20 = vmax.f32 %v1735_v16, 0.0 }
 0x6cd   : > { %v1801_v18 = vmax.f32 %v12486_v17, 0.0  ;;  %v1738_v19 = vpop.f32.mrb[51].mxu1 }
 0x6ce   : > { %v1799_v21 = vmax.f32 %v1738_v19, 0.0 }
 0x6cf   : > { %v1815_v22 = vpack.c.bf16 %v1801_v18, %v1800_v12 }
 0x6d0   : > { %v1814_v23 = vpack.c.bf16 %v1799_v21, %v1798_v20 }
 0x6d2   : > { %v12489_v24 = vpop.f32.mrb[52].mxu1  ;;  %12515 = vmatprep.mubr.bf16.mxu0 %v1814_v23 }
 0x6d3   : > { %v1751_v25 = vpop.f32.mrb[53].mxu1  ;;  %12516 = vmatmul.mubr.bf16.vlgmr.msra.gmra.mrb[32].mxu0 %v1815_v22  ;;  %v1804_v26 = vmax.f32 %v12489_v24, 0.0 }
 0x6d4   : > { %v12490_v35 = vpop.f32.mrb[54].mxu1  ;;  %v1802_v29 = vmax.f32 %v1751_v25, 0.0 }
 0x6d5   : > { %v1805_v27 = vmax.f32 %v12490_v35, 0.0  ;;  %v1754_v28 = vpop.f32.mrb[55].mxu1 }
 0x6d6   : > { %v1803_v30 = vmax.f32 %v1754_v28, 0.0 }
 0x6d7   : > { %v1817_v31 = vpack.c.bf16 %v1805_v27, %v1804_v26 }
 0x6d8   : > { %v1816_v32 = vpack.c.bf16 %v1803_v30, %v1802_v29 }
 0x6da   : > { %v12493_v33 = vpop.f32.mrb[56].mxu1  ;;  %12519 = vmatprep.mubr.bf16.mxu0 %v1816_v32 }
 0x6db   : > { %v1767_v34 = vpop.f32.mrb[57].mxu1  ;;  %12520 = vmatmul.mubr.bf16.gmra.mrb[36].mxu0 %v1817_v31  ;;  %v1808_v37 = vmax.f32 %v12493_v33, 0.0 }
 0x6dc   : > { %v12494_v36 = vpop.f32.mrb[58].mxu1  ;;  %v1806_v40 = vmax.f32 %v1767_v34, 0.0 }
 0x6dd   : > { %v1809_v38 = vmax.f32 %v12494_v36, 0.0  ;;  %v1770_v39 = vpop.f32.mrb[59].mxu1 }
 0x6de   : > { %v1807_v41 = vmax.f32 %v1770_v39, 0.0  ;;  %v13735_v39 = vld [vmem:[#allocation10 + $0x1b0] ss:$8 sps:$4 sm:$0xff]  }
 0x6df   : > { %v1819_v42 = vpack.c.bf16 %v1809_v38, %v1808_v37  ;;  %v13728_v38 = vld [vmem:[#allocation10 + $0x184] ss:$8 sps:$4 sm:$0xff]  }
 0x6e0   : > { %v1818_v43 = vpack.c.bf16 %v1807_v41, %v1806_v40  ;;  %v13740_v40 = vld [vmem:[#allocation10 + $0x1c4] ss:$8 sps:$4 sm:$0xff]   ;;  %v13738_v41 = vld [vmem:[#allocation10 + $0x1c0] ss:$8 sps:$4 sm:$0xff]  }
 0x6e2   : > { %v12497_v44 = vpop.f32.mrb[60].mxu1  ;;  %12523 = vmatprep.mubr.bf16.mxu0 %v1818_v43  ;;  %v13741_v43 = vld [vmem:[#allocation10 + $0x1d0] ss:$8 sps:$4 sm:$0xff]  }
 0x6e3   : > { %v1783_v45 = vpop.f32.mrb[61].mxu1  ;;  %12524 = vmatmul.mubr.bf16.gmra.mrb[40].mxu0 %v1819_v42  ;;  %v1812_v47 = vmax.f32 %v12497_v44, 0.0  ;;  %v13743_v42 = vld [vmem:[#allocation10 + $0x1d4] ss:$8 sps:$4 sm:$0xff]   ;;  %v13746_v44 = vld [vmem:[#allocation10 + $0x1e4] ss:$8 sps:$4 sm:$0xff]  }
 0x6e4   : > { %v12498_v46 = vpop.f32.mrb[62].mxu1  ;;  %v1810_v50 = vmax.f32 %v1783_v45, 0.0  ;;  %v13744_v45 = vld [vmem:[#allocation10 + $0x1e0] ss:$8 sps:$4 sm:$0xff]  }
 0x6e5   : > { %v1813_v48 = vmax.f32 %v12498_v46, 0.0  ;;  %v1786_v49 = vpop.f32.mrb[63].mxu1 }
 0x6e6   : > { %v1811_v51 = vmax.f32 %v1786_v49, 0.0 }
 0x6e7   : > { %v1821_v52 = vpack.c.bf16 %v1813_v48, %v1812_v47 }
 0x6e8   : > { %v1820_v53 = vpack.c.bf16 %v1811_v51, %v1810_v50 }
 0x6ea   : > { %12527 = vmatprep.mubr.bf16.mxu0 %v1820_v53 }
 0x6eb   : > { %12528 = vmatmul.mubr.bf16.gmra.mrb[44].mxu0 %v1821_v52 }
 0x7a6   : > { %v12517_v54 = vpop.f32.mrb[32].mxu0 }
 0x7a7   : > { %v1929_v56 = vpop.f32.mrb[33].mxu0  ;;  %v1938_v58 = vadd.f32 %v12517_v54, %v10767_v55 }
 0x7a8   : > { %v12518_v57 = vpop.f32.mrb[34].mxu0  ;;  %v1930_v4 = vadd.f32 %v10767_v55, %v1929_v56 }
 0x7a9   : > { %v1941_v59 = vadd.f32 %v12518_v57, %v10767_v55  ;;  %v1932_v3 = vpop.f32.mrb[35].mxu0 }
 0x7aa   : > { %v1933_v5 = vadd.f32 %v10767_v55, %v1932_v3 }
 0x7ab   : > { %v1993_v6 = vpack.c.bf16 %v1941_v59, %v1938_v58 }
 0x7ac   : > { %v1992_v7 = vpack.c.bf16 %v1933_v5, %v1930_v4 }
 0x7ae   : > { %v12521_v8 = vpop.f32.mrb[36].mxu0  ;;  %12531 = vmatprep.subr.bf16.mxu1 %v1992_v7 }
 0x7af   : > { %v1945_v9 = vpop.f32.mrb[37].mxu0  ;;  %12532 = vmatpush3.bf16.msra.mxu1 %v1992_v7  ;;  %v1954_v11 = vadd.f32 %v12521_v8, %v10767_v55 }
 0x7b0   : > { %v12522_v10 = vpop.f32.mrb[38].mxu0  ;;  %12533 = vmatprep.subr.bf16.mxu1 %v1993_v6  ;;  %v1946_v15 = vadd.f32 %v10767_v55, %v1945_v9 }
 0x7b1   : > { %v1957_v13 = vadd.f32 %v12522_v10, %v10767_v55  ;;  %v1948_v14 = vpop.f32.mrb[39].mxu0 }
 0x7b2   : > { %v1949_v16 = vadd.f32 %v10767_v55, %v1948_v14 }
 0x7b3   : > { %12534 = vmatpush3.bf16.msra.mxu1 %v1993_v6  ;;  %v1995_v17 = vpack.c.bf16 %v1957_v13, %v1954_v11 }
 0x7b4   : > { %v1994_v12 = vpack.c.bf16 %v1949_v16, %v1946_v15 }
 0x7b6   : > { %v12525_v18 = vpop.f32.mrb[40].mxu0  ;;  %12535 = vmatprep.subr.bf16.mxu1 %v1994_v12 }
 0x7b7   : > { %v1961_v19 = vpop.f32.mrb[41].mxu0  ;;  %12536 = vmatpush3.bf16.msra.mxu1 %v1994_v12  ;;  %v1970_v21 = vadd.f32 %v12525_v18, %v10767_v55 }
 0x7b8   : > { %v12526_v20 = vpop.f32.mrb[42].mxu0  ;;  %12537 = vmatprep.subr.bf16.mxu1 %v1995_v17  ;;  %v1962_v24 = vadd.f32 %v10767_v55, %v1961_v19 }
 0x7b9   : > { %v1973_v22 = vadd.f32 %v12526_v20, %v10767_v55  ;;  %v1964_v23 = vpop.f32.mrb[43].mxu0 }
 0x7ba   : > { %v1965_v25 = vadd.f32 %v10767_v55, %v1964_v23 }
 0x7bb   : > { %12538 = vmatpush3.bf16.msra.mxu1 %v1995_v17  ;;  %v1997_v35 = vpack.c.bf16 %v1973_v22, %v1970_v21 }
 0x7bc   : > { %v1996_v26 = vpack.c.bf16 %v1965_v25, %v1962_v24 }
 0x7be   : > { %v12529_v27 = vpop.f32.mrb[44].mxu0  ;;  %12539 = vmatprep.subr.bf16.mxu1 %v1996_v26 }
 0x7bf   : > { %v1977_v28 = vpop.f32.mrb[45].mxu0  ;;  %12540 = vmatpush3.bf16.msra.mxu1 %v1996_v26  ;;  %v1986_v30 = vadd.f32 %v12529_v27, %v10767_v55 }
 0x7c0   : > { %v12530_v29 = vpop.f32.mrb[46].mxu0  ;;  %12541 = vmatprep.subr.bf16.mxu1 %v1997_v35  ;;  %v1978_v33 = vadd.f32 %v10767_v55, %v1977_v28 }
 0x7c1   : > { %v1989_v31 = vadd.f32 %v12530_v29, %v10767_v55  ;;  %v1980_v32 = vpop.f32.mrb[47].mxu0 }
 0x7c2   : > { %v1981_v34 = vadd.f32 %v10767_v55, %v1980_v32 }
 0x7c3   : > { %12542 = vmatpush3.bf16.msra.mxu1 %v1997_v35  ;;  %v1999_v36 = vpack.c.bf16 %v1989_v31, %v1986_v30 }
 0x7c4   : > { %v1998_v37 = vpack.c.bf16 %v1981_v34, %v1978_v33 }
 0x7c6   : > { %12543 = vmatprep.subr.bf16.mxu1 %v1998_v37 }
 0x7c7   : > { %12544 = vmatpush3.bf16.msra.mxu1 %v1998_v37  ;;  %v13723_v37 = vld [vmem:[%s15222_s0 + $0x8] sm:$0xff]  }
 0x7c8   : > { %12545 = vmatprep.subr.bf16.mxu1 %v1999_v36 }
 0x7cb   : > { %12546 = vmatpush3.bf16.msra.mxu1 %v1999_v36 }
 0x7cc   : > { %2316 = vmatprep.subr.bf16.mxu1 %v13728_v38  ;;  %v13749_v38 = vld [vmem:[#allocation10 + $0x1f4] ss:$8 sps:$4 sm:$0xff]  }
 0x7ce   : > { %12548 = vmatmul.mubr.bf16.vlgmr.msra.gmra.mrb[64].mxu1 %v15155_v60  ;;  %v13722_v60 = vld [vmem:[%s15222_s0] sm:$0xff]  }
 0x7cf   : > { %12551 = vmatprep.mubr.bf16.mxu1 %v15158_v61  ;;  %12579 = vmatprep.mubr.bf16.mxu0 %v13722_v60  ;;  %v13726_v61 = vld [vmem:[#allocation10 + $0x180] ss:$8 sps:$4 sm:$0xff]   ;;  %v13724_v60 = vld [vmem:[%s15222_s0 + $0x10] sm:$0xff]  }
 0x7d0   : > { %2317 = vmatpush1.bf16.msra.mxu1 %v13726_v61  ;;  %v13725_v61 = vld [vmem:[%s15222_s0 + $0x18] sm:$0xff]  }
 0x7d6   : > { %12552 = vmatmul.mubr.bf16.gmra.mrb[68].mxu1 %v15163_v62  ;;  %v13731_v62 = vld [vmem:[#allocation10 + $0x194] ss:$8 sps:$4 sm:$0xff]  }
 0x7d7   : > { %12555 = vmatprep.mubr.bf16.mxu1 %v15166_v63  ;;  %v13729_v63 = vld [vmem:[#allocation10 + $0x190] ss:$8 sps:$4 sm:$0xff]   ;;  %2318 = vmatprep.subr.bf16.mxu1 %v13731_v62 }
 0x7d8   : > { %2319 = vmatpush1.bf16.msra.mxu1 %v13729_v63  ;;  %v13747_v62 = vld [vmem:[#allocation10 + $0x1f0] ss:$8 sps:$4 sm:$0xff]   ;;  %v14652_v63 = vmov 0  }
 0x7de   : > { %12556 = vmatmul.mubr.bf16.gmra.mrb[72].mxu1 %v15171_v0  ;;  %v13734_v0 = vld [vmem:[#allocation10 + $0x1a4] ss:$8 sps:$4 sm:$0xff]  }
 0x7df   : > { %12559 = vmatprep.mubr.bf16.mxu1 %v15174_v1  ;;  %v13732_v1 = vld [vmem:[#allocation10 + $0x1a0] ss:$8 sps:$4 sm:$0xff]   ;;  %2320 = vmatprep.subr.bf16.mxu1 %v13734_v0  ;;  %v14653_v0 = vmov 0.0  }
 0x7e0   : > { %2321 = vmatpush1.bf16.msra.mxu1 %v13732_v1  ;;  %v13750_v1 = vld [vmem:[#allocation11 + $0x1c0] sm:$0xff]  }
 0x7e6   : > { %12560 = vmatmul.mubr.bf16.gmra.mrb[76].mxu1 %v15179_v2  ;;  %v13737_v2 = vld [vmem:[#allocation10 + $0x1b4] ss:$8 sps:$4 sm:$0xff]  }
 0x7e7   : > { %2322 = vmatprep.subr.bf16.mxu1 %v13737_v2  ;;  %2348 = vmatprep.mubr.bf16.mxu1 %v14652_v63  ;;  %v13751_v2 = vld [vmem:[#allocation11 + $0x180] sm:$0xff]  }
 0x7e8   : > { %2323 = vmatpush1.bf16.msra.mxu1 %v13735_v39  ;;  %v13752_v39 = vld [vmem:[#allocation11 + $0x1c8] sm:$0xff]  }
 0x7e9   : > { %2324 = vmatprep.subr.bf16.mxu1 %v13740_v40  ;;  %v13753_v40 = vld [vmem:[#allocation11 + $0x188] sm:$0xff]  }
 0x7ec   : > { %2325 = vmatpush1.bf16.msra.mxu1 %v13738_v41  ;;  %v13754_v41 = vld [vmem:[#allocation11 + $0x1d0] sm:$0xff]  }
 0x7ed   : > { %2326 = vmatprep.subr.bf16.mxu1 %v13743_v42  ;;  %v13755_v42 = vld [vmem:[#allocation11 + $0x190] sm:$0xff]  }
 0x7f0   : > { %2327 = vmatpush1.bf16.msra.mxu1 %v13741_v43  ;;  %v13756_v43 = vld [vmem:[#allocation11 + $0x1d8] sm:$0xff]  }
 0x7f1   : > { %2328 = vmatprep.subr.bf16.mxu1 %v13746_v44  ;;  %v13757_v44 = vld [vmem:[#allocation11 + $0x198] sm:$0xff]  }
 0x7f4   : > { %2329 = vmatpush1.bf16.msra.mxu1 %v13744_v45  ;;  %v13758_v45 = vld [vmem:[#allocation11 + $0x1e0] sm:$0xff]  }
 0x7f5   : > { %2330 = vmatprep.subr.bf16.mxu1 %v13749_v38 }
 0x7f8   : > { %2331 = vmatpush1.bf16.msra.mxu1 %v13747_v62 }
 0x7f9   : > { %12587 = vmatprep.subr.bf16.mxu1 %v14653_v0 }
 0x8a1   : > { %v12549_v46 = vpop.f32.mrb[64].mxu1 }
 0x8a2   : > { %v2034_v47 = vpop.f32.mrb[65].mxu1  ;;  %v2617_v49 = vmax.f32 %v12549_v46, 0.0 }
 0x8a3   : > { %v12550_v48 = vpop.f32.mrb[66].mxu1  ;;  %v2615_v53 = vmax.f32 %v2034_v47, 0.0 }
 0x8a4   : > { %v2618_v50 = vmax.f32 %v12550_v48, 0.0  ;;  %v2037_v51 = vpop.f32.mrb[67].mxu1  ;;  %v2106_v52 = vpack.c.bf16 %v12550_v48, %v12549_v46  ;;  %v13759_v46 = vld [vmem:[#allocation11 + $0x1a0] sm:$0xff]  }
 0x8a5   : > { %v2616_v54 = vmax.f32 %v2037_v51, 0.0  ;;  %v2105_v55 = vpack.c.bf16 %v2037_v51, %v2034_v47  ;;  %v13760_v47 = vld [vmem:[#allocation11 + $0x1e8] sm:$0xff]  }
 0x8a6   : > { %v15225_v56 = vpack.c.bf16 %v2618_v50, %v2617_v49 }
 0x8a7   : > { %12563 = vmatprep.subr.bf16.mxu0 %v2105_v55  ;;  %v15227_v57 = vpack.c.bf16 %v2616_v54, %v2615_v53 }
 0x8a8   : > { %12564 = vmatpush3.bf16.msra.mxu0 %v2105_v55 }
 0x8a9   : > { %v12553_v58 = vpop.f32.mrb[68].mxu1  ;;  %12565 = vmatprep.subr.bf16.mxu0 %v2106_v52 }
 0x8aa   : > { %v2050_v59 = vpop.f32.mrb[69].mxu1  ;;  %v2621_v4 = vmax.f32 %v12553_v58, 0.0 }
 0x8ab   : > { %v12554_v3 = vpop.f32.mrb[70].mxu1  ;;  %v2619_v8 = vmax.f32 %v2050_v59, 0.0 }
 0x8ac   : > { %v2622_v5 = vmax.f32 %v12554_v3, 0.0  ;;  %v2053_v6 = vpop.f32.mrb[71].mxu1  ;;  %12566 = vmatpush3.bf16.msra.mxu0 %v2106_v52  ;;  %v2108_v7 = vpack.c.bf16 %v12554_v3, %v12553_v58 }
 0x8ad   : > { %v2620_v9 = vmax.f32 %v2053_v6, 0.0  ;;  %v2107_v10 = vpack.c.bf16 %v2053_v6, %v2050_v59  ;;  %v13764_v6 = vld [vmem:[#allocation11 + $0x1f8] sm:$0xff]  }
 0x8ae   : > { %v15229_v11 = vpack.c.bf16 %v2622_v5, %v2621_v4  ;;  %v13763_v5 = vld [vmem:[#allocation11 + $0x1b0] sm:$0xff]  }
 0x8af   : > { %12567 = vmatprep.subr.bf16.mxu0 %v2107_v10  ;;  %v15231_v13 = vpack.c.bf16 %v2620_v9, %v2619_v8  ;;  %v2226_v8 = vlaneseq }
 0x8b0   : > { %12568 = vmatpush3.bf16.msra.mxu0 %v2107_v10 }
 0x8b1   : > { %v12557_v14 = vpop.f32.mrb[72].mxu1  ;;  %12569 = vmatprep.subr.bf16.mxu0 %v2108_v7  ;;  %v2227_v9 = vshrl.u32 %v2226_v8, 7 }
 0x8b2   : > { %v2066_v15 = vpop.f32.mrb[73].mxu1  ;;  %v2625_v17 = vmax.f32 %v12557_v14, 0.0 }
 0x8b3   : > { %v12558_v16 = vpop.f32.mrb[74].mxu1  ;;  %v2623_v20 = vmax.f32 %v2066_v15, 0.0  ;;  %v15265_v10 = vsub.s32 0, %v2227_v9 }
 0x8b4   : > { %v2626_v12 = vmax.f32 %v12558_v16, 0.0  ;;  %v2069_v18 = vpop.f32.mrb[75].mxu1  ;;  %12570 = vmatpush3.bf16.msra.mxu0 %v2108_v7  ;;  %v2110_v19 = vpack.c.bf16 %v12558_v16, %v12557_v14  ;;  %v13765_v7 = vld [vmem:[#allocation11 + $0x1b8] sm:$0xff]  }
 0x8b5   : > { %v2624_v21 = vmax.f32 %v2069_v18, 0.0  ;;  %v2109_v22 = vpack.c.bf16 %v2069_v18, %v2066_v15 }
 0x8b6   : > { %v15233_v23 = vpack.c.bf16 %v2626_v12, %v2625_v17 }
 0x8b7   : > { %12571 = vmatprep.subr.bf16.mxu0 %v2109_v22  ;;  %v15235_v24 = vpack.c.bf16 %v2624_v21, %v2623_v20 }
 0x8b8   : > { %12572 = vmatpush3.bf16.msra.mxu0 %v2109_v22 }
 0x8b9   : > { %v12561_v25 = vpop.f32.mrb[76].mxu1  ;;  %12573 = vmatprep.subr.bf16.mxu0 %v2110_v19 }
 0x8ba   : > { %v2082_v35 = vpop.f32.mrb[77].mxu1  ;;  %v2629_v27 = vmax.f32 %v12561_v25, 0.0 }
 0x8bb   : > { %v12562_v26 = vpop.f32.mrb[78].mxu1  ;;  %v2627_v31 = vmax.f32 %v2082_v35, 0.0 }
 0x8bc   : > { %v2630_v28 = vmax.f32 %v12562_v26, 0.0  ;;  %v2085_v29 = vpop.f32.mrb[79].mxu1  ;;  %12574 = vmatpush3.bf16.msra.mxu0 %v2110_v19  ;;  %v2112_v30 = vpack.c.bf16 %v12562_v26, %v12561_v25 }
 0x8bd   : > { %v2628_v32 = vmax.f32 %v2085_v29, 0.0  ;;  %v2111_v33 = vpack.c.bf16 %v2085_v29, %v2082_v35 }
 0x8be   : > { %v15237_v34 = vpack.c.bf16 %v2630_v28, %v2629_v27 }
 0x8bf   : > { %12575 = vmatprep.subr.bf16.mxu0 %v2111_v33  ;;  %v15239_v36 = vpack.c.bf16 %v2628_v32, %v2627_v31 }
 0x8c0   : > { %12576 = vmatpush3.bf16.msra.mxu0 %v2111_v33 }
 0x8c1   : > { %12577 = vmatprep.subr.bf16.mxu0 %v2112_v30 }
 0x8c4   : > { %12578 = vmatpush3.bf16.msra.mxu0 %v2112_v30 }
 0x8c5   : > { %11603 = vmatprep.subr.bf16.mxu0 %v13750_v1 }
 0x8c7   : > { %12580 = vmatmul.mubr.bf16.vlgmr.msra.gmra.mrb[48].mxu0 %v13723_v37 }
 0x8c8   : > { %12583 = vmatprep.mubr.bf16.mxu0 %v13724_v60  ;;  %11604 = vmatpush3.bf16.msra.mxu0 %v13751_v2 }
 0x8c9   : > { %11605 = vmatprep.subr.bf16.mxu0 %v13752_v39 }
 0x8cc   : > { %11606 = vmatpush3.bf16.msra.mxu0 %v13753_v40 }
 0x8cd   : > { %11607 = vmatprep.subr.bf16.mxu0 %v13754_v41 }
 0x8cf   : > { %12584 = vmatmul.mubr.bf16.gmra.mrb[52].mxu0 %v13725_v61 }
 0x8d0   : > { %11608 = vmatpush3.bf16.msra.mxu0 %v13755_v42 }
 0x8d1   : > { %11609 = vmatprep.subr.bf16.mxu0 %v13756_v43 }
 0x8d4   : > { %11610 = vmatpush3.bf16.msra.mxu0 %v13757_v44 }
 0x8d5   : > { %11611 = vmatprep.subr.bf16.mxu0 %v13758_v45 }
 0x8d8   : > { %11612 = vmatpush3.bf16.msra.mxu0 %v13759_v46 }
 0x8d9   : > { %11613 = vmatprep.subr.bf16.mxu0 %v13760_v47 }
 0x99a   : > { %v12581_v48 = vpop.f32.mrb[48].mxu0 }
 0x99b   : > { %v2171_v49 = vpop.f32.mrb[49].mxu0 }
 0x99c   : > { %v12582_v50 = vpop.f32.mrb[50].mxu0 }
 0x99d   : > { %v2203_v51 = vpack.c.bf16 %v12582_v50, %v12581_v48  ;;  %v2174_v52 = vpop.f32.mrb[51].mxu0 }
 0x99e   : > { %v2202_v53 = vpack.c.bf16 %v2174_v52, %v2171_v49 }
 0x9a0   : > { %2349 = vmatmul.mubr.bf16.vlgmr.msra.gmra.mrb[80].mxu1 %v2202_v53 }
 0x9a1   : > { %12588 = vmatpush3.bf16.msra.mxu1 %v15227_v57  ;;  %2358 = vmatprep.mubr.bf16.mxu1 %v14652_v63  ;;  %v13762_v57 = vld [vmem:[#allocation11 + $0x1f0] sm:$0xff]  }
 0x9a2   : > { %12589 = vmatprep.subr.bf16.mxu1 %v14653_v0  ;;  %v12585_v54 = vpop.f32.mrb[52].mxu0 }
 0x9a3   : > { %v2187_v55 = vpop.f32.mrb[53].mxu0 }
 0x9a4   : > { %v12586_v58 = vpop.f32.mrb[54].mxu0 }
 0x9a5   : > { %12590 = vmatpush3.bf16.msra.mxu1 %v15225_v56  ;;  %v2205_v59 = vpack.c.bf16 %v12586_v58, %v12585_v54  ;;  %v2190_v3 = vpop.f32.mrb[55].mxu0  ;;  %v13761_v56 = vld [vmem:[#allocation11 + $0x1a8] sm:$0xff]  }
 0x9a6   : > { %12591 = vmatprep.subr.bf16.mxu1 %v14653_v0  ;;  %v2204_v4 = vpack.c.bf16 %v2190_v3, %v2187_v55  ;;  %11614 = vmatpush3.bf16.msra.mxu0 %v13761_v56 }
 0x9a7   : > { %11615 = vmatprep.subr.bf16.mxu0 %v13762_v57 }
 0x9a8   : > { %2359 = vmatmul.mubr.bf16.gmra.mrb[84].mxu1 %v2203_v51 }
 0x9a9   : > { %12592 = vmatpush3.bf16.msra.mxu1 %v15231_v13  ;;  %2368 = vmatprep.mubr.bf16.mxu1 %v14652_v63  ;;  %v15270_v13 = vsub.s32 1, %v2227_v9  ;;  %v13767_v9 = vld [vmem:[%s15088_s25] sm:$0xff]  }
 0x9aa   : > { %12593 = vmatprep.subr.bf16.mxu1 %v14653_v0  ;;  %11616 = vmatpush3.bf16.msra.mxu0 %v13763_v5 }
 0x9ab   : > { %11617 = vmatprep.subr.bf16.mxu0 %v13764_v6 }
 0x9ad   : > { %12594 = vmatpush3.bf16.msra.mxu1 %v15229_v11  ;;  %v10780_v11 = vld [vmem:[%s15919_s16 + $0x6] sm:$0x3] }
 0x9ae   : > { %12595 = vmatprep.subr.bf16.mxu1 %v14653_v0  ;;  %11618 = vmatpush3.bf16.msra.mxu0 %v13765_v7  ;;  %v2229_v14 = vrot.slane %v10780_v11, %v15265_v10  ;;  %v2233_v15 = vrot.slane %v10780_v11, %v15270_v13  ;;  %v13768_v11 = vld [vmem:[#allocation14] ss:$8 sps:$4 sm:$0xff]  }
 0x9af   : > { %12607 = vmatprep.subr.bf16.mxu0 %v14653_v0 }
 0x9b0   : > { %2369 = vmatmul.mubr.bf16.gmra.mrb[88].mxu1 %v2204_v4 }
 0x9b1   : > { %12596 = vmatpush3.bf16.msra.mxu1 %v15235_v24  ;;  %2378 = vmatprep.mubr.bf16.mxu1 %v14652_v63 }
 0x9b2   : > { %12597 = vmatprep.subr.bf16.mxu1 %v14653_v0 }
 0x9b5   : > { %12598 = vmatpush3.bf16.msra.mxu1 %v15233_v23 }
 0x9b6   : > { %12599 = vmatprep.subr.bf16.mxu1 %v14653_v0 }
 0x9b8   : > { %2379 = vmatmul.mubr.bf16.gmra.mrb[92].mxu1 %v2205_v59 }
 0x9b9   : > { %12600 = vmatpush3.bf16.msra.mxu1 %v15239_v36  ;;  %12603 = vmatprep.mubr.msk.bf16.mxu1 %vm14654_vm1, %v14653_v0 }
 0x9ba   : > { %12601 = vmatprep.subr.bf16.mxu1 %v14653_v0 }
 0x9bd   : > { %12602 = vmatpush3.bf16.msra.mxu1 %v15237_v34 }
 0x9c0   : > { %12604 = vmatmul.mubr.bf16.vlgmr.msra.gmra.mrb[96].mxu1 %v13767_v9  ;;  %v13766_v9 = vld [vmem:[%s15095_s8] sm:$0xff]  }
 0x9c1   : > { %2897 = vmatprep.mubr.bf16.mxu1 %v14652_v63 }
 0xa73   : > { %v2350_v16 = vpop.f32.mrb[80].mxu1 }
 0xa74   : > { %v2351_v17 = vadd.f32 %v2350_v16, %v2229_v14  ;;  %v2352_v12 = vpop.f32.mrb[81].mxu1  ;;  %v13773_v16 = vld [vmem:[#allocation14 + $0x14] ss:$8 sps:$4 sm:$0xff]  }
 0xa75   : > { %v2353_v18 = vadd.f32 %v2352_v12, %v2233_v15  ;;  %v2354_v19 = vpop.f32.mrb[82].mxu1  ;;  %v13774_v12 = vld [vmem:[#allocation14 + $0x20] ss:$8 sps:$4 sm:$0xff]  }
 0xa76   : > { %v2355_v20 = vadd.f32 %v2354_v19, %v2229_v14  ;;  %v2356_v21 = vpop.f32.mrb[83].mxu1  ;;  %v2389_v23 = vmax.f32 %v2351_v17, 0.0  ;;  %v13776_v17 = vld [vmem:[#allocation14 + $0x24] ss:$8 sps:$4 sm:$0xff]   ;;  %v13777_v19 = vld [vmem:[#allocation14 + $0x30] ss:$8 sps:$4 sm:$0xff]  }
 0xa77   : > { %v2357_v22 = vadd.f32 %v2356_v21, %v2233_v15  ;;  %v2390_v25 = vmax.f32 %v2353_v18, 0.0  ;;  %v13779_v18 = vld [vmem:[#allocation14 + $0x34] ss:$8 sps:$4 sm:$0xff]   ;;  %v13780_v21 = vld [vmem:[#allocation14 + $0x40] ss:$8 sps:$4 sm:$0xff]  }
 0xa78   : > { %v2391_v24 = vmax.f32 %v2355_v20, 0.0  ;;  %v13782_v20 = vld [vmem:[#allocation14 + $0x44] ss:$8 sps:$4 sm:$0xff]  }
 0xa79   : > { %v2392_v35 = vmax.f32 %v2357_v22, 0.0  ;;  %v13785_v22 = vld [vmem:[#allocation14 + $0x54] ss:$8 sps:$4 sm:$0xff]  }
 0xa7a   : > { %v2405_v26 = vpack.c.bf16 %v2391_v24, %v2389_v23  ;;  %v13783_v23 = vld [vmem:[#allocation14 + $0x50] ss:$8 sps:$4 sm:$0xff]   ;;  %v13788_v24 = vld [vmem:[#allocation14 + $0x64] ss:$8 sps:$4 sm:$0xff]  }
 0xa7b   : > { %v2360_v27 = vpop.f32.mrb[84].mxu1  ;;  %v2406_v28 = vpack.c.bf16 %v2392_v35, %v2390_v25  ;;  %v13786_v25 = vld [vmem:[#allocation14 + $0x60] ss:$8 sps:$4 sm:$0xff]  }
 0xa7c   : > { %v2361_v29 = vadd.f32 %v2360_v27, %v2229_v14  ;;  %v2362_v30 = vpop.f32.mrb[85].mxu1 }
 0xa7d   : > { %v2363_v31 = vadd.f32 %v2362_v30, %v2233_v15  ;;  %v2364_v32 = vpop.f32.mrb[86].mxu1  ;;  %2582 = vmatprep.mubr.bf16.mxu0 %v2406_v28 }
 0xa7e   : > { %v2365_v33 = vadd.f32 %v2364_v32, %v2229_v14  ;;  %v2366_v34 = vpop.f32.mrb[87].mxu1  ;;  %2583 = vmatmul.mubr.bf16.vlgmr.msra.gmra.mrb[56].mxu0 %v2405_v26  ;;  %v2393_v37 = vmax.f32 %v2361_v29, 0.0  ;;  %v10798_v26 = vld [vmem:[%s15920_s18 + $0x3] ss:$0 sm:$0xff] }
 0xa7f   : > { %v2367_v36 = vadd.f32 %v2366_v34, %v2233_v15  ;;  %v2394_v61 = vmax.f32 %v2363_v31, 0.0 }
 0xa80   : > { %v2395_v60 = vmax.f32 %v2365_v33, 0.0 }
 0xa81   : > { %v2396_v38 = vmax.f32 %v2367_v36, 0.0 }
 0xa82   : > { %v2407_v62 = vpack.c.bf16 %v2395_v60, %v2393_v37 }
 0xa83   : > { %v2370_v1 = vpop.f32.mrb[88].mxu1  ;;  %v2408_v2 = vpack.c.bf16 %v2396_v38, %v2394_v61 }
 0xa84   : > { %v2371_v39 = vadd.f32 %v2370_v1, %v2229_v14  ;;  %v2372_v40 = vpop.f32.mrb[89].mxu1 }
 0xa85   : > { %v2373_v41 = vadd.f32 %v2372_v40, %v2233_v15  ;;  %v2374_v42 = vpop.f32.mrb[90].mxu1  ;;  %2590 = vmatprep.mubr.bf16.mxu0 %v2408_v2 }
 0xa86   : > { %v2375_v43 = vadd.f32 %v2374_v42, %v2229_v14  ;;  %v2376_v44 = vpop.f32.mrb[91].mxu1  ;;  %2591 = vmatmul.mubr.bf16.gmra.mrb[60].mxu0 %v2407_v62  ;;  %v2397_v46 = vmax.f32 %v2371_v39, 0.0 }
 0xa87   : > { %v2377_v45 = vadd.f32 %v2376_v44, %v2233_v15  ;;  %v2398_v48 = vmax.f32 %v2373_v41, 0.0 }
 0xa88   : > { %v2399_v47 = vmax.f32 %v2375_v43, 0.0 }
 0xa89   : > { %v2400_v49 = vmax.f32 %v2377_v45, 0.0 }
 0xa8a   : > { %v2409_v50 = vpack.c.bf16 %v2399_v47, %v2397_v46 }
 0xa8b   : > { %v2380_v51 = vpop.f32.mrb[92].mxu1  ;;  %v2410_v52 = vpack.c.bf16 %v2400_v49, %v2398_v48 }
 0xa8c   : > { %v2381_v53 = vadd.f32 %v2380_v51, %v2229_v14  ;;  %v2382_v54 = vpop.f32.mrb[93].mxu1 }
 0xa8d   : > { %v2383_v55 = vadd.f32 %v2382_v54, %v2233_v15  ;;  %v2384_v58 = vpop.f32.mrb[94].mxu1  ;;  %2598 = vmatprep.mubr.bf16.mxu0 %v2410_v52 }
 0xa8e   : > { %v2385_v59 = vadd.f32 %v2384_v58, %v2229_v14  ;;  %v2386_v3 = vpop.f32.mrb[95].mxu1  ;;  %2599 = vmatmul.mubr.bf16.gmra.mrb[64].mxu0 %v2409_v50  ;;  %v2401_v56 = vmax.f32 %v2381_v53, 0.0  ;;  %v13770_v14 = vld [vmem:[#allocation14 + $0x4] ss:$8 sps:$4 sm:$0xff]  }
 0xa8f   : > { %v2387_v4 = vadd.f32 %v2386_v3, %v2233_v15  ;;  %v2402_v5 = vmax.f32 %v2383_v55, 0.0  ;;  %2865 = vmatprep.subr.bf16.mxu1 %v13770_v14  ;;  %v13771_v15 = vld [vmem:[#allocation14 + $0x10] ss:$8 sps:$4 sm:$0xff]  }
 0xa90   : > { %v2403_v57 = vmax.f32 %v2385_v59, 0.0  ;;  %2866 = vmatpush1.bf16.msra.mxu1 %v13768_v11  ;;  %v13791_v11 = vld [vmem:[#allocation14 + $0x74] ss:$8 sps:$4 sm:$0xff]   ;;  %v13789_v14 = vld [vmem:[#allocation14 + $0x70] ss:$8 sps:$4 sm:$0xff]  }
 0xa91   : > { %v2404_v6 = vmax.f32 %v2387_v4, 0.0  ;;  %2867 = vmatprep.subr.bf16.mxu1 %v13773_v16  ;;  %v13794_v16 = vld [vmem:[#allocation13 + $0x4] ss:$8 sps:$4 sm:$0xff]  }
 0xa92   : > { %v2411_v7 = vpack.c.bf16 %v2403_v57, %v2401_v56 }
 0xa93   : > { %v2412_v8 = vpack.c.bf16 %v2404_v6, %v2402_v5 }
 0xa94   : > { %2868 = vmatpush1.bf16.msra.mxu1 %v13771_v15  ;;  %v15288_v15 = vpop.f32.mrb[96].mxu1 }
 0xa95   : > { %2606 = vmatprep.mubr.bf16.mxu0 %v2412_v8  ;;  %2869 = vmatprep.subr.bf16.mxu1 %v13776_v17  ;;  %v12605_v17 = vpop.f32.mrb[97].mxu1 }
 0xa96   : > { %2607 = vmatmul.mubr.bf16.gmra.mrb[68].mxu0 %v2411_v7  ;;  %v13834_v17 = vld [vmem:[#allocation7 + $0x10] sm:$0xff]  }
 0xa97   : > { %12615 = vmatprep.mubr.msk.bf16.mxu0 %vm14654_vm1, %v14653_v0 }
 0xa98   : > { %2870 = vmatpush1.bf16.msra.mxu1 %v13774_v12  ;;  %v15290_v12 = vpop.f32.mrb[98].mxu1 }
 0xa99   : > { %2871 = vmatprep.subr.bf16.mxu1 %v13779_v18  ;;  %v2751_v18 = vpack.c.bf16 %v15290_v12, %v15288_v15  ;;  %v13833_v15 = vld [vmem:[#allocation7 + $0x8] sm:$0xff]   ;;  %v13835_v12 = vld [vmem:[#allocation7 + $0x18] sm:$0xff]  }
 0xa9c   : > { %2872 = vmatpush1.bf16.msra.mxu1 %v13777_v19  ;;  %v12606_v19 = vpop.f32.mrb[99].mxu1 }
 0xa9d   : > { %2873 = vmatprep.subr.bf16.mxu1 %v13782_v20  ;;  %v13816_v20 = vld [vmem:[#allocation16 + $0x40] sm:$0xff]   ;;  %v13838_v19 = vld [vmem:[%s15124_s7 + $0x50] sm:$0xff]  }
 0xaa0   : > { %2874 = vmatpush1.bf16.msra.mxu1 %v13780_v21  ;;  %v13817_v21 = vld [vmem:[#allocation16] sm:$0xff]  }
 0xaa1   : > { %2875 = vmatprep.subr.bf16.mxu1 %v13785_v22  ;;  %v13818_v22 = vld [vmem:[#allocation16 + $0x48] sm:$0xff]  }
 0xaa4   : > { %2876 = vmatpush1.bf16.msra.mxu1 %v13783_v23  ;;  %v13819_v23 = vld [vmem:[#allocation16 + $0x8] sm:$0xff]  }
 0xaa5   : > { %2877 = vmatprep.subr.bf16.mxu1 %v13788_v24  ;;  %v13820_v24 = vld [vmem:[#allocation16 + $0x50] sm:$0xff]  }
 0xaa8   : > { %2878 = vmatpush1.bf16.msra.mxu1 %v13786_v25  ;;  %v13821_v25 = vld [vmem:[#allocation16 + $0x10] sm:$0xff]  }
 0xaa9   : > { %2879 = vmatprep.subr.bf16.mxu1 %v13791_v11 }
 0xaac   : > { %2880 = vmatpush1.bf16.msra.mxu1 %v13789_v14 }
 0xaad   : > { %2988 = vmatprep.subr.bf16.mxu1 %v13794_v16  ;;  %v13836_v16 = vld [vmem:[%s15124_s7 + $0x40] sm:$0xff]  }
 0xb51   : > { %v11619_v35 = vpop.f32.mrb[56].mxu0 }
 0xb52   : > { %v11620_v27 = vpop.f32.mrb[57].mxu0 }
 0xb53   : > { %v11621_v28 = vadd.f32 %v11620_v27, %v11619_v35  ;;  %v11622_v29 = vpop.f32.mrb[58].mxu0  ;;  %v13822_v35 = vld [vmem:[#allocation16 + $0x58] sm:$0xff]   ;;  %v13824_v27 = vld [vmem:[#allocation16 + $0x60] sm:$0xff]  }
 0xb54   : > { %v11623_v30 = vpop.f32.mrb[59].mxu0 }
 0xb55   : > { %v2585_v31 = vadd.f32 %v11621_v28, %v10798_v26  ;;  %v11624_v32 = vadd.f32 %v11623_v30, %v11622_v29  ;;  %v13825_v28 = vld [vmem:[#allocation16 + $0x20] sm:$0xff]   ;;  %v13826_v29 = vld [vmem:[#allocation16 + $0x68] sm:$0xff]  }
 0xb56   : > { %v13827_v30 = vld [vmem:[#allocation16 + $0x28] sm:$0xff]  }
 0xb57   : > { %v2588_v33 = vadd.f32 %v11624_v32, %v10798_v26  ;;  %v2639_v34 = vmax.f32 %v2585_v31, 0.0 }
 0xb59   : > { %v2640_v36 = vmax.f32 %v2588_v33, 0.0  ;;  %v11625_v37 = vpop.f32.mrb[60].mxu0 }
 0xb5a   : > { %v11626_v60 = vpop.f32.mrb[61].mxu0 }
 0xb5b   : > { %v11627_v61 = vadd.f32 %v11626_v60, %v11625_v37  ;;  %v11628_v38 = vpop.f32.mrb[62].mxu0  ;;  %v2647_v62 = vpack.c.bf16 %v2640_v36, %v2639_v34  ;;  %v13792_v34 = vld [vmem:[#allocation13] ss:$8 sps:$4 sm:$0xff]   ;;  %v13797_v60 = vld [vmem:[#allocation13 + $0x14] ss:$8 sps:$4 sm:$0xff]  }
 0xb5c   : > { %v11629_v1 = vpop.f32.mrb[63].mxu0 }
 0xb5d   : > { %v2593_v2 = vadd.f32 %v11627_v61, %v10798_v26  ;;  %v11630_v39 = vadd.f32 %v11629_v1, %v11628_v38  ;;  %12608 = vmatpush3.bf16.msra.mxu0 %v2647_v62  ;;  %v13795_v61 = vld [vmem:[#allocation13 + $0x10] ss:$8 sps:$4 sm:$0xff]   ;;  %v13800_v38 = vld [vmem:[#allocation13 + $0x24] ss:$8 sps:$4 sm:$0xff]   ;;  %v13798_v62 = vld [vmem:[#allocation13 + $0x20] ss:$8 sps:$4 sm:$0xff]  }
 0xb5e   : > { %12609 = vmatprep.subr.bf16.mxu0 %v14653_v0  ;;  %v13803_v1 = vld [vmem:[#allocation13 + $0x34] ss:$8 sps:$4 sm:$0xff]  }
 0xb5f   : > { %v2596_v40 = vadd.f32 %v11630_v39, %v10798_v26  ;;  %v2641_v41 = vmax.f32 %v2593_v2, 0.0  ;;  %v13801_v2 = vld [vmem:[#allocation13 + $0x30] ss:$8 sps:$4 sm:$0xff]   ;;  %v13806_v39 = vld [vmem:[#allocation13 + $0x44] ss:$8 sps:$4 sm:$0xff]  }
 0xb61   : > { %v2642_v42 = vmax.f32 %v2596_v40, 0.0  ;;  %v11631_v43 = vpop.f32.mrb[64].mxu0  ;;  %v13804_v40 = vld [vmem:[#allocation13 + $0x40] ss:$8 sps:$4 sm:$0xff]  }
 0xb62   : > { %v11632_v44 = vpop.f32.mrb[65].mxu0 }
 0xb63   : > { %v11633_v45 = vadd.f32 %v11632_v44, %v11631_v43  ;;  %v11634_v46 = vpop.f32.mrb[66].mxu0  ;;  %v2648_v47 = vpack.c.bf16 %v2642_v42, %v2641_v41  ;;  %v13809_v41 = vld [vmem:[#allocation13 + $0x54] ss:$8 sps:$4 sm:$0xff]   ;;  %v13807_v42 = vld [vmem:[#allocation13 + $0x50] ss:$8 sps:$4 sm:$0xff]  }
 0xb64   : > { %v11635_v48 = vpop.f32.mrb[67].mxu0  ;;  %v13812_v43 = vld [vmem:[#allocation13 + $0x64] ss:$8 sps:$4 sm:$0xff]   ;;  %v13810_v44 = vld [vmem:[#allocation13 + $0x60] ss:$8 sps:$4 sm:$0xff]  }
 0xb65   : > { %v2601_v49 = vadd.f32 %v11633_v45, %v10798_v26  ;;  %v11636_v50 = vadd.f32 %v11635_v48, %v11634_v46  ;;  %12610 = vmatpush3.bf16.msra.mxu0 %v2648_v47  ;;  %v13815_v45 = vld [vmem:[#allocation13 + $0x74] ss:$8 sps:$4 sm:$0xff]   ;;  %v13813_v46 = vld [vmem:[#allocation13 + $0x70] ss:$8 sps:$4 sm:$0xff]  }
 0xb66   : > { %12611 = vmatprep.subr.bf16.mxu0 %v14653_v0  ;;  %v13828_v47 = vld [vmem:[#allocation16 + $0x70] sm:$0xff]  }
 0xb67   : > { %v2604_v51 = vadd.f32 %v11636_v50, %v10798_v26  ;;  %v2643_v52 = vmax.f32 %v2601_v49, 0.0  ;;  %v13829_v48 = vld [vmem:[#allocation16 + $0x30] sm:$0xff]   ;;  %v13830_v49 = vld [vmem:[#allocation16 + $0x78] sm:$0xff]  }
 0xb68   : > { %v13831_v50 = vld [vmem:[#allocation16 + $0x38] sm:$0xff]  }
 0xb69   : > { %v2644_v53 = vmax.f32 %v2604_v51, 0.0  ;;  %v11637_v54 = vpop.f32.mrb[68].mxu0  ;;  %v13832_v51 = vld [vmem:[#allocation7] sm:$0xff]  }
 0xb6a   : > { %v11638_v55 = vpop.f32.mrb[69].mxu0 }
 0xb6b   : > { %v11639_v58 = vadd.f32 %v11638_v55, %v11637_v54  ;;  %v11640_v59 = vpop.f32.mrb[70].mxu0  ;;  %v2649_v3 = vpack.c.bf16 %v2644_v53, %v2643_v52  ;;  %v3031_v52 = vld [vmem:[%s15921_s24] sm:$0x3] }
 0xb6c   : > { %v11641_v4 = vpop.f32.mrb[71].mxu0  ;;  %v3036_v53 = vrot.slane %v3031_v52, %v15265_v10  ;;  %v3040_v54 = vrot.slane %v3031_v52, %v15270_v13 }
 0xb6d   : > { %v2609_v56 = vadd.f32 %v11639_v58, %v10798_v26  ;;  %v11642_v57 = vadd.f32 %v11641_v4, %v11640_v59  ;;  %12612 = vmatpush3.bf16.msra.mxu0 %v2649_v3 }
 0xb6e   : > { %12613 = vmatprep.subr.bf16.mxu0 %v14653_v0 }
 0xb6f   : > { %v2612_v5 = vadd.f32 %v11642_v57, %v10798_v26  ;;  %v2645_v6 = vmax.f32 %v2609_v56, 0.0  ;;  %v13823_v26 = vld [vmem:[#allocation16 + $0x18] sm:$0xff]  }
 0xb71   : > { %v2646_v7 = vmax.f32 %v2612_v5, 0.0 }
 0xb73   : > { %v2650_v8 = vpack.c.bf16 %v2646_v7, %v2645_v6 }
 0xb75   : > { %12614 = vmatpush3.bf16.msra.mxu0 %v2650_v8 }
 0xb76   : > { %11657 = vmatprep.subr.bf16.mxu0 %v13816_v20  ;;  %v13839_v20 = vld [vmem:[%s15124_s7 + $0x58] sm:$0xff]  }
 0xb78   : > { %12616 = vmatmul.mubr.msk.bf16.vlgmr.msra.gmra.mrb[72].mxu0 %vm911_vm0, %v13766_v9 }
 0xb79   : > { %11658 = vmatpush3.bf16.msra.mxu0 %v13817_v21  ;;  %v13840_v21 = vld [vmem:[%s15124_s7 + $0x60] sm:$0xff]  }
 0xb7a   : > { %11659 = vmatprep.subr.bf16.mxu0 %v13818_v22  ;;  %v13841_v22 = vld [vmem:[%s15124_s7 + $0x68] sm:$0xff]  }
 0xb7d   : > { %11660 = vmatpush3.bf16.msra.mxu0 %v13819_v23  ;;  %v13842_v23 = vld [vmem:[%s15124_s7 + $0x70] sm:$0xff]  }
 0xb7e   : > { %11661 = vmatprep.subr.bf16.mxu0 %v13820_v24  ;;  %v13843_v24 = vld [vmem:[%s15124_s7 + $0x78] sm:$0xff]  }
 0xb81   : > { %11662 = vmatpush3.bf16.msra.mxu0 %v13821_v25  ;;  %v15317_v25 = vld [vmem:[%s15131_s19 + $0x40] sm:$0xff]  }
 0xb82   : > { %11663 = vmatprep.subr.bf16.mxu0 %v13822_v35  ;;  %v13852_v35 = vld [vmem:[#allocation8] sm:$0xff]  }
 0xb85   : > { %11664 = vmatpush3.bf16.msra.mxu0 %v13823_v26  ;;  %v13853_v26 = vld [vmem:[#allocation8 + $0x8] sm:$0xff]  }
 0xb86   : > { %11665 = vmatprep.subr.bf16.mxu0 %v13824_v27  ;;  %v13854_v27 = vld [vmem:[#allocation8 + $0x10] sm:$0xff]  }
 0xb89   : > { %11666 = vmatpush3.bf16.msra.mxu0 %v13825_v28  ;;  %v13855_v28 = vld [vmem:[#allocation8 + $0x18] sm:$0xff]  }
 0xb8a   : > { %11667 = vmatprep.subr.bf16.mxu0 %v13826_v29  ;;  %v13856_v29 = vld [vmem:[#allocation8 + $0x20] sm:$0xff]  }
 0xb8d   : > { %11668 = vmatpush3.bf16.msra.mxu0 %v13827_v30  ;;  %v13857_v30 = vld [vmem:[#allocation8 + $0x28] sm:$0xff]  }
 0xb8e   : > { %11669 = vmatprep.subr.bf16.mxu0 %v13828_v47 }
 0xb91   : > { %11670 = vmatpush3.bf16.msra.mxu0 %v13829_v48 }
 0xb92   : > { %11671 = vmatprep.subr.bf16.mxu0 %v13830_v49 }
 0xb95   : > { %11672 = vmatpush3.bf16.msra.mxu0 %v13831_v50 }
 0xb96   : > { %12619 = vmatprep.subr.bf16.mxu0 %v13832_v51 }
 0xc4b   : > { %v2744_v31 = vpop.f32.mrb[72].mxu0 }
 0xc4c   : > { %v12617_v32 = vpop.f32.mrb[73].mxu0 }
 0xc4d   : > { %v2747_v33 = vpop.f32.mrb[74].mxu0  ;;  %v10850_v32 = vld [vmem:[%s15922_s26] ss:$0 sm:$0xff] }
 0xc4e   : > { %v2768_v36 = vpack.c.bf16 %v2747_v33, %v2744_v31  ;;  %v12618_v37 = vpop.f32.mrb[75].mxu0 }
 0xc50   : > { %2898 = vmatmul.mubr.bf16.vlgmr.msra.gmra.mrb[100].mxu1 %v2768_v36 }
 0xc51   : > { %2989 = vmatpush1.bf16.msra.mxu1 %v13792_v34  ;;  %3020 = vmatprep.mubr.bf16.mxu1 %v14652_v63 }
 0xc52   : > { %2990 = vmatprep.subr.bf16.mxu1 %v13797_v60 }
 0xc55   : > { %2991 = vmatpush1.bf16.msra.mxu1 %v13795_v61 }
 0xc56   : > { %2992 = vmatprep.subr.bf16.mxu1 %v13800_v38 }
 0xc59   : > { %2993 = vmatpush1.bf16.msra.mxu1 %v13798_v62 }
 0xc5a   : > { %2994 = vmatprep.subr.bf16.mxu1 %v13803_v1  ;;  %v10883_v1 = vld [vmem:[%s15916_s10] ss:$0 sm:$0xff] }
 0xc5d   : > { %2995 = vmatpush1.bf16.msra.mxu1 %v13801_v2 }
 0xc5e   : > { %2996 = vmatprep.subr.bf16.mxu1 %v13806_v39 }
 0xc61   : > { %2997 = vmatpush1.bf16.msra.mxu1 %v13804_v40 }
 0xc62   : > { %2998 = vmatprep.subr.bf16.mxu1 %v13809_v41 }
 0xc65   : > { %2999 = vmatpush1.bf16.msra.mxu1 %v13807_v42 }
 0xc66   : > { %3000 = vmatprep.subr.bf16.mxu1 %v13812_v43 }
 0xc69   : > { %3001 = vmatpush1.bf16.msra.mxu1 %v13810_v44 }
 0xc6a   : > { %3002 = vmatprep.subr.bf16.mxu1 %v13815_v45 }
 0xc6d   : > { %3003 = vmatpush1.bf16.msra.mxu1 %v13813_v46 }
 0xc6e   : > { %12675 = vmatprep.subr.bf16.mxu1 %v13852_v35 }
 0xc70   : > { %3021 = vmatmul.mubr.bf16.vlgmr.msra.gmra.mrb[100].mxu1 %v2751_v18  ;;  %v13837_v18 = vld [vmem:[%s15124_s7 + $0x48] sm:$0xff]  }
 0xc71   : > { %12676 = vmatpush3.bf16.msra.mxu1 %v13852_v35  ;;  %v15343_v35 = vld [vmem:[%s15131_s19 + $0x60] sm:$0xff]  }
 0xc72   : > { %12677 = vmatprep.subr.bf16.mxu1 %v13853_v26 }
 0xc75   : > { %12678 = vmatpush3.bf16.msra.mxu1 %v13853_v26  ;;  %v15348_v26 = vld [vmem:[%s15131_s19 + $0x68] sm:$0xff]  }
 0xc76   : > { %12679 = vmatprep.subr.bf16.mxu1 %v13854_v27 }
 0xc79   : > { %12680 = vmatpush3.bf16.msra.mxu1 %v13854_v27  ;;  %v15351_v27 = vld [vmem:[%s15131_s19 + $0x70] sm:$0xff]  }
 0xc7a   : > { %12681 = vmatprep.subr.bf16.mxu1 %v13855_v28 }
 0xc7d   : > { %12682 = vmatpush3.bf16.msra.mxu1 %v13855_v28  ;;  %v15356_v28 = vld [vmem:[%s15131_s19 + $0x78] sm:$0xff]  }
 0xc7e   : > { %12683 = vmatprep.subr.bf16.mxu1 %v13856_v29 }
 0xc81   : > { %12684 = vmatpush3.bf16.msra.mxu1 %v13856_v29  ;;  %v13858_v29 = vld [vmem:[#allocation8 + $0x30] sm:$0xff]  }
 0xc82   : > { %12685 = vmatprep.subr.bf16.mxu1 %v13857_v30 }
 0xc85   : > { %12686 = vmatpush3.bf16.msra.mxu1 %v13857_v30  ;;  %v13859_v30 = vld [vmem:[#allocation8 + $0x38] sm:$0xff]  }
 0xc86   : > { %12687 = vmatprep.subr.bf16.mxu1 %v13858_v29 }
 0xc89   : > { %12688 = vmatpush3.bf16.msra.mxu1 %v13858_v29 }
 0xc8a   : > { %12689 = vmatprep.subr.bf16.mxu1 %v13859_v30 }
 0xc8d   : > { %12690 = vmatpush3.bf16.msra.mxu1 %v13859_v30 }
 0xd43   : > { %v3022_v55 = vpop.f32.mrb[100].mxu1 }
 0xd44   : > { %v3043_v58 = vadd.f32 %v3036_v53, %v3022_v55  ;;  %v3024_v59 = vpop.f32.mrb[101].mxu1 }
 0xd45   : > { %v3044_v3 = vadd.f32 %v3040_v54, %v3024_v59  ;;  %v3026_v4 = vpop.f32.mrb[102].mxu1 }
 0xd46   : > { %v3045_v56 = vadd.f32 %v3036_v53, %v3026_v4  ;;  %v3028_v57 = vpop.f32.mrb[103].mxu1  ;;  %v3047_v6 = vmax.f32 %v3043_v58, 0.0 }
 0xd47   : > { %v3046_v5 = vadd.f32 %v3040_v54, %v3028_v57  ;;  %v3048_v8 = vmax.f32 %v3044_v3, 0.0 }
 0xd48   : > { %v3049_v7 = vmax.f32 %v3045_v56, 0.0 }
 0xd49   : > { %v3050_v9 = vmax.f32 %v3046_v5, 0.0 }
 0xd4a   : > { %v3051_v11 = vpack.c.bf16 %v3049_v7, %v3047_v6 }
 0xd4b   : > { %v3052_v14 = vpack.c.bf16 %v3050_v9, %v3048_v8 }
 0xd4d   : > { %3220 = vmatprep.mubr.bf16.mxu0 %v3052_v14 }
 0xd4e   : > { %3221 = vmatmul.mubr.bf16.vlgmr.msra.gmra.mrb[76].mxu0 %v3051_v11 }
 0xd4f   : > { %12620 = vmatpush3.bf16.msra.mxu0 %v13832_v51  ;;  %12627 = vmatprep.mubr.msk.bf16.mxu0 %vm911_vm0, %v13836_v16 }
 0xd50   : > { %12621 = vmatprep.subr.bf16.mxu0 %v13833_v15 }
 0xd53   : > { %12622 = vmatpush3.bf16.msra.mxu0 %v13833_v15 }
 0xd54   : > { %12623 = vmatprep.subr.bf16.mxu0 %v13834_v17 }
 0xd57   : > { %12624 = vmatpush3.bf16.msra.mxu0 %v13834_v17 }
 0xd58   : > { %12625 = vmatprep.subr.bf16.mxu0 %v13835_v12 }
 0xd5b   : > { %12626 = vmatpush3.bf16.msra.mxu0 %v13835_v12 }
 0xd5e   : > { %12628 = vmatmul.mubr.msk.bf16.vlgmr.msra.gmra.mrb[80].mxu0 %vm911_vm0, %v13837_v18 }
 0xd5f   : > { %12631 = vmatprep.mubr.msk.bf16.mxu0 %vm911_vm0, %v13838_v19 }
 0xd66   : > { %12632 = vmatmul.mubr.msk.bf16.gmra.mrb[84].mxu0 %vm911_vm0, %v13839_v20 }
 0xd67   : > { %12635 = vmatprep.mubr.msk.bf16.mxu0 %vm911_vm0, %v13840_v21 }
 0xd6e   : > { %12636 = vmatmul.mubr.msk.bf16.gmra.mrb[88].mxu0 %vm911_vm0, %v13841_v22  ;;  %v15332_v22 = vld [vmem:[%s15131_s19 + $0x48] sm:$0xff]  }
 0xd6f   : > { %12639 = vmatprep.mubr.msk.bf16.mxu0 %vm911_vm0, %v13842_v23  ;;  %v15335_v23 = vld [vmem:[%s15131_s19 + $0x50] sm:$0xff]  }
 0xd76   : > { %12640 = vmatmul.mubr.msk.bf16.gmra.mrb[92].mxu0 %vm911_vm0, %v13843_v24  ;;  %v15340_v24 = vld [vmem:[%s15131_s19 + $0x58] sm:$0xff]  }
 0xd77   : > { %12659 = vmatprep.mubr.bf16.mxu0 %v15317_v25 }
 0xe21   : > { %v11673_v31 = vpop.f32.mrb[76].mxu0 }
 0xe22   : > { %v11674_v33 = vpop.f32.mrb[77].mxu0 }
 0xe23   : > { %v11675_v34 = vadd.f32 %v11674_v33, %v11673_v31  ;;  %v11676_v36 = vpop.f32.mrb[78].mxu0 }
 0xe24   : > { %v11677_v37 = vpop.f32.mrb[79].mxu0 }
 0xe25   : > { %v3223_v60 = vadd.f32 %v11675_v34, %v10850_v32  ;;  %v11678_v61 = vadd.f32 %v11677_v37, %v11676_v36 }
 0xe27   : > { %3229 = vst [vmem:[%s15324_s2] sm:$0xff] %v3223_v60  ;;  %v3226_v38 = vadd.f32 %v11678_v61, %v10850_v32 }
 0xe29   : > { %3230 = vst [vmem:[%s15324_s2 + $0x8] sm:$0xff] %v3226_v38 }
 0xe31   : > { %v12629_v62 = vpop.f32.mrb[80].mxu0 }
 0xe32   : > { %v3385_v2 = vpop.f32.mrb[81].mxu0  ;;  %v3394_v40 = vadd.f32 %v12629_v62, %v10883_v1 }
 0xe33   : > { %v12630_v39 = vpop.f32.mrb[82].mxu0  ;;  %v3386_v43 = vadd.f32 %v10883_v1, %v3385_v2 }
 0xe34   : > { %v3397_v41 = vadd.f32 %v12630_v39, %v10883_v1  ;;  %v3388_v42 = vpop.f32.mrb[83].mxu0 }
 0xe35   : > { %v3389_v44 = vadd.f32 %v10883_v1, %v3388_v42 }
 0xe36   : > { %v3466_v45 = vpack.c.bf16 %v3397_v41, %v3394_v40 }
 0xe37   : > { %v3465_v46 = vpack.c.bf16 %v3389_v44, %v3386_v43 }
 0xe39   : > { %v12633_v47 = vpop.f32.mrb[84].mxu0  ;;  %12643 = vmatprep.subr.bf16.mxu0 %v3465_v46 }
 0xe3a   : > { %v3401_v48 = vpop.f32.mrb[85].mxu0  ;;  %12644 = vmatpush3.bf16.msra.mxu0 %v3465_v46  ;;  %v3410_v50 = vadd.f32 %v12633_v47, %v10883_v1 }
 0xe3b   : > { %v12634_v49 = vpop.f32.mrb[86].mxu0  ;;  %12645 = vmatprep.subr.bf16.mxu0 %v3466_v45  ;;  %v3402_v53 = vadd.f32 %v10883_v1, %v3401_v48 }
 0xe3c   : > { %v3413_v51 = vadd.f32 %v12634_v49, %v10883_v1  ;;  %v3404_v52 = vpop.f32.mrb[87].mxu0 }
 0xe3d   : > { %v3405_v54 = vadd.f32 %v10883_v1, %v3404_v52 }
 0xe3e   : > { %12646 = vmatpush3.bf16.msra.mxu0 %v3466_v45  ;;  %v3468_v55 = vpack.c.bf16 %v3413_v51, %v3410_v50 }
 0xe3f   : > { %v3467_v58 = vpack.c.bf16 %v3405_v54, %v3402_v53 }
 0xe41   : > { %v12637_v59 = vpop.f32.mrb[88].mxu0  ;;  %12647 = vmatprep.subr.bf16.mxu0 %v3467_v58 }
 0xe42   : > { %v3417_v3 = vpop.f32.mrb[89].mxu0  ;;  %12648 = vmatpush3.bf16.msra.mxu0 %v3467_v58  ;;  %v3426_v56 = vadd.f32 %v12637_v59, %v10883_v1 }
 0xe43   : > { %v12638_v4 = vpop.f32.mrb[90].mxu0  ;;  %12649 = vmatprep.subr.bf16.mxu0 %v3468_v55  ;;  %v3418_v6 = vadd.f32 %v10883_v1, %v3417_v3 }
 0xe44   : > { %v3429_v57 = vadd.f32 %v12638_v4, %v10883_v1  ;;  %v3420_v5 = vpop.f32.mrb[91].mxu0 }
 0xe45   : > { %v3421_v7 = vadd.f32 %v10883_v1, %v3420_v5 }
 0xe46   : > { %12650 = vmatpush3.bf16.msra.mxu0 %v3468_v55  ;;  %v3470_v8 = vpack.c.bf16 %v3429_v57, %v3426_v56 }
 0xe47   : > { %v3469_v9 = vpack.c.bf16 %v3421_v7, %v3418_v6 }
 0xe49   : > { %v12641_v11 = vpop.f32.mrb[92].mxu0  ;;  %12651 = vmatprep.subr.bf16.mxu0 %v3469_v9 }
 0xe4a   : > { %v3433_v14 = vpop.f32.mrb[93].mxu0  ;;  %12652 = vmatpush3.bf16.msra.mxu0 %v3469_v9  ;;  %v3442_v15 = vadd.f32 %v12641_v11, %v10883_v1  ;;  %v13860_v11 = vld [vmem:[#allocation8 + $0x40] sm:$0xff]  }
 0xe4b   : > { %v12642_v16 = vpop.f32.mrb[94].mxu0  ;;  %12653 = vmatprep.subr.bf16.mxu0 %v3470_v8  ;;  %v3434_v18 = vadd.f32 %v10883_v1, %v3433_v14  ;;  %v13861_v14 = vld [vmem:[#allocation8 + $0x48] sm:$0xff]   ;;  %12739 = vmatprep.subr.bf16.mxu1 %v13860_v11 }
 0xe4c   : > { %v3445_v17 = vadd.f32 %v12642_v16, %v10883_v1  ;;  %v3436_v12 = vpop.f32.mrb[95].mxu0  ;;  %v13862_v16 = vld [vmem:[#allocation8 + $0x50] sm:$0xff]  }
 0xe4d   : > { %v3437_v19 = vadd.f32 %v10883_v1, %v3436_v12  ;;  %v13865_v12 = vld [vmem:[#allocation8 + $0x68] sm:$0xff]  }
 0xe4e   : > { %12654 = vmatpush3.bf16.msra.mxu0 %v3470_v8  ;;  %v3472_v20 = vpack.c.bf16 %v3445_v17, %v3442_v15  ;;  %v13863_v15 = vld [vmem:[#allocation8 + $0x58] sm:$0xff]   ;;  %v13864_v17 = vld [vmem:[#allocation8 + $0x60] sm:$0xff]  }
 0xe4f   : > { %v3471_v21 = vpack.c.bf16 %v3437_v19, %v3434_v18  ;;  %v10928_v19 = vld [vmem:[%s15917_s6] ss:$0 sm:$0xff] }
 0xe51   : > { %12655 = vmatprep.subr.bf16.mxu0 %v3471_v21 }
 0xe52   : > { %12656 = vmatpush3.bf16.msra.mxu0 %v3471_v21 }
 0xe53   : > { %12657 = vmatprep.subr.bf16.mxu0 %v3472_v20 }
 0xe56   : > { %12658 = vmatpush3.bf16.msra.mxu0 %v3472_v20 }
 0xe59   : > { %12660 = vmatmul.mubr.bf16.vlgmr.msra.gmra.mrb[96].mxu0 %v15332_v22 }
 0xe5a   : > { %12663 = vmatprep.mubr.bf16.mxu0 %v15335_v23 }
 0xe61   : > { %12664 = vmatmul.mubr.bf16.gmra.mrb[100].mxu0 %v15340_v24 }
 0xe62   : > { %12667 = vmatprep.mubr.bf16.mxu0 %v15343_v35 }
 0xe69   : > { %12668 = vmatmul.mubr.bf16.gmra.mrb[104].mxu0 %v15348_v26 }
 0xe6a   : > { %12671 = vmatprep.mubr.bf16.mxu0 %v15351_v27 }
 0xe71   : > { %12672 = vmatmul.mubr.bf16.gmra.mrb[108].mxu0 %v15356_v28 }
 0xe72   : > { %12723 = vmatprep.mubr.bf16.mxu0 %v15317_v25 }
 0xf2c   : > { %v12661_v31 = vpop.f32.mrb[96].mxu0 }
 0xf2d   : > { %v3555_v32 = vpop.f32.mrb[97].mxu0  ;;  %v3620_v34 = vmax.f32 %v12661_v31, 0.0 }
 0xf2e   : > { %v12662_v33 = vpop.f32.mrb[98].mxu0  ;;  %v3618_v60 = vmax.f32 %v3555_v32, 0.0 }
 0xf2f   : > { %v3621_v36 = vmax.f32 %v12662_v33, 0.0  ;;  %v3558_v37 = vpop.f32.mrb[99].mxu0 }
 0xf30   : > { %v3619_v61 = vmax.f32 %v3558_v37, 0.0 }
 0xf31   : > { %v3635_v38 = vpack.c.bf16 %v3621_v36, %v3620_v34 }
 0xf32   : > { %v3634_v62 = vpack.c.bf16 %v3619_v61, %v3618_v60 }
 0xf34   : > { %v12665_v1 = vpop.f32.mrb[100].mxu0  ;;  %12691 = vmatprep.mubr.bf16.mxu1 %v3634_v62 }
 0xf35   : > { %v3571_v2 = vpop.f32.mrb[101].mxu0  ;;  %12692 = vmatmul.mubr.bf16.vlgmr.msra.gmra.mrb[104].mxu1 %v3635_v38  ;;  %v3624_v40 = vmax.f32 %v12665_v1, 0.0 }
 0xf36   : > { %v12666_v39 = vpop.f32.mrb[102].mxu0  ;;  %v3622_v43 = vmax.f32 %v3571_v2, 0.0  ;;  %12740 = vmatpush3.bf16.msra.mxu1 %v13860_v11 }
 0xf37   : > { %v3625_v41 = vmax.f32 %v12666_v39, 0.0  ;;  %v3574_v42 = vpop.f32.mrb[103].mxu0  ;;  %12741 = vmatprep.subr.bf16.mxu1 %v13861_v14 }
 0xf38   : > { %v3623_v44 = vmax.f32 %v3574_v42, 0.0 }
 0xf39   : > { %v3637_v45 = vpack.c.bf16 %v3625_v41, %v3624_v40 }
 0xf3a   : > { %v3636_v46 = vpack.c.bf16 %v3623_v44, %v3622_v43  ;;  %12742 = vmatpush3.bf16.msra.mxu1 %v13861_v14 }
 0xf3b   : > { %12743 = vmatprep.subr.bf16.mxu1 %v13862_v16 }
 0xf3c   : > { %v12669_v47 = vpop.f32.mrb[104].mxu0  ;;  %12695 = vmatprep.mubr.bf16.mxu1 %v3636_v46 }
 0xf3d   : > { %v3587_v48 = vpop.f32.mrb[105].mxu0  ;;  %12696 = vmatmul.mubr.bf16.gmra.mrb[108].mxu1 %v3637_v45  ;;  %v3628_v50 = vmax.f32 %v12669_v47, 0.0 }
 0xf3e   : > { %v12670_v49 = vpop.f32.mrb[106].mxu0  ;;  %v3626_v53 = vmax.f32 %v3587_v48, 0.0  ;;  %12744 = vmatpush3.bf16.msra.mxu1 %v13862_v16 }
 0xf3f   : > { %v3629_v51 = vmax.f32 %v12670_v49, 0.0  ;;  %v3590_v52 = vpop.f32.mrb[107].mxu0  ;;  %12745 = vmatprep.subr.bf16.mxu1 %v13863_v15 }
 0xf40   : > { %v3627_v54 = vmax.f32 %v3590_v52, 0.0 }
 0xf41   : > { %v3639_v55 = vpack.c.bf16 %v3629_v51, %v3628_v50 }
 0xf42   : > { %v3638_v58 = vpack.c.bf16 %v3627_v54, %v3626_v53  ;;  %12746 = vmatpush3.bf16.msra.mxu1 %v13863_v15 }
 0xf43   : > { %12747 = vmatprep.subr.bf16.mxu1 %v13864_v17 }
 0xf44   : > { %v12673_v59 = vpop.f32.mrb[108].mxu0  ;;  %12699 = vmatprep.mubr.bf16.mxu1 %v3638_v58 }
 0xf45   : > { %v3603_v3 = vpop.f32.mrb[109].mxu0  ;;  %12700 = vmatmul.mubr.bf16.gmra.mrb[112].mxu1 %v3639_v55  ;;  %v3632_v56 = vmax.f32 %v12673_v59, 0.0 }
 0xf46   : > { %v12674_v4 = vpop.f32.mrb[110].mxu0  ;;  %v3630_v6 = vmax.f32 %v3603_v3, 0.0  ;;  %12748 = vmatpush3.bf16.msra.mxu1 %v13864_v17 }
 0xf47   : > { %v3633_v57 = vmax.f32 %v12674_v4, 0.0  ;;  %v3606_v5 = vpop.f32.mrb[111].mxu0  ;;  %12749 = vmatprep.subr.bf16.mxu1 %v13865_v12 }
 0xf48   : > { %v3631_v7 = vmax.f32 %v3606_v5, 0.0  ;;  %v13866_v5 = vld [vmem:[#allocation8 + $0x70] sm:$0xff]  }
 0xf49   : > { %v3641_v8 = vpack.c.bf16 %v3633_v57, %v3632_v56 }
 0xf4a   : > { %v3640_v9 = vpack.c.bf16 %v3631_v7, %v3630_v6  ;;  %12750 = vmatpush3.bf16.msra.mxu1 %v13865_v12  ;;  %v13867_v6 = vld [vmem:[#allocation8 + $0x78] sm:$0xff]  }
 0xf4b   : > { %12751 = vmatprep.subr.bf16.mxu1 %v13866_v5 }
 0xf4c   : > { %12703 = vmatprep.mubr.bf16.mxu1 %v3640_v9 }
 0xf4d   : > { %12704 = vmatmul.mubr.bf16.gmra.mrb[116].mxu1 %v3641_v8 }
 0xf4e   : > { %12752 = vmatpush3.bf16.msra.mxu1 %v13866_v5 }
 0xf4f   : > { %12753 = vmatprep.subr.bf16.mxu1 %v13867_v6 }
 0xf52   : > { %12754 = vmatpush3.bf16.msra.mxu1 %v13867_v6 }
0x1008   : > { %v12693_v18 = vpop.f32.mrb[104].mxu1 }
0x1009   : > { %v3747_v20 = vpop.f32.mrb[105].mxu1  ;;  %v3756_v29 = vadd.f32 %v12693_v18, %v10928_v19 }
0x100a   : > { %v12694_v21 = vpop.f32.mrb[106].mxu1  ;;  %v3748_v32 = vadd.f32 %v10928_v19, %v3747_v20 }
0x100b   : > { %v3759_v30 = vadd.f32 %v12694_v21, %v10928_v19  ;;  %v3750_v31 = vpop.f32.mrb[107].mxu1 }
0x100c   : > { %v3751_v33 = vadd.f32 %v10928_v19, %v3750_v31 }
0x100d   : > { %v3811_v34 = vpack.c.bf16 %v3759_v30, %v3756_v29 }
0x100e   : > { %v3810_v36 = vpack.c.bf16 %v3751_v33, %v3748_v32 }
0x1010   : > { %v12697_v37 = vpop.f32.mrb[108].mxu1  ;;  %12707 = vmatprep.subr.bf16.mxu0 %v3810_v36 }
0x1011   : > { %v3763_v60 = vpop.f32.mrb[109].mxu1  ;;  %12708 = vmatpush3.bf16.msra.mxu0 %v3810_v36  ;;  %v3772_v38 = vadd.f32 %v12697_v37, %v10928_v19 }
0x1012   : > { %v12698_v61 = vpop.f32.mrb[110].mxu1  ;;  %12709 = vmatprep.subr.bf16.mxu0 %v3811_v34  ;;  %v3764_v2 = vadd.f32 %v10928_v19, %v3763_v60 }
0x1013   : > { %v3775_v62 = vadd.f32 %v12698_v61, %v10928_v19  ;;  %v3766_v1 = vpop.f32.mrb[111].mxu1 }
0x1014   : > { %v3767_v39 = vadd.f32 %v10928_v19, %v3766_v1 }
0x1015   : > { %12710 = vmatpush3.bf16.msra.mxu0 %v3811_v34  ;;  %v3813_v40 = vpack.c.bf16 %v3775_v62, %v3772_v38 }
0x1016   : > { %v3812_v41 = vpack.c.bf16 %v3767_v39, %v3764_v2 }
0x1018   : > { %v12701_v42 = vpop.f32.mrb[112].mxu1  ;;  %12711 = vmatprep.subr.bf16.mxu0 %v3812_v41 }
0x1019   : > { %v3779_v43 = vpop.f32.mrb[113].mxu1  ;;  %12712 = vmatpush3.bf16.msra.mxu0 %v3812_v41  ;;  %v3788_v45 = vadd.f32 %v12701_v42, %v10928_v19 }
0x101a   : > { %v12702_v44 = vpop.f32.mrb[114].mxu1  ;;  %12713 = vmatprep.subr.bf16.mxu0 %v3813_v40  ;;  %v3780_v48 = vadd.f32 %v10928_v19, %v3779_v43 }
0x101b   : > { %v3791_v46 = vadd.f32 %v12702_v44, %v10928_v19  ;;  %v3782_v47 = vpop.f32.mrb[115].mxu1 }
0x101c   : > { %v3783_v49 = vadd.f32 %v10928_v19, %v3782_v47 }
0x101d   : > { %v3815_v50 = vpack.c.bf16 %v3791_v46, %v3788_v45  ;;  %12714 = vmatpush3.bf16.msra.mxu0 %v3813_v40 }
0x101e   : > { %v3814_v51 = vpack.c.bf16 %v3783_v49, %v3780_v48 }
0x1020   : > { %v12705_v52 = vpop.f32.mrb[116].mxu1  ;;  %12715 = vmatprep.subr.bf16.mxu0 %v3814_v51 }
0x1021   : > { %v3795_v53 = vpop.f32.mrb[117].mxu1  ;;  %12716 = vmatpush3.bf16.msra.mxu0 %v3814_v51  ;;  %v3804_v55 = vadd.f32 %v12705_v52, %v10928_v19  ;;  %v13868_v52 = vld [vmem:[#allocation8 + $0x80] sm:$0xff]  }
0x1022   : > { %v12706_v54 = vpop.f32.mrb[118].mxu1  ;;  %12717 = vmatprep.subr.bf16.mxu0 %v3815_v50  ;;  %v3796_v3 = vadd.f32 %v10928_v19, %v3795_v53  ;;  %v13869_v53 = vld [vmem:[#allocation8 + $0x88] sm:$0xff]   ;;  %12803 = vmatprep.subr.bf16.mxu1 %v13868_v52 }
0x1023   : > { %v3807_v58 = vadd.f32 %v12706_v54, %v10928_v19  ;;  %v3798_v59 = vpop.f32.mrb[119].mxu1  ;;  %v13870_v54 = vld [vmem:[#allocation8 + $0x90] sm:$0xff]  }
0x1024   : > { %v3799_v4 = vadd.f32 %v10928_v19, %v3798_v59  ;;  %v13873_v59 = vld [vmem:[#allocation8 + $0xa8] sm:$0xff]  }
0x1025   : > { %v3817_v56 = vpack.c.bf16 %v3807_v58, %v3804_v55  ;;  %12718 = vmatpush3.bf16.msra.mxu0 %v3815_v50  ;;  %v13871_v55 = vld [vmem:[#allocation8 + $0x98] sm:$0xff]   ;;  %v13872_v58 = vld [vmem:[#allocation8 + $0xa0] sm:$0xff]  }
0x1026   : > { %v3816_v57 = vpack.c.bf16 %v3799_v4, %v3796_v3  ;;  %v10938_v4 = vld [vmem:[%s15917_s6 + $0x1] ss:$0 sm:$0xff] }
0x1028   : > { %12719 = vmatprep.subr.bf16.mxu0 %v3816_v57 }
0x1029   : > { %12720 = vmatpush3.bf16.msra.mxu0 %v3816_v57 }
0x102a   : > { %12721 = vmatprep.subr.bf16.mxu0 %v3817_v56 }
0x102d   : > { %12722 = vmatpush3.bf16.msra.mxu0 %v3817_v56 }
0x1030   : > { %12724 = vmatmul.mubr.bf16.vlgmr.msra.gmra.mrb[112].mxu0 %v15332_v22 }
0x1031   : > { %12727 = vmatprep.mubr.bf16.mxu0 %v15335_v23 }
0x1038   : > { %12728 = vmatmul.mubr.bf16.gmra.mrb[116].mxu0 %v15340_v24 }
0x1039   : > { %12731 = vmatprep.mubr.bf16.mxu0 %v15343_v35 }
0x1040   : > { %12732 = vmatmul.mubr.bf16.gmra.mrb[120].mxu0 %v15348_v26 }
0x1041   : > { %12735 = vmatprep.mubr.bf16.mxu0 %v15351_v27 }
0x1048   : > { %12736 = vmatmul.mubr.bf16.gmra.mrb[124].mxu0 %v15356_v28 }
0x1049   : > { %12787 = vmatprep.mubr.bf16.mxu0 %v15317_v25 }
0x1103   : > { %v12725_v7 = vpop.f32.mrb[112].mxu0 }
0x1104   : > { %v3852_v8 = vpop.f32.mrb[113].mxu0  ;;  %v3917_v11 = vmax.f32 %v12725_v7, 0.0 }
0x1105   : > { %v12726_v9 = vpop.f32.mrb[114].mxu0  ;;  %v3915_v15 = vmax.f32 %v3852_v8, 0.0 }
0x1106   : > { %v3918_v14 = vmax.f32 %v12726_v9, 0.0  ;;  %v3855_v16 = vpop.f32.mrb[115].mxu0 }
0x1107   : > { %v3916_v17 = vmax.f32 %v3855_v16, 0.0 }
0x1108   : > { %v3932_v12 = vpack.c.bf16 %v3918_v14, %v3917_v11 }
0x1109   : > { %v3931_v18 = vpack.c.bf16 %v3916_v17, %v3915_v15 }
0x110b   : > { %v12729_v19 = vpop.f32.mrb[116].mxu0  ;;  %12755 = vmatprep.mubr.bf16.mxu1 %v3931_v18 }
0x110c   : > { %v3868_v20 = vpop.f32.mrb[117].mxu0  ;;  %12756 = vmatmul.mubr.bf16.vlgmr.msra.gmra.mrb[120].mxu1 %v3932_v12  ;;  %v3921_v29 = vmax.f32 %v12729_v19, 0.0 }
0x110d   : > { %v12730_v21 = vpop.f32.mrb[118].mxu0  ;;  %v3919_v32 = vmax.f32 %v3868_v20, 0.0  ;;  %12804 = vmatpush3.bf16.msra.mxu1 %v13868_v52 }
0x110e   : > { %v3922_v30 = vmax.f32 %v12730_v21, 0.0  ;;  %v3871_v31 = vpop.f32.mrb[119].mxu0  ;;  %12805 = vmatprep.subr.bf16.mxu1 %v13869_v53 }
0x110f   : > { %v3920_v33 = vmax.f32 %v3871_v31, 0.0 }
0x1110   : > { %v3934_v34 = vpack.c.bf16 %v3922_v30, %v3921_v29 }
0x1111   : > { %v3933_v36 = vpack.c.bf16 %v3920_v33, %v3919_v32  ;;  %12806 = vmatpush3.bf16.msra.mxu1 %v13869_v53 }
0x1112   : > { %12807 = vmatprep.subr.bf16.mxu1 %v13870_v54 }
0x1113   : > { %v12733_v37 = vpop.f32.mrb[120].mxu0  ;;  %12759 = vmatprep.mubr.bf16.mxu1 %v3933_v36 }
0x1114   : > { %v3884_v60 = vpop.f32.mrb[121].mxu0  ;;  %12760 = vmatmul.mubr.bf16.gmra.mrb[124].mxu1 %v3934_v34  ;;  %v3925_v38 = vmax.f32 %v12733_v37, 0.0 }
0x1115   : > { %v12734_v61 = vpop.f32.mrb[122].mxu0  ;;  %v3923_v2 = vmax.f32 %v3884_v60, 0.0  ;;  %12808 = vmatpush3.bf16.msra.mxu1 %v13870_v54 }
0x1116   : > { %v3926_v62 = vmax.f32 %v12734_v61, 0.0  ;;  %v3887_v1 = vpop.f32.mrb[123].mxu0  ;;  %12809 = vmatprep.subr.bf16.mxu1 %v13871_v55 }
0x1117   : > { %v3924_v39 = vmax.f32 %v3887_v1, 0.0 }
0x1118   : > { %v3936_v40 = vpack.c.bf16 %v3926_v62, %v3925_v38 }
0x1119   : > { %v3935_v41 = vpack.c.bf16 %v3924_v39, %v3923_v2  ;;  %12810 = vmatpush3.bf16.msra.mxu1 %v13871_v55 }
0x111a   : > { %12811 = vmatprep.subr.bf16.mxu1 %v13872_v58 }
0x111b   : > { %v12737_v42 = vpop.f32.mrb[124].mxu0  ;;  %12763 = vmatprep.mubr.bf16.mxu1 %v3935_v41 }
0x111c   : > { %v3900_v43 = vpop.f32.mrb[125].mxu0  ;;  %12764 = vmatmul.mubr.bf16.gmra.mrb[128].mxu1 %v3936_v40  ;;  %v3929_v45 = vmax.f32 %v12737_v42, 0.0 }
0x111d   : > { %v12738_v44 = vpop.f32.mrb[126].mxu0  ;;  %v3927_v48 = vmax.f32 %v3900_v43, 0.0  ;;  %12812 = vmatpush3.bf16.msra.mxu1 %v13872_v58 }
0x111e   : > { %v3930_v46 = vmax.f32 %v12738_v44, 0.0  ;;  %v3903_v47 = vpop.f32.mrb[127].mxu0  ;;  %12813 = vmatprep.subr.bf16.mxu1 %v13873_v59 }
0x111f   : > { %v3928_v49 = vmax.f32 %v3903_v47, 0.0  ;;  %v13874_v47 = vld [vmem:[#allocation8 + $0xb0] sm:$0xff]  }
0x1120   : > { %v3938_v50 = vpack.c.bf16 %v3930_v46, %v3929_v45 }
0x1121   : > { %v3937_v51 = vpack.c.bf16 %v3928_v49, %v3927_v48  ;;  %12814 = vmatpush3.bf16.msra.mxu1 %v13873_v59  ;;  %v13875_v48 = vld [vmem:[#allocation8 + $0xb8] sm:$0xff]  }
0x1122   : > { %12815 = vmatprep.subr.bf16.mxu1 %v13874_v47 }
0x1123   : > { %12767 = vmatprep.mubr.bf16.mxu1 %v3937_v51 }
0x1124   : > { %12768 = vmatmul.mubr.bf16.gmra.mrb[132].mxu1 %v3938_v50 }
0x1125   : > { %12816 = vmatpush3.bf16.msra.mxu1 %v13874_v47 }
0x1126   : > { %12817 = vmatprep.subr.bf16.mxu1 %v13875_v48 }
0x1129   : > { %12818 = vmatpush3.bf16.msra.mxu1 %v13875_v48 }
0x11df   : > { %v12757_v3 = vpop.f32.mrb[120].mxu1 }
0x11e0   : > { %v4044_v56 = vpop.f32.mrb[121].mxu1  ;;  %v4053_v5 = vadd.f32 %v12757_v3, %v10938_v4 }
0x11e1   : > { %v12758_v57 = vpop.f32.mrb[122].mxu1  ;;  %v4045_v8 = vadd.f32 %v10938_v4, %v4044_v56 }
0x11e2   : > { %v4056_v6 = vadd.f32 %v12758_v57, %v10938_v4  ;;  %v4047_v7 = vpop.f32.mrb[123].mxu1 }
0x11e3   : > { %v4048_v9 = vadd.f32 %v10938_v4, %v4047_v7 }
0x11e4   : > { %v4108_v11 = vpack.c.bf16 %v4056_v6, %v4053_v5 }
0x11e5   : > { %v4107_v14 = vpack.c.bf16 %v4048_v9, %v4045_v8 }
0x11e7   : > { %v12761_v16 = vpop.f32.mrb[124].mxu1  ;;  %12771 = vmatprep.subr.bf16.mxu0 %v4107_v14 }
0x11e8   : > { %v4060_v15 = vpop.f32.mrb[125].mxu1  ;;  %12772 = vmatpush3.bf16.msra.mxu0 %v4107_v14  ;;  %v4069_v12 = vadd.f32 %v12761_v16, %v10938_v4 }
0x11e9   : > { %v12762_v17 = vpop.f32.mrb[126].mxu1  ;;  %12773 = vmatprep.subr.bf16.mxu0 %v4108_v11  ;;  %v4061_v20 = vadd.f32 %v10938_v4, %v4060_v15 }
0x11ea   : > { %v4072_v18 = vadd.f32 %v12762_v17, %v10938_v4  ;;  %v4063_v19 = vpop.f32.mrb[127].mxu1 }
0x11eb   : > { %v4064_v21 = vadd.f32 %v10938_v4, %v4063_v19 }
0x11ec   : > { %v4110_v29 = vpack.c.bf16 %v4072_v18, %v4069_v12  ;;  %12774 = vmatpush3.bf16.msra.mxu0 %v4108_v11 }
0x11ed   : > { %v4109_v30 = vpack.c.bf16 %v4064_v21, %v4061_v20 }
0x11ef   : > { %v12765_v31 = vpop.f32.mrb[128].mxu1  ;;  %12775 = vmatprep.subr.bf16.mxu0 %v4109_v30 }
0x11f0   : > { %v4076_v32 = vpop.f32.mrb[129].mxu1  ;;  %12776 = vmatpush3.bf16.msra.mxu0 %v4109_v30  ;;  %v4085_v34 = vadd.f32 %v12765_v31, %v10938_v4 }
0x11f1   : > { %v12766_v33 = vpop.f32.mrb[130].mxu1  ;;  %12777 = vmatprep.subr.bf16.mxu0 %v4110_v29  ;;  %v4077_v60 = vadd.f32 %v10938_v4, %v4076_v32 }
0x11f2   : > { %v4088_v36 = vadd.f32 %v12766_v33, %v10938_v4  ;;  %v4079_v37 = vpop.f32.mrb[131].mxu1 }
0x11f3   : > { %v4080_v61 = vadd.f32 %v10938_v4, %v4079_v37 }
0x11f4   : > { %v4112_v38 = vpack.c.bf16 %v4088_v36, %v4085_v34  ;;  %12778 = vmatpush3.bf16.msra.mxu0 %v4110_v29 }
0x11f5   : > { %v4111_v62 = vpack.c.bf16 %v4080_v61, %v4077_v60 }
0x11f7   : > { %v12769_v1 = vpop.f32.mrb[132].mxu1  ;;  %12779 = vmatprep.subr.bf16.mxu0 %v4111_v62 }
0x11f8   : > { %v4092_v2 = vpop.f32.mrb[133].mxu1  ;;  %12780 = vmatpush3.bf16.msra.mxu0 %v4111_v62  ;;  %v4101_v40 = vadd.f32 %v12769_v1, %v10938_v4  ;;  %v10948_v1 = vld [vmem:[%s15917_s6 + $0x2] ss:$0 sm:$0xff] }
0x11f9   : > { %v12770_v39 = vpop.f32.mrb[134].mxu1  ;;  %12781 = vmatprep.subr.bf16.mxu0 %v4112_v38  ;;  %v4093_v43 = vadd.f32 %v10938_v4, %v4092_v2 }
0x11fa   : > { %v4104_v41 = vadd.f32 %v12770_v39, %v10938_v4  ;;  %v4095_v42 = vpop.f32.mrb[135].mxu1 }
0x11fb   : > { %v4096_v44 = vadd.f32 %v10938_v4, %v4095_v42 }
0x11fc   : > { %v4114_v45 = vpack.c.bf16 %v4104_v41, %v4101_v40  ;;  %12782 = vmatpush3.bf16.msra.mxu0 %v4112_v38 }
0x11fd   : > { %v4113_v46 = vpack.c.bf16 %v4096_v44, %v4093_v43 }
0x11ff   : > { %12783 = vmatprep.subr.bf16.mxu0 %v4113_v46 }
0x1200   : > { %12784 = vmatpush3.bf16.msra.mxu0 %v4113_v46 }
0x1201   : > { %12785 = vmatprep.subr.bf16.mxu0 %v4114_v45 }
0x1204   : > { %12786 = vmatpush3.bf16.msra.mxu0 %v4114_v45 }
0x1207   : > { %12788 = vmatmul.mubr.bf16.vlgmr.msra.gmra.mrb[128].mxu0 %v15332_v22 }
0x1208   : > { %12791 = vmatprep.mubr.bf16.mxu0 %v15335_v23 }
0x120f   : > { %12792 = vmatmul.mubr.bf16.gmra.mrb[132].mxu0 %v15340_v24 }
0x1210   : > { %12795 = vmatprep.mubr.bf16.mxu0 %v15343_v35 }
0x1217   : > { %12796 = vmatmul.mubr.bf16.gmra.mrb[136].mxu0 %v15348_v26 }
0x1218   : > { %12799 = vmatprep.mubr.bf16.mxu0 %v15351_v27 }
0x121f   : > { %12800 = vmatmul.mubr.bf16.gmra.mrb[140].mxu0 %v15356_v28 }
0x1220   : > { %12851 = vmatprep.mubr.bf16.mxu0 %v15317_v25 }
0x12da   : > { %v12789_v49 = vpop.f32.mrb[128].mxu0 }
0x12db   : > { %v4149_v50 = vpop.f32.mrb[129].mxu0  ;;  %v4214_v52 = vmax.f32 %v12789_v49, 0.0 }
0x12dc   : > { %v12790_v51 = vpop.f32.mrb[130].mxu0  ;;  %v4212_v55 = vmax.f32 %v4149_v50, 0.0 }
0x12dd   : > { %v4215_v53 = vmax.f32 %v12790_v51, 0.0  ;;  %v4152_v54 = vpop.f32.mrb[131].mxu0 }
0x12de   : > { %v4213_v58 = vmax.f32 %v4152_v54, 0.0 }
0x12df   : > { %v4229_v59 = vpack.c.bf16 %v4215_v53, %v4214_v52 }
0x12e0   : > { %v4228_v3 = vpack.c.bf16 %v4213_v58, %v4212_v55 }
0x12e2   : > { %v12793_v4 = vpop.f32.mrb[132].mxu0  ;;  %12819 = vmatprep.mubr.bf16.mxu1 %v4228_v3 }
0x12e3   : > { %v4165_v56 = vpop.f32.mrb[133].mxu0  ;;  %12820 = vmatmul.mubr.bf16.vlgmr.msra.gmra.mrb[136].mxu1 %v4229_v59  ;;  %v4218_v57 = vmax.f32 %v12793_v4, 0.0 }
0x12e4   : > { %v12794_v25 = vpop.f32.mrb[134].mxu0  ;;  %v4216_v7 = vmax.f32 %v4165_v56, 0.0 }
0x12e5   : > { %v4219_v5 = vmax.f32 %v12794_v25, 0.0  ;;  %v4168_v6 = vpop.f32.mrb[135].mxu0 }
0x12e6   : > { %v4217_v8 = vmax.f32 %v4168_v6, 0.0 }
0x12e7   : > { %v4231_v9 = vpack.c.bf16 %v4219_v5, %v4218_v57 }
0x12e8   : > { %v4230_v11 = vpack.c.bf16 %v4217_v8, %v4216_v7 }
0x12ea   : > { %v12797_v14 = vpop.f32.mrb[136].mxu0  ;;  %12823 = vmatprep.mubr.bf16.mxu1 %v4230_v11 }
0x12eb   : > { %v4181_v16 = vpop.f32.mrb[137].mxu0  ;;  %12824 = vmatmul.mubr.bf16.gmra.mrb[140].mxu1 %v4231_v9  ;;  %v4222_v17 = vmax.f32 %v12797_v14, 0.0 }
0x12ec   : > { %v12798_v15 = vpop.f32.mrb[138].mxu0  ;;  %v4220_v19 = vmax.f32 %v4181_v16, 0.0 }
0x12ed   : > { %v4223_v12 = vmax.f32 %v12798_v15, 0.0  ;;  %v4184_v18 = vpop.f32.mrb[139].mxu0 }
0x12ee   : > { %v4221_v20 = vmax.f32 %v4184_v18, 0.0 }
0x12ef   : > { %v4233_v21 = vpack.c.bf16 %v4223_v12, %v4222_v17 }
0x12f0   : > { %v4232_v29 = vpack.c.bf16 %v4221_v20, %v4220_v19 }
0x12f2   : > { %v12801_v30 = vpop.f32.mrb[140].mxu0  ;;  %12827 = vmatprep.mubr.bf16.mxu1 %v4232_v29  ;;  %v13880_v29 = vld [vmem:[#allocation10 + $0x180] ss:$8 sps:$4 sm:$0xff]  }
0x12f3   : > { %v4197_v31 = vpop.f32.mrb[141].mxu0  ;;  %12828 = vmatmul.mubr.bf16.gmra.mrb[144].mxu1 %v4233_v21  ;;  %v4226_v33 = vmax.f32 %v12801_v30, 0.0  ;;  %v13876_v21 = vld [vmem:[%s15222_s0 + $0x20] sm:$0xff]  }
0x12f4   : > { %v12802_v32 = vpop.f32.mrb[142].mxu0  ;;  %v4224_v37 = vmax.f32 %v4197_v31, 0.0  ;;  %v13882_v30 = vld [vmem:[#allocation10 + $0x184] ss:$8 sps:$4 sm:$0xff]   ;;  %v13885_v31 = vld [vmem:[#allocation10 + $0x194] ss:$8 sps:$4 sm:$0xff]  }
0x12f5   : > { %v4227_v34 = vmax.f32 %v12802_v32, 0.0  ;;  %v4200_v36 = vpop.f32.mrb[143].mxu0  ;;  %v13897_v32 = vld [vmem:[#allocation10 + $0x1d4] ss:$8 sps:$4 sm:$0xff]  }
0x12f6   : > { %v4225_v60 = vmax.f32 %v4200_v36, 0.0  ;;  %v13898_v36 = vld [vmem:[#allocation10 + $0x1e0] ss:$8 sps:$4 sm:$0xff]  }
0x12f7   : > { %v4235_v61 = vpack.c.bf16 %v4227_v34, %v4226_v33  ;;  %v13895_v33 = vld [vmem:[#allocation10 + $0x1d0] ss:$8 sps:$4 sm:$0xff]   ;;  %v13900_v34 = vld [vmem:[#allocation10 + $0x1e4] ss:$8 sps:$4 sm:$0xff]  }
0x12f8   : > { %v4234_v38 = vpack.c.bf16 %v4225_v60, %v4224_v37 }
0x12fa   : > { %12831 = vmatprep.mubr.bf16.mxu1 %v4234_v38 }
0x12fb   : > { %12832 = vmatmul.mubr.bf16.gmra.mrb[148].mxu1 %v4235_v61 }
0x12fc   : > { %12883 = vmatprep.mubr.bf16.mxu1 %v13876_v21 }
0x13b6   : > { %v12821_v62 = vpop.f32.mrb[136].mxu1 }
0x13b7   : > { %v4341_v2 = vpop.f32.mrb[137].mxu1  ;;  %v4350_v40 = vadd.f32 %v12821_v62, %v10948_v1 }
0x13b8   : > { %v12822_v39 = vpop.f32.mrb[138].mxu1  ;;  %v4342_v43 = vadd.f32 %v10948_v1, %v4341_v2 }
0x13b9   : > { %v4353_v41 = vadd.f32 %v12822_v39, %v10948_v1  ;;  %v4344_v42 = vpop.f32.mrb[139].mxu1 }
0x13ba   : > { %v4345_v44 = vadd.f32 %v10948_v1, %v4344_v42 }
0x13bb   : > { %v4405_v45 = vpack.c.bf16 %v4353_v41, %v4350_v40 }
0x13bc   : > { %v4404_v46 = vpack.c.bf16 %v4345_v44, %v4342_v43 }
0x13be   : > { %v12825_v47 = vpop.f32.mrb[140].mxu1  ;;  %12835 = vmatprep.subr.bf16.mxu0 %v4404_v46 }
0x13bf   : > { %v4357_v48 = vpop.f32.mrb[141].mxu1  ;;  %12836 = vmatpush3.bf16.msra.mxu0 %v4404_v46  ;;  %v4366_v50 = vadd.f32 %v12825_v47, %v10948_v1 }
0x13c0   : > { %v12826_v49 = vpop.f32.mrb[142].mxu1  ;;  %12837 = vmatprep.subr.bf16.mxu0 %v4405_v45  ;;  %v4358_v53 = vadd.f32 %v10948_v1, %v4357_v48 }
0x13c1   : > { %v4369_v51 = vadd.f32 %v12826_v49, %v10948_v1  ;;  %v4360_v52 = vpop.f32.mrb[143].mxu1 }
0x13c2   : > { %v4361_v54 = vadd.f32 %v10948_v1, %v4360_v52 }
0x13c3   : > { %v4407_v55 = vpack.c.bf16 %v4369_v51, %v4366_v50  ;;  %12838 = vmatpush3.bf16.msra.mxu0 %v4405_v45 }
0x13c4   : > { %v4406_v58 = vpack.c.bf16 %v4361_v54, %v4358_v53 }
0x13c6   : > { %v12829_v59 = vpop.f32.mrb[144].mxu1  ;;  %12839 = vmatprep.subr.bf16.mxu0 %v4406_v58 }
0x13c7   : > { %v4373_v3 = vpop.f32.mrb[145].mxu1  ;;  %12840 = vmatpush3.bf16.msra.mxu0 %v4406_v58  ;;  %v4382_v56 = vadd.f32 %v12829_v59, %v10948_v1 }
0x13c8   : > { %v12830_v4 = vpop.f32.mrb[146].mxu1  ;;  %12841 = vmatprep.subr.bf16.mxu0 %v4407_v55  ;;  %v4374_v5 = vadd.f32 %v10948_v1, %v4373_v3 }
0x13c9   : > { %v4385_v25 = vadd.f32 %v12830_v4, %v10948_v1  ;;  %v4376_v57 = vpop.f32.mrb[147].mxu1 }
0x13ca   : > { %v4377_v6 = vadd.f32 %v10948_v1, %v4376_v57 }
0x13cb   : > { %v4409_v7 = vpack.c.bf16 %v4385_v25, %v4382_v56  ;;  %12842 = vmatpush3.bf16.msra.mxu0 %v4407_v55 }
0x13cc   : > { %v4408_v8 = vpack.c.bf16 %v4377_v6, %v4374_v5 }
0x13ce   : > { %v12833_v9 = vpop.f32.mrb[148].mxu1  ;;  %12843 = vmatprep.subr.bf16.mxu0 %v4408_v8 }
0x13cf   : > { %v4389_v11 = vpop.f32.mrb[149].mxu1  ;;  %12844 = vmatpush3.bf16.msra.mxu0 %v4408_v8  ;;  %v4398_v16 = vadd.f32 %v12833_v9, %v10948_v1 }
0x13d0   : > { %v12834_v14 = vpop.f32.mrb[150].mxu1  ;;  %12845 = vmatprep.subr.bf16.mxu0 %v4409_v7  ;;  %v4390_v12 = vadd.f32 %v10948_v1, %v4389_v11 }
0x13d1   : > { %v4401_v15 = vadd.f32 %v12834_v14, %v10948_v1  ;;  %v4392_v17 = vpop.f32.mrb[151].mxu1 }
0x13d2   : > { %v4393_v18 = vadd.f32 %v10948_v1, %v4392_v17 }
0x13d3   : > { %v4411_v19 = vpack.c.bf16 %v4401_v15, %v4398_v16  ;;  %12846 = vmatpush3.bf16.msra.mxu0 %v4409_v7 }
0x13d4   : > { %v4410_v20 = vpack.c.bf16 %v4393_v18, %v4390_v12 }
0x13d6   : > { %12847 = vmatprep.subr.bf16.mxu0 %v4410_v20 }
0x13d7   : > { %12848 = vmatpush3.bf16.msra.mxu0 %v4410_v20 }
0x13d8   : > { %12849 = vmatprep.subr.bf16.mxu0 %v4411_v19 }
0x13db   : > { %12850 = vmatpush3.bf16.msra.mxu0 %v4411_v19 }
0x13dc   : > { %4727 = vmatprep.subr.bf16.mxu0 %v13882_v30 }
0x13de   : > { %12852 = vmatmul.mubr.bf16.vlgmr.msra.gmra.mrb[144].mxu0 %v15332_v22  ;;  %v13883_v22 = vld [vmem:[#allocation10 + $0x190] ss:$8 sps:$4 sm:$0xff]  }
0x13df   : > { %12855 = vmatprep.mubr.bf16.mxu0 %v15335_v23  ;;  %4728 = vmatpush1.bf16.msra.mxu0 %v13880_v29  ;;  %v13888_v23 = vld [vmem:[#allocation10 + $0x1a4] ss:$8 sps:$4 sm:$0xff]  }
0x13e0   : > { %4729 = vmatprep.subr.bf16.mxu0 %v13885_v31  ;;  %v13877_v31 = vld [vmem:[%s15222_s0 + $0x28] sm:$0xff]  }
0x13e3   : > { %4730 = vmatpush1.bf16.msra.mxu0 %v13883_v22  ;;  %v13878_v22 = vld [vmem:[%s15222_s0 + $0x30] sm:$0xff]  }
0x13e4   : > { %4731 = vmatprep.subr.bf16.mxu0 %v13888_v23  ;;  %v13879_v23 = vld [vmem:[%s15222_s0 + $0x38] sm:$0xff]  }
0x13e6   : > { %12856 = vmatmul.mubr.bf16.gmra.mrb[148].mxu0 %v15340_v24  ;;  %v13886_v24 = vld [vmem:[#allocation10 + $0x1a0] ss:$8 sps:$4 sm:$0xff]  }
0x13e7   : > { %12859 = vmatprep.mubr.bf16.mxu0 %v15343_v35  ;;  %v13891_v35 = vld [vmem:[#allocation10 + $0x1b4] ss:$8 sps:$4 sm:$0xff]   ;;  %4732 = vmatpush1.bf16.msra.mxu0 %v13886_v24 }
0x13e8   : > { %4733 = vmatprep.subr.bf16.mxu0 %v13891_v35  ;;  %v13903_v24 = vld [vmem:[#allocation10 + $0x1f4] ss:$8 sps:$4 sm:$0xff]   ;;  %v13901_v35 = vld [vmem:[#allocation10 + $0x1f0] ss:$8 sps:$4 sm:$0xff]  }
0x13ee   : > { %12860 = vmatmul.mubr.bf16.gmra.mrb[152].mxu0 %v15348_v26  ;;  %v13889_v26 = vld [vmem:[#allocation10 + $0x1b0] ss:$8 sps:$4 sm:$0xff]  }
0x13ef   : > { %12863 = vmatprep.mubr.bf16.mxu0 %v15351_v27  ;;  %v13894_v27 = vld [vmem:[#allocation10 + $0x1c4] ss:$8 sps:$4 sm:$0xff]   ;;  %4734 = vmatpush1.bf16.msra.mxu0 %v13889_v26 }
0x13f0   : > { %4735 = vmatprep.subr.bf16.mxu0 %v13894_v27  ;;  %v13904_v26 = vld [vmem:[#allocation11 + $0x1c0] sm:$0xff]  }
0x13f1   : > { %v13905_v27 = vld [vmem:[#allocation11 + $0x180] sm:$0xff]  }
0x13f6   : > { %12864 = vmatmul.mubr.bf16.gmra.mrb[156].mxu0 %v15356_v28  ;;  %v13892_v28 = vld [vmem:[#allocation10 + $0x1c0] ss:$8 sps:$4 sm:$0xff]  }
0x13f7   : > { %4759 = vmatprep.mubr.bf16.mxu0 %v14652_v63  ;;  %4736 = vmatpush1.bf16.msra.mxu0 %v13892_v28  ;;  %v13906_v28 = vld [vmem:[#allocation11 + $0x1c8] sm:$0xff]  }
0x13f8   : > { %4737 = vmatprep.subr.bf16.mxu0 %v13897_v32  ;;  %v13907_v32 = vld [vmem:[#allocation11 + $0x188] sm:$0xff]  }
0x13fb   : > { %4738 = vmatpush1.bf16.msra.mxu0 %v13895_v33  ;;  %v13908_v33 = vld [vmem:[#allocation11 + $0x1d0] sm:$0xff]  }
0x13fc   : > { %4739 = vmatprep.subr.bf16.mxu0 %v13900_v34  ;;  %v13909_v34 = vld [vmem:[#allocation11 + $0x190] sm:$0xff]  }
0x13ff   : > { %4740 = vmatpush1.bf16.msra.mxu0 %v13898_v36  ;;  %v13910_v36 = vld [vmem:[#allocation11 + $0x1d8] sm:$0xff]  }
0x1400   : > { %4741 = vmatprep.subr.bf16.mxu0 %v13903_v24 }
0x1403   : > { %4742 = vmatpush1.bf16.msra.mxu0 %v13901_v35 }
0x1404   : > { %12891 = vmatprep.subr.bf16.mxu0 %v14653_v0 }
0x14b1   : > { %v12853_v37 = vpop.f32.mrb[144].mxu0 }
0x14b2   : > { %v4446_v60 = vpop.f32.mrb[145].mxu0  ;;  %v5026_v38 = vmax.f32 %v12853_v37, 0.0 }
0x14b3   : > { %v12854_v61 = vpop.f32.mrb[146].mxu0  ;;  %v5024_v39 = vmax.f32 %v4446_v60, 0.0 }
0x14b4   : > { %v4519_v62 = vpack.c.bf16 %v12854_v61, %v12853_v37  ;;  %v5027_v1 = vmax.f32 %v12854_v61, 0.0  ;;  %v4449_v2 = vpop.f32.mrb[147].mxu0  ;;  %v13911_v37 = vld [vmem:[#allocation11 + $0x198] sm:$0xff]   ;;  %v13913_v61 = vld [vmem:[#allocation11 + $0x1a0] sm:$0xff]  }
0x14b5   : > { %v4518_v40 = vpack.c.bf16 %v4449_v2, %v4446_v60  ;;  %v5025_v41 = vmax.f32 %v4449_v2, 0.0  ;;  %v13912_v60 = vld [vmem:[#allocation11 + $0x1e0] sm:$0xff]  }
0x14b6   : > { %v15394_v42 = vpack.c.bf16 %v5027_v1, %v5026_v38  ;;  %v13914_v38 = vld [vmem:[#allocation11 + $0x1e8] sm:$0xff]  }
0x14b7   : > { %v15396_v43 = vpack.c.bf16 %v5025_v41, %v5024_v39  ;;  %12867 = vmatprep.subr.bf16.mxu1 %v4518_v40 }
0x14b8   : > { %12868 = vmatpush3.bf16.msra.mxu1 %v4518_v40 }
0x14b9   : > { %v12857_v44 = vpop.f32.mrb[148].mxu0  ;;  %12869 = vmatprep.subr.bf16.mxu1 %v4519_v62 }
0x14ba   : > { %v4462_v45 = vpop.f32.mrb[149].mxu0  ;;  %v5030_v47 = vmax.f32 %v12857_v44, 0.0 }
0x14bb   : > { %v12858_v46 = vpop.f32.mrb[150].mxu0  ;;  %v5028_v51 = vmax.f32 %v4462_v45, 0.0 }
0x14bc   : > { %v4521_v48 = vpack.c.bf16 %v12858_v46, %v12857_v44  ;;  %v5031_v49 = vmax.f32 %v12858_v46, 0.0  ;;  %v4465_v50 = vpop.f32.mrb[151].mxu0  ;;  %12870 = vmatpush3.bf16.msra.mxu1 %v4519_v62 }
0x14bd   : > { %v4520_v52 = vpack.c.bf16 %v4465_v50, %v4462_v45  ;;  %v5029_v53 = vmax.f32 %v4465_v50, 0.0  ;;  %v13917_v50 = vld [vmem:[#allocation11 + $0x1b0] sm:$0xff]  }
0x14be   : > { %v15398_v54 = vpack.c.bf16 %v5031_v49, %v5030_v47 }
0x14bf   : > { %v15400_v55 = vpack.c.bf16 %v5029_v53, %v5028_v51  ;;  %12871 = vmatprep.subr.bf16.mxu1 %v4520_v52  ;;  %v13918_v51 = vld [vmem:[#allocation11 + $0x1f8] sm:$0xff]   ;;  %v10969_v53 = vld [vmem:[%s15919_s16 + $0x6] sm:$0x3] }
0x14c0   : > { %12872 = vmatpush3.bf16.msra.mxu1 %v4520_v52  ;;  %v13919_v52 = vld [vmem:[#allocation11 + $0x1b8] sm:$0xff]  }
0x14c1   : > { %v12861_v58 = vpop.f32.mrb[152].mxu0  ;;  %12873 = vmatprep.subr.bf16.mxu1 %v4521_v48 }
0x14c2   : > { %v4478_v59 = vpop.f32.mrb[153].mxu0  ;;  %v5034_v4 = vmax.f32 %v12861_v58, 0.0 }
0x14c3   : > { %v12862_v3 = vpop.f32.mrb[154].mxu0  ;;  %v5032_v5 = vmax.f32 %v4478_v59, 0.0 }
0x14c4   : > { %v4523_v56 = vpack.c.bf16 %v12862_v3, %v12861_v58  ;;  %v5035_v25 = vmax.f32 %v12862_v3, 0.0  ;;  %v4481_v57 = vpop.f32.mrb[155].mxu0  ;;  %12874 = vmatpush3.bf16.msra.mxu1 %v4521_v48 }
0x14c5   : > { %v4522_v6 = vpack.c.bf16 %v4481_v57, %v4478_v59  ;;  %v5033_v7 = vmax.f32 %v4481_v57, 0.0 }
0x14c6   : > { %v15402_v8 = vpack.c.bf16 %v5035_v25, %v5034_v4 }
0x14c7   : > { %v15404_v9 = vpack.c.bf16 %v5033_v7, %v5032_v5  ;;  %12875 = vmatprep.subr.bf16.mxu1 %v4522_v6 }
0x14c8   : > { %12876 = vmatpush3.bf16.msra.mxu1 %v4522_v6 }
0x14c9   : > { %v12865_v11 = vpop.f32.mrb[156].mxu0  ;;  %12877 = vmatprep.subr.bf16.mxu1 %v4523_v56 }
0x14ca   : > { %v4494_v14 = vpop.f32.mrb[157].mxu0  ;;  %v5038_v15 = vmax.f32 %v12865_v11, 0.0 }
0x14cb   : > { %v12866_v16 = vpop.f32.mrb[158].mxu0  ;;  %v5036_v19 = vmax.f32 %v4494_v14, 0.0 }
0x14cc   : > { %v4525_v17 = vpack.c.bf16 %v12866_v16, %v12865_v11  ;;  %v5039_v12 = vmax.f32 %v12866_v16, 0.0  ;;  %v4497_v18 = vpop.f32.mrb[159].mxu0  ;;  %12878 = vmatpush3.bf16.msra.mxu1 %v4523_v56 }
0x14cd   : > { %v4524_v20 = vpack.c.bf16 %v4497_v18, %v4494_v14  ;;  %v5037_v21 = vmax.f32 %v4497_v18, 0.0 }
0x14ce   : > { %v15406_v29 = vpack.c.bf16 %v5039_v12, %v5038_v15 }
0x14cf   : > { %v15408_v30 = vpack.c.bf16 %v5037_v21, %v5036_v19  ;;  %12879 = vmatprep.subr.bf16.mxu1 %v4524_v20 }
0x14d0   : > { %12880 = vmatpush3.bf16.msra.mxu1 %v4524_v20 }
0x14d1   : > { %12881 = vmatprep.subr.bf16.mxu1 %v4525_v17 }
0x14d4   : > { %12882 = vmatpush3.bf16.msra.mxu1 %v4525_v17 }
0x14d5   : > { %11815 = vmatprep.subr.bf16.mxu1 %v13904_v26 }
0x14d7   : > { %12884 = vmatmul.mubr.bf16.vlgmr.msra.gmra.mrb[152].mxu1 %v13877_v31 }
0x14d8   : > { %12887 = vmatprep.mubr.bf16.mxu1 %v13878_v22  ;;  %11816 = vmatpush3.bf16.msra.mxu1 %v13905_v27 }
0x14d9   : > { %11817 = vmatprep.subr.bf16.mxu1 %v13906_v28 }
0x14dc   : > { %11818 = vmatpush3.bf16.msra.mxu1 %v13907_v32 }
0x14dd   : > { %11819 = vmatprep.subr.bf16.mxu1 %v13908_v33 }
0x14df   : > { %12888 = vmatmul.mubr.bf16.gmra.mrb[156].mxu1 %v13879_v23 }
0x14e0   : > { %11820 = vmatpush3.bf16.msra.mxu1 %v13909_v34 }
0x14e1   : > { %11821 = vmatprep.subr.bf16.mxu1 %v13910_v36 }
0x14e4   : > { %11822 = vmatpush3.bf16.msra.mxu1 %v13911_v37 }
0x14e5   : > { %11823 = vmatprep.subr.bf16.mxu1 %v13912_v60 }
0x14e8   : > { %11824 = vmatpush3.bf16.msra.mxu1 %v13913_v61 }
0x14e9   : > { %11825 = vmatprep.subr.bf16.mxu1 %v13914_v38 }
0x15aa   : > { %v12885_v62 = vpop.f32.mrb[152].mxu1 }
0x15ab   : > { %v4584_v1 = vpop.f32.mrb[153].mxu1 }
0x15ac   : > { %v12886_v2 = vpop.f32.mrb[154].mxu1 }
0x15ad   : > { %v4616_v39 = vpack.c.bf16 %v12886_v2, %v12885_v62  ;;  %v4587_v40 = vpop.f32.mrb[155].mxu1 }
0x15ae   : > { %v4615_v41 = vpack.c.bf16 %v4587_v40, %v4584_v1 }
0x15b0   : > { %4760 = vmatmul.mubr.bf16.vlgmr.msra.gmra.mrb[160].mxu0 %v4615_v41 }
0x15b1   : > { %12892 = vmatpush3.bf16.msra.mxu0 %v15396_v43  ;;  %4769 = vmatprep.mubr.bf16.mxu0 %v14652_v63  ;;  %v13916_v43 = vld [vmem:[#allocation11 + $0x1f0] sm:$0xff]  }
0x15b2   : > { %12893 = vmatprep.subr.bf16.mxu0 %v14653_v0  ;;  %v12889_v44 = vpop.f32.mrb[156].mxu1 }
0x15b3   : > { %v4600_v45 = vpop.f32.mrb[157].mxu1 }
0x15b4   : > { %v12890_v46 = vpop.f32.mrb[158].mxu1 }
0x15b5   : > { %12894 = vmatpush3.bf16.msra.mxu0 %v15394_v42  ;;  %v4618_v47 = vpack.c.bf16 %v12890_v46, %v12889_v44  ;;  %v4603_v48 = vpop.f32.mrb[159].mxu1  ;;  %v13915_v42 = vld [vmem:[#allocation11 + $0x1a8] sm:$0xff]  }
0x15b6   : > { %12895 = vmatprep.subr.bf16.mxu0 %v14653_v0  ;;  %v4617_v49 = vpack.c.bf16 %v4603_v48, %v4600_v45  ;;  %11826 = vmatpush3.bf16.msra.mxu1 %v13915_v42 }
0x15b7   : > { %11827 = vmatprep.subr.bf16.mxu1 %v13916_v43 }
0x15b8   : > { %4770 = vmatmul.mubr.bf16.gmra.mrb[164].mxu0 %v4616_v39 }
0x15b9   : > { %12896 = vmatpush3.bf16.msra.mxu0 %v15400_v55  ;;  %4779 = vmatprep.mubr.bf16.mxu0 %v14652_v63  ;;  %v4644_v55 = vrot.slane %v10969_v53, %v15270_v13 }
0x15ba   : > { %12897 = vmatprep.subr.bf16.mxu0 %v14653_v0  ;;  %11828 = vmatpush3.bf16.msra.mxu1 %v13917_v50 }
0x15bb   : > { %11829 = vmatprep.subr.bf16.mxu1 %v13918_v51 }
0x15bd   : > { %12898 = vmatpush3.bf16.msra.mxu0 %v15398_v54  ;;  %v4640_v54 = vrot.slane %v10969_v53, %v15265_v10  ;;  %v13922_v53 = vld [vmem:[#allocation14] ss:$8 sps:$4 sm:$0xff]  }
0x15be   : > { %12899 = vmatprep.subr.bf16.mxu0 %v14653_v0  ;;  %11830 = vmatpush3.bf16.msra.mxu1 %v13919_v52  ;;  %v13921_v52 = vld [vmem:[%s15088_s25 + $0x8] sm:$0xff]  }
0x15bf   : > { %12911 = vmatprep.subr.bf16.mxu1 %v14653_v0 }
0x15c0   : > { %4780 = vmatmul.mubr.bf16.gmra.mrb[168].mxu0 %v4617_v49 }
0x15c1   : > { %12900 = vmatpush3.bf16.msra.mxu0 %v15404_v9  ;;  %4789 = vmatprep.mubr.bf16.mxu0 %v14652_v63 }
0x15c2   : > { %12901 = vmatprep.subr.bf16.mxu0 %v14653_v0 }
0x15c5   : > { %12902 = vmatpush3.bf16.msra.mxu0 %v15402_v8 }
0x15c6   : > { %12903 = vmatprep.subr.bf16.mxu0 %v14653_v0 }
0x15c8   : > { %4790 = vmatmul.mubr.bf16.gmra.mrb[172].mxu0 %v4618_v47 }
0x15c9   : > { %12904 = vmatpush3.bf16.msra.mxu0 %v15408_v30  ;;  %12907 = vmatprep.mubr.msk.bf16.mxu0 %vm14654_vm1, %v14653_v0 }
0x15ca   : > { %12905 = vmatprep.subr.bf16.mxu0 %v14653_v0 }
0x15cd   : > { %12906 = vmatpush3.bf16.msra.mxu0 %v15406_v29 }
0x15d0   : > { %12908 = vmatmul.mubr.bf16.vlgmr.msra.gmra.mrb[176].mxu0 %v13921_v52  ;;  %v13920_v52 = vld [vmem:[%s15095_s8 + $0x8] sm:$0xff]  }
0x15d1   : > { %5308 = vmatprep.mubr.bf16.mxu0 %v14652_v63 }
0x1683   : > { %v4761_v58 = vpop.f32.mrb[160].mxu0 }
0x1684   : > { %v4762_v59 = vadd.f32 %v4761_v58, %v4640_v54  ;;  %v4763_v3 = vpop.f32.mrb[161].mxu0  ;;  %v13924_v58 = vld [vmem:[#allocation14 + $0x4] ss:$8 sps:$4 sm:$0xff]  }
0x1685   : > { %v4764_v4 = vadd.f32 %v4763_v3, %v4644_v55  ;;  %v4765_v56 = vpop.f32.mrb[162].mxu0  ;;  %5276 = vmatprep.subr.bf16.mxu0 %v13924_v58  ;;  %v13928_v3 = vld [vmem:[#allocation14 + $0x20] ss:$8 sps:$4 sm:$0xff]   ;;  %v13943_v58 = vld [vmem:[#allocation14 + $0x70] ss:$8 sps:$4 sm:$0xff]  }
0x1686   : > { %v4766_v25 = vadd.f32 %v4765_v56, %v4640_v54  ;;  %v4767_v57 = vpop.f32.mrb[163].mxu0  ;;  %v4800_v6 = vmax.f32 %v4762_v59, 0.0  ;;  %v13927_v59 = vld [vmem:[#allocation14 + $0x14] ss:$8 sps:$4 sm:$0xff]   ;;  %5277 = vmatpush1.bf16.msra.mxu0 %v13922_v53  ;;  %v13931_v56 = vld [vmem:[#allocation14 + $0x30] ss:$8 sps:$4 sm:$0xff]  }
0x1687   : > { %v4768_v5 = vadd.f32 %v4767_v57, %v4644_v55  ;;  %v4801_v8 = vmax.f32 %v4764_v4, 0.0  ;;  %5278 = vmatprep.subr.bf16.mxu0 %v13927_v59  ;;  %v13933_v4 = vld [vmem:[#allocation14 + $0x34] ss:$8 sps:$4 sm:$0xff]   ;;  %v13934_v57 = vld [vmem:[#allocation14 + $0x40] ss:$8 sps:$4 sm:$0xff]  }
0x1688   : > { %v4802_v7 = vmax.f32 %v4766_v25, 0.0  ;;  %v13936_v25 = vld [vmem:[#allocation14 + $0x44] ss:$8 sps:$4 sm:$0xff]   ;;  %v13945_v53 = vld [vmem:[#allocation14 + $0x74] ss:$8 sps:$4 sm:$0xff]  }
0x1689   : > { %v4803_v9 = vmax.f32 %v4768_v5, 0.0  ;;  %v13939_v5 = vld [vmem:[#allocation14 + $0x54] ss:$8 sps:$4 sm:$0xff]   ;;  %v13948_v59 = vld [vmem:[#allocation13 + $0x4] ss:$8 sps:$4 sm:$0xff]  }
0x168a   : > { %v4816_v11 = vpack.c.bf16 %v4802_v7, %v4800_v6  ;;  %v13937_v6 = vld [vmem:[#allocation14 + $0x50] ss:$8 sps:$4 sm:$0xff]   ;;  %v13942_v7 = vld [vmem:[#allocation14 + $0x64] ss:$8 sps:$4 sm:$0xff]  }
0x168b   : > { %v4817_v14 = vpack.c.bf16 %v4803_v9, %v4801_v8  ;;  %v4771_v16 = vpop.f32.mrb[164].mxu0  ;;  %v13940_v8 = vld [vmem:[#allocation14 + $0x60] ss:$8 sps:$4 sm:$0xff]  }
0x168c   : > { %v4772_v15 = vadd.f32 %v4771_v16, %v4640_v54  ;;  %v4773_v17 = vpop.f32.mrb[165].mxu0 }
0x168d   : > { %v4774_v12 = vadd.f32 %v4773_v17, %v4644_v55  ;;  %v4775_v18 = vpop.f32.mrb[166].mxu0  ;;  %4991 = vmatprep.mubr.bf16.mxu1 %v4817_v14 }
0x168e   : > { %v4776_v19 = vadd.f32 %v4775_v18, %v4640_v54  ;;  %v4777_v20 = vpop.f32.mrb[167].mxu0  ;;  %4992 = vmatmul.mubr.bf16.vlgmr.msra.gmra.mrb[160].mxu1 %v4816_v11  ;;  %v4804_v29 = vmax.f32 %v4772_v15, 0.0  ;;  %v10987_v11 = vld [vmem:[%s15920_s18 + $0x3] ss:$0 sm:$0xff] }
0x168f   : > { %v4778_v21 = vadd.f32 %v4777_v20, %v4644_v55  ;;  %v4805_v31 = vmax.f32 %v4774_v12, 0.0 }
0x1690   : > { %v4806_v30 = vmax.f32 %v4776_v19, 0.0 }
0x1691   : > { %v4807_v22 = vmax.f32 %v4778_v21, 0.0 }
0x1692   : > { %v4818_v23 = vpack.c.bf16 %v4806_v30, %v4804_v29 }
0x1693   : > { %v4819_v24 = vpack.c.bf16 %v4807_v22, %v4805_v31  ;;  %v4781_v35 = vpop.f32.mrb[168].mxu0 }
0x1694   : > { %v4782_v26 = vadd.f32 %v4781_v35, %v4640_v54  ;;  %v4783_v27 = vpop.f32.mrb[169].mxu0 }
0x1695   : > { %v4784_v28 = vadd.f32 %v4783_v27, %v4644_v55  ;;  %v4785_v32 = vpop.f32.mrb[170].mxu0  ;;  %4999 = vmatprep.mubr.bf16.mxu1 %v4819_v24 }
0x1696   : > { %v4786_v33 = vadd.f32 %v4785_v32, %v4640_v54  ;;  %v4787_v34 = vpop.f32.mrb[171].mxu0  ;;  %5000 = vmatmul.mubr.bf16.gmra.mrb[164].mxu1 %v4818_v23  ;;  %v4808_v37 = vmax.f32 %v4782_v26, 0.0 }
0x1697   : > { %v4788_v36 = vadd.f32 %v4787_v34, %v4644_v55  ;;  %v4809_v61 = vmax.f32 %v4784_v28, 0.0 }
0x1698   : > { %v4810_v60 = vmax.f32 %v4786_v33, 0.0 }
0x1699   : > { %v4811_v38 = vmax.f32 %v4788_v36, 0.0 }
0x169a   : > { %v4820_v62 = vpack.c.bf16 %v4810_v60, %v4808_v37 }
0x169b   : > { %v4821_v1 = vpack.c.bf16 %v4811_v38, %v4809_v61  ;;  %v4791_v2 = vpop.f32.mrb[172].mxu0 }
0x169c   : > { %v4792_v39 = vadd.f32 %v4791_v2, %v4640_v54  ;;  %v4793_v40 = vpop.f32.mrb[173].mxu0 }
0x169d   : > { %v4794_v41 = vadd.f32 %v4793_v40, %v4644_v55  ;;  %v4795_v44 = vpop.f32.mrb[174].mxu0  ;;  %5007 = vmatprep.mubr.bf16.mxu1 %v4821_v1 }
0x169e   : > { %v4796_v45 = vadd.f32 %v4795_v44, %v4640_v54  ;;  %v4797_v46 = vpop.f32.mrb[175].mxu0  ;;  %5008 = vmatmul.mubr.bf16.gmra.mrb[168].mxu1 %v4820_v62  ;;  %v4812_v48 = vmax.f32 %v4792_v39, 0.0  ;;  %v13925_v54 = vld [vmem:[#allocation14 + $0x10] ss:$8 sps:$4 sm:$0xff]  }
0x169f   : > { %v4798_v47 = vadd.f32 %v4797_v46, %v4644_v55  ;;  %v4813_v42 = vmax.f32 %v4794_v41, 0.0  ;;  %v13930_v55 = vld [vmem:[#allocation14 + $0x24] ss:$8 sps:$4 sm:$0xff]   ;;  %5279 = vmatpush1.bf16.msra.mxu0 %v13925_v54 }
0x16a0   : > { %v4814_v49 = vmax.f32 %v4796_v45, 0.0  ;;  %5280 = vmatprep.subr.bf16.mxu0 %v13930_v55 }
0x16a1   : > { %v4815_v43 = vmax.f32 %v4798_v47, 0.0 }
0x16a2   : > { %v4822_v50 = vpack.c.bf16 %v4814_v49, %v4812_v48 }
0x16a3   : > { %v4823_v51 = vpack.c.bf16 %v4815_v43, %v4813_v42  ;;  %5281 = vmatpush1.bf16.msra.mxu0 %v13928_v3  ;;  %v15452_v54 = vpop.f32.mrb[176].mxu0 }
0x16a4   : > { %5282 = vmatprep.subr.bf16.mxu0 %v13933_v4  ;;  %v12909_v55 = vpop.f32.mrb[177].mxu0 }
0x16a5   : > { %5015 = vmatprep.mubr.bf16.mxu1 %v4823_v51  ;;  %v15454_v3 = vpop.f32.mrb[178].mxu0  ;;  %v13988_v55 = vld [vmem:[#allocation7 + $0x10] sm:$0xff]  }
0x16a6   : > { %5016 = vmatmul.mubr.bf16.gmra.mrb[172].mxu1 %v4822_v50  ;;  %v5162_v4 = vpack.c.bf16 %v15454_v3, %v15452_v54  ;;  %v13987_v54 = vld [vmem:[#allocation7 + $0x8] sm:$0xff]   ;;  %v13989_v3 = vld [vmem:[#allocation7 + $0x18] sm:$0xff]  }
0x16a7   : > { %12919 = vmatprep.mubr.msk.bf16.mxu1 %vm14654_vm1, %v14653_v0  ;;  %5283 = vmatpush1.bf16.msra.mxu0 %v13931_v56  ;;  %v12910_v56 = vpop.f32.mrb[179].mxu0 }
0x16a8   : > { %5284 = vmatprep.subr.bf16.mxu0 %v13936_v25  ;;  %v13970_v25 = vld [vmem:[#allocation16 + $0x40] sm:$0xff]   ;;  %v13992_v56 = vld [vmem:[%s15124_s7 + $0x90] sm:$0xff]  }
0x16ab   : > { %5285 = vmatpush1.bf16.msra.mxu0 %v13934_v57  ;;  %v13971_v57 = vld [vmem:[#allocation16] sm:$0xff]  }
0x16ac   : > { %5286 = vmatprep.subr.bf16.mxu0 %v13939_v5  ;;  %v13972_v5 = vld [vmem:[#allocation16 + $0x48] sm:$0xff]  }
0x16af   : > { %5287 = vmatpush1.bf16.msra.mxu0 %v13937_v6  ;;  %v13973_v6 = vld [vmem:[#allocation16 + $0x8] sm:$0xff]  }
0x16b0   : > { %5288 = vmatprep.subr.bf16.mxu0 %v13942_v7  ;;  %v13974_v7 = vld [vmem:[#allocation16 + $0x50] sm:$0xff]  }
0x16b3   : > { %5289 = vmatpush1.bf16.msra.mxu0 %v13940_v8  ;;  %v13975_v8 = vld [vmem:[#allocation16 + $0x10] sm:$0xff]  }
0x16b4   : > { %5290 = vmatprep.subr.bf16.mxu0 %v13945_v53 }
0x16b7   : > { %5291 = vmatpush1.bf16.msra.mxu0 %v13943_v58 }
0x16b8   : > { %5399 = vmatprep.subr.bf16.mxu0 %v13948_v59  ;;  %v13990_v59 = vld [vmem:[%s15124_s7 + $0x80] sm:$0xff]  }
0x1761   : > { %v11831_v9 = vpop.f32.mrb[160].mxu1 }
0x1762   : > { %v11832_v14 = vpop.f32.mrb[161].mxu1 }
0x1763   : > { %v11833_v16 = vadd.f32 %v11832_v14, %v11831_v9  ;;  %v11834_v15 = vpop.f32.mrb[162].mxu1  ;;  %v13976_v9 = vld [vmem:[#allocation16 + $0x58] sm:$0xff]   ;;  %v13978_v14 = vld [vmem:[#allocation16 + $0x60] sm:$0xff]  }
0x1764   : > { %v11835_v17 = vpop.f32.mrb[163].mxu1 }
0x1765   : > { %v4994_v12 = vadd.f32 %v11833_v16, %v10987_v11  ;;  %v11836_v18 = vadd.f32 %v11835_v17, %v11834_v15  ;;  %v13979_v16 = vld [vmem:[#allocation16 + $0x20] sm:$0xff]   ;;  %v13980_v15 = vld [vmem:[#allocation16 + $0x68] sm:$0xff]  }
0x1766   : > { %v13981_v17 = vld [vmem:[#allocation16 + $0x28] sm:$0xff]  }
0x1767   : > { %v4997_v19 = vadd.f32 %v11836_v18, %v10987_v11  ;;  %v5048_v20 = vmax.f32 %v4994_v12, 0.0 }
0x1769   : > { %v5049_v21 = vmax.f32 %v4997_v19, 0.0  ;;  %v11837_v29 = vpop.f32.mrb[164].mxu1 }
0x176a   : > { %v11838_v30 = vpop.f32.mrb[165].mxu1 }
0x176b   : > { %v5056_v31 = vpack.c.bf16 %v5049_v21, %v5048_v20  ;;  %v11839_v22 = vadd.f32 %v11838_v30, %v11837_v29  ;;  %v11840_v23 = vpop.f32.mrb[166].mxu1  ;;  %v13946_v20 = vld [vmem:[#allocation13] ss:$8 sps:$4 sm:$0xff]   ;;  %v13951_v30 = vld [vmem:[#allocation13 + $0x14] ss:$8 sps:$4 sm:$0xff]  }
0x176c   : > { %v11841_v24 = vpop.f32.mrb[167].mxu1 }
0x176d   : > { %v5002_v35 = vadd.f32 %v11839_v22, %v10987_v11  ;;  %v11842_v26 = vadd.f32 %v11841_v24, %v11840_v23  ;;  %12912 = vmatpush3.bf16.msra.mxu1 %v5056_v31  ;;  %v13949_v31 = vld [vmem:[#allocation13 + $0x10] ss:$8 sps:$4 sm:$0xff]   ;;  %v13954_v22 = vld [vmem:[#allocation13 + $0x24] ss:$8 sps:$4 sm:$0xff]   ;;  %v13952_v23 = vld [vmem:[#allocation13 + $0x20] ss:$8 sps:$4 sm:$0xff]  }
0x176e   : > { %12913 = vmatprep.subr.bf16.mxu1 %v14653_v0  ;;  %v13957_v24 = vld [vmem:[#allocation13 + $0x34] ss:$8 sps:$4 sm:$0xff]  }
0x176f   : > { %v5005_v27 = vadd.f32 %v11842_v26, %v10987_v11  ;;  %v5050_v28 = vmax.f32 %v5002_v35, 0.0  ;;  %v13955_v35 = vld [vmem:[#allocation13 + $0x30] ss:$8 sps:$4 sm:$0xff]   ;;  %v13960_v26 = vld [vmem:[#allocation13 + $0x44] ss:$8 sps:$4 sm:$0xff]  }
0x1771   : > { %v5051_v32 = vmax.f32 %v5005_v27, 0.0  ;;  %v11843_v33 = vpop.f32.mrb[168].mxu1  ;;  %v13958_v27 = vld [vmem:[#allocation13 + $0x40] ss:$8 sps:$4 sm:$0xff]  }
0x1772   : > { %v11844_v34 = vpop.f32.mrb[169].mxu1 }
0x1773   : > { %v5057_v36 = vpack.c.bf16 %v5051_v32, %v5050_v28  ;;  %v11845_v37 = vadd.f32 %v11844_v34, %v11843_v33  ;;  %v11846_v60 = vpop.f32.mrb[170].mxu1  ;;  %v13963_v28 = vld [vmem:[#allocation13 + $0x54] ss:$8 sps:$4 sm:$0xff]   ;;  %v13961_v32 = vld [vmem:[#allocation13 + $0x50] ss:$8 sps:$4 sm:$0xff]  }
0x1774   : > { %v11847_v61 = vpop.f32.mrb[171].mxu1  ;;  %v13966_v33 = vld [vmem:[#allocation13 + $0x64] ss:$8 sps:$4 sm:$0xff]   ;;  %v13964_v34 = vld [vmem:[#allocation13 + $0x60] ss:$8 sps:$4 sm:$0xff]  }
0x1775   : > { %v5010_v38 = vadd.f32 %v11845_v37, %v10987_v11  ;;  %v11848_v62 = vadd.f32 %v11847_v61, %v11846_v60  ;;  %12914 = vmatpush3.bf16.msra.mxu1 %v5057_v36  ;;  %v13969_v36 = vld [vmem:[#allocation13 + $0x74] ss:$8 sps:$4 sm:$0xff]   ;;  %v13967_v37 = vld [vmem:[#allocation13 + $0x70] ss:$8 sps:$4 sm:$0xff]  }
0x1776   : > { %12915 = vmatprep.subr.bf16.mxu1 %v14653_v0  ;;  %v13982_v60 = vld [vmem:[#allocation16 + $0x70] sm:$0xff]  }
0x1777   : > { %v5013_v1 = vadd.f32 %v11848_v62, %v10987_v11  ;;  %v5052_v2 = vmax.f32 %v5010_v38, 0.0  ;;  %v13983_v61 = vld [vmem:[#allocation16 + $0x30] sm:$0xff]   ;;  %v13984_v38 = vld [vmem:[#allocation16 + $0x78] sm:$0xff]  }
0x1778   : > { %v13985_v62 = vld [vmem:[#allocation16 + $0x38] sm:$0xff]  }
0x1779   : > { %v5053_v39 = vmax.f32 %v5013_v1, 0.0  ;;  %v11849_v40 = vpop.f32.mrb[172].mxu1  ;;  %v13986_v1 = vld [vmem:[#allocation7] sm:$0xff]  }
0x177a   : > { %v11850_v41 = vpop.f32.mrb[173].mxu1 }
0x177b   : > { %v5058_v44 = vpack.c.bf16 %v5053_v39, %v5052_v2  ;;  %v11851_v45 = vadd.f32 %v11850_v41, %v11849_v40  ;;  %v11852_v46 = vpop.f32.mrb[174].mxu1  ;;  %v5442_v2 = vld [vmem:[%s15921_s24] sm:$0x3] }
0x177c   : > { %v11853_v47 = vpop.f32.mrb[175].mxu1  ;;  %v5447_v39 = vrot.slane %v5442_v2, %v15265_v10  ;;  %v5451_v40 = vrot.slane %v5442_v2, %v15270_v13 }
0x177d   : > { %v5018_v48 = vadd.f32 %v11851_v45, %v10987_v11  ;;  %v11854_v49 = vadd.f32 %v11853_v47, %v11852_v46  ;;  %12916 = vmatpush3.bf16.msra.mxu1 %v5058_v44 }
0x177e   : > { %12917 = vmatprep.subr.bf16.mxu1 %v14653_v0 }
0x177f   : > { %v5021_v42 = vadd.f32 %v11854_v49, %v10987_v11  ;;  %v5054_v43 = vmax.f32 %v5018_v48, 0.0  ;;  %v13977_v11 = vld [vmem:[#allocation16 + $0x18] sm:$0xff]  }
0x1781   : > { %v5055_v50 = vmax.f32 %v5021_v42, 0.0 }
0x1783   : > { %v5059_v51 = vpack.c.bf16 %v5055_v50, %v5054_v43 }
0x1785   : > { %12918 = vmatpush3.bf16.msra.mxu1 %v5059_v51 }
0x1786   : > { %11869 = vmatprep.subr.bf16.mxu1 %v13970_v25  ;;  %v13993_v25 = vld [vmem:[%s15124_s7 + $0x98] sm:$0xff]  }
0x1788   : > { %12920 = vmatmul.mubr.msk.bf16.vlgmr.msra.gmra.mrb[176].mxu1 %vm911_vm0, %v13920_v52 }
0x1789   : > { %11870 = vmatpush3.bf16.msra.mxu1 %v13971_v57  ;;  %v13994_v57 = vld [vmem:[%s15124_s7 + $0xa0] sm:$0xff]  }
0x178a   : > { %11871 = vmatprep.subr.bf16.mxu1 %v13972_v5  ;;  %v13995_v5 = vld [vmem:[%s15124_s7 + $0xa8] sm:$0xff]  }
0x178d   : > { %11872 = vmatpush3.bf16.msra.mxu1 %v13973_v6  ;;  %v13996_v6 = vld [vmem:[%s15124_s7 + $0xb0] sm:$0xff]  }
0x178e   : > { %11873 = vmatprep.subr.bf16.mxu1 %v13974_v7  ;;  %v13997_v7 = vld [vmem:[%s15124_s7 + $0xb8] sm:$0xff]  }
0x1791   : > { %11874 = vmatpush3.bf16.msra.mxu1 %v13975_v8  ;;  %v15481_v8 = vld [vmem:[%s15131_s19 + $0x80] sm:$0xff]  }
0x1792   : > { %11875 = vmatprep.subr.bf16.mxu1 %v13976_v9  ;;  %v14006_v9 = vld [vmem:[#allocation8] sm:$0xff]  }
0x1795   : > { %11876 = vmatpush3.bf16.msra.mxu1 %v13977_v11  ;;  %v14007_v11 = vld [vmem:[#allocation8 + $0x8] sm:$0xff]  }
0x1796   : > { %11877 = vmatprep.subr.bf16.mxu1 %v13978_v14  ;;  %v14008_v14 = vld [vmem:[#allocation8 + $0x10] sm:$0xff]  }
0x1799   : > { %11878 = vmatpush3.bf16.msra.mxu1 %v13979_v16  ;;  %v14009_v16 = vld [vmem:[#allocation8 + $0x18] sm:$0xff]  }
0x179a   : > { %11879 = vmatprep.subr.bf16.mxu1 %v13980_v15  ;;  %v14010_v15 = vld [vmem:[#allocation8 + $0x20] sm:$0xff]  }
0x179d   : > { %11880 = vmatpush3.bf16.msra.mxu1 %v13981_v17  ;;  %v14011_v17 = vld [vmem:[#allocation8 + $0x28] sm:$0xff]  }
0x179e   : > { %11881 = vmatprep.subr.bf16.mxu1 %v13982_v60 }
0x17a1   : > { %11882 = vmatpush3.bf16.msra.mxu1 %v13983_v61 }
0x17a2   : > { %11883 = vmatprep.subr.bf16.mxu1 %v13984_v38 }
0x17a5   : > { %11884 = vmatpush3.bf16.msra.mxu1 %v13985_v62 }
0x17a6   : > { %12923 = vmatprep.subr.bf16.mxu1 %v13986_v1 }
0x185b   : > { %v5155_v12 = vpop.f32.mrb[176].mxu1 }
0x185c   : > { %v12921_v18 = vpop.f32.mrb[177].mxu1 }
0x185d   : > { %v5158_v19 = vpop.f32.mrb[178].mxu1  ;;  %v11043_v18 = vld [vmem:[%s15922_s26] ss:$0 sm:$0xff] }
0x185e   : > { %v5179_v21 = vpack.c.bf16 %v5158_v19, %v5155_v12  ;;  %v12922_v29 = vpop.f32.mrb[179].mxu1 }
0x1860   : > { %5309 = vmatmul.mubr.bf16.vlgmr.msra.gmra.mrb[180].mxu0 %v5179_v21 }
0x1861   : > { %5400 = vmatpush1.bf16.msra.mxu0 %v13946_v20  ;;  %5431 = vmatprep.mubr.bf16.mxu0 %v14652_v63 }
0x1862   : > { %5401 = vmatprep.subr.bf16.mxu0 %v13951_v30 }
0x1865   : > { %5402 = vmatpush1.bf16.msra.mxu0 %v13949_v31 }
0x1866   : > { %5403 = vmatprep.subr.bf16.mxu0 %v13954_v22 }
0x1869   : > { %5404 = vmatpush1.bf16.msra.mxu0 %v13952_v23 }
0x186a   : > { %5405 = vmatprep.subr.bf16.mxu0 %v13957_v24  ;;  %v11078_v24 = vld [vmem:[%s15916_s10] ss:$0 sm:$0xff] }
0x186d   : > { %5406 = vmatpush1.bf16.msra.mxu0 %v13955_v35 }
0x186e   : > { %5407 = vmatprep.subr.bf16.mxu0 %v13960_v26 }
0x1871   : > { %5408 = vmatpush1.bf16.msra.mxu0 %v13958_v27 }
0x1872   : > { %5409 = vmatprep.subr.bf16.mxu0 %v13963_v28 }
0x1875   : > { %5410 = vmatpush1.bf16.msra.mxu0 %v13961_v32 }
0x1876   : > { %5411 = vmatprep.subr.bf16.mxu0 %v13966_v33 }
0x1879   : > { %5412 = vmatpush1.bf16.msra.mxu0 %v13964_v34 }
0x187a   : > { %5413 = vmatprep.subr.bf16.mxu0 %v13969_v36 }
0x187d   : > { %5414 = vmatpush1.bf16.msra.mxu0 %v13967_v37 }
0x187e   : > { %12979 = vmatprep.subr.bf16.mxu0 %v14006_v9 }
0x1880   : > { %5432 = vmatmul.mubr.bf16.vlgmr.msra.gmra.mrb[180].mxu0 %v5162_v4  ;;  %v13991_v4 = vld [vmem:[%s15124_s7 + $0x88] sm:$0xff]  }
0x1881   : > { %12980 = vmatpush3.bf16.msra.mxu0 %v14006_v9  ;;  %v15504_v9 = vld [vmem:[%s15131_s19 + $0xa0] sm:$0xff]  }
0x1882   : > { %12981 = vmatprep.subr.bf16.mxu0 %v14007_v11 }
0x1885   : > { %12982 = vmatpush3.bf16.msra.mxu0 %v14007_v11  ;;  %v15509_v11 = vld [vmem:[%s15131_s19 + $0xa8] sm:$0xff]  }
0x1886   : > { %12983 = vmatprep.subr.bf16.mxu0 %v14008_v14 }
0x1889   : > { %12984 = vmatpush3.bf16.msra.mxu0 %v14008_v14  ;;  %v15512_v14 = vld [vmem:[%s15131_s19 + $0xb0] sm:$0xff]  }
0x188a   : > { %12985 = vmatprep.subr.bf16.mxu0 %v14009_v16 }
0x188d   : > { %12986 = vmatpush3.bf16.msra.mxu0 %v14009_v16  ;;  %v15517_v16 = vld [vmem:[%s15131_s19 + $0xb8] sm:$0xff]  }
0x188e   : > { %12987 = vmatprep.subr.bf16.mxu0 %v14010_v15 }
0x1891   : > { %12988 = vmatpush3.bf16.msra.mxu0 %v14010_v15  ;;  %v14012_v15 = vld [vmem:[#allocation8 + $0x30] sm:$0xff]  }
0x1892   : > { %12989 = vmatprep.subr.bf16.mxu0 %v14011_v17 }
0x1895   : > { %12990 = vmatpush3.bf16.msra.mxu0 %v14011_v17  ;;  %v14013_v17 = vld [vmem:[#allocation8 + $0x38] sm:$0xff]  }
0x1896   : > { %12991 = vmatprep.subr.bf16.mxu0 %v14012_v15 }
0x1899   : > { %12992 = vmatpush3.bf16.msra.mxu0 %v14012_v15 }
0x189a   : > { %12993 = vmatprep.subr.bf16.mxu0 %v14013_v17 }
0x189d   : > { %12994 = vmatpush3.bf16.msra.mxu0 %v14013_v17 }
0x1953   : > { %v5433_v41 = vpop.f32.mrb[180].mxu0 }
0x1954   : > { %v5454_v44 = vadd.f32 %v5447_v39, %v5433_v41  ;;  %v5435_v45 = vpop.f32.mrb[181].mxu0 }
0x1955   : > { %v5455_v46 = vadd.f32 %v5451_v40, %v5435_v45  ;;  %v5437_v47 = vpop.f32.mrb[182].mxu0 }
0x1956   : > { %v5456_v48 = vadd.f32 %v5447_v39, %v5437_v47  ;;  %v5439_v49 = vpop.f32.mrb[183].mxu0  ;;  %v5458_v43 = vmax.f32 %v5454_v44, 0.0 }
0x1957   : > { %v5457_v42 = vadd.f32 %v5451_v40, %v5439_v49  ;;  %v5459_v51 = vmax.f32 %v5455_v46, 0.0 }
0x1958   : > { %v5460_v50 = vmax.f32 %v5456_v48, 0.0 }
0x1959   : > { %v5461_v52 = vmax.f32 %v5457_v42, 0.0 }
0x195a   : > { %v5462_v53 = vpack.c.bf16 %v5460_v50, %v5458_v43 }
0x195b   : > { %v5463_v58 = vpack.c.bf16 %v5461_v52, %v5459_v51 }
0x195d   : > { %5631 = vmatprep.mubr.bf16.mxu1 %v5463_v58 }
0x195e   : > { %5632 = vmatmul.mubr.bf16.vlgmr.msra.gmra.mrb[180].mxu1 %v5462_v53 }
0x195f   : > { %12924 = vmatpush3.bf16.msra.mxu1 %v13986_v1  ;;  %12931 = vmatprep.mubr.msk.bf16.mxu1 %vm911_vm0, %v13990_v59 }
0x1960   : > { %12925 = vmatprep.subr.bf16.mxu1 %v13987_v54 }
0x1963   : > { %12926 = vmatpush3.bf16.msra.mxu1 %v13987_v54 }
0x1964   : > { %12927 = vmatprep.subr.bf16.mxu1 %v13988_v55 }
0x1967   : > { %12928 = vmatpush3.bf16.msra.mxu1 %v13988_v55 }
0x1968   : > { %12929 = vmatprep.subr.bf16.mxu1 %v13989_v3 }
0x196b   : > { %12930 = vmatpush3.bf16.msra.mxu1 %v13989_v3 }
0x196e   : > { %12932 = vmatmul.mubr.msk.bf16.vlgmr.msra.gmra.mrb[184].mxu1 %vm911_vm0, %v13991_v4 }
0x196f   : > { %12935 = vmatprep.mubr.msk.bf16.mxu1 %vm911_vm0, %v13992_v56 }
0x1976   : > { %12936 = vmatmul.mubr.msk.bf16.gmra.mrb[188].mxu1 %vm911_vm0, %v13993_v25 }
0x1977   : > { %12939 = vmatprep.mubr.msk.bf16.mxu1 %vm911_vm0, %v13994_v57 }
0x197e   : > { %12940 = vmatmul.mubr.msk.bf16.gmra.mrb[192].mxu1 %vm911_vm0, %v13995_v5  ;;  %v15493_v5 = vld [vmem:[%s15131_s19 + $0x88] sm:$0xff]  }
0x197f   : > { %12943 = vmatprep.mubr.msk.bf16.mxu1 %vm911_vm0, %v13996_v6  ;;  %v15496_v6 = vld [vmem:[%s15131_s19 + $0x90] sm:$0xff]  }
0x1986   : > { %12944 = vmatmul.mubr.msk.bf16.gmra.mrb[196].mxu1 %vm911_vm0, %v13997_v7  ;;  %v15501_v7 = vld [vmem:[%s15131_s19 + $0x98] sm:$0xff]  }
0x1987   : > { %12963 = vmatprep.mubr.bf16.mxu1 %v15481_v8 }
0x1a31   : > { %v11885_v12 = vpop.f32.mrb[180].mxu1 }
0x1a32   : > { %v11886_v19 = vpop.f32.mrb[181].mxu1 }
0x1a33   : > { %v11887_v20 = vadd.f32 %v11886_v19, %v11885_v12  ;;  %v11888_v21 = vpop.f32.mrb[182].mxu1 }
0x1a34   : > { %v11889_v29 = vpop.f32.mrb[183].mxu1 }
0x1a35   : > { %v5634_v30 = vadd.f32 %v11887_v20, %v11043_v18  ;;  %v11890_v31 = vadd.f32 %v11889_v29, %v11888_v21 }
0x1a37   : > { %11060 = vst [vmem:[%s15324_s2 + $0x10] sm:$0xff] %v5634_v30  ;;  %v5637_v22 = vadd.f32 %v11890_v31, %v11043_v18 }
0x1a39   : > { %11061 = vst [vmem:[%s15324_s2 + $0x18] sm:$0xff] %v5637_v22 }
0x1a41   : > { %v12933_v23 = vpop.f32.mrb[184].mxu1 }
0x1a42   : > { %v5797_v35 = vpop.f32.mrb[185].mxu1  ;;  %v5806_v27 = vadd.f32 %v12933_v23, %v11078_v24 }
0x1a43   : > { %v12934_v26 = vpop.f32.mrb[186].mxu1  ;;  %v5798_v33 = vadd.f32 %v11078_v24, %v5797_v35 }
0x1a44   : > { %v5809_v28 = vadd.f32 %v12934_v26, %v11078_v24  ;;  %v5800_v32 = vpop.f32.mrb[187].mxu1 }
0x1a45   : > { %v5801_v34 = vadd.f32 %v11078_v24, %v5800_v32 }
0x1a46   : > { %v5878_v36 = vpack.c.bf16 %v5809_v28, %v5806_v27 }
0x1a47   : > { %v5877_v37 = vpack.c.bf16 %v5801_v34, %v5798_v33 }
0x1a49   : > { %v12937_v60 = vpop.f32.mrb[188].mxu1  ;;  %12947 = vmatprep.subr.bf16.mxu1 %v5877_v37 }
0x1a4a   : > { %v5813_v61 = vpop.f32.mrb[189].mxu1  ;;  %12948 = vmatpush3.bf16.msra.mxu1 %v5877_v37  ;;  %v5822_v62 = vadd.f32 %v12937_v60, %v11078_v24 }
0x1a4b   : > { %v12938_v38 = vpop.f32.mrb[190].mxu1  ;;  %12949 = vmatprep.subr.bf16.mxu1 %v5878_v36  ;;  %v5814_v39 = vadd.f32 %v11078_v24, %v5813_v61 }
0x1a4c   : > { %v5825_v1 = vadd.f32 %v12938_v38, %v11078_v24  ;;  %v5816_v2 = vpop.f32.mrb[191].mxu1 }
0x1a4d   : > { %v5817_v40 = vadd.f32 %v11078_v24, %v5816_v2 }
0x1a4e   : > { %v5880_v41 = vpack.c.bf16 %v5825_v1, %v5822_v62  ;;  %12950 = vmatpush3.bf16.msra.mxu1 %v5878_v36 }
0x1a4f   : > { %v5879_v44 = vpack.c.bf16 %v5817_v40, %v5814_v39 }
0x1a51   : > { %v12941_v45 = vpop.f32.mrb[192].mxu1  ;;  %12951 = vmatprep.subr.bf16.mxu1 %v5879_v44 }
0x1a52   : > { %v5829_v46 = vpop.f32.mrb[193].mxu1  ;;  %12952 = vmatpush3.bf16.msra.mxu1 %v5879_v44  ;;  %v5838_v48 = vadd.f32 %v12941_v45, %v11078_v24 }
0x1a53   : > { %v12942_v47 = vpop.f32.mrb[194].mxu1  ;;  %12953 = vmatprep.subr.bf16.mxu1 %v5880_v41  ;;  %v5830_v43 = vadd.f32 %v11078_v24, %v5829_v46 }
0x1a54   : > { %v5841_v49 = vadd.f32 %v12942_v47, %v11078_v24  ;;  %v5832_v42 = vpop.f32.mrb[195].mxu1 }
0x1a55   : > { %v5833_v50 = vadd.f32 %v11078_v24, %v5832_v42 }
0x1a56   : > { %v5882_v51 = vpack.c.bf16 %v5841_v49, %v5838_v48  ;;  %12954 = vmatpush3.bf16.msra.mxu1 %v5880_v41 }
0x1a57   : > { %v5881_v52 = vpack.c.bf16 %v5833_v50, %v5830_v43 }
0x1a59   : > { %v12945_v53 = vpop.f32.mrb[196].mxu1  ;;  %12955 = vmatprep.subr.bf16.mxu1 %v5881_v52 }
0x1a5a   : > { %v5845_v58 = vpop.f32.mrb[197].mxu1  ;;  %12956 = vmatpush3.bf16.msra.mxu1 %v5881_v52  ;;  %v5854_v54 = vadd.f32 %v12945_v53, %v11078_v24  ;;  %v14014_v53 = vld [vmem:[#allocation8 + $0x40] sm:$0xff]  }
0x1a5b   : > { %v12946_v59 = vpop.f32.mrb[198].mxu1  ;;  %12957 = vmatprep.subr.bf16.mxu1 %v5882_v51  ;;  %v5846_v4 = vadd.f32 %v11078_v24, %v5845_v58  ;;  %v14015_v58 = vld [vmem:[#allocation8 + $0x48] sm:$0xff]   ;;  %13043 = vmatprep.subr.bf16.mxu0 %v14014_v53 }
0x1a5c   : > { %v5857_v55 = vadd.f32 %v12946_v59, %v11078_v24  ;;  %v5848_v3 = vpop.f32.mrb[199].mxu1  ;;  %v14016_v59 = vld [vmem:[#allocation8 + $0x50] sm:$0xff]  }
0x1a5d   : > { %v5849_v56 = vadd.f32 %v11078_v24, %v5848_v3  ;;  %v14019_v3 = vld [vmem:[#allocation8 + $0x68] sm:$0xff]  }
0x1a5e   : > { %v5884_v25 = vpack.c.bf16 %v5857_v55, %v5854_v54  ;;  %12958 = vmatpush3.bf16.msra.mxu1 %v5882_v51  ;;  %v14017_v54 = vld [vmem:[#allocation8 + $0x58] sm:$0xff]   ;;  %v14018_v55 = vld [vmem:[#allocation8 + $0x60] sm:$0xff]  }
0x1a5f   : > { %v5883_v57 = vpack.c.bf16 %v5849_v56, %v5846_v4  ;;  %v11123_v56 = vld [vmem:[%s15917_s6] ss:$0 sm:$0xff] }
0x1a61   : > { %12959 = vmatprep.subr.bf16.mxu1 %v5883_v57 }
0x1a62   : > { %12960 = vmatpush3.bf16.msra.mxu1 %v5883_v57 }
0x1a63   : > { %12961 = vmatprep.subr.bf16.mxu1 %v5884_v25 }
0x1a66   : > { %12962 = vmatpush3.bf16.msra.mxu1 %v5884_v25 }
0x1a69   : > { %12964 = vmatmul.mubr.bf16.vlgmr.msra.gmra.mrb[200].mxu1 %v15493_v5 }
0x1a6a   : > { %12967 = vmatprep.mubr.bf16.mxu1 %v15496_v6 }
0x1a71   : > { %12968 = vmatmul.mubr.bf16.gmra.mrb[204].mxu1 %v15501_v7 }
0x1a72   : > { %12971 = vmatprep.mubr.bf16.mxu1 %v15504_v9 }
0x1a79   : > { %12972 = vmatmul.mubr.bf16.gmra.mrb[208].mxu1 %v15509_v11 }
0x1a7a   : > { %12975 = vmatprep.mubr.bf16.mxu1 %v15512_v14 }
0x1a81   : > { %12976 = vmatmul.mubr.bf16.gmra.mrb[212].mxu1 %v15517_v16 }
0x1a82   : > { %13027 = vmatprep.mubr.bf16.mxu1 %v15481_v8 }
0x1b3c   : > { %v12965_v12 = vpop.f32.mrb[200].mxu1 }
0x1b3d   : > { %v5967_v18 = vpop.f32.mrb[201].mxu1  ;;  %v6032_v20 = vmax.f32 %v12965_v12, 0.0 }
0x1b3e   : > { %v12966_v19 = vpop.f32.mrb[202].mxu1  ;;  %v6030_v30 = vmax.f32 %v5967_v18, 0.0 }
0x1b3f   : > { %v6033_v21 = vmax.f32 %v12966_v19, 0.0  ;;  %v5970_v29 = vpop.f32.mrb[203].mxu1 }
0x1b40   : > { %v6031_v31 = vmax.f32 %v5970_v29, 0.0 }
0x1b41   : > { %v6047_v22 = vpack.c.bf16 %v6033_v21, %v6032_v20 }
0x1b42   : > { %v6046_v23 = vpack.c.bf16 %v6031_v31, %v6030_v30 }
0x1b44   : > { %v12969_v24 = vpop.f32.mrb[204].mxu1  ;;  %12995 = vmatprep.mubr.bf16.mxu0 %v6046_v23 }
0x1b45   : > { %v5983_v35 = vpop.f32.mrb[205].mxu1  ;;  %12996 = vmatmul.mubr.bf16.vlgmr.msra.gmra.mrb[184].mxu0 %v6047_v22  ;;  %v6036_v27 = vmax.f32 %v12969_v24, 0.0 }
0x1b46   : > { %v12970_v26 = vpop.f32.mrb[206].mxu1  ;;  %v6034_v33 = vmax.f32 %v5983_v35, 0.0  ;;  %13044 = vmatpush3.bf16.msra.mxu0 %v14014_v53 }
0x1b47   : > { %v6037_v28 = vmax.f32 %v12970_v26, 0.0  ;;  %v5986_v32 = vpop.f32.mrb[207].mxu1  ;;  %13045 = vmatprep.subr.bf16.mxu0 %v14015_v58 }
0x1b48   : > { %v6035_v34 = vmax.f32 %v5986_v32, 0.0 }
0x1b49   : > { %v6049_v36 = vpack.c.bf16 %v6037_v28, %v6036_v27 }
0x1b4a   : > { %v6048_v37 = vpack.c.bf16 %v6035_v34, %v6034_v33  ;;  %13046 = vmatpush3.bf16.msra.mxu0 %v14015_v58 }
0x1b4b   : > { %13047 = vmatprep.subr.bf16.mxu0 %v14016_v59 }
0x1b4c   : > { %v12973_v60 = vpop.f32.mrb[208].mxu1  ;;  %12999 = vmatprep.mubr.bf16.mxu0 %v6048_v37 }
0x1b4d   : > { %v5999_v61 = vpop.f32.mrb[209].mxu1  ;;  %13000 = vmatmul.mubr.bf16.gmra.mrb[188].mxu0 %v6049_v36  ;;  %v6040_v62 = vmax.f32 %v12973_v60, 0.0 }
0x1b4e   : > { %v12974_v38 = vpop.f32.mrb[210].mxu1  ;;  %v6038_v39 = vmax.f32 %v5999_v61, 0.0  ;;  %13048 = vmatpush3.bf16.msra.mxu0 %v14016_v59 }
0x1b4f   : > { %v6041_v1 = vmax.f32 %v12974_v38, 0.0  ;;  %v6002_v2 = vpop.f32.mrb[211].mxu1  ;;  %13049 = vmatprep.subr.bf16.mxu0 %v14017_v54 }
0x1b50   : > { %v6039_v40 = vmax.f32 %v6002_v2, 0.0 }
0x1b51   : > { %v6051_v41 = vpack.c.bf16 %v6041_v1, %v6040_v62 }
0x1b52   : > { %v6050_v44 = vpack.c.bf16 %v6039_v40, %v6038_v39  ;;  %13050 = vmatpush3.bf16.msra.mxu0 %v14017_v54 }
0x1b53   : > { %13051 = vmatprep.subr.bf16.mxu0 %v14018_v55 }
0x1b54   : > { %v12977_v45 = vpop.f32.mrb[212].mxu1  ;;  %13003 = vmatprep.mubr.bf16.mxu0 %v6050_v44 }
0x1b55   : > { %v6015_v46 = vpop.f32.mrb[213].mxu1  ;;  %13004 = vmatmul.mubr.bf16.gmra.mrb[192].mxu0 %v6051_v41  ;;  %v6044_v48 = vmax.f32 %v12977_v45, 0.0 }
0x1b56   : > { %v12978_v47 = vpop.f32.mrb[214].mxu1  ;;  %v6042_v43 = vmax.f32 %v6015_v46, 0.0  ;;  %13052 = vmatpush3.bf16.msra.mxu0 %v14018_v55 }
0x1b57   : > { %v6045_v49 = vmax.f32 %v12978_v47, 0.0  ;;  %v6018_v42 = vpop.f32.mrb[215].mxu1  ;;  %13053 = vmatprep.subr.bf16.mxu0 %v14019_v3 }
0x1b58   : > { %v6043_v50 = vmax.f32 %v6018_v42, 0.0  ;;  %v14020_v42 = vld [vmem:[#allocation8 + $0x70] sm:$0xff]  }
0x1b59   : > { %v6053_v51 = vpack.c.bf16 %v6045_v49, %v6044_v48 }
0x1b5a   : > { %v6052_v52 = vpack.c.bf16 %v6043_v50, %v6042_v43  ;;  %13054 = vmatpush3.bf16.msra.mxu0 %v14019_v3  ;;  %v14021_v43 = vld [vmem:[#allocation8 + $0x78] sm:$0xff]  }
0x1b5b   : > { %13055 = vmatprep.subr.bf16.mxu0 %v14020_v42 }
0x1b5c   : > { %13007 = vmatprep.mubr.bf16.mxu0 %v6052_v52 }
0x1b5d   : > { %13008 = vmatmul.mubr.bf16.gmra.mrb[196].mxu0 %v6053_v51 }
0x1b5e   : > { %13056 = vmatpush3.bf16.msra.mxu0 %v14020_v42 }
0x1b5f   : > { %13057 = vmatprep.subr.bf16.mxu0 %v14021_v43 }
0x1b62   : > { %13058 = vmatpush3.bf16.msra.mxu0 %v14021_v43 }
0x1c18   : > { %v12997_v4 = vpop.f32.mrb[184].mxu0 }
0x1c19   : > { %v6159_v25 = vpop.f32.mrb[185].mxu0  ;;  %v6168_v15 = vadd.f32 %v12997_v4, %v11123_v56 }
0x1c1a   : > { %v12998_v57 = vpop.f32.mrb[186].mxu0  ;;  %v6160_v18 = vadd.f32 %v11123_v56, %v6159_v25 }
0x1c1b   : > { %v6171_v17 = vadd.f32 %v12998_v57, %v11123_v56  ;;  %v6162_v12 = vpop.f32.mrb[187].mxu0 }
0x1c1c   : > { %v6163_v19 = vadd.f32 %v11123_v56, %v6162_v12 }
0x1c1d   : > { %v6223_v20 = vpack.c.bf16 %v6171_v17, %v6168_v15 }
0x1c1e   : > { %v6222_v21 = vpack.c.bf16 %v6163_v19, %v6160_v18 }
0x1c20   : > { %v13001_v29 = vpop.f32.mrb[188].mxu0  ;;  %13011 = vmatprep.subr.bf16.mxu1 %v6222_v21 }
0x1c21   : > { %v6175_v30 = vpop.f32.mrb[189].mxu0  ;;  %13012 = vmatpush3.bf16.msra.mxu1 %v6222_v21  ;;  %v6184_v22 = vadd.f32 %v13001_v29, %v11123_v56 }
0x1c22   : > { %v13002_v31 = vpop.f32.mrb[190].mxu0  ;;  %13013 = vmatprep.subr.bf16.mxu1 %v6223_v20  ;;  %v6176_v35 = vadd.f32 %v11123_v56, %v6175_v30 }
0x1c23   : > { %v6187_v23 = vadd.f32 %v13002_v31, %v11123_v56  ;;  %v6178_v24 = vpop.f32.mrb[191].mxu0 }
0x1c24   : > { %v6179_v26 = vadd.f32 %v11123_v56, %v6178_v24 }
0x1c25   : > { %v6225_v27 = vpack.c.bf16 %v6187_v23, %v6184_v22  ;;  %13014 = vmatpush3.bf16.msra.mxu1 %v6223_v20 }
0x1c26   : > { %v6224_v28 = vpack.c.bf16 %v6179_v26, %v6176_v35 }
0x1c28   : > { %v13005_v32 = vpop.f32.mrb[192].mxu0  ;;  %13015 = vmatprep.subr.bf16.mxu1 %v6224_v28 }
0x1c29   : > { %v6191_v33 = vpop.f32.mrb[193].mxu0  ;;  %13016 = vmatpush3.bf16.msra.mxu1 %v6224_v28  ;;  %v6200_v36 = vadd.f32 %v13005_v32, %v11123_v56 }
0x1c2a   : > { %v13006_v34 = vpop.f32.mrb[194].mxu0  ;;  %13017 = vmatprep.subr.bf16.mxu1 %v6225_v27  ;;  %v6192_v61 = vadd.f32 %v11123_v56, %v6191_v33 }
0x1c2b   : > { %v6203_v37 = vadd.f32 %v13006_v34, %v11123_v56  ;;  %v6194_v60 = vpop.f32.mrb[195].mxu0 }
0x1c2c   : > { %v6195_v38 = vadd.f32 %v11123_v56, %v6194_v60 }
0x1c2d   : > { %v6227_v62 = vpack.c.bf16 %v6203_v37, %v6200_v36  ;;  %13018 = vmatpush3.bf16.msra.mxu1 %v6225_v27 }
0x1c2e   : > { %v6226_v1 = vpack.c.bf16 %v6195_v38, %v6192_v61 }
0x1c30   : > { %v13009_v2 = vpop.f32.mrb[196].mxu0  ;;  %13019 = vmatprep.subr.bf16.mxu1 %v6226_v1 }
0x1c31   : > { %v6207_v39 = vpop.f32.mrb[197].mxu0  ;;  %13020 = vmatpush3.bf16.msra.mxu1 %v6226_v1  ;;  %v6216_v41 = vadd.f32 %v13009_v2, %v11123_v56  ;;  %v14022_v2 = vld [vmem:[#allocation8 + $0x80] sm:$0xff]  }
0x1c32   : > { %v13010_v40 = vpop.f32.mrb[198].mxu0  ;;  %13021 = vmatprep.subr.bf16.mxu1 %v6227_v62  ;;  %v6208_v46 = vadd.f32 %v11123_v56, %v6207_v39  ;;  %v14023_v39 = vld [vmem:[#allocation8 + $0x88] sm:$0xff]   ;;  %13107 = vmatprep.subr.bf16.mxu0 %v14022_v2 }
0x1c33   : > { %v6219_v44 = vadd.f32 %v13010_v40, %v11123_v56  ;;  %v6210_v45 = vpop.f32.mrb[199].mxu0  ;;  %v14024_v40 = vld [vmem:[#allocation8 + $0x90] sm:$0xff]  }
0x1c34   : > { %v6211_v47 = vadd.f32 %v11123_v56, %v6210_v45  ;;  %v14027_v45 = vld [vmem:[#allocation8 + $0xa8] sm:$0xff]  }
0x1c35   : > { %v6229_v48 = vpack.c.bf16 %v6219_v44, %v6216_v41  ;;  %13022 = vmatpush3.bf16.msra.mxu1 %v6227_v62  ;;  %v14025_v41 = vld [vmem:[#allocation8 + $0x98] sm:$0xff]   ;;  %v14026_v44 = vld [vmem:[#allocation8 + $0xa0] sm:$0xff]  }
0x1c36   : > { %v6228_v49 = vpack.c.bf16 %v6211_v47, %v6208_v46  ;;  %v11133_v47 = vld [vmem:[%s15917_s6 + $0x1] ss:$0 sm:$0xff] }
0x1c38   : > { %13023 = vmatprep.subr.bf16.mxu1 %v6228_v49 }
0x1c39   : > { %13024 = vmatpush3.bf16.msra.mxu1 %v6228_v49 }
0x1c3a   : > { %13025 = vmatprep.subr.bf16.mxu1 %v6229_v48 }
0x1c3d   : > { %13026 = vmatpush3.bf16.msra.mxu1 %v6229_v48 }
0x1c40   : > { %13028 = vmatmul.mubr.bf16.vlgmr.msra.gmra.mrb[216].mxu1 %v15493_v5 }
0x1c41   : > { %13031 = vmatprep.mubr.bf16.mxu1 %v15496_v6 }
0x1c48   : > { %13032 = vmatmul.mubr.bf16.gmra.mrb[220].mxu1 %v15501_v7 }
0x1c49   : > { %13035 = vmatprep.mubr.bf16.mxu1 %v15504_v9 }
0x1c50   : > { %13036 = vmatmul.mubr.bf16.gmra.mrb[224].mxu1 %v15509_v11 }
0x1c51   : > { %13039 = vmatprep.mubr.bf16.mxu1 %v15512_v14 }
0x1c58   : > { %13040 = vmatmul.mubr.bf16.gmra.mrb[228].mxu1 %v15517_v16 }
0x1c59   : > { %13091 = vmatprep.mubr.bf16.mxu1 %v15481_v8 }
0x1d13   : > { %v13029_v50 = vpop.f32.mrb[216].mxu1 }
0x1d14   : > { %v6264_v51 = vpop.f32.mrb[217].mxu1  ;;  %v6329_v53 = vmax.f32 %v13029_v50, 0.0 }
0x1d15   : > { %v13030_v52 = vpop.f32.mrb[218].mxu1  ;;  %v6327_v54 = vmax.f32 %v6264_v51, 0.0 }
0x1d16   : > { %v6330_v58 = vmax.f32 %v13030_v52, 0.0  ;;  %v6267_v59 = vpop.f32.mrb[219].mxu1 }
0x1d17   : > { %v6328_v55 = vmax.f32 %v6267_v59, 0.0 }
0x1d18   : > { %v6344_v3 = vpack.c.bf16 %v6330_v58, %v6329_v53 }
0x1d19   : > { %v6343_v4 = vpack.c.bf16 %v6328_v55, %v6327_v54 }
0x1d1b   : > { %v13033_v56 = vpop.f32.mrb[220].mxu1  ;;  %13059 = vmatprep.mubr.bf16.mxu0 %v6343_v4 }
0x1d1c   : > { %v6280_v25 = vpop.f32.mrb[221].mxu1  ;;  %13060 = vmatmul.mubr.bf16.vlgmr.msra.gmra.mrb[200].mxu0 %v6344_v3  ;;  %v6333_v15 = vmax.f32 %v13033_v56, 0.0 }
0x1d1d   : > { %v13034_v57 = vpop.f32.mrb[222].mxu1  ;;  %v6331_v18 = vmax.f32 %v6280_v25, 0.0  ;;  %13108 = vmatpush3.bf16.msra.mxu0 %v14022_v2 }
0x1d1e   : > { %v6334_v17 = vmax.f32 %v13034_v57, 0.0  ;;  %v6283_v12 = vpop.f32.mrb[223].mxu1  ;;  %13109 = vmatprep.subr.bf16.mxu0 %v14023_v39 }
0x1d1f   : > { %v6332_v19 = vmax.f32 %v6283_v12, 0.0 }
0x1d20   : > { %v6346_v20 = vpack.c.bf16 %v6334_v17, %v6333_v15 }
0x1d21   : > { %v6345_v21 = vpack.c.bf16 %v6332_v19, %v6331_v18  ;;  %13110 = vmatpush3.bf16.msra.mxu0 %v14023_v39 }
0x1d22   : > { %13111 = vmatprep.subr.bf16.mxu0 %v14024_v40 }
0x1d23   : > { %v13037_v29 = vpop.f32.mrb[224].mxu1  ;;  %13063 = vmatprep.mubr.bf16.mxu0 %v6345_v21 }
0x1d24   : > { %v6296_v30 = vpop.f32.mrb[225].mxu1  ;;  %13064 = vmatmul.mubr.bf16.gmra.mrb[204].mxu0 %v6346_v20  ;;  %v6337_v22 = vmax.f32 %v13037_v29, 0.0 }
0x1d25   : > { %v13038_v31 = vpop.f32.mrb[226].mxu1  ;;  %v6335_v35 = vmax.f32 %v6296_v30, 0.0  ;;  %13112 = vmatpush3.bf16.msra.mxu0 %v14024_v40 }
0x1d26   : > { %v6338_v23 = vmax.f32 %v13038_v31, 0.0  ;;  %v6299_v24 = vpop.f32.mrb[227].mxu1  ;;  %13113 = vmatprep.subr.bf16.mxu0 %v14025_v41 }
0x1d27   : > { %v6336_v26 = vmax.f32 %v6299_v24, 0.0 }
0x1d28   : > { %v6348_v27 = vpack.c.bf16 %v6338_v23, %v6337_v22 }
0x1d29   : > { %v6347_v28 = vpack.c.bf16 %v6336_v26, %v6335_v35  ;;  %13114 = vmatpush3.bf16.msra.mxu0 %v14025_v41 }
0x1d2a   : > { %13115 = vmatprep.subr.bf16.mxu0 %v14026_v44 }
0x1d2b   : > { %v13041_v32 = vpop.f32.mrb[228].mxu1  ;;  %13067 = vmatprep.mubr.bf16.mxu0 %v6347_v28 }
0x1d2c   : > { %v6312_v33 = vpop.f32.mrb[229].mxu1  ;;  %13068 = vmatmul.mubr.bf16.gmra.mrb[208].mxu0 %v6348_v27  ;;  %v6341_v36 = vmax.f32 %v13041_v32, 0.0 }
0x1d2d   : > { %v13042_v34 = vpop.f32.mrb[230].mxu1  ;;  %v6339_v61 = vmax.f32 %v6312_v33, 0.0  ;;  %13116 = vmatpush3.bf16.msra.mxu0 %v14026_v44 }
0x1d2e   : > { %v6342_v37 = vmax.f32 %v13042_v34, 0.0  ;;  %v6315_v60 = vpop.f32.mrb[231].mxu1  ;;  %13117 = vmatprep.subr.bf16.mxu0 %v14027_v45 }
0x1d2f   : > { %v6340_v38 = vmax.f32 %v6315_v60, 0.0  ;;  %v14028_v60 = vld [vmem:[#allocation8 + $0xb0] sm:$0xff]  }
0x1d30   : > { %v6350_v62 = vpack.c.bf16 %v6342_v37, %v6341_v36 }
0x1d31   : > { %v6349_v1 = vpack.c.bf16 %v6340_v38, %v6339_v61  ;;  %13118 = vmatpush3.bf16.msra.mxu0 %v14027_v45  ;;  %v14029_v61 = vld [vmem:[#allocation8 + $0xb8] sm:$0xff]  }
0x1d32   : > { %13119 = vmatprep.subr.bf16.mxu0 %v14028_v60 }
0x1d33   : > { %13071 = vmatprep.mubr.bf16.mxu0 %v6349_v1 }
0x1d34   : > { %13072 = vmatmul.mubr.bf16.gmra.mrb[212].mxu0 %v6350_v62 }
0x1d35   : > { %13120 = vmatpush3.bf16.msra.mxu0 %v14028_v60 }
0x1d36   : > { %13121 = vmatprep.subr.bf16.mxu0 %v14029_v61 }
0x1d39   : > { %13122 = vmatpush3.bf16.msra.mxu0 %v14029_v61 }
0x1def   : > { %v13061_v46 = vpop.f32.mrb[200].mxu0 }
0x1df0   : > { %v6456_v48 = vpop.f32.mrb[201].mxu0  ;;  %v6465_v42 = vadd.f32 %v13061_v46, %v11133_v47 }
0x1df1   : > { %v13062_v49 = vpop.f32.mrb[202].mxu0  ;;  %v6457_v51 = vadd.f32 %v11133_v47, %v6456_v48 }
0x1df2   : > { %v6468_v43 = vadd.f32 %v13062_v49, %v11133_v47  ;;  %v6459_v50 = vpop.f32.mrb[203].mxu0 }
0x1df3   : > { %v6460_v52 = vadd.f32 %v11133_v47, %v6459_v50 }
0x1df4   : > { %v6520_v53 = vpack.c.bf16 %v6468_v43, %v6465_v42 }
0x1df5   : > { %v6519_v58 = vpack.c.bf16 %v6460_v52, %v6457_v51 }
0x1df7   : > { %v13065_v59 = vpop.f32.mrb[204].mxu0  ;;  %13075 = vmatprep.subr.bf16.mxu1 %v6519_v58 }
0x1df8   : > { %v6472_v54 = vpop.f32.mrb[205].mxu0  ;;  %13076 = vmatpush3.bf16.msra.mxu1 %v6519_v58  ;;  %v6481_v3 = vadd.f32 %v13065_v59, %v11133_v47 }
0x1df9   : > { %v13066_v55 = vpop.f32.mrb[206].mxu0  ;;  %13077 = vmatprep.subr.bf16.mxu1 %v6520_v53  ;;  %v6473_v25 = vadd.f32 %v11133_v47, %v6472_v54 }
0x1dfa   : > { %v6484_v4 = vadd.f32 %v13066_v55, %v11133_v47  ;;  %v6475_v56 = vpop.f32.mrb[207].mxu0 }
0x1dfb   : > { %v6476_v57 = vadd.f32 %v11133_v47, %v6475_v56 }
0x1dfc   : > { %v6522_v15 = vpack.c.bf16 %v6484_v4, %v6481_v3  ;;  %13078 = vmatpush3.bf16.msra.mxu1 %v6520_v53 }
0x1dfd   : > { %v6521_v17 = vpack.c.bf16 %v6476_v57, %v6473_v25 }
0x1dff   : > { %v13069_v12 = vpop.f32.mrb[208].mxu0  ;;  %13079 = vmatprep.subr.bf16.mxu1 %v6521_v17 }
0x1e00   : > { %v6488_v18 = vpop.f32.mrb[209].mxu0  ;;  %13080 = vmatpush3.bf16.msra.mxu1 %v6521_v17  ;;  %v6497_v20 = vadd.f32 %v13069_v12, %v11133_v47 }
0x1e01   : > { %v13070_v19 = vpop.f32.mrb[210].mxu0  ;;  %13081 = vmatprep.subr.bf16.mxu1 %v6522_v15  ;;  %v6489_v30 = vadd.f32 %v11133_v47, %v6488_v18 }
0x1e02   : > { %v6500_v21 = vadd.f32 %v13070_v19, %v11133_v47  ;;  %v6491_v29 = vpop.f32.mrb[211].mxu0 }
0x1e03   : > { %v6492_v31 = vadd.f32 %v11133_v47, %v6491_v29 }
0x1e04   : > { %v6524_v22 = vpack.c.bf16 %v6500_v21, %v6497_v20  ;;  %13082 = vmatpush3.bf16.msra.mxu1 %v6522_v15 }
0x1e05   : > { %v6523_v23 = vpack.c.bf16 %v6492_v31, %v6489_v30 }
0x1e07   : > { %v13073_v24 = vpop.f32.mrb[212].mxu0  ;;  %13083 = vmatprep.subr.bf16.mxu1 %v6523_v23 }
0x1e08   : > { %v6504_v35 = vpop.f32.mrb[213].mxu0  ;;  %13084 = vmatpush3.bf16.msra.mxu1 %v6523_v23  ;;  %v6513_v27 = vadd.f32 %v13073_v24, %v11133_v47  ;;  %v11143_v24 = vld [vmem:[%s15917_s6 + $0x2] ss:$0 sm:$0xff] }
0x1e09   : > { %v13074_v26 = vpop.f32.mrb[214].mxu0  ;;  %13085 = vmatprep.subr.bf16.mxu1 %v6524_v22  ;;  %v6505_v33 = vadd.f32 %v11133_v47, %v6504_v35 }
0x1e0a   : > { %v6516_v28 = vadd.f32 %v13074_v26, %v11133_v47  ;;  %v6507_v32 = vpop.f32.mrb[215].mxu0 }
0x1e0b   : > { %v6508_v34 = vadd.f32 %v11133_v47, %v6507_v32 }
0x1e0c   : > { %v6526_v36 = vpack.c.bf16 %v6516_v28, %v6513_v27  ;;  %13086 = vmatpush3.bf16.msra.mxu1 %v6524_v22 }
0x1e0d   : > { %v6525_v37 = vpack.c.bf16 %v6508_v34, %v6505_v33 }
0x1e0f   : > { %13087 = vmatprep.subr.bf16.mxu1 %v6525_v37 }
0x1e10   : > { %13088 = vmatpush3.bf16.msra.mxu1 %v6525_v37 }
0x1e11   : > { %13089 = vmatprep.subr.bf16.mxu1 %v6526_v36 }
0x1e14   : > { %13090 = vmatpush3.bf16.msra.mxu1 %v6526_v36 }
0x1e17   : > { %13092 = vmatmul.mubr.bf16.vlgmr.msra.gmra.mrb[232].mxu1 %v15493_v5 }
0x1e18   : > { %13095 = vmatprep.mubr.bf16.mxu1 %v15496_v6 }
0x1e1f   : > { %13096 = vmatmul.mubr.bf16.gmra.mrb[236].mxu1 %v15501_v7 }
0x1e20   : > { %13099 = vmatprep.mubr.bf16.mxu1 %v15504_v9 }
0x1e27   : > { %13100 = vmatmul.mubr.bf16.gmra.mrb[240].mxu1 %v15509_v11 }
0x1e28   : > { %13103 = vmatprep.mubr.bf16.mxu1 %v15512_v14 }
0x1e2f   : > { %13104 = vmatmul.mubr.bf16.gmra.mrb[244].mxu1 %v15517_v16 }
0x1e30   : > { %13155 = vmatprep.mubr.bf16.mxu1 %v15481_v8 }
0x1eea   : > { %v13093_v38 = vpop.f32.mrb[232].mxu1 }
0x1eeb   : > { %v6561_v62 = vpop.f32.mrb[233].mxu1  ;;  %v6626_v2 = vmax.f32 %v13093_v38, 0.0 }
0x1eec   : > { %v13094_v1 = vpop.f32.mrb[234].mxu1  ;;  %v6624_v41 = vmax.f32 %v6561_v62, 0.0 }
0x1eed   : > { %v6627_v39 = vmax.f32 %v13094_v1, 0.0  ;;  %v6564_v40 = vpop.f32.mrb[235].mxu1 }
0x1eee   : > { %v6625_v44 = vmax.f32 %v6564_v40, 0.0 }
0x1eef   : > { %v6641_v45 = vpack.c.bf16 %v6627_v39, %v6626_v2 }
0x1ef0   : > { %v6640_v46 = vpack.c.bf16 %v6625_v44, %v6624_v41 }
0x1ef2   : > { %v13097_v47 = vpop.f32.mrb[236].mxu1  ;;  %13123 = vmatprep.mubr.bf16.mxu0 %v6640_v46 }
0x1ef3   : > { %v6577_v48 = vpop.f32.mrb[237].mxu1  ;;  %13124 = vmatmul.mubr.bf16.vlgmr.msra.gmra.mrb[216].mxu0 %v6641_v45  ;;  %v6630_v49 = vmax.f32 %v13097_v47, 0.0 }
0x1ef4   : > { %v13098_v8 = vpop.f32.mrb[238].mxu1  ;;  %v6628_v50 = vmax.f32 %v6577_v48, 0.0 }
0x1ef5   : > { %v6631_v42 = vmax.f32 %v13098_v8, 0.0  ;;  %v6580_v43 = vpop.f32.mrb[239].mxu1 }
0x1ef6   : > { %v6629_v51 = vmax.f32 %v6580_v43, 0.0 }
0x1ef7   : > { %v6643_v52 = vpack.c.bf16 %v6631_v42, %v6630_v49 }
0x1ef8   : > { %v6642_v53 = vpack.c.bf16 %v6629_v51, %v6628_v50 }
0x1efa   : > { %v13101_v58 = vpop.f32.mrb[240].mxu1  ;;  %13127 = vmatprep.mubr.bf16.mxu0 %v6642_v53 }
0x1efb   : > { %v6593_v59 = vpop.f32.mrb[241].mxu1  ;;  %13128 = vmatmul.mubr.bf16.gmra.mrb[220].mxu0 %v6643_v52  ;;  %v6634_v55 = vmax.f32 %v13101_v58, 0.0 }
0x1efc   : > { %v13102_v54 = vpop.f32.mrb[242].mxu1  ;;  %v6632_v56 = vmax.f32 %v6593_v59, 0.0 }
0x1efd   : > { %v6635_v3 = vmax.f32 %v13102_v54, 0.0  ;;  %v6596_v4 = vpop.f32.mrb[243].mxu1 }
0x1efe   : > { %v6633_v25 = vmax.f32 %v6596_v4, 0.0 }
0x1eff   : > { %v6645_v57 = vpack.c.bf16 %v6635_v3, %v6634_v55 }
0x1f00   : > { %v6644_v15 = vpack.c.bf16 %v6633_v25, %v6632_v56 }
0x1f02   : > { %v13105_v17 = vpop.f32.mrb[244].mxu1  ;;  %13131 = vmatprep.mubr.bf16.mxu0 %v6644_v15  ;;  %v14034_v15 = vld [vmem:[#allocation10 + $0x180] ss:$8 sps:$4 sm:$0xff]  }
0x1f03   : > { %v6609_v12 = vpop.f32.mrb[245].mxu1  ;;  %13132 = vmatmul.mubr.bf16.gmra.mrb[224].mxu0 %v6645_v57  ;;  %v6638_v19 = vmax.f32 %v13105_v17, 0.0  ;;  %v14030_v57 = vld [vmem:[%s15222_s0 + $0x40] sm:$0xff]  }
0x1f04   : > { %v13106_v18 = vpop.f32.mrb[246].mxu1  ;;  %v6636_v29 = vmax.f32 %v6609_v12, 0.0  ;;  %v14036_v17 = vld [vmem:[#allocation10 + $0x184] ss:$8 sps:$4 sm:$0xff]   ;;  %v14039_v12 = vld [vmem:[#allocation10 + $0x194] ss:$8 sps:$4 sm:$0xff]  }
0x1f05   : > { %v6639_v20 = vmax.f32 %v13106_v18, 0.0  ;;  %v6612_v21 = vpop.f32.mrb[247].mxu1  ;;  %v14051_v18 = vld [vmem:[#allocation10 + $0x1d4] ss:$8 sps:$4 sm:$0xff]  }
0x1f06   : > { %v6637_v30 = vmax.f32 %v6612_v21, 0.0  ;;  %v14052_v21 = vld [vmem:[#allocation10 + $0x1e0] ss:$8 sps:$4 sm:$0xff]  }
0x1f07   : > { %v6647_v31 = vpack.c.bf16 %v6639_v20, %v6638_v19  ;;  %v14049_v19 = vld [vmem:[#allocation10 + $0x1d0] ss:$8 sps:$4 sm:$0xff]   ;;  %v14054_v20 = vld [vmem:[#allocation10 + $0x1e4] ss:$8 sps:$4 sm:$0xff]  }
0x1f08   : > { %v6646_v22 = vpack.c.bf16 %v6637_v30, %v6636_v29 }
0x1f0a   : > { %13135 = vmatprep.mubr.bf16.mxu0 %v6646_v22 }
0x1f0b   : > { %13136 = vmatmul.mubr.bf16.gmra.mrb[228].mxu0 %v6647_v31 }
0x1f0c   : > { %13187 = vmatprep.mubr.bf16.mxu0 %v14030_v57 }
0x1fc6   : > { %v13125_v23 = vpop.f32.mrb[216].mxu0 }
0x1fc7   : > { %v6753_v35 = vpop.f32.mrb[217].mxu0  ;;  %v6762_v27 = vadd.f32 %v13125_v23, %v11143_v24 }
0x1fc8   : > { %v13126_v26 = vpop.f32.mrb[218].mxu0  ;;  %v6754_v33 = vadd.f32 %v11143_v24, %v6753_v35 }
0x1fc9   : > { %v6765_v28 = vadd.f32 %v13126_v26, %v11143_v24  ;;  %v6756_v32 = vpop.f32.mrb[219].mxu0 }
0x1fca   : > { %v6757_v34 = vadd.f32 %v11143_v24, %v6756_v32 }
0x1fcb   : > { %v6817_v36 = vpack.c.bf16 %v6765_v28, %v6762_v27 }
0x1fcc   : > { %v6816_v37 = vpack.c.bf16 %v6757_v34, %v6754_v33 }
0x1fce   : > { %v13129_v60 = vpop.f32.mrb[220].mxu0  ;;  %13139 = vmatprep.subr.bf16.mxu1 %v6816_v37 }
0x1fcf   : > { %v6769_v61 = vpop.f32.mrb[221].mxu0  ;;  %13140 = vmatpush3.bf16.msra.mxu1 %v6816_v37  ;;  %v6778_v62 = vadd.f32 %v13129_v60, %v11143_v24 }
0x1fd0   : > { %v13130_v38 = vpop.f32.mrb[222].mxu0  ;;  %13141 = vmatprep.subr.bf16.mxu1 %v6817_v36  ;;  %v6770_v39 = vadd.f32 %v11143_v24, %v6769_v61 }
0x1fd1   : > { %v6781_v1 = vadd.f32 %v13130_v38, %v11143_v24  ;;  %v6772_v2 = vpop.f32.mrb[223].mxu0 }
0x1fd2   : > { %v6773_v40 = vadd.f32 %v11143_v24, %v6772_v2 }
0x1fd3   : > { %v6819_v41 = vpack.c.bf16 %v6781_v1, %v6778_v62  ;;  %13142 = vmatpush3.bf16.msra.mxu1 %v6817_v36 }
0x1fd4   : > { %v6818_v44 = vpack.c.bf16 %v6773_v40, %v6770_v39 }
0x1fd6   : > { %v13133_v45 = vpop.f32.mrb[224].mxu0  ;;  %13143 = vmatprep.subr.bf16.mxu1 %v6818_v44 }
0x1fd7   : > { %v6785_v46 = vpop.f32.mrb[225].mxu0  ;;  %13144 = vmatpush3.bf16.msra.mxu1 %v6818_v44  ;;  %v6794_v48 = vadd.f32 %v13133_v45, %v11143_v24 }
0x1fd8   : > { %v13134_v47 = vpop.f32.mrb[226].mxu0  ;;  %13145 = vmatprep.subr.bf16.mxu1 %v6819_v41  ;;  %v6786_v42 = vadd.f32 %v11143_v24, %v6785_v46 }
0x1fd9   : > { %v6797_v8 = vadd.f32 %v13134_v47, %v11143_v24  ;;  %v6788_v49 = vpop.f32.mrb[227].mxu0 }
0x1fda   : > { %v6789_v43 = vadd.f32 %v11143_v24, %v6788_v49 }
0x1fdb   : > { %v6821_v50 = vpack.c.bf16 %v6797_v8, %v6794_v48  ;;  %13146 = vmatpush3.bf16.msra.mxu1 %v6819_v41 }
0x1fdc   : > { %v6820_v51 = vpack.c.bf16 %v6789_v43, %v6786_v42 }
0x1fde   : > { %v13137_v52 = vpop.f32.mrb[228].mxu0  ;;  %13147 = vmatprep.subr.bf16.mxu1 %v6820_v51 }
0x1fdf   : > { %v6801_v53 = vpop.f32.mrb[229].mxu0  ;;  %13148 = vmatpush3.bf16.msra.mxu1 %v6820_v51  ;;  %v6810_v59 = vadd.f32 %v13137_v52, %v11143_v24 }
0x1fe0   : > { %v13138_v58 = vpop.f32.mrb[230].mxu0  ;;  %13149 = vmatprep.subr.bf16.mxu1 %v6821_v50  ;;  %v6802_v3 = vadd.f32 %v11143_v24, %v6801_v53 }
0x1fe1   : > { %v6813_v54 = vadd.f32 %v13138_v58, %v11143_v24  ;;  %v6804_v55 = vpop.f32.mrb[231].mxu0 }
0x1fe2   : > { %v6805_v4 = vadd.f32 %v11143_v24, %v6804_v55 }
0x1fe3   : > { %v6823_v56 = vpack.c.bf16 %v6813_v54, %v6810_v59  ;;  %13150 = vmatpush3.bf16.msra.mxu1 %v6821_v50 }
0x1fe4   : > { %v6822_v25 = vpack.c.bf16 %v6805_v4, %v6802_v3 }
0x1fe6   : > { %13151 = vmatprep.subr.bf16.mxu1 %v6822_v25 }
0x1fe7   : > { %13152 = vmatpush3.bf16.msra.mxu1 %v6822_v25 }
0x1fe8   : > { %13153 = vmatprep.subr.bf16.mxu1 %v6823_v56 }
0x1feb   : > { %13154 = vmatpush3.bf16.msra.mxu1 %v6823_v56 }
0x1fec   : > { %7139 = vmatprep.subr.bf16.mxu1 %v14036_v17 }
0x1fee   : > { %13156 = vmatmul.mubr.bf16.vlgmr.msra.gmra.mrb[248].mxu1 %v15493_v5  ;;  %v14037_v5 = vld [vmem:[#allocation10 + $0x190] ss:$8 sps:$4 sm:$0xff]  }
0x1fef   : > { %13159 = vmatprep.mubr.bf16.mxu1 %v15496_v6  ;;  %7140 = vmatpush1.bf16.msra.mxu1 %v14034_v15  ;;  %v14042_v6 = vld [vmem:[#allocation10 + $0x1a4] ss:$8 sps:$4 sm:$0xff]  }
0x1ff0   : > { %7141 = vmatprep.subr.bf16.mxu1 %v14039_v12  ;;  %v14031_v12 = vld [vmem:[%s15222_s0 + $0x48] sm:$0xff]  }
0x1ff3   : > { %7142 = vmatpush1.bf16.msra.mxu1 %v14037_v5  ;;  %v14032_v5 = vld [vmem:[%s15222_s0 + $0x50] sm:$0xff]  }
0x1ff4   : > { %7143 = vmatprep.subr.bf16.mxu1 %v14042_v6  ;;  %v14033_v6 = vld [vmem:[%s15222_s0 + $0x58] sm:$0xff]  }
0x1ff6   : > { %13160 = vmatmul.mubr.bf16.gmra.mrb[252].mxu1 %v15501_v7  ;;  %v14040_v7 = vld [vmem:[#allocation10 + $0x1a0] ss:$8 sps:$4 sm:$0xff]  }
0x1ff7   : > { %13163 = vmatprep.mubr.bf16.mxu1 %v15504_v9  ;;  %v14045_v9 = vld [vmem:[#allocation10 + $0x1b4] ss:$8 sps:$4 sm:$0xff]   ;;  %7144 = vmatpush1.bf16.msra.mxu1 %v14040_v7 }
0x1ff8   : > { %7145 = vmatprep.subr.bf16.mxu1 %v14045_v9  ;;  %v14057_v7 = vld [vmem:[#allocation10 + $0x1f4] ss:$8 sps:$4 sm:$0xff]   ;;  %v14055_v9 = vld [vmem:[#allocation10 + $0x1f0] ss:$8 sps:$4 sm:$0xff]  }
0x1ffe   : > { %13164 = vmatmul.mubr.bf16.gmra.mrb[0].mxu1 %v15509_v11  ;;  %v14043_v11 = vld [vmem:[#allocation10 + $0x1b0] ss:$8 sps:$4 sm:$0xff]  }
0x1fff   : > { %13167 = vmatprep.mubr.bf16.mxu1 %v15512_v14  ;;  %v14048_v14 = vld [vmem:[#allocation10 + $0x1c4] ss:$8 sps:$4 sm:$0xff]   ;;  %7146 = vmatpush1.bf16.msra.mxu1 %v14043_v11 }
0x2000   : > { %7147 = vmatprep.subr.bf16.mxu1 %v14048_v14  ;;  %v14058_v11 = vld [vmem:[#allocation11 + $0x1c0] sm:$0xff]  }
0x2001   : > { %v14059_v14 = vld [vmem:[#allocation11 + $0x180] sm:$0xff]  }
0x2006   : > { %13168 = vmatmul.mubr.bf16.gmra.mrb[4].mxu1 %v15517_v16  ;;  %v14046_v16 = vld [vmem:[#allocation10 + $0x1c0] ss:$8 sps:$4 sm:$0xff]  }
0x2007   : > { %7171 = vmatprep.mubr.bf16.mxu1 %v14652_v63  ;;  %7148 = vmatpush1.bf16.msra.mxu1 %v14046_v16  ;;  %v14060_v16 = vld [vmem:[#allocation11 + $0x1c8] sm:$0xff]  }
0x2008   : > { %7149 = vmatprep.subr.bf16.mxu1 %v14051_v18  ;;  %v14061_v18 = vld [vmem:[#allocation11 + $0x188] sm:$0xff]  }
0x200b   : > { %7150 = vmatpush1.bf16.msra.mxu1 %v14049_v19  ;;  %v14062_v19 = vld [vmem:[#allocation11 + $0x1d0] sm:$0xff]  }
0x200c   : > { %7151 = vmatprep.subr.bf16.mxu1 %v14054_v20  ;;  %v14063_v20 = vld [vmem:[#allocation11 + $0x190] sm:$0xff]  }
0x200f   : > { %7152 = vmatpush1.bf16.msra.mxu1 %v14052_v21  ;;  %v14064_v21 = vld [vmem:[#allocation11 + $0x1d8] sm:$0xff]  }
0x2010   : > { %7153 = vmatprep.subr.bf16.mxu1 %v14057_v7 }
0x2013   : > { %7154 = vmatpush1.bf16.msra.mxu1 %v14055_v9 }
0x2014   : > { %13195 = vmatprep.subr.bf16.mxu1 %v14653_v0 }
0x20c1   : > { %v13157_v29 = vpop.f32.mrb[248].mxu1 }
0x20c2   : > { %v6858_v30 = vpop.f32.mrb[249].mxu1  ;;  %v7438_v22 = vmax.f32 %v13157_v29, 0.0 }
0x20c3   : > { %v13158_v31 = vpop.f32.mrb[250].mxu1  ;;  %v7436_v26 = vmax.f32 %v6858_v30, 0.0 }
0x20c4   : > { %v6931_v23 = vpack.c.bf16 %v13158_v31, %v13157_v29  ;;  %v7439_v24 = vmax.f32 %v13158_v31, 0.0  ;;  %v6861_v35 = vpop.f32.mrb[251].mxu1  ;;  %v14065_v29 = vld [vmem:[#allocation11 + $0x198] sm:$0xff]   ;;  %v14067_v31 = vld [vmem:[#allocation11 + $0x1a0] sm:$0xff]  }
0x20c5   : > { %v6930_v27 = vpack.c.bf16 %v6861_v35, %v6858_v30  ;;  %v7437_v28 = vmax.f32 %v6861_v35, 0.0  ;;  %v14066_v30 = vld [vmem:[#allocation11 + $0x1e0] sm:$0xff]  }
0x20c6   : > { %v15555_v32 = vpack.c.bf16 %v7439_v24, %v7438_v22  ;;  %v14068_v22 = vld [vmem:[#allocation11 + $0x1e8] sm:$0xff]  }
0x20c7   : > { %v15557_v33 = vpack.c.bf16 %v7437_v28, %v7436_v26  ;;  %13171 = vmatprep.subr.bf16.mxu0 %v6930_v27 }
0x20c8   : > { %13172 = vmatpush3.bf16.msra.mxu0 %v6930_v27 }
0x20c9   : > { %v13161_v34 = vpop.f32.mrb[252].mxu1  ;;  %13173 = vmatprep.subr.bf16.mxu0 %v6931_v23 }
0x20ca   : > { %v6874_v36 = vpop.f32.mrb[253].mxu1  ;;  %v7442_v60 = vmax.f32 %v13161_v34, 0.0 }
0x20cb   : > { %v13162_v37 = vpop.f32.mrb[254].mxu1  ;;  %v7440_v1 = vmax.f32 %v6874_v36, 0.0 }
0x20cc   : > { %v6933_v61 = vpack.c.bf16 %v13162_v37, %v13161_v34  ;;  %v7443_v38 = vmax.f32 %v13162_v37, 0.0  ;;  %v6877_v62 = vpop.f32.mrb[255].mxu1  ;;  %13174 = vmatpush3.bf16.msra.mxu0 %v6931_v23 }
0x20cd   : > { %v6932_v2 = vpack.c.bf16 %v6877_v62, %v6874_v36  ;;  %v7441_v39 = vmax.f32 %v6877_v62, 0.0  ;;  %v14071_v62 = vld [vmem:[#allocation11 + $0x1b0] sm:$0xff]  }
0x20ce   : > { %v15559_v40 = vpack.c.bf16 %v7443_v38, %v7442_v60 }
0x20cf   : > { %v15561_v41 = vpack.c.bf16 %v7441_v39, %v7440_v1  ;;  %13175 = vmatprep.subr.bf16.mxu0 %v6932_v2  ;;  %v14072_v1 = vld [vmem:[#allocation11 + $0x1f8] sm:$0xff]   ;;  %v11164_v39 = vld [vmem:[%s15919_s16 + $0x6] sm:$0x3] }
0x20d0   : > { %13176 = vmatpush3.bf16.msra.mxu0 %v6932_v2  ;;  %v14073_v2 = vld [vmem:[#allocation11 + $0x1b8] sm:$0xff]  }
0x20d1   : > { %v13165_v44 = vpop.f32.mrb[0].mxu1  ;;  %13177 = vmatprep.subr.bf16.mxu0 %v6933_v61 }
0x20d2   : > { %v6890_v45 = vpop.f32.mrb[1].mxu1  ;;  %v7446_v47 = vmax.f32 %v13165_v44, 0.0 }
0x20d3   : > { %v13166_v46 = vpop.f32.mrb[2].mxu1  ;;  %v7444_v42 = vmax.f32 %v6890_v45, 0.0 }
0x20d4   : > { %v6935_v48 = vpack.c.bf16 %v13166_v46, %v13165_v44  ;;  %v7447_v8 = vmax.f32 %v13166_v46, 0.0  ;;  %v6893_v49 = vpop.f32.mrb[3].mxu1  ;;  %13178 = vmatpush3.bf16.msra.mxu0 %v6933_v61 }
0x20d5   : > { %v6934_v43 = vpack.c.bf16 %v6893_v49, %v6890_v45  ;;  %v7445_v50 = vmax.f32 %v6893_v49, 0.0 }
0x20d6   : > { %v15563_v51 = vpack.c.bf16 %v7447_v8, %v7446_v47 }
0x20d7   : > { %v15565_v52 = vpack.c.bf16 %v7445_v50, %v7444_v42  ;;  %13179 = vmatprep.subr.bf16.mxu0 %v6934_v43 }
0x20d8   : > { %13180 = vmatpush3.bf16.msra.mxu0 %v6934_v43 }
0x20d9   : > { %v13169_v53 = vpop.f32.mrb[4].mxu1  ;;  %13181 = vmatprep.subr.bf16.mxu0 %v6935_v48 }
0x20da   : > { %v6906_v58 = vpop.f32.mrb[5].mxu1  ;;  %v7450_v54 = vmax.f32 %v13169_v53, 0.0 }
0x20db   : > { %v13170_v59 = vpop.f32.mrb[6].mxu1  ;;  %v7448_v56 = vmax.f32 %v6906_v58, 0.0 }
0x20dc   : > { %v6937_v55 = vpack.c.bf16 %v13170_v59, %v13169_v53  ;;  %v7451_v3 = vmax.f32 %v13170_v59, 0.0  ;;  %v6909_v4 = vpop.f32.mrb[7].mxu1  ;;  %13182 = vmatpush3.bf16.msra.mxu0 %v6935_v48 }
0x20dd   : > { %v6936_v25 = vpack.c.bf16 %v6909_v4, %v6906_v58  ;;  %v7449_v57 = vmax.f32 %v6909_v4, 0.0 }
0x20de   : > { %v15567_v15 = vpack.c.bf16 %v7451_v3, %v7450_v54 }
0x20df   : > { %v15569_v17 = vpack.c.bf16 %v7449_v57, %v7448_v56  ;;  %13183 = vmatprep.subr.bf16.mxu0 %v6936_v25 }
0x20e0   : > { %13184 = vmatpush3.bf16.msra.mxu0 %v6936_v25 }
0x20e1   : > { %13185 = vmatprep.subr.bf16.mxu0 %v6937_v55 }
0x20e4   : > { %13186 = vmatpush3.bf16.msra.mxu0 %v6937_v55 }
0x20e5   : > { %12027 = vmatprep.subr.bf16.mxu0 %v14058_v11 }
0x20e7   : > { %13188 = vmatmul.mubr.bf16.vlgmr.msra.gmra.mrb[232].mxu0 %v14031_v12 }
0x20e8   : > { %13191 = vmatprep.mubr.bf16.mxu0 %v14032_v5  ;;  %12028 = vmatpush3.bf16.msra.mxu0 %v14059_v14 }
0x20e9   : > { %12029 = vmatprep.subr.bf16.mxu0 %v14060_v16 }
0x20ec   : > { %12030 = vmatpush3.bf16.msra.mxu0 %v14061_v18 }
0x20ed   : > { %12031 = vmatprep.subr.bf16.mxu0 %v14062_v19 }
0x20ef   : > { %13192 = vmatmul.mubr.bf16.gmra.mrb[236].mxu0 %v14033_v6 }
0x20f0   : > { %12032 = vmatpush3.bf16.msra.mxu0 %v14063_v20 }
0x20f1   : > { %12033 = vmatprep.subr.bf16.mxu0 %v14064_v21 }
0x20f4   : > { %12034 = vmatpush3.bf16.msra.mxu0 %v14065_v29 }
0x20f5   : > { %12035 = vmatprep.subr.bf16.mxu0 %v14066_v30 }
0x20f8   : > { %12036 = vmatpush3.bf16.msra.mxu0 %v14067_v31 }
0x20f9   : > { %12037 = vmatprep.subr.bf16.mxu0 %v14068_v22 }
0x21ba   : > { %v13189_v23 = vpop.f32.mrb[232].mxu0 }
0x21bb   : > { %v6996_v24 = vpop.f32.mrb[233].mxu0 }
0x21bc   : > { %v13190_v35 = vpop.f32.mrb[234].mxu0 }
0x21bd   : > { %v7028_v26 = vpack.c.bf16 %v13190_v35, %v13189_v23  ;;  %v6999_v27 = vpop.f32.mrb[235].mxu0 }
0x21be   : > { %v7027_v28 = vpack.c.bf16 %v6999_v27, %v6996_v24 }
0x21c0   : > { %7172 = vmatmul.mubr.bf16.vlgmr.msra.gmra.mrb[8].mxu1 %v7027_v28 }
0x21c1   : > { %13196 = vmatpush3.bf16.msra.mxu1 %v15557_v33  ;;  %7181 = vmatprep.mubr.bf16.mxu1 %v14652_v63  ;;  %v14070_v33 = vld [vmem:[#allocation11 + $0x1f0] sm:$0xff]  }
0x21c2   : > { %13197 = vmatprep.subr.bf16.mxu1 %v14653_v0  ;;  %v13193_v34 = vpop.f32.mrb[236].mxu0 }
0x21c3   : > { %v7012_v36 = vpop.f32.mrb[237].mxu0 }
0x21c4   : > { %v13194_v37 = vpop.f32.mrb[238].mxu0 }
0x21c5   : > { %13198 = vmatpush3.bf16.msra.mxu1 %v15555_v32  ;;  %v7030_v60 = vpack.c.bf16 %v13194_v37, %v13193_v34  ;;  %v7015_v61 = vpop.f32.mrb[239].mxu0  ;;  %v14069_v32 = vld [vmem:[#allocation11 + $0x1a8] sm:$0xff]  }
0x21c6   : > { %13199 = vmatprep.subr.bf16.mxu1 %v14653_v0  ;;  %v7029_v38 = vpack.c.bf16 %v7015_v61, %v7012_v36  ;;  %12038 = vmatpush3.bf16.msra.mxu0 %v14069_v32 }
0x21c7   : > { %12039 = vmatprep.subr.bf16.mxu0 %v14070_v33 }
0x21c8   : > { %7182 = vmatmul.mubr.bf16.gmra.mrb[12].mxu1 %v7028_v26 }
0x21c9   : > { %13200 = vmatpush3.bf16.msra.mxu1 %v15561_v41  ;;  %7191 = vmatprep.mubr.bf16.mxu1 %v14652_v63  ;;  %v7056_v41 = vrot.slane %v11164_v39, %v15270_v13 }
0x21ca   : > { %13201 = vmatprep.subr.bf16.mxu1 %v14653_v0  ;;  %12040 = vmatpush3.bf16.msra.mxu0 %v14071_v62 }
0x21cb   : > { %12041 = vmatprep.subr.bf16.mxu0 %v14072_v1 }
0x21cd   : > { %13202 = vmatpush3.bf16.msra.mxu1 %v15559_v40  ;;  %v7052_v40 = vrot.slane %v11164_v39, %v15265_v10  ;;  %v14076_v39 = vld [vmem:[#allocation14] ss:$8 sps:$4 sm:$0xff]  }
0x21ce   : > { %13203 = vmatprep.subr.bf16.mxu1 %v14653_v0  ;;  %12042 = vmatpush3.bf16.msra.mxu0 %v14073_v2  ;;  %v14075_v2 = vld [vmem:[%s15088_s25 + $0x10] sm:$0xff]  }
0x21cf   : > { %13215 = vmatprep.subr.bf16.mxu0 %v14653_v0 }
0x21d0   : > { %7192 = vmatmul.mubr.bf16.gmra.mrb[16].mxu1 %v7029_v38 }
0x21d1   : > { %13204 = vmatpush3.bf16.msra.mxu1 %v15565_v52  ;;  %7201 = vmatprep.mubr.bf16.mxu1 %v14652_v63 }
0x21d2   : > { %13205 = vmatprep.subr.bf16.mxu1 %v14653_v0 }
0x21d5   : > { %13206 = vmatpush3.bf16.msra.mxu1 %v15563_v51 }
0x21d6   : > { %13207 = vmatprep.subr.bf16.mxu1 %v14653_v0 }
0x21d8   : > { %7202 = vmatmul.mubr.bf16.gmra.mrb[20].mxu1 %v7030_v60 }
0x21d9   : > { %13208 = vmatpush3.bf16.msra.mxu1 %v15569_v17  ;;  %13211 = vmatprep.mubr.msk.bf16.mxu1 %vm14654_vm1, %v14653_v0 }
0x21da   : > { %13209 = vmatprep.subr.bf16.mxu1 %v14653_v0 }
0x21dd   : > { %13210 = vmatpush3.bf16.msra.mxu1 %v15567_v15 }
0x21e0   : > { %13212 = vmatmul.mubr.bf16.vlgmr.msra.gmra.mrb[24].mxu1 %v14075_v2  ;;  %v14074_v2 = vld [vmem:[%s15095_s8 + $0x10] sm:$0xff]  }
0x21e1   : > { %7720 = vmatprep.mubr.bf16.mxu1 %v14652_v63 }
0x2293   : > { %v7173_v44 = vpop.f32.mrb[8].mxu1 }
0x2294   : > { %v7174_v45 = vadd.f32 %v7173_v44, %v7052_v40  ;;  %v7175_v46 = vpop.f32.mrb[9].mxu1  ;;  %v14078_v44 = vld [vmem:[#allocation14 + $0x4] ss:$8 sps:$4 sm:$0xff]  }
0x2295   : > { %v7176_v47 = vadd.f32 %v7175_v46, %v7056_v41  ;;  %v7177_v48 = vpop.f32.mrb[10].mxu1  ;;  %7688 = vmatprep.subr.bf16.mxu1 %v14078_v44  ;;  %v14082_v46 = vld [vmem:[#allocation14 + $0x20] ss:$8 sps:$4 sm:$0xff]   ;;  %v14097_v44 = vld [vmem:[#allocation14 + $0x70] ss:$8 sps:$4 sm:$0xff]  }
0x2296   : > { %v7178_v8 = vadd.f32 %v7177_v48, %v7052_v40  ;;  %v7179_v49 = vpop.f32.mrb[11].mxu1  ;;  %v7212_v43 = vmax.f32 %v7174_v45, 0.0  ;;  %v14081_v45 = vld [vmem:[#allocation14 + $0x14] ss:$8 sps:$4 sm:$0xff]   ;;  %7689 = vmatpush1.bf16.msra.mxu1 %v14076_v39  ;;  %v14085_v48 = vld [vmem:[#allocation14 + $0x30] ss:$8 sps:$4 sm:$0xff]  }
0x2297   : > { %v7180_v42 = vadd.f32 %v7179_v49, %v7056_v41  ;;  %v7213_v51 = vmax.f32 %v7176_v47, 0.0  ;;  %7690 = vmatprep.subr.bf16.mxu1 %v14081_v45  ;;  %v14087_v47 = vld [vmem:[#allocation14 + $0x34] ss:$8 sps:$4 sm:$0xff]   ;;  %v14088_v49 = vld [vmem:[#allocation14 + $0x40] ss:$8 sps:$4 sm:$0xff]  }
0x2298   : > { %v7214_v50 = vmax.f32 %v7178_v8, 0.0  ;;  %v14090_v8 = vld [vmem:[#allocation14 + $0x44] ss:$8 sps:$4 sm:$0xff]   ;;  %v14099_v39 = vld [vmem:[#allocation14 + $0x74] ss:$8 sps:$4 sm:$0xff]  }
0x2299   : > { %v7215_v52 = vmax.f32 %v7180_v42, 0.0  ;;  %v14093_v42 = vld [vmem:[#allocation14 + $0x54] ss:$8 sps:$4 sm:$0xff]   ;;  %v14102_v45 = vld [vmem:[#allocation13 + $0x4] ss:$8 sps:$4 sm:$0xff]  }
0x229a   : > { %v7228_v53 = vpack.c.bf16 %v7214_v50, %v7212_v43  ;;  %v14091_v43 = vld [vmem:[#allocation14 + $0x50] ss:$8 sps:$4 sm:$0xff]   ;;  %v14096_v50 = vld [vmem:[#allocation14 + $0x64] ss:$8 sps:$4 sm:$0xff]  }
0x229b   : > { %v7229_v58 = vpack.c.bf16 %v7215_v52, %v7213_v51  ;;  %v7183_v59 = vpop.f32.mrb[12].mxu1  ;;  %v14094_v51 = vld [vmem:[#allocation14 + $0x60] ss:$8 sps:$4 sm:$0xff]  }
0x229c   : > { %v7184_v54 = vadd.f32 %v7183_v59, %v7052_v40  ;;  %v7185_v55 = vpop.f32.mrb[13].mxu1 }
0x229d   : > { %v7186_v3 = vadd.f32 %v7185_v55, %v7056_v41  ;;  %v7187_v4 = vpop.f32.mrb[14].mxu1  ;;  %7403 = vmatprep.mubr.bf16.mxu0 %v7229_v58 }
0x229e   : > { %v7188_v56 = vadd.f32 %v7187_v4, %v7052_v40  ;;  %v7189_v25 = vpop.f32.mrb[15].mxu1  ;;  %7404 = vmatmul.mubr.bf16.vlgmr.msra.gmra.mrb[240].mxu0 %v7228_v53  ;;  %v7216_v15 = vmax.f32 %v7184_v54, 0.0  ;;  %v11182_v53 = vld [vmem:[%s15920_s18 + $0x3] ss:$0 sm:$0xff] }
0x229f   : > { %v7190_v57 = vadd.f32 %v7189_v25, %v7056_v41  ;;  %v7217_v12 = vmax.f32 %v7186_v3, 0.0 }
0x22a0   : > { %v7218_v17 = vmax.f32 %v7188_v56, 0.0 }
0x22a1   : > { %v7219_v5 = vmax.f32 %v7190_v57, 0.0 }
0x22a2   : > { %v7230_v6 = vpack.c.bf16 %v7218_v17, %v7216_v15 }
0x22a3   : > { %v7231_v7 = vpack.c.bf16 %v7219_v5, %v7217_v12  ;;  %v7193_v9 = vpop.f32.mrb[16].mxu1 }
0x22a4   : > { %v7194_v11 = vadd.f32 %v7193_v9, %v7052_v40  ;;  %v7195_v14 = vpop.f32.mrb[17].mxu1 }
0x22a5   : > { %v7196_v16 = vadd.f32 %v7195_v14, %v7056_v41  ;;  %v7197_v18 = vpop.f32.mrb[18].mxu1  ;;  %7411 = vmatprep.mubr.bf16.mxu0 %v7231_v7 }
0x22a6   : > { %v7198_v19 = vadd.f32 %v7197_v18, %v7052_v40  ;;  %v7199_v20 = vpop.f32.mrb[19].mxu1  ;;  %7412 = vmatmul.mubr.bf16.gmra.mrb[244].mxu0 %v7230_v6  ;;  %v7220_v29 = vmax.f32 %v7194_v11, 0.0 }
0x22a7   : > { %v7200_v21 = vadd.f32 %v7199_v20, %v7056_v41  ;;  %v7221_v31 = vmax.f32 %v7196_v16, 0.0 }
0x22a8   : > { %v7222_v30 = vmax.f32 %v7198_v19, 0.0 }
0x22a9   : > { %v7223_v22 = vmax.f32 %v7200_v21, 0.0 }
0x22aa   : > { %v7232_v23 = vpack.c.bf16 %v7222_v30, %v7220_v29 }
0x22ab   : > { %v7233_v24 = vpack.c.bf16 %v7223_v22, %v7221_v31  ;;  %v7203_v35 = vpop.f32.mrb[20].mxu1 }
0x22ac   : > { %v7204_v26 = vadd.f32 %v7203_v35, %v7052_v40  ;;  %v7205_v27 = vpop.f32.mrb[21].mxu1 }
0x22ad   : > { %v7206_v28 = vadd.f32 %v7205_v27, %v7056_v41  ;;  %v7207_v34 = vpop.f32.mrb[22].mxu1  ;;  %7419 = vmatprep.mubr.bf16.mxu0 %v7233_v24 }
0x22ae   : > { %v7208_v36 = vadd.f32 %v7207_v34, %v7052_v40  ;;  %v7209_v37 = vpop.f32.mrb[23].mxu1  ;;  %7420 = vmatmul.mubr.bf16.gmra.mrb[248].mxu0 %v7232_v23  ;;  %v7224_v61 = vmax.f32 %v7204_v26, 0.0  ;;  %v14079_v40 = vld [vmem:[#allocation14 + $0x10] ss:$8 sps:$4 sm:$0xff]  }
0x22af   : > { %v7210_v60 = vadd.f32 %v7209_v37, %v7056_v41  ;;  %v7225_v32 = vmax.f32 %v7206_v28, 0.0  ;;  %v14084_v41 = vld [vmem:[#allocation14 + $0x24] ss:$8 sps:$4 sm:$0xff]   ;;  %7691 = vmatpush1.bf16.msra.mxu1 %v14079_v40 }
0x22b0   : > { %v7226_v38 = vmax.f32 %v7208_v36, 0.0  ;;  %7692 = vmatprep.subr.bf16.mxu1 %v14084_v41 }
0x22b1   : > { %v7227_v33 = vmax.f32 %v7210_v60, 0.0 }
0x22b2   : > { %v7234_v62 = vpack.c.bf16 %v7226_v38, %v7224_v61 }
0x22b3   : > { %v7235_v1 = vpack.c.bf16 %v7227_v33, %v7225_v32  ;;  %7693 = vmatpush1.bf16.msra.mxu1 %v14082_v46  ;;  %v15613_v40 = vpop.f32.mrb[24].mxu1 }
0x22b4   : > { %7694 = vmatprep.subr.bf16.mxu1 %v14087_v47  ;;  %v13213_v41 = vpop.f32.mrb[25].mxu1 }
0x22b5   : > { %7427 = vmatprep.mubr.bf16.mxu0 %v7235_v1  ;;  %v15615_v46 = vpop.f32.mrb[26].mxu1  ;;  %v14142_v41 = vld [vmem:[#allocation7 + $0x10] sm:$0xff]  }
0x22b6   : > { %7428 = vmatmul.mubr.bf16.gmra.mrb[252].mxu0 %v7234_v62  ;;  %v7574_v47 = vpack.c.bf16 %v15615_v46, %v15613_v40  ;;  %v14141_v40 = vld [vmem:[#allocation7 + $0x8] sm:$0xff]   ;;  %v14143_v46 = vld [vmem:[#allocation7 + $0x18] sm:$0xff]  }
0x22b7   : > { %13223 = vmatprep.mubr.msk.bf16.mxu0 %vm14654_vm1, %v14653_v0  ;;  %7695 = vmatpush1.bf16.msra.mxu1 %v14085_v48  ;;  %v13214_v48 = vpop.f32.mrb[27].mxu1 }
0x22b8   : > { %7696 = vmatprep.subr.bf16.mxu1 %v14090_v8  ;;  %v14124_v8 = vld [vmem:[#allocation16 + $0x40] sm:$0xff]   ;;  %v14146_v48 = vld [vmem:[%s15124_s7 + $0xd0] sm:$0xff]  }
0x22bb   : > { %7697 = vmatpush1.bf16.msra.mxu1 %v14088_v49  ;;  %v14125_v49 = vld [vmem:[#allocation16] sm:$0xff]  }
0x22bc   : > { %7698 = vmatprep.subr.bf16.mxu1 %v14093_v42  ;;  %v14126_v42 = vld [vmem:[#allocation16 + $0x48] sm:$0xff]  }
0x22bf   : > { %7699 = vmatpush1.bf16.msra.mxu1 %v14091_v43  ;;  %v14127_v43 = vld [vmem:[#allocation16 + $0x8] sm:$0xff]  }
0x22c0   : > { %7700 = vmatprep.subr.bf16.mxu1 %v14096_v50  ;;  %v14128_v50 = vld [vmem:[#allocation16 + $0x50] sm:$0xff]  }
0x22c3   : > { %7701 = vmatpush1.bf16.msra.mxu1 %v14094_v51  ;;  %v14129_v51 = vld [vmem:[#allocation16 + $0x10] sm:$0xff]  }
0x22c4   : > { %7702 = vmatprep.subr.bf16.mxu1 %v14099_v39 }
0x22c7   : > { %7703 = vmatpush1.bf16.msra.mxu1 %v14097_v44 }
0x22c8   : > { %7811 = vmatprep.subr.bf16.mxu1 %v14102_v45  ;;  %v14144_v45 = vld [vmem:[%s15124_s7 + $0xc0] sm:$0xff]  }
0x2371   : > { %v12043_v52 = vpop.f32.mrb[240].mxu0 }
0x2372   : > { %v12044_v58 = vpop.f32.mrb[241].mxu0 }
0x2373   : > { %v12045_v59 = vadd.f32 %v12044_v58, %v12043_v52  ;;  %v12046_v54 = vpop.f32.mrb[242].mxu0  ;;  %v14130_v52 = vld [vmem:[#allocation16 + $0x58] sm:$0xff]   ;;  %v14132_v58 = vld [vmem:[#allocation16 + $0x60] sm:$0xff]  }
0x2374   : > { %v12047_v55 = vpop.f32.mrb[243].mxu0 }
0x2375   : > { %v7406_v3 = vadd.f32 %v12045_v59, %v11182_v53  ;;  %v12048_v4 = vadd.f32 %v12047_v55, %v12046_v54  ;;  %v14133_v59 = vld [vmem:[#allocation16 + $0x20] sm:$0xff]   ;;  %v14134_v54 = vld [vmem:[#allocation16 + $0x68] sm:$0xff]  }
0x2376   : > { %v14135_v55 = vld [vmem:[#allocation16 + $0x28] sm:$0xff]  }
0x2377   : > { %v7409_v56 = vadd.f32 %v12048_v4, %v11182_v53  ;;  %v7460_v25 = vmax.f32 %v7406_v3, 0.0 }
0x2379   : > { %v7461_v57 = vmax.f32 %v7409_v56, 0.0  ;;  %v12049_v15 = vpop.f32.mrb[244].mxu0 }
0x237a   : > { %v12050_v17 = vpop.f32.mrb[245].mxu0 }
0x237b   : > { %v7468_v12 = vpack.c.bf16 %v7461_v57, %v7460_v25  ;;  %v12051_v5 = vadd.f32 %v12050_v17, %v12049_v15  ;;  %v12052_v6 = vpop.f32.mrb[246].mxu0  ;;  %v14100_v25 = vld [vmem:[#allocation13] ss:$8 sps:$4 sm:$0xff]   ;;  %v14105_v17 = vld [vmem:[#allocation13 + $0x14] ss:$8 sps:$4 sm:$0xff]  }
0x237c   : > { %v12053_v7 = vpop.f32.mrb[247].mxu0 }
0x237d   : > { %v7414_v9 = vadd.f32 %v12051_v5, %v11182_v53  ;;  %v12054_v11 = vadd.f32 %v12053_v7, %v12052_v6  ;;  %13216 = vmatpush3.bf16.msra.mxu0 %v7468_v12  ;;  %v14103_v12 = vld [vmem:[#allocation13 + $0x10] ss:$8 sps:$4 sm:$0xff]   ;;  %v14108_v5 = vld [vmem:[#allocation13 + $0x24] ss:$8 sps:$4 sm:$0xff]   ;;  %v14106_v6 = vld [vmem:[#allocation13 + $0x20] ss:$8 sps:$4 sm:$0xff]  }
0x237e   : > { %13217 = vmatprep.subr.bf16.mxu0 %v14653_v0  ;;  %v14111_v7 = vld [vmem:[#allocation13 + $0x34] ss:$8 sps:$4 sm:$0xff]  }
0x237f   : > { %v7417_v14 = vadd.f32 %v12054_v11, %v11182_v53  ;;  %v7462_v16 = vmax.f32 %v7414_v9, 0.0  ;;  %v14109_v9 = vld [vmem:[#allocation13 + $0x30] ss:$8 sps:$4 sm:$0xff]   ;;  %v14114_v11 = vld [vmem:[#allocation13 + $0x44] ss:$8 sps:$4 sm:$0xff]  }
0x2381   : > { %v7463_v18 = vmax.f32 %v7417_v14, 0.0  ;;  %v12055_v19 = vpop.f32.mrb[248].mxu0  ;;  %v14112_v14 = vld [vmem:[#allocation13 + $0x40] ss:$8 sps:$4 sm:$0xff]  }
0x2382   : > { %v12056_v20 = vpop.f32.mrb[249].mxu0 }
0x2383   : > { %v7469_v21 = vpack.c.bf16 %v7463_v18, %v7462_v16  ;;  %v12057_v29 = vadd.f32 %v12056_v20, %v12055_v19  ;;  %v12058_v30 = vpop.f32.mrb[250].mxu0  ;;  %v14117_v16 = vld [vmem:[#allocation13 + $0x54] ss:$8 sps:$4 sm:$0xff]   ;;  %v14115_v18 = vld [vmem:[#allocation13 + $0x50] ss:$8 sps:$4 sm:$0xff]  }
0x2384   : > { %v12059_v31 = vpop.f32.mrb[251].mxu0  ;;  %v14120_v19 = vld [vmem:[#allocation13 + $0x64] ss:$8 sps:$4 sm:$0xff]   ;;  %v14118_v20 = vld [vmem:[#allocation13 + $0x60] ss:$8 sps:$4 sm:$0xff]  }
0x2385   : > { %v7422_v22 = vadd.f32 %v12057_v29, %v11182_v53  ;;  %v12060_v23 = vadd.f32 %v12059_v31, %v12058_v30  ;;  %13218 = vmatpush3.bf16.msra.mxu0 %v7469_v21  ;;  %v14123_v21 = vld [vmem:[#allocation13 + $0x74] ss:$8 sps:$4 sm:$0xff]   ;;  %v14121_v29 = vld [vmem:[#allocation13 + $0x70] ss:$8 sps:$4 sm:$0xff]  }
0x2386   : > { %13219 = vmatprep.subr.bf16.mxu0 %v14653_v0  ;;  %v14136_v30 = vld [vmem:[#allocation16 + $0x70] sm:$0xff]  }
0x2387   : > { %v7425_v24 = vadd.f32 %v12060_v23, %v11182_v53  ;;  %v7464_v35 = vmax.f32 %v7422_v22, 0.0  ;;  %v14137_v31 = vld [vmem:[#allocation16 + $0x30] sm:$0xff]   ;;  %v14138_v22 = vld [vmem:[#allocation16 + $0x78] sm:$0xff]  }
0x2388   : > { %v14139_v23 = vld [vmem:[#allocation16 + $0x38] sm:$0xff]  }
0x2389   : > { %v7465_v26 = vmax.f32 %v7425_v24, 0.0  ;;  %v12061_v27 = vpop.f32.mrb[252].mxu0  ;;  %v14140_v24 = vld [vmem:[#allocation7] sm:$0xff]  }
0x238a   : > { %v12062_v28 = vpop.f32.mrb[253].mxu0 }
0x238b   : > { %v7470_v34 = vpack.c.bf16 %v7465_v26, %v7464_v35  ;;  %v12063_v36 = vadd.f32 %v12062_v28, %v12061_v27  ;;  %v12064_v37 = vpop.f32.mrb[254].mxu0  ;;  %v7854_v35 = vld [vmem:[%s15921_s24] sm:$0x3] }
0x238c   : > { %v12065_v60 = vpop.f32.mrb[255].mxu0  ;;  %v7859_v26 = vrot.slane %v7854_v35, %v15265_v10  ;;  %v7863_v27 = vrot.slane %v7854_v35, %v15270_v13 }
0x238d   : > { %v7430_v61 = vadd.f32 %v12063_v36, %v11182_v53  ;;  %v12066_v38 = vadd.f32 %v12065_v60, %v12064_v37  ;;  %13220 = vmatpush3.bf16.msra.mxu0 %v7470_v34 }
0x238e   : > { %13221 = vmatprep.subr.bf16.mxu0 %v14653_v0 }
0x238f   : > { %v7433_v32 = vadd.f32 %v12066_v38, %v11182_v53  ;;  %v7466_v33 = vmax.f32 %v7430_v61, 0.0  ;;  %v14131_v53 = vld [vmem:[#allocation16 + $0x18] sm:$0xff]  }
0x2391   : > { %v7467_v62 = vmax.f32 %v7433_v32, 0.0 }
0x2393   : > { %v7471_v1 = vpack.c.bf16 %v7467_v62, %v7466_v33 }
0x2395   : > { %13222 = vmatpush3.bf16.msra.mxu0 %v7471_v1 }
0x2396   : > { %12081 = vmatprep.subr.bf16.mxu0 %v14124_v8  ;;  %v14147_v8 = vld [vmem:[%s15124_s7 + $0xd8] sm:$0xff]  }
0x2398   : > { %13224 = vmatmul.mubr.msk.bf16.vlgmr.msra.gmra.mrb[0].mxu0 %vm911_vm0, %v14074_v2 }
0x2399   : > { %12082 = vmatpush3.bf16.msra.mxu0 %v14125_v49  ;;  %v14148_v49 = vld [vmem:[%s15124_s7 + $0xe0] sm:$0xff]  }
0x239a   : > { %12083 = vmatprep.subr.bf16.mxu0 %v14126_v42  ;;  %v14149_v42 = vld [vmem:[%s15124_s7 + $0xe8] sm:$0xff]  }
0x239d   : > { %12084 = vmatpush3.bf16.msra.mxu0 %v14127_v43  ;;  %v14150_v43 = vld [vmem:[%s15124_s7 + $0xf0] sm:$0xff]  }
0x239e   : > { %12085 = vmatprep.subr.bf16.mxu0 %v14128_v50  ;;  %v14151_v50 = vld [vmem:[%s15124_s7 + $0xf8] sm:$0xff]  }
0x23a1   : > { %12086 = vmatpush3.bf16.msra.mxu0 %v14129_v51  ;;  %v15642_v51 = vld [vmem:[%s15131_s19 + $0xc0] sm:$0xff]  }
0x23a2   : > { %12087 = vmatprep.subr.bf16.mxu0 %v14130_v52  ;;  %v14160_v52 = vld [vmem:[#allocation8] sm:$0xff]  }
0x23a5   : > { %12088 = vmatpush3.bf16.msra.mxu0 %v14131_v53  ;;  %v14161_v53 = vld [vmem:[#allocation8 + $0x8] sm:$0xff]  }
0x23a6   : > { %12089 = vmatprep.subr.bf16.mxu0 %v14132_v58  ;;  %v14162_v58 = vld [vmem:[#allocation8 + $0x10] sm:$0xff]  }
0x23a9   : > { %12090 = vmatpush3.bf16.msra.mxu0 %v14133_v59  ;;  %v14163_v59 = vld [vmem:[#allocation8 + $0x18] sm:$0xff]  }
0x23aa   : > { %12091 = vmatprep.subr.bf16.mxu0 %v14134_v54  ;;  %v14164_v54 = vld [vmem:[#allocation8 + $0x20] sm:$0xff]  }
0x23ad   : > { %12092 = vmatpush3.bf16.msra.mxu0 %v14135_v55  ;;  %v14165_v55 = vld [vmem:[#allocation8 + $0x28] sm:$0xff]  }
0x23ae   : > { %12093 = vmatprep.subr.bf16.mxu0 %v14136_v30 }
0x23b1   : > { %12094 = vmatpush3.bf16.msra.mxu0 %v14137_v31 }
0x23b2   : > { %12095 = vmatprep.subr.bf16.mxu0 %v14138_v22 }
0x23b5   : > { %12096 = vmatpush3.bf16.msra.mxu0 %v14139_v23 }
0x23b6   : > { %13227 = vmatprep.subr.bf16.mxu0 %v14140_v24 }
0x246b   : > { %v7567_v3 = vpop.f32.mrb[0].mxu0 }
0x246c   : > { %v13225_v4 = vpop.f32.mrb[1].mxu0 }
0x246d   : > { %v7570_v56 = vpop.f32.mrb[2].mxu0  ;;  %v11238_v4 = vld [vmem:[%s15922_s26] ss:$0 sm:$0xff] }
0x246e   : > { %v7591_v57 = vpack.c.bf16 %v7570_v56, %v7567_v3  ;;  %v13226_v15 = vpop.f32.mrb[3].mxu0 }
0x2470   : > { %7721 = vmatmul.mubr.bf16.vlgmr.msra.gmra.mrb[28].mxu1 %v7591_v57 }
0x2471   : > { %7812 = vmatpush1.bf16.msra.mxu1 %v14100_v25  ;;  %7843 = vmatprep.mubr.bf16.mxu1 %v14652_v63 }
0x2472   : > { %7813 = vmatprep.subr.bf16.mxu1 %v14105_v17 }
0x2475   : > { %7814 = vmatpush1.bf16.msra.mxu1 %v14103_v12 }
0x2476   : > { %7815 = vmatprep.subr.bf16.mxu1 %v14108_v5 }
0x2479   : > { %7816 = vmatpush1.bf16.msra.mxu1 %v14106_v6 }
0x247a   : > { %7817 = vmatprep.subr.bf16.mxu1 %v14111_v7  ;;  %v11273_v7 = vld [vmem:[%s15916_s10] ss:$0 sm:$0xff] }
0x247d   : > { %7818 = vmatpush1.bf16.msra.mxu1 %v14109_v9 }
0x247e   : > { %7819 = vmatprep.subr.bf16.mxu1 %v14114_v11 }
0x2481   : > { %7820 = vmatpush1.bf16.msra.mxu1 %v14112_v14 }
0x2482   : > { %7821 = vmatprep.subr.bf16.mxu1 %v14117_v16 }
0x2485   : > { %7822 = vmatpush1.bf16.msra.mxu1 %v14115_v18 }
0x2486   : > { %7823 = vmatprep.subr.bf16.mxu1 %v14120_v19 }
0x2489   : > { %7824 = vmatpush1.bf16.msra.mxu1 %v14118_v20 }
0x248a   : > { %7825 = vmatprep.subr.bf16.mxu1 %v14123_v21 }
0x248d   : > { %7826 = vmatpush1.bf16.msra.mxu1 %v14121_v29 }
0x248e   : > { %13283 = vmatprep.subr.bf16.mxu1 %v14160_v52 }
0x2490   : > { %7844 = vmatmul.mubr.bf16.vlgmr.msra.gmra.mrb[28].mxu1 %v7574_v47  ;;  %v14145_v47 = vld [vmem:[%s15124_s7 + $0xc8] sm:$0xff]  }
0x2491   : > { %13284 = vmatpush3.bf16.msra.mxu1 %v14160_v52  ;;  %v15665_v52 = vld [vmem:[%s15131_s19 + $0xe0] sm:$0xff]  }
0x2492   : > { %13285 = vmatprep.subr.bf16.mxu1 %v14161_v53 }
0x2495   : > { %13286 = vmatpush3.bf16.msra.mxu1 %v14161_v53  ;;  %v15670_v53 = vld [vmem:[%s15131_s19 + $0xe8] sm:$0xff]  }
0x2496   : > { %13287 = vmatprep.subr.bf16.mxu1 %v14162_v58 }
0x2499   : > { %13288 = vmatpush3.bf16.msra.mxu1 %v14162_v58  ;;  %v15673_v58 = vld [vmem:[%s15131_s19 + $0xf0] sm:$0xff]  }
0x249a   : > { %13289 = vmatprep.subr.bf16.mxu1 %v14163_v59 }
0x249d   : > { %13290 = vmatpush3.bf16.msra.mxu1 %v14163_v59  ;;  %v15678_v59 = vld [vmem:[%s15131_s19 + $0xf8] sm:$0xff]  }
0x249e   : > { %13291 = vmatprep.subr.bf16.mxu1 %v14164_v54 }
0x24a1   : > { %13292 = vmatpush3.bf16.msra.mxu1 %v14164_v54  ;;  %v14166_v54 = vld [vmem:[#allocation8 + $0x30] sm:$0xff]  }
0x24a2   : > { %13293 = vmatprep.subr.bf16.mxu1 %v14165_v55 }
0x24a5   : > { %13294 = vmatpush3.bf16.msra.mxu1 %v14165_v55  ;;  %v14167_v55 = vld [vmem:[#allocation8 + $0x38] sm:$0xff]  }
0x24a6   : > { %13295 = vmatprep.subr.bf16.mxu1 %v14166_v54 }
0x24a9   : > { %13296 = vmatpush3.bf16.msra.mxu1 %v14166_v54 }
0x24aa   : > { %13297 = vmatprep.subr.bf16.mxu1 %v14167_v55 }
0x24ad   : > { %13298 = vmatpush3.bf16.msra.mxu1 %v14167_v55 }
0x2563   : > { %v7845_v28 = vpop.f32.mrb[28].mxu1 }
0x2564   : > { %v7866_v34 = vadd.f32 %v7859_v26, %v7845_v28  ;;  %v7847_v36 = vpop.f32.mrb[29].mxu1 }
0x2565   : > { %v7867_v37 = vadd.f32 %v7863_v27, %v7847_v36  ;;  %v7849_v60 = vpop.f32.mrb[30].mxu1 }
0x2566   : > { %v7868_v61 = vadd.f32 %v7859_v26, %v7849_v60  ;;  %v7851_v38 = vpop.f32.mrb[31].mxu1  ;;  %v7870_v33 = vmax.f32 %v7866_v34, 0.0 }
0x2567   : > { %v7869_v32 = vadd.f32 %v7863_v27, %v7851_v38  ;;  %v7871_v1 = vmax.f32 %v7867_v37, 0.0 }
0x2568   : > { %v7872_v62 = vmax.f32 %v7868_v61, 0.0 }
0x2569   : > { %v7873_v2 = vmax.f32 %v7869_v32, 0.0 }
0x256a   : > { %v7874_v39 = vpack.c.bf16 %v7872_v62, %v7870_v33 }
0x256b   : > { %v7875_v44 = vpack.c.bf16 %v7873_v2, %v7871_v1 }
0x256d   : > { %8043 = vmatprep.mubr.bf16.mxu0 %v7875_v44 }
0x256e   : > { %8044 = vmatmul.mubr.bf16.vlgmr.msra.gmra.mrb[4].mxu0 %v7874_v39 }
0x256f   : > { %13228 = vmatpush3.bf16.msra.mxu0 %v14140_v24  ;;  %13235 = vmatprep.mubr.msk.bf16.mxu0 %vm911_vm0, %v14144_v45 }
0x2570   : > { %13229 = vmatprep.subr.bf16.mxu0 %v14141_v40 }
0x2573   : > { %13230 = vmatpush3.bf16.msra.mxu0 %v14141_v40 }
0x2574   : > { %13231 = vmatprep.subr.bf16.mxu0 %v14142_v41 }
0x2577   : > { %13232 = vmatpush3.bf16.msra.mxu0 %v14142_v41 }
0x2578   : > { %13233 = vmatprep.subr.bf16.mxu0 %v14143_v46 }
0x257b   : > { %13234 = vmatpush3.bf16.msra.mxu0 %v14143_v46 }
0x257e   : > { %13236 = vmatmul.mubr.msk.bf16.vlgmr.msra.gmra.mrb[8].mxu0 %vm911_vm0, %v14145_v47 }
0x257f   : > { %13239 = vmatprep.mubr.msk.bf16.mxu0 %vm911_vm0, %v14146_v48 }
0x2586   : > { %13240 = vmatmul.mubr.msk.bf16.gmra.mrb[12].mxu0 %vm911_vm0, %v14147_v8 }
0x2587   : > { %13243 = vmatprep.mubr.msk.bf16.mxu0 %vm911_vm0, %v14148_v49 }
0x258e   : > { %13244 = vmatmul.mubr.msk.bf16.gmra.mrb[16].mxu0 %vm911_vm0, %v14149_v42  ;;  %v15654_v42 = vld [vmem:[%s15131_s19 + $0xc8] sm:$0xff]  }
0x258f   : > { %13247 = vmatprep.mubr.msk.bf16.mxu0 %vm911_vm0, %v14150_v43  ;;  %v15657_v43 = vld [vmem:[%s15131_s19 + $0xd0] sm:$0xff]  }
0x2596   : > { %13248 = vmatmul.mubr.msk.bf16.gmra.mrb[20].mxu0 %vm911_vm0, %v14151_v50  ;;  %v15662_v50 = vld [vmem:[%s15131_s19 + $0xd8] sm:$0xff]  }
0x2597   : > { %13267 = vmatprep.mubr.bf16.mxu0 %v15642_v51 }
0x2641   : > { %v12097_v3 = vpop.f32.mrb[4].mxu0 }
0x2642   : > { %v12098_v56 = vpop.f32.mrb[5].mxu0 }
0x2643   : > { %v12099_v25 = vadd.f32 %v12098_v56, %v12097_v3  ;;  %v12100_v57 = vpop.f32.mrb[6].mxu0 }
0x2644   : > { %v12101_v15 = vpop.f32.mrb[7].mxu0 }
0x2645   : > { %v8046_v17 = vadd.f32 %v12099_v25, %v11238_v4  ;;  %v12102_v12 = vadd.f32 %v12101_v15, %v12100_v57 }
0x2647   : > { %11255 = vst [vmem:[%s15324_s2 + $0x20] sm:$0xff] %v8046_v17  ;;  %v8049_v5 = vadd.f32 %v12102_v12, %v11238_v4 }
0x2649   : > { %11256 = vst [vmem:[%s15324_s2 + $0x28] sm:$0xff] %v8049_v5 }
0x2651   : > { %v13237_v6 = vpop.f32.mrb[8].mxu0 }
0x2652   : > { %v8209_v9 = vpop.f32.mrb[9].mxu0  ;;  %v8218_v14 = vadd.f32 %v13237_v6, %v11273_v7 }
0x2653   : > { %v13238_v11 = vpop.f32.mrb[10].mxu0  ;;  %v8210_v19 = vadd.f32 %v11273_v7, %v8209_v9 }
0x2654   : > { %v8221_v16 = vadd.f32 %v13238_v11, %v11273_v7  ;;  %v8212_v18 = vpop.f32.mrb[11].mxu0 }
0x2655   : > { %v8213_v20 = vadd.f32 %v11273_v7, %v8212_v18 }
0x2656   : > { %v8290_v21 = vpack.c.bf16 %v8221_v16, %v8218_v14 }
0x2657   : > { %v8289_v29 = vpack.c.bf16 %v8213_v20, %v8210_v19 }
0x2659   : > { %v13241_v30 = vpop.f32.mrb[12].mxu0  ;;  %13251 = vmatprep.subr.bf16.mxu0 %v8289_v29 }
0x265a   : > { %v8225_v31 = vpop.f32.mrb[13].mxu0  ;;  %13252 = vmatpush3.bf16.msra.mxu0 %v8289_v29  ;;  %v8234_v23 = vadd.f32 %v13241_v30, %v11273_v7 }
0x265b   : > { %v13242_v22 = vpop.f32.mrb[14].mxu0  ;;  %13253 = vmatprep.subr.bf16.mxu0 %v8290_v21  ;;  %v8226_v26 = vadd.f32 %v11273_v7, %v8225_v31 }
0x265c   : > { %v8237_v24 = vadd.f32 %v13242_v22, %v11273_v7  ;;  %v8228_v35 = vpop.f32.mrb[15].mxu0 }
0x265d   : > { %v8229_v27 = vadd.f32 %v11273_v7, %v8228_v35 }
0x265e   : > { %v8292_v28 = vpack.c.bf16 %v8237_v24, %v8234_v23  ;;  %13254 = vmatpush3.bf16.msra.mxu0 %v8290_v21 }
0x265f   : > { %v8291_v34 = vpack.c.bf16 %v8229_v27, %v8226_v26 }
0x2661   : > { %v13245_v36 = vpop.f32.mrb[16].mxu0  ;;  %13255 = vmatprep.subr.bf16.mxu0 %v8291_v34 }
0x2662   : > { %v8241_v37 = vpop.f32.mrb[17].mxu0  ;;  %13256 = vmatpush3.bf16.msra.mxu0 %v8291_v34  ;;  %v8250_v61 = vadd.f32 %v13245_v36, %v11273_v7 }
0x2663   : > { %v13246_v60 = vpop.f32.mrb[18].mxu0  ;;  %13257 = vmatprep.subr.bf16.mxu0 %v8292_v28  ;;  %v8242_v33 = vadd.f32 %v11273_v7, %v8241_v37 }
0x2664   : > { %v8253_v38 = vadd.f32 %v13246_v60, %v11273_v7  ;;  %v8244_v32 = vpop.f32.mrb[19].mxu0 }
0x2665   : > { %v8245_v62 = vadd.f32 %v11273_v7, %v8244_v32 }
0x2666   : > { %v8294_v1 = vpack.c.bf16 %v8253_v38, %v8250_v61  ;;  %13258 = vmatpush3.bf16.msra.mxu0 %v8292_v28 }
0x2667   : > { %v8293_v2 = vpack.c.bf16 %v8245_v62, %v8242_v33 }
0x2669   : > { %v13249_v39 = vpop.f32.mrb[20].mxu0  ;;  %13259 = vmatprep.subr.bf16.mxu0 %v8293_v2 }
0x266a   : > { %v8257_v44 = vpop.f32.mrb[21].mxu0  ;;  %13260 = vmatpush3.bf16.msra.mxu0 %v8293_v2  ;;  %v8266_v40 = vadd.f32 %v13249_v39, %v11273_v7  ;;  %v14168_v39 = vld [vmem:[#allocation8 + $0x40] sm:$0xff]  }
0x266b   : > { %v13250_v45 = vpop.f32.mrb[22].mxu0  ;;  %13261 = vmatprep.subr.bf16.mxu0 %v8294_v1  ;;  %v8258_v47 = vadd.f32 %v11273_v7, %v8257_v44  ;;  %v14169_v44 = vld [vmem:[#allocation8 + $0x48] sm:$0xff]   ;;  %13347 = vmatprep.subr.bf16.mxu1 %v14168_v39 }
0x266c   : > { %v8269_v41 = vadd.f32 %v13250_v45, %v11273_v7  ;;  %v8260_v46 = vpop.f32.mrb[23].mxu0  ;;  %v14170_v45 = vld [vmem:[#allocation8 + $0x50] sm:$0xff]  }
0x266d   : > { %v8261_v48 = vadd.f32 %v11273_v7, %v8260_v46  ;;  %v14173_v46 = vld [vmem:[#allocation8 + $0x68] sm:$0xff]  }
0x266e   : > { %v8296_v8 = vpack.c.bf16 %v8269_v41, %v8266_v40  ;;  %13262 = vmatpush3.bf16.msra.mxu0 %v8294_v1  ;;  %v14171_v40 = vld [vmem:[#allocation8 + $0x58] sm:$0xff]   ;;  %v14172_v41 = vld [vmem:[#allocation8 + $0x60] sm:$0xff]  }
0x266f   : > { %v8295_v49 = vpack.c.bf16 %v8261_v48, %v8258_v47  ;;  %v11318_v48 = vld [vmem:[%s15917_s6] ss:$0 sm:$0xff] }
0x2671   : > { %13263 = vmatprep.subr.bf16.mxu0 %v8295_v49 }
0x2672   : > { %13264 = vmatpush3.bf16.msra.mxu0 %v8295_v49 }
0x2673   : > { %13265 = vmatprep.subr.bf16.mxu0 %v8296_v8 }
0x2676   : > { %13266 = vmatpush3.bf16.msra.mxu0 %v8296_v8 }
0x2679   : > { %13268 = vmatmul.mubr.bf16.vlgmr.msra.gmra.mrb[24].mxu0 %v15654_v42 }
0x267a   : > { %13271 = vmatprep.mubr.bf16.mxu0 %v15657_v43 }
0x2681   : > { %13272 = vmatmul.mubr.bf16.gmra.mrb[28].mxu0 %v15662_v50 }
0x2682   : > { %13275 = vmatprep.mubr.bf16.mxu0 %v15665_v52 }
0x2689   : > { %13276 = vmatmul.mubr.bf16.gmra.mrb[32].mxu0 %v15670_v53 }
0x268a   : > { %13279 = vmatprep.mubr.bf16.mxu0 %v15673_v58 }
0x2691   : > { %13280 = vmatmul.mubr.bf16.gmra.mrb[36].mxu0 %v15678_v59 }
0x2692   : > { %13331 = vmatprep.mubr.bf16.mxu0 %v15642_v51 }
0x274c   : > { %v13269_v3 = vpop.f32.mrb[24].mxu0 }
0x274d   : > { %v8379_v4 = vpop.f32.mrb[25].mxu0  ;;  %v8444_v25 = vmax.f32 %v13269_v3, 0.0 }
0x274e   : > { %v13270_v56 = vpop.f32.mrb[26].mxu0  ;;  %v8442_v17 = vmax.f32 %v8379_v4, 0.0 }
0x274f   : > { %v8445_v57 = vmax.f32 %v13270_v56, 0.0  ;;  %v8382_v15 = vpop.f32.mrb[27].mxu0 }
0x2750   : > { %v8443_v12 = vmax.f32 %v8382_v15, 0.0 }
0x2751   : > { %v8459_v5 = vpack.c.bf16 %v8445_v57, %v8444_v25 }
0x2752   : > { %v8458_v6 = vpack.c.bf16 %v8443_v12, %v8442_v17 }
0x2754   : > { %v13273_v7 = vpop.f32.mrb[28].mxu0  ;;  %13299 = vmatprep.mubr.bf16.mxu1 %v8458_v6 }
0x2755   : > { %v8395_v9 = vpop.f32.mrb[29].mxu0  ;;  %13300 = vmatmul.mubr.bf16.vlgmr.msra.gmra.mrb[32].mxu1 %v8459_v5  ;;  %v8448_v14 = vmax.f32 %v13273_v7, 0.0 }
0x2756   : > { %v13274_v11 = vpop.f32.mrb[30].mxu0  ;;  %v8446_v19 = vmax.f32 %v8395_v9, 0.0  ;;  %13348 = vmatpush3.bf16.msra.mxu1 %v14168_v39 }
0x2757   : > { %v8449_v16 = vmax.f32 %v13274_v11, 0.0  ;;  %v8398_v18 = vpop.f32.mrb[31].mxu0  ;;  %13349 = vmatprep.subr.bf16.mxu1 %v14169_v44 }
0x2758   : > { %v8447_v20 = vmax.f32 %v8398_v18, 0.0 }
0x2759   : > { %v8461_v21 = vpack.c.bf16 %v8449_v16, %v8448_v14 }
0x275a   : > { %v8460_v29 = vpack.c.bf16 %v8447_v20, %v8446_v19  ;;  %13350 = vmatpush3.bf16.msra.mxu1 %v14169_v44 }
0x275b   : > { %13351 = vmatprep.subr.bf16.mxu1 %v14170_v45 }
0x275c   : > { %v13277_v30 = vpop.f32.mrb[32].mxu0  ;;  %13303 = vmatprep.mubr.bf16.mxu1 %v8460_v29 }
0x275d   : > { %v8411_v31 = vpop.f32.mrb[33].mxu0  ;;  %13304 = vmatmul.mubr.bf16.gmra.mrb[36].mxu1 %v8461_v21  ;;  %v8452_v23 = vmax.f32 %v13277_v30, 0.0 }
0x275e   : > { %v13278_v22 = vpop.f32.mrb[34].mxu0  ;;  %v8450_v26 = vmax.f32 %v8411_v31, 0.0  ;;  %13352 = vmatpush3.bf16.msra.mxu1 %v14170_v45 }
0x275f   : > { %v8453_v24 = vmax.f32 %v13278_v22, 0.0  ;;  %v8414_v35 = vpop.f32.mrb[35].mxu0  ;;  %13353 = vmatprep.subr.bf16.mxu1 %v14171_v40 }
0x2760   : > { %v8451_v27 = vmax.f32 %v8414_v35, 0.0 }
0x2761   : > { %v8463_v28 = vpack.c.bf16 %v8453_v24, %v8452_v23 }
0x2762   : > { %v8462_v34 = vpack.c.bf16 %v8451_v27, %v8450_v26  ;;  %13354 = vmatpush3.bf16.msra.mxu1 %v14171_v40 }
0x2763   : > { %13355 = vmatprep.subr.bf16.mxu1 %v14172_v41 }
0x2764   : > { %v13281_v36 = vpop.f32.mrb[36].mxu0  ;;  %13307 = vmatprep.mubr.bf16.mxu1 %v8462_v34 }
0x2765   : > { %v8427_v37 = vpop.f32.mrb[37].mxu0  ;;  %13308 = vmatmul.mubr.bf16.gmra.mrb[40].mxu1 %v8463_v28  ;;  %v8456_v61 = vmax.f32 %v13281_v36, 0.0 }
0x2766   : > { %v13282_v60 = vpop.f32.mrb[38].mxu0  ;;  %v8454_v33 = vmax.f32 %v8427_v37, 0.0  ;;  %13356 = vmatpush3.bf16.msra.mxu1 %v14172_v41 }
0x2767   : > { %v8457_v38 = vmax.f32 %v13282_v60, 0.0  ;;  %v8430_v32 = vpop.f32.mrb[39].mxu0  ;;  %13357 = vmatprep.subr.bf16.mxu1 %v14173_v46 }
0x2768   : > { %v8455_v62 = vmax.f32 %v8430_v32, 0.0  ;;  %v14174_v32 = vld [vmem:[#allocation8 + $0x70] sm:$0xff]  }
0x2769   : > { %v8465_v1 = vpack.c.bf16 %v8457_v38, %v8456_v61 }
0x276a   : > { %v8464_v2 = vpack.c.bf16 %v8455_v62, %v8454_v33  ;;  %13358 = vmatpush3.bf16.msra.mxu1 %v14173_v46  ;;  %v14175_v33 = vld [vmem:[#allocation8 + $0x78] sm:$0xff]  }
0x276b   : > { %13359 = vmatprep.subr.bf16.mxu1 %v14174_v32 }
0x276c   : > { %13311 = vmatprep.mubr.bf16.mxu1 %v8464_v2 }
0x276d   : > { %13312 = vmatmul.mubr.bf16.gmra.mrb[44].mxu1 %v8465_v1 }
0x276e   : > { %13360 = vmatpush3.bf16.msra.mxu1 %v14174_v32 }
0x276f   : > { %13361 = vmatprep.subr.bf16.mxu1 %v14175_v33 }
0x2772   : > { %13362 = vmatpush3.bf16.msra.mxu1 %v14175_v33 }
0x2828   : > { %v13301_v47 = vpop.f32.mrb[32].mxu1 }
0x2829   : > { %v8571_v8 = vpop.f32.mrb[33].mxu1  ;;  %v8580_v54 = vadd.f32 %v13301_v47, %v11318_v48 }
0x282a   : > { %v13302_v49 = vpop.f32.mrb[34].mxu1  ;;  %v8572_v4 = vadd.f32 %v11318_v48, %v8571_v8 }
0x282b   : > { %v8583_v55 = vadd.f32 %v13302_v49, %v11318_v48  ;;  %v8574_v3 = vpop.f32.mrb[35].mxu1 }
0x282c   : > { %v8575_v56 = vadd.f32 %v11318_v48, %v8574_v3 }
0x282d   : > { %v8635_v25 = vpack.c.bf16 %v8583_v55, %v8580_v54 }
0x282e   : > { %v8634_v57 = vpack.c.bf16 %v8575_v56, %v8572_v4 }
0x2830   : > { %v13305_v15 = vpop.f32.mrb[36].mxu1  ;;  %13315 = vmatprep.subr.bf16.mxu0 %v8634_v57 }
0x2831   : > { %v8587_v17 = vpop.f32.mrb[37].mxu1  ;;  %13316 = vmatpush3.bf16.msra.mxu0 %v8634_v57  ;;  %v8596_v5 = vadd.f32 %v13305_v15, %v11318_v48 }
0x2832   : > { %v13306_v12 = vpop.f32.mrb[38].mxu1  ;;  %13317 = vmatprep.subr.bf16.mxu0 %v8635_v25  ;;  %v8588_v9 = vadd.f32 %v11318_v48, %v8587_v17 }
0x2833   : > { %v8599_v6 = vadd.f32 %v13306_v12, %v11318_v48  ;;  %v8590_v7 = vpop.f32.mrb[39].mxu1 }
0x2834   : > { %v8591_v11 = vadd.f32 %v11318_v48, %v8590_v7 }
0x2835   : > { %v8637_v14 = vpack.c.bf16 %v8599_v6, %v8596_v5  ;;  %13318 = vmatpush3.bf16.msra.mxu0 %v8635_v25 }
0x2836   : > { %v8636_v16 = vpack.c.bf16 %v8591_v11, %v8588_v9 }
0x2838   : > { %v13309_v18 = vpop.f32.mrb[40].mxu1  ;;  %13319 = vmatprep.subr.bf16.mxu0 %v8636_v16 }
0x2839   : > { %v8603_v19 = vpop.f32.mrb[41].mxu1  ;;  %13320 = vmatpush3.bf16.msra.mxu0 %v8636_v16  ;;  %v8612_v21 = vadd.f32 %v13309_v18, %v11318_v48 }
0x283a   : > { %v13310_v20 = vpop.f32.mrb[42].mxu1  ;;  %13321 = vmatprep.subr.bf16.mxu0 %v8637_v14  ;;  %v8604_v31 = vadd.f32 %v11318_v48, %v8603_v19 }
0x283b   : > { %v8615_v29 = vadd.f32 %v13310_v20, %v11318_v48  ;;  %v8606_v30 = vpop.f32.mrb[43].mxu1 }
0x283c   : > { %v8607_v22 = vadd.f32 %v11318_v48, %v8606_v30 }
0x283d   : > { %v8639_v23 = vpack.c.bf16 %v8615_v29, %v8612_v21  ;;  %13322 = vmatpush3.bf16.msra.mxu0 %v8637_v14 }
0x283e   : > { %v8638_v24 = vpack.c.bf16 %v8607_v22, %v8604_v31 }
0x2840   : > { %v13313_v35 = vpop.f32.mrb[44].mxu1  ;;  %13323 = vmatprep.subr.bf16.mxu0 %v8638_v24 }
0x2841   : > { %v8619_v26 = vpop.f32.mrb[45].mxu1  ;;  %13324 = vmatpush3.bf16.msra.mxu0 %v8638_v24  ;;  %v8628_v28 = vadd.f32 %v13313_v35, %v11318_v48  ;;  %v14176_v35 = vld [vmem:[#allocation8 + $0x80] sm:$0xff]  }
0x2842   : > { %v13314_v27 = vpop.f32.mrb[46].mxu1  ;;  %13325 = vmatprep.subr.bf16.mxu0 %v8639_v23  ;;  %v8620_v37 = vadd.f32 %v11318_v48, %v8619_v26  ;;  %v14177_v26 = vld [vmem:[#allocation8 + $0x88] sm:$0xff]   ;;  %13411 = vmatprep.subr.bf16.mxu1 %v14176_v35 }
0x2843   : > { %v8631_v34 = vadd.f32 %v13314_v27, %v11318_v48  ;;  %v8622_v36 = vpop.f32.mrb[47].mxu1  ;;  %v14178_v27 = vld [vmem:[#allocation8 + $0x90] sm:$0xff]  }
0x2844   : > { %v8623_v60 = vadd.f32 %v11318_v48, %v8622_v36  ;;  %v14181_v36 = vld [vmem:[#allocation8 + $0xa8] sm:$0xff]  }
0x2845   : > { %v8641_v61 = vpack.c.bf16 %v8631_v34, %v8628_v28  ;;  %13326 = vmatpush3.bf16.msra.mxu0 %v8639_v23  ;;  %v14179_v28 = vld [vmem:[#allocation8 + $0x98] sm:$0xff]   ;;  %v14180_v34 = vld [vmem:[#allocation8 + $0xa0] sm:$0xff]  }
0x2846   : > { %v8640_v38 = vpack.c.bf16 %v8623_v60, %v8620_v37  ;;  %v11328_v60 = vld [vmem:[%s15917_s6 + $0x1] ss:$0 sm:$0xff] }
0x2848   : > { %13327 = vmatprep.subr.bf16.mxu0 %v8640_v38 }
0x2849   : > { %13328 = vmatpush3.bf16.msra.mxu0 %v8640_v38 }
0x284a   : > { %13329 = vmatprep.subr.bf16.mxu0 %v8641_v61 }
0x284d   : > { %13330 = vmatpush3.bf16.msra.mxu0 %v8641_v61 }
0x2850   : > { %13332 = vmatmul.mubr.bf16.vlgmr.msra.gmra.mrb[40].mxu0 %v15654_v42 }
0x2851   : > { %13335 = vmatprep.mubr.bf16.mxu0 %v15657_v43 }
0x2858   : > { %13336 = vmatmul.mubr.bf16.gmra.mrb[44].mxu0 %v15662_v50 }
0x2859   : > { %13339 = vmatprep.mubr.bf16.mxu0 %v15665_v52 }
0x2860   : > { %13340 = vmatmul.mubr.bf16.gmra.mrb[48].mxu0 %v15670_v53 }
0x2861   : > { %13343 = vmatprep.mubr.bf16.mxu0 %v15673_v58 }
0x2868   : > { %13344 = vmatmul.mubr.bf16.gmra.mrb[52].mxu0 %v15678_v59 }
0x2869   : > { %13395 = vmatprep.mubr.bf16.mxu0 %v15642_v51 }
0x2923   : > { %v13333_v62 = vpop.f32.mrb[40].mxu0 }
0x2924   : > { %v8676_v1 = vpop.f32.mrb[41].mxu0  ;;  %v8741_v39 = vmax.f32 %v13333_v62, 0.0 }
0x2925   : > { %v13334_v2 = vpop.f32.mrb[42].mxu0  ;;  %v8739_v40 = vmax.f32 %v8676_v1, 0.0 }
0x2926   : > { %v8742_v44 = vmax.f32 %v13334_v2, 0.0  ;;  %v8679_v45 = vpop.f32.mrb[43].mxu0 }
0x2927   : > { %v8740_v41 = vmax.f32 %v8679_v45, 0.0 }
0x2928   : > { %v8756_v46 = vpack.c.bf16 %v8742_v44, %v8741_v39 }
0x2929   : > { %v8755_v47 = vpack.c.bf16 %v8740_v41, %v8739_v40 }
0x292b   : > { %v13337_v48 = vpop.f32.mrb[44].mxu0  ;;  %13363 = vmatprep.mubr.bf16.mxu1 %v8755_v47 }
0x292c   : > { %v8692_v8 = vpop.f32.mrb[45].mxu0  ;;  %13364 = vmatmul.mubr.bf16.vlgmr.msra.gmra.mrb[48].mxu1 %v8756_v46  ;;  %v8745_v54 = vmax.f32 %v13337_v48, 0.0 }
0x292d   : > { %v13338_v49 = vpop.f32.mrb[46].mxu0  ;;  %v8743_v4 = vmax.f32 %v8692_v8, 0.0  ;;  %13412 = vmatpush3.bf16.msra.mxu1 %v14176_v35 }
0x292e   : > { %v8746_v55 = vmax.f32 %v13338_v49, 0.0  ;;  %v8695_v3 = vpop.f32.mrb[47].mxu0  ;;  %13413 = vmatprep.subr.bf16.mxu1 %v14177_v26 }
0x292f   : > { %v8744_v56 = vmax.f32 %v8695_v3, 0.0 }
0x2930   : > { %v8758_v25 = vpack.c.bf16 %v8746_v55, %v8745_v54 }
0x2931   : > { %v8757_v57 = vpack.c.bf16 %v8744_v56, %v8743_v4  ;;  %13414 = vmatpush3.bf16.msra.mxu1 %v14177_v26 }
0x2932   : > { %13415 = vmatprep.subr.bf16.mxu1 %v14178_v27 }
0x2933   : > { %v13341_v15 = vpop.f32.mrb[48].mxu0  ;;  %13367 = vmatprep.mubr.bf16.mxu1 %v8757_v57 }
0x2934   : > { %v8708_v17 = vpop.f32.mrb[49].mxu0  ;;  %13368 = vmatmul.mubr.bf16.gmra.mrb[52].mxu1 %v8758_v25  ;;  %v8749_v5 = vmax.f32 %v13341_v15, 0.0 }
0x2935   : > { %v13342_v12 = vpop.f32.mrb[50].mxu0  ;;  %v8747_v9 = vmax.f32 %v8708_v17, 0.0  ;;  %13416 = vmatpush3.bf16.msra.mxu1 %v14178_v27 }
0x2936   : > { %v8750_v6 = vmax.f32 %v13342_v12, 0.0  ;;  %v8711_v7 = vpop.f32.mrb[51].mxu0  ;;  %13417 = vmatprep.subr.bf16.mxu1 %v14179_v28 }
0x2937   : > { %v8748_v11 = vmax.f32 %v8711_v7, 0.0 }
0x2938   : > { %v8760_v14 = vpack.c.bf16 %v8750_v6, %v8749_v5 }
0x2939   : > { %v8759_v16 = vpack.c.bf16 %v8748_v11, %v8747_v9  ;;  %13418 = vmatpush3.bf16.msra.mxu1 %v14179_v28 }
0x293a   : > { %13419 = vmatprep.subr.bf16.mxu1 %v14180_v34 }
0x293b   : > { %v13345_v18 = vpop.f32.mrb[52].mxu0  ;;  %13371 = vmatprep.mubr.bf16.mxu1 %v8759_v16 }
0x293c   : > { %v8724_v19 = vpop.f32.mrb[53].mxu0  ;;  %13372 = vmatmul.mubr.bf16.gmra.mrb[56].mxu1 %v8760_v14  ;;  %v8753_v21 = vmax.f32 %v13345_v18, 0.0 }
0x293d   : > { %v13346_v20 = vpop.f32.mrb[54].mxu0  ;;  %v8751_v31 = vmax.f32 %v8724_v19, 0.0  ;;  %13420 = vmatpush3.bf16.msra.mxu1 %v14180_v34 }
0x293e   : > { %v8754_v29 = vmax.f32 %v13346_v20, 0.0  ;;  %v8727_v30 = vpop.f32.mrb[55].mxu0  ;;  %13421 = vmatprep.subr.bf16.mxu1 %v14181_v36 }
0x293f   : > { %v8752_v22 = vmax.f32 %v8727_v30, 0.0  ;;  %v14182_v30 = vld [vmem:[#allocation8 + $0xb0] sm:$0xff]  }
0x2940   : > { %v8762_v23 = vpack.c.bf16 %v8754_v29, %v8753_v21 }
0x2941   : > { %v8761_v24 = vpack.c.bf16 %v8752_v22, %v8751_v31  ;;  %13422 = vmatpush3.bf16.msra.mxu1 %v14181_v36  ;;  %v14183_v31 = vld [vmem:[#allocation8 + $0xb8] sm:$0xff]  }
0x2942   : > { %13423 = vmatprep.subr.bf16.mxu1 %v14182_v30 }
0x2943   : > { %13375 = vmatprep.mubr.bf16.mxu1 %v8761_v24 }
0x2944   : > { %13376 = vmatmul.mubr.bf16.gmra.mrb[60].mxu1 %v8762_v23 }
0x2945   : > { %13424 = vmatpush3.bf16.msra.mxu1 %v14182_v30 }
0x2946   : > { %13425 = vmatprep.subr.bf16.mxu1 %v14183_v31 }
0x2949   : > { %13426 = vmatpush3.bf16.msra.mxu1 %v14183_v31 }
0x29ff   : > { %v13365_v37 = vpop.f32.mrb[48].mxu1 }
0x2a00   : > { %v8868_v61 = vpop.f32.mrb[49].mxu1  ;;  %v8877_v32 = vadd.f32 %v13365_v37, %v11328_v60 }
0x2a01   : > { %v13366_v38 = vpop.f32.mrb[50].mxu1  ;;  %v8869_v1 = vadd.f32 %v11328_v60, %v8868_v61 }
0x2a02   : > { %v8880_v33 = vadd.f32 %v13366_v38, %v11328_v60  ;;  %v8871_v62 = vpop.f32.mrb[51].mxu1 }
0x2a03   : > { %v8872_v2 = vadd.f32 %v11328_v60, %v8871_v62 }
0x2a04   : > { %v8932_v39 = vpack.c.bf16 %v8880_v33, %v8877_v32 }
0x2a05   : > { %v8931_v44 = vpack.c.bf16 %v8872_v2, %v8869_v1 }
0x2a07   : > { %v13369_v45 = vpop.f32.mrb[52].mxu1  ;;  %13379 = vmatprep.subr.bf16.mxu0 %v8931_v44 }
0x2a08   : > { %v8884_v40 = vpop.f32.mrb[53].mxu1  ;;  %13380 = vmatpush3.bf16.msra.mxu0 %v8931_v44  ;;  %v8893_v46 = vadd.f32 %v13369_v45, %v11328_v60 }
0x2a09   : > { %v13370_v41 = vpop.f32.mrb[54].mxu1  ;;  %13381 = vmatprep.subr.bf16.mxu0 %v8932_v39  ;;  %v8885_v8 = vadd.f32 %v11328_v60, %v8884_v40 }
0x2a0a   : > { %v8896_v47 = vadd.f32 %v13370_v41, %v11328_v60  ;;  %v8887_v48 = vpop.f32.mrb[55].mxu1 }
0x2a0b   : > { %v8888_v49 = vadd.f32 %v11328_v60, %v8887_v48 }
0x2a0c   : > { %v8934_v54 = vpack.c.bf16 %v8896_v47, %v8893_v46  ;;  %13382 = vmatpush3.bf16.msra.mxu0 %v8932_v39 }
0x2a0d   : > { %v8933_v55 = vpack.c.bf16 %v8888_v49, %v8885_v8 }
0x2a0f   : > { %v13373_v3 = vpop.f32.mrb[56].mxu1  ;;  %13383 = vmatprep.subr.bf16.mxu0 %v8933_v55 }
0x2a10   : > { %v8900_v4 = vpop.f32.mrb[57].mxu1  ;;  %13384 = vmatpush3.bf16.msra.mxu0 %v8933_v55  ;;  %v8909_v25 = vadd.f32 %v13373_v3, %v11328_v60 }
0x2a11   : > { %v13374_v56 = vpop.f32.mrb[58].mxu1  ;;  %13385 = vmatprep.subr.bf16.mxu0 %v8934_v54  ;;  %v8901_v17 = vadd.f32 %v11328_v60, %v8900_v4 }
0x2a12   : > { %v8912_v57 = vadd.f32 %v13374_v56, %v11328_v60  ;;  %v8903_v15 = vpop.f32.mrb[59].mxu1 }
0x2a13   : > { %v8904_v12 = vadd.f32 %v11328_v60, %v8903_v15 }
0x2a14   : > { %v8936_v5 = vpack.c.bf16 %v8912_v57, %v8909_v25  ;;  %13386 = vmatpush3.bf16.msra.mxu0 %v8934_v54 }
0x2a15   : > { %v8935_v6 = vpack.c.bf16 %v8904_v12, %v8901_v17 }
0x2a17   : > { %v13377_v7 = vpop.f32.mrb[60].mxu1  ;;  %13387 = vmatprep.subr.bf16.mxu0 %v8935_v6 }
0x2a18   : > { %v8916_v9 = vpop.f32.mrb[61].mxu1  ;;  %13388 = vmatpush3.bf16.msra.mxu0 %v8935_v6  ;;  %v8925_v14 = vadd.f32 %v13377_v7, %v11328_v60  ;;  %v11338_v7 = vld [vmem:[%s15917_s6 + $0x2] ss:$0 sm:$0xff] }
0x2a19   : > { %v13378_v11 = vpop.f32.mrb[62].mxu1  ;;  %13389 = vmatprep.subr.bf16.mxu0 %v8936_v5  ;;  %v8917_v19 = vadd.f32 %v11328_v60, %v8916_v9 }
0x2a1a   : > { %v8928_v16 = vadd.f32 %v13378_v11, %v11328_v60  ;;  %v8919_v18 = vpop.f32.mrb[63].mxu1 }
0x2a1b   : > { %v8920_v20 = vadd.f32 %v11328_v60, %v8919_v18 }
0x2a1c   : > { %v8938_v21 = vpack.c.bf16 %v8928_v16, %v8925_v14  ;;  %13390 = vmatpush3.bf16.msra.mxu0 %v8936_v5 }
0x2a1d   : > { %v8937_v29 = vpack.c.bf16 %v8920_v20, %v8917_v19 }
0x2a1f   : > { %13391 = vmatprep.subr.bf16.mxu0 %v8937_v29 }
0x2a20   : > { %13392 = vmatpush3.bf16.msra.mxu0 %v8937_v29 }
0x2a21   : > { %13393 = vmatprep.subr.bf16.mxu0 %v8938_v21 }
0x2a24   : > { %13394 = vmatpush3.bf16.msra.mxu0 %v8938_v21 }
0x2a27   : > { %13396 = vmatmul.mubr.bf16.vlgmr.msra.gmra.mrb[56].mxu0 %v15654_v42 }
0x2a28   : > { %13399 = vmatprep.mubr.bf16.mxu0 %v15657_v43 }
0x2a2f   : > { %13400 = vmatmul.mubr.bf16.gmra.mrb[60].mxu0 %v15662_v50 }
0x2a30   : > { %13403 = vmatprep.mubr.bf16.mxu0 %v15665_v52 }
0x2a37   : > { %13404 = vmatmul.mubr.bf16.gmra.mrb[64].mxu0 %v15670_v53 }
0x2a38   : > { %13407 = vmatprep.mubr.bf16.mxu0 %v15673_v58 }
0x2a3f   : > { %13408 = vmatmul.mubr.bf16.gmra.mrb[68].mxu0 %v15678_v59 }
0x2a40   : > { %13459 = vmatprep.mubr.bf16.mxu0 %v15642_v51 }
0x2afa   : > { %v13397_v22 = vpop.f32.mrb[56].mxu0 }
0x2afb   : > { %v8973_v23 = vpop.f32.mrb[57].mxu0  ;;  %v9038_v35 = vmax.f32 %v13397_v22, 0.0 }
0x2afc   : > { %v13398_v24 = vpop.f32.mrb[58].mxu0  ;;  %v9036_v28 = vmax.f32 %v8973_v23, 0.0 }
0x2afd   : > { %v9039_v26 = vmax.f32 %v13398_v24, 0.0  ;;  %v8976_v27 = vpop.f32.mrb[59].mxu0 }
0x2afe   : > { %v9037_v34 = vmax.f32 %v8976_v27, 0.0 }
0x2aff   : > { %v9053_v36 = vpack.c.bf16 %v9039_v26, %v9038_v35 }
0x2b00   : > { %v9052_v37 = vpack.c.bf16 %v9037_v34, %v9036_v28 }
0x2b02   : > { %v13401_v60 = vpop.f32.mrb[60].mxu0  ;;  %13427 = vmatprep.mubr.bf16.mxu1 %v9052_v37 }
0x2b03   : > { %v8989_v61 = vpop.f32.mrb[61].mxu0  ;;  %13428 = vmatmul.mubr.bf16.vlgmr.msra.gmra.mrb[64].mxu1 %v9053_v36  ;;  %v9042_v38 = vmax.f32 %v13401_v60, 0.0 }
0x2b04   : > { %v13402_v51 = vpop.f32.mrb[62].mxu0  ;;  %v9040_v62 = vmax.f32 %v8989_v61, 0.0 }
0x2b05   : > { %v9043_v32 = vmax.f32 %v13402_v51, 0.0  ;;  %v8992_v33 = vpop.f32.mrb[63].mxu0 }
0x2b06   : > { %v9041_v1 = vmax.f32 %v8992_v33, 0.0 }
0x2b07   : > { %v9055_v2 = vpack.c.bf16 %v9043_v32, %v9042_v38 }
0x2b08   : > { %v9054_v39 = vpack.c.bf16 %v9041_v1, %v9040_v62 }
0x2b0a   : > { %v13405_v44 = vpop.f32.mrb[64].mxu0  ;;  %13431 = vmatprep.mubr.bf16.mxu1 %v9054_v39 }
0x2b0b   : > { %v9005_v45 = vpop.f32.mrb[65].mxu0  ;;  %13432 = vmatmul.mubr.bf16.gmra.mrb[68].mxu1 %v9055_v2  ;;  %v9046_v41 = vmax.f32 %v13405_v44, 0.0 }
0x2b0c   : > { %v13406_v40 = vpop.f32.mrb[66].mxu0  ;;  %v9044_v48 = vmax.f32 %v9005_v45, 0.0 }
0x2b0d   : > { %v9047_v46 = vmax.f32 %v13406_v40, 0.0  ;;  %v9008_v47 = vpop.f32.mrb[67].mxu0 }
0x2b0e   : > { %v9045_v8 = vmax.f32 %v9008_v47, 0.0 }
0x2b0f   : > { %v9057_v49 = vpack.c.bf16 %v9047_v46, %v9046_v41 }
0x2b10   : > { %v9056_v54 = vpack.c.bf16 %v9045_v8, %v9044_v48 }
0x2b12   : > { %v13409_v55 = vpop.f32.mrb[68].mxu0  ;;  %13435 = vmatprep.mubr.bf16.mxu1 %v9056_v54  ;;  %v14188_v54 = vld [vmem:[#allocation10 + $0x180] ss:$8 sps:$4 sm:$0xff]  }
0x2b13   : > { %v9021_v3 = vpop.f32.mrb[69].mxu0  ;;  %13436 = vmatmul.mubr.bf16.gmra.mrb[72].mxu1 %v9057_v49  ;;  %v9050_v56 = vmax.f32 %v13409_v55, 0.0  ;;  %v14184_v49 = vld [vmem:[%s15222_s0 + $0x60] sm:$0xff]  }
0x2b14   : > { %v13410_v4 = vpop.f32.mrb[70].mxu0  ;;  %v9048_v15 = vmax.f32 %v9021_v3, 0.0  ;;  %v14190_v55 = vld [vmem:[#allocation10 + $0x184] ss:$8 sps:$4 sm:$0xff]   ;;  %v14193_v3 = vld [vmem:[#allocation10 + $0x194] ss:$8 sps:$4 sm:$0xff]  }
0x2b15   : > { %v9051_v25 = vmax.f32 %v13410_v4, 0.0  ;;  %v9024_v57 = vpop.f32.mrb[71].mxu0  ;;  %v14205_v4 = vld [vmem:[#allocation10 + $0x1d4] ss:$8 sps:$4 sm:$0xff]  }
0x2b16   : > { %v9049_v17 = vmax.f32 %v9024_v57, 0.0  ;;  %v14206_v57 = vld [vmem:[#allocation10 + $0x1e0] ss:$8 sps:$4 sm:$0xff]  }
0x2b17   : > { %v9059_v12 = vpack.c.bf16 %v9051_v25, %v9050_v56  ;;  %v14203_v56 = vld [vmem:[#allocation10 + $0x1d0] ss:$8 sps:$4 sm:$0xff]   ;;  %v14208_v25 = vld [vmem:[#allocation10 + $0x1e4] ss:$8 sps:$4 sm:$0xff]  }
0x2b18   : > { %v9058_v5 = vpack.c.bf16 %v9049_v17, %v9048_v15 }
0x2b1a   : > { %13439 = vmatprep.mubr.bf16.mxu1 %v9058_v5 }
0x2b1b   : > { %13440 = vmatmul.mubr.bf16.gmra.mrb[76].mxu1 %v9059_v12 }
0x2b1c   : > { %13491 = vmatprep.mubr.bf16.mxu1 %v14184_v49 }
0x2bd6   : > { %v13429_v6 = vpop.f32.mrb[64].mxu1 }
0x2bd7   : > { %v9165_v9 = vpop.f32.mrb[65].mxu1  ;;  %v9174_v14 = vadd.f32 %v13429_v6, %v11338_v7 }
0x2bd8   : > { %v13430_v11 = vpop.f32.mrb[66].mxu1  ;;  %v9166_v19 = vadd.f32 %v11338_v7, %v9165_v9 }
0x2bd9   : > { %v9177_v16 = vadd.f32 %v13430_v11, %v11338_v7  ;;  %v9168_v18 = vpop.f32.mrb[67].mxu1 }
0x2bda   : > { %v9169_v20 = vadd.f32 %v11338_v7, %v9168_v18 }
0x2bdb   : > { %v9229_v21 = vpack.c.bf16 %v9177_v16, %v9174_v14 }
0x2bdc   : > { %v9228_v29 = vpack.c.bf16 %v9169_v20, %v9166_v19 }
0x2bde   : > { %v13433_v30 = vpop.f32.mrb[68].mxu1  ;;  %13443 = vmatprep.subr.bf16.mxu0 %v9228_v29 }
0x2bdf   : > { %v9181_v31 = vpop.f32.mrb[69].mxu1  ;;  %13444 = vmatpush3.bf16.msra.mxu0 %v9228_v29  ;;  %v9190_v23 = vadd.f32 %v13433_v30, %v11338_v7 }
0x2be0   : > { %v13434_v22 = vpop.f32.mrb[70].mxu1  ;;  %13445 = vmatprep.subr.bf16.mxu0 %v9229_v21  ;;  %v9182_v26 = vadd.f32 %v11338_v7, %v9181_v31 }
0x2be1   : > { %v9193_v24 = vadd.f32 %v13434_v22, %v11338_v7  ;;  %v9184_v35 = vpop.f32.mrb[71].mxu1 }
0x2be2   : > { %v9185_v27 = vadd.f32 %v11338_v7, %v9184_v35 }
0x2be3   : > { %v9231_v28 = vpack.c.bf16 %v9193_v24, %v9190_v23  ;;  %13446 = vmatpush3.bf16.msra.mxu0 %v9229_v21 }
0x2be4   : > { %v9230_v34 = vpack.c.bf16 %v9185_v27, %v9182_v26 }
0x2be6   : > { %v13437_v36 = vpop.f32.mrb[72].mxu1  ;;  %13447 = vmatprep.subr.bf16.mxu0 %v9230_v34 }
0x2be7   : > { %v9197_v37 = vpop.f32.mrb[73].mxu1  ;;  %13448 = vmatpush3.bf16.msra.mxu0 %v9230_v34  ;;  %v9206_v61 = vadd.f32 %v13437_v36, %v11338_v7 }
0x2be8   : > { %v13438_v60 = vpop.f32.mrb[74].mxu1  ;;  %13449 = vmatprep.subr.bf16.mxu0 %v9231_v28  ;;  %v9198_v32 = vadd.f32 %v11338_v7, %v9197_v37 }
0x2be9   : > { %v9209_v51 = vadd.f32 %v13438_v60, %v11338_v7  ;;  %v9200_v38 = vpop.f32.mrb[75].mxu1 }
0x2bea   : > { %v9201_v33 = vadd.f32 %v11338_v7, %v9200_v38 }
0x2beb   : > { %v9233_v62 = vpack.c.bf16 %v9209_v51, %v9206_v61  ;;  %13450 = vmatpush3.bf16.msra.mxu0 %v9231_v28 }
0x2bec   : > { %v9232_v1 = vpack.c.bf16 %v9201_v33, %v9198_v32 }
0x2bee   : > { %v13441_v2 = vpop.f32.mrb[76].mxu1  ;;  %13451 = vmatprep.subr.bf16.mxu0 %v9232_v1 }
0x2bef   : > { %v9213_v39 = vpop.f32.mrb[77].mxu1  ;;  %13452 = vmatpush3.bf16.msra.mxu0 %v9232_v1  ;;  %v9222_v45 = vadd.f32 %v13441_v2, %v11338_v7 }
0x2bf0   : > { %v13442_v44 = vpop.f32.mrb[78].mxu1  ;;  %13453 = vmatprep.subr.bf16.mxu0 %v9233_v62  ;;  %v9214_v46 = vadd.f32 %v11338_v7, %v9213_v39 }
0x2bf1   : > { %v9225_v40 = vadd.f32 %v13442_v44, %v11338_v7  ;;  %v9216_v41 = vpop.f32.mrb[79].mxu1 }
0x2bf2   : > { %v9217_v47 = vadd.f32 %v11338_v7, %v9216_v41 }
0x2bf3   : > { %v9235_v48 = vpack.c.bf16 %v9225_v40, %v9222_v45  ;;  %13454 = vmatpush3.bf16.msra.mxu0 %v9233_v62 }
0x2bf4   : > { %v9234_v8 = vpack.c.bf16 %v9217_v47, %v9214_v46 }
0x2bf6   : > { %13455 = vmatprep.subr.bf16.mxu0 %v9234_v8 }
0x2bf7   : > { %13456 = vmatpush3.bf16.msra.mxu0 %v9234_v8 }
0x2bf8   : > { %13457 = vmatprep.subr.bf16.mxu0 %v9235_v48 }
0x2bfb   : > { %13458 = vmatpush3.bf16.msra.mxu0 %v9235_v48 }
0x2bfc   : > { %9551 = vmatprep.subr.bf16.mxu0 %v14190_v55 }
0x2bfe   : > { %13460 = vmatmul.mubr.bf16.vlgmr.msra.gmra.mrb[72].mxu0 %v15654_v42  ;;  %v14191_v42 = vld [vmem:[#allocation10 + $0x190] ss:$8 sps:$4 sm:$0xff]  }
0x2bff   : > { %13463 = vmatprep.mubr.bf16.mxu0 %v15657_v43  ;;  %9552 = vmatpush1.bf16.msra.mxu0 %v14188_v54  ;;  %v14196_v43 = vld [vmem:[#allocation10 + $0x1a4] ss:$8 sps:$4 sm:$0xff]  }
0x2c00   : > { %9553 = vmatprep.subr.bf16.mxu0 %v14193_v3  ;;  %v14185_v3 = vld [vmem:[%s15222_s0 + $0x68] sm:$0xff]  }
0x2c03   : > { %9554 = vmatpush1.bf16.msra.mxu0 %v14191_v42  ;;  %v14186_v42 = vld [vmem:[%s15222_s0 + $0x70] sm:$0xff]  }
0x2c04   : > { %9555 = vmatprep.subr.bf16.mxu0 %v14196_v43  ;;  %v14187_v43 = vld [vmem:[%s15222_s0 + $0x78] sm:$0xff]   ;;  %s15923_s0 = sld [smem:[#allocation41_spill]] }
0x2c06   : > { %13464 = vmatmul.mubr.bf16.gmra.mrb[76].mxu0 %v15662_v50  ;;  %v14194_v50 = vld [vmem:[#allocation10 + $0x1a0] ss:$8 sps:$4 sm:$0xff]  }
0x2c07   : > { %13467 = vmatprep.mubr.bf16.mxu0 %v15665_v52  ;;  %v14199_v52 = vld [vmem:[#allocation10 + $0x1b4] ss:$8 sps:$4 sm:$0xff]   ;;  %9556 = vmatpush1.bf16.msra.mxu0 %v14194_v50 }
0x2c08   : > { %9557 = vmatprep.subr.bf16.mxu0 %v14199_v52  ;;  %v14211_v50 = vld [vmem:[#allocation10 + $0x1f4] ss:$8 sps:$4 sm:$0xff]   ;;  %v14209_v52 = vld [vmem:[#allocation10 + $0x1f0] ss:$8 sps:$4 sm:$0xff]  }
0x2c0a   : > { %s15791_s5 = scalar_lea.hbm %s15923_s0, %s11466_s14 }
0x2c0e   : > { %13468 = vmatmul.mubr.bf16.gmra.mrb[80].mxu0 %v15670_v53  ;;  %v14197_v53 = vld [vmem:[#allocation10 + $0x1b0] ss:$8 sps:$4 sm:$0xff]  }
0x2c0f   : > { %13471 = vmatprep.mubr.bf16.mxu0 %v15673_v58  ;;  %v14202_v58 = vld [vmem:[#allocation10 + $0x1c4] ss:$8 sps:$4 sm:$0xff]   ;;  %9558 = vmatpush1.bf16.msra.mxu0 %v14197_v53 }
0x2c10   : > { %9559 = vmatprep.subr.bf16.mxu0 %v14202_v58  ;;  %v14212_v53 = vld [vmem:[#allocation11 + $0x1c0] sm:$0xff]  }
0x2c11   : > { %v14213_v58 = vld [vmem:[#allocation11 + $0x180] sm:$0xff]  }
0x2c16   : > { %13472 = vmatmul.mubr.bf16.gmra.mrb[84].mxu0 %v15678_v59  ;;  %v14200_v59 = vld [vmem:[#allocation10 + $0x1c0] ss:$8 sps:$4 sm:$0xff]  }
0x2c17   : > { %9583 = vmatprep.mubr.bf16.mxu0 %v14652_v63  ;;  %9560 = vmatpush1.bf16.msra.mxu0 %v14200_v59  ;;  %v14214_v59 = vld [vmem:[#allocation11 + $0x1c8] sm:$0xff]  }
0x2c18   : > { %9561 = vmatprep.subr.bf16.mxu0 %v14205_v4  ;;  %v14215_v4 = vld [vmem:[#allocation11 + $0x188] sm:$0xff]  }
0x2c1b   : > { %9562 = vmatpush1.bf16.msra.mxu0 %v14203_v56  ;;  %v14216_v56 = vld [vmem:[#allocation11 + $0x1d0] sm:$0xff]  }
0x2c1c   : > { %9563 = vmatprep.subr.bf16.mxu0 %v14208_v25  ;;  %v14217_v25 = vld [vmem:[#allocation11 + $0x190] sm:$0xff]  }
0x2c1f   : > { %9564 = vmatpush1.bf16.msra.mxu0 %v14206_v57  ;;  %v14218_v57 = vld [vmem:[#allocation11 + $0x1d8] sm:$0xff]  }
0x2c20   : > { %9565 = vmatprep.subr.bf16.mxu0 %v14211_v50 }
0x2c23   : > { %9566 = vmatpush1.bf16.msra.mxu0 %v14209_v52 }
0x2c24   : > { %13499 = vmatprep.subr.bf16.mxu0 %v14653_v0 }
0x2cd1   : > { %v13461_v15 = vpop.f32.mrb[72].mxu0 }
0x2cd2   : > { %v9270_v17 = vpop.f32.mrb[73].mxu0  ;;  %v9850_v5 = vmax.f32 %v13461_v15, 0.0 }
0x2cd3   : > { %v13462_v12 = vpop.f32.mrb[74].mxu0  ;;  %v9848_v11 = vmax.f32 %v9270_v17, 0.0 }
0x2cd4   : > { %v9343_v6 = vpack.c.bf16 %v13462_v12, %v13461_v15  ;;  %v9851_v7 = vmax.f32 %v13462_v12, 0.0  ;;  %v9273_v9 = vpop.f32.mrb[75].mxu0  ;;  %v14219_v15 = vld [vmem:[#allocation11 + $0x198] sm:$0xff]   ;;  %v14221_v12 = vld [vmem:[#allocation11 + $0x1a0] sm:$0xff]  }
0x2cd5   : > { %v9342_v14 = vpack.c.bf16 %v9273_v9, %v9270_v17  ;;  %v9849_v16 = vmax.f32 %v9273_v9, 0.0  ;;  %v14220_v17 = vld [vmem:[#allocation11 + $0x1e0] sm:$0xff]  }
0x2cd6   : > { %v15716_v18 = vpack.c.bf16 %v9851_v7, %v9850_v5  ;;  %v14222_v5 = vld [vmem:[#allocation11 + $0x1e8] sm:$0xff]  }
0x2cd7   : > { %v15718_v19 = vpack.c.bf16 %v9849_v16, %v9848_v11  ;;  %13475 = vmatprep.subr.bf16.mxu1 %v9342_v14 }
0x2cd8   : > { %13476 = vmatpush3.bf16.msra.mxu1 %v9342_v14 }
0x2cd9   : > { %v13465_v20 = vpop.f32.mrb[76].mxu0  ;;  %13477 = vmatprep.subr.bf16.mxu1 %v9343_v6 }
0x2cda   : > { %v9286_v21 = vpop.f32.mrb[77].mxu0  ;;  %v9854_v30 = vmax.f32 %v13465_v20, 0.0 }
0x2cdb   : > { %v13466_v29 = vpop.f32.mrb[78].mxu0  ;;  %v9852_v24 = vmax.f32 %v9286_v21, 0.0 }
0x2cdc   : > { %v9345_v31 = vpack.c.bf16 %v13466_v29, %v13465_v20  ;;  %v9855_v22 = vmax.f32 %v13466_v29, 0.0  ;;  %v9289_v23 = vpop.f32.mrb[79].mxu0  ;;  %13478 = vmatpush3.bf16.msra.mxu1 %v9343_v6 }
0x2cdd   : > { %v9344_v35 = vpack.c.bf16 %v9289_v23, %v9286_v21  ;;  %v9853_v26 = vmax.f32 %v9289_v23, 0.0  ;;  %v14225_v23 = vld [vmem:[#allocation11 + $0x1b0] sm:$0xff]  }
0x2cde   : > { %v15720_v27 = vpack.c.bf16 %v9855_v22, %v9854_v30 }
0x2cdf   : > { %v15722_v28 = vpack.c.bf16 %v9853_v26, %v9852_v24  ;;  %13479 = vmatprep.subr.bf16.mxu1 %v9344_v35  ;;  %v14226_v24 = vld [vmem:[#allocation11 + $0x1f8] sm:$0xff]   ;;  %v11359_v26 = vld [vmem:[%s15919_s16 + $0x6] sm:$0x3] }
0x2ce0   : > { %13480 = vmatpush3.bf16.msra.mxu1 %v9344_v35  ;;  %v14227_v35 = vld [vmem:[#allocation11 + $0x1b8] sm:$0xff]  }
0x2ce1   : > { %v13469_v34 = vpop.f32.mrb[80].mxu0  ;;  %13481 = vmatprep.subr.bf16.mxu1 %v9345_v31 }
0x2ce2   : > { %v9302_v36 = vpop.f32.mrb[81].mxu0  ;;  %v9858_v60 = vmax.f32 %v13469_v34, 0.0 }
0x2ce3   : > { %v13470_v37 = vpop.f32.mrb[82].mxu0  ;;  %v9856_v32 = vmax.f32 %v9302_v36, 0.0 }
0x2ce4   : > { %v9347_v61 = vpack.c.bf16 %v13470_v37, %v13469_v34  ;;  %v9859_v51 = vmax.f32 %v13470_v37, 0.0  ;;  %v9305_v38 = vpop.f32.mrb[83].mxu0  ;;  %13482 = vmatpush3.bf16.msra.mxu1 %v9345_v31 }
0x2ce5   : > { %v9346_v33 = vpack.c.bf16 %v9305_v38, %v9302_v36  ;;  %v9857_v62 = vmax.f32 %v9305_v38, 0.0 }
0x2ce6   : > { %v15724_v1 = vpack.c.bf16 %v9859_v51, %v9858_v60 }
0x2ce7   : > { %v15726_v2 = vpack.c.bf16 %v9857_v62, %v9856_v32  ;;  %13483 = vmatprep.subr.bf16.mxu1 %v9346_v33 }
0x2ce8   : > { %13484 = vmatpush3.bf16.msra.mxu1 %v9346_v33 }
0x2ce9   : > { %v13473_v39 = vpop.f32.mrb[84].mxu0  ;;  %13485 = vmatprep.subr.bf16.mxu1 %v9347_v61 }
0x2cea   : > { %v9318_v44 = vpop.f32.mrb[85].mxu0  ;;  %v9862_v40 = vmax.f32 %v13473_v39, 0.0 }
0x2ceb   : > { %v13474_v45 = vpop.f32.mrb[86].mxu0  ;;  %v9860_v48 = vmax.f32 %v9318_v44, 0.0 }
0x2cec   : > { %v9349_v41 = vpack.c.bf16 %v13474_v45, %v13473_v39  ;;  %v9863_v46 = vmax.f32 %v13474_v45, 0.0  ;;  %v9321_v47 = vpop.f32.mrb[87].mxu0  ;;  %13486 = vmatpush3.bf16.msra.mxu1 %v9347_v61 }
0x2ced   : > { %v9348_v8 = vpack.c.bf16 %v9321_v47, %v9318_v44  ;;  %v9861_v49 = vmax.f32 %v9321_v47, 0.0 }
0x2cee   : > { %v15728_v54 = vpack.c.bf16 %v9863_v46, %v9862_v40 }
0x2cef   : > { %v15730_v55 = vpack.c.bf16 %v9861_v49, %v9860_v48  ;;  %13487 = vmatprep.subr.bf16.mxu1 %v9348_v8 }
0x2cf0   : > { %13488 = vmatpush3.bf16.msra.mxu1 %v9348_v8 }
0x2cf1   : > { %13489 = vmatprep.subr.bf16.mxu1 %v9349_v41 }
0x2cf4   : > { %13490 = vmatpush3.bf16.msra.mxu1 %v9349_v41 }
0x2cf5   : > { %12239 = vmatprep.subr.bf16.mxu1 %v14212_v53 }
0x2cf7   : > { %13492 = vmatmul.mubr.bf16.vlgmr.msra.gmra.mrb[80].mxu1 %v14185_v3 }
0x2cf8   : > { %13495 = vmatprep.mubr.bf16.mxu1 %v14186_v42  ;;  %12240 = vmatpush3.bf16.msra.mxu1 %v14213_v58 }
0x2cf9   : > { %12241 = vmatprep.subr.bf16.mxu1 %v14214_v59 }
0x2cfc   : > { %12242 = vmatpush3.bf16.msra.mxu1 %v14215_v4 }
0x2cfd   : > { %12243 = vmatprep.subr.bf16.mxu1 %v14216_v56 }
0x2cff   : > { %13496 = vmatmul.mubr.bf16.gmra.mrb[84].mxu1 %v14187_v43 }
0x2d00   : > { %12244 = vmatpush3.bf16.msra.mxu1 %v14217_v25 }
0x2d01   : > { %12245 = vmatprep.subr.bf16.mxu1 %v14218_v57 }
0x2d04   : > { %12246 = vmatpush3.bf16.msra.mxu1 %v14219_v15 }
0x2d05   : > { %12247 = vmatprep.subr.bf16.mxu1 %v14220_v17 }
0x2d08   : > { %12248 = vmatpush3.bf16.msra.mxu1 %v14221_v12 }
0x2d09   : > { %12249 = vmatprep.subr.bf16.mxu1 %v14222_v5 }
0x2dca   : > { %v13493_v6 = vpop.f32.mrb[80].mxu1 }
0x2dcb   : > { %v9408_v7 = vpop.f32.mrb[81].mxu1 }
0x2dcc   : > { %v13494_v9 = vpop.f32.mrb[82].mxu1 }
0x2dcd   : > { %v9440_v11 = vpack.c.bf16 %v13494_v9, %v13493_v6  ;;  %v9411_v14 = vpop.f32.mrb[83].mxu1 }
0x2dce   : > { %v9439_v16 = vpack.c.bf16 %v9411_v14, %v9408_v7 }
0x2dd0   : > { %9584 = vmatmul.mubr.bf16.vlgmr.msra.gmra.mrb[88].mxu0 %v9439_v16 }
0x2dd1   : > { %13500 = vmatpush3.bf16.msra.mxu0 %v15718_v19  ;;  %9593 = vmatprep.mubr.bf16.mxu0 %v14652_v63  ;;  %v14224_v19 = vld [vmem:[#allocation11 + $0x1f0] sm:$0xff]  }
0x2dd2   : > { %13501 = vmatprep.subr.bf16.mxu0 %v14653_v0  ;;  %v13497_v20 = vpop.f32.mrb[84].mxu1 }
0x2dd3   : > { %v9424_v21 = vpop.f32.mrb[85].mxu1 }
0x2dd4   : > { %v13498_v29 = vpop.f32.mrb[86].mxu1 }
0x2dd5   : > { %13502 = vmatpush3.bf16.msra.mxu0 %v15716_v18  ;;  %v9442_v30 = vpack.c.bf16 %v13498_v29, %v13497_v20  ;;  %v9427_v31 = vpop.f32.mrb[87].mxu1  ;;  %v14223_v18 = vld [vmem:[#allocation11 + $0x1a8] sm:$0xff]  }
0x2dd6   : > { %13503 = vmatprep.subr.bf16.mxu0 %v14653_v0  ;;  %v9441_v22 = vpack.c.bf16 %v9427_v31, %v9424_v21  ;;  %12250 = vmatpush3.bf16.msra.mxu1 %v14223_v18 }
0x2dd7   : > { %12251 = vmatprep.subr.bf16.mxu1 %v14224_v19 }
0x2dd8   : > { %9594 = vmatmul.mubr.bf16.gmra.mrb[92].mxu0 %v9440_v11 }
0x2dd9   : > { %13504 = vmatpush3.bf16.msra.mxu0 %v15722_v28  ;;  %9603 = vmatprep.mubr.bf16.mxu0 %v14652_v63  ;;  %v9468_v28 = vrot.slane %v11359_v26, %v15270_v13 }
0x2dda   : > { %13505 = vmatprep.subr.bf16.mxu0 %v14653_v0  ;;  %12252 = vmatpush3.bf16.msra.mxu1 %v14225_v23 }
0x2ddb   : > { %12253 = vmatprep.subr.bf16.mxu1 %v14226_v24 }
0x2ddd   : > { %13506 = vmatpush3.bf16.msra.mxu0 %v15720_v27  ;;  %v9464_v27 = vrot.slane %v11359_v26, %v15265_v10  ;;  %v14230_v26 = vld [vmem:[#allocation14] ss:$8 sps:$4 sm:$0xff]  }
0x2dde   : > { %13507 = vmatprep.subr.bf16.mxu0 %v14653_v0  ;;  %12254 = vmatpush3.bf16.msra.mxu1 %v14227_v35  ;;  %v14229_v35 = vld [vmem:[%s15088_s25 + $0x18] sm:$0xff]   ;;  %s10468_s25 = scalar_lea.sflag [#allocation4], %s15084_s9 }
0x2ddf   : > { %13519 = vmatprep.subr.bf16.mxu1 %v14653_v0 }
0x2de0   : > { %9604 = vmatmul.mubr.bf16.gmra.mrb[96].mxu0 %v9441_v22 }
0x2de1   : > { %13508 = vmatpush3.bf16.msra.mxu0 %v15726_v2  ;;  %9613 = vmatprep.mubr.bf16.mxu0 %v14652_v63 }
0x2de2   : > { %13509 = vmatprep.subr.bf16.mxu0 %v14653_v0 }
0x2de5   : > { %13510 = vmatpush3.bf16.msra.mxu0 %v15724_v1 }
0x2de6   : > { %13511 = vmatprep.subr.bf16.mxu0 %v14653_v0 }
0x2de8   : > { %9614 = vmatmul.mubr.bf16.gmra.mrb[100].mxu0 %v9442_v30 }
0x2de9   : > { %13512 = vmatpush3.bf16.msra.mxu0 %v15730_v55  ;;  %13515 = vmatprep.mubr.msk.bf16.mxu0 %vm14654_vm1, %v14653_v0 }
0x2dea   : > { %13513 = vmatprep.subr.bf16.mxu0 %v14653_v0 }
0x2ded   : > { %13514 = vmatpush3.bf16.msra.mxu0 %v15728_v54 }
0x2df0   : > { %13516 = vmatmul.mubr.bf16.vlgmr.msra.gmra.mrb[104].mxu0 %v14229_v35  ;;  %v14228_v35 = vld [vmem:[%s15095_s8 + $0x18] sm:$0xff]   ;;  %s14555_s8 = sshll.u32 %s14655_s1, 4  ;;  %s14556_s8 = int_to_ptr.vmem [resolvable:$false] %s14555_s8 }
0x2df1   : > { %10132 = vmatprep.mubr.bf16.mxu0 %v14652_v63  ;;  %s14557_s11 = scalar_lea.vmem %s14556_s8, 2048  ;;  %p14558_p7 = scmp.lt.s32.totalorder %s15793_s15, %s14556_s8 }
0x2df2   : > { %p14559_p11 = scmp.lt.s32.totalorder %s14557_s11, %s14551_s13 }
0x2df4   : > { %p14560_p3 = por %p14559_p11, %p14558_p7 }
0x2df6   : > { %p14561_p12 = pnand %p14560_p3, %p14554_p9 }
0x2ea3   : > { %v9585_v34 = vpop.f32.mrb[88].mxu0 }
0x2ea4   : > { %v9586_v36 = vadd.f32 %v9585_v34, %v9464_v27  ;;  %v9587_v37 = vpop.f32.mrb[89].mxu0  ;;  %v14232_v34 = vld [vmem:[#allocation14 + $0x4] ss:$8 sps:$4 sm:$0xff]  }
0x2ea5   : > { %v9588_v60 = vadd.f32 %v9587_v37, %v9468_v28  ;;  %v9589_v61 = vpop.f32.mrb[90].mxu0  ;;  %10100 = vmatprep.subr.bf16.mxu0 %v14232_v34  ;;  %v14236_v37 = vld [vmem:[#allocation14 + $0x20] ss:$8 sps:$4 sm:$0xff]   ;;  %v14251_v34 = vld [vmem:[#allocation14 + $0x70] ss:$8 sps:$4 sm:$0xff]  }
0x2ea6   : > { %v9590_v51 = vadd.f32 %v9589_v61, %v9464_v27  ;;  %v9591_v38 = vpop.f32.mrb[91].mxu0  ;;  %v9624_v33 = vmax.f32 %v9586_v36, 0.0  ;;  %v14235_v36 = vld [vmem:[#allocation14 + $0x14] ss:$8 sps:$4 sm:$0xff]   ;;  %10101 = vmatpush1.bf16.msra.mxu0 %v14230_v26  ;;  %v14239_v61 = vld [vmem:[#allocation14 + $0x30] ss:$8 sps:$4 sm:$0xff]  }
0x2ea7   : > { %v9592_v32 = vadd.f32 %v9591_v38, %v9468_v28  ;;  %v9625_v1 = vmax.f32 %v9588_v60, 0.0  ;;  %10102 = vmatprep.subr.bf16.mxu0 %v14235_v36  ;;  %v14241_v60 = vld [vmem:[#allocation14 + $0x34] ss:$8 sps:$4 sm:$0xff]   ;;  %v14242_v38 = vld [vmem:[#allocation14 + $0x40] ss:$8 sps:$4 sm:$0xff]  }
0x2ea8   : > { %v9626_v62 = vmax.f32 %v9590_v51, 0.0  ;;  %v14244_v51 = vld [vmem:[#allocation14 + $0x44] ss:$8 sps:$4 sm:$0xff]   ;;  %v14253_v26 = vld [vmem:[#allocation14 + $0x74] ss:$8 sps:$4 sm:$0xff]  }
0x2ea9   : > { %v9627_v2 = vmax.f32 %v9592_v32, 0.0  ;;  %v14247_v32 = vld [vmem:[#allocation14 + $0x54] ss:$8 sps:$4 sm:$0xff]   ;;  %v14256_v36 = vld [vmem:[#allocation13 + $0x4] ss:$8 sps:$4 sm:$0xff]  }
0x2eaa   : > { %v9640_v39 = vpack.c.bf16 %v9626_v62, %v9624_v33  ;;  %v14245_v33 = vld [vmem:[#allocation14 + $0x50] ss:$8 sps:$4 sm:$0xff]   ;;  %v14250_v62 = vld [vmem:[#allocation14 + $0x64] ss:$8 sps:$4 sm:$0xff]  }
0x2eab   : > { %v9641_v44 = vpack.c.bf16 %v9627_v2, %v9625_v1  ;;  %v9595_v45 = vpop.f32.mrb[92].mxu0  ;;  %v14248_v1 = vld [vmem:[#allocation14 + $0x60] ss:$8 sps:$4 sm:$0xff]  }
0x2eac   : > { %v9596_v40 = vadd.f32 %v9595_v45, %v9464_v27  ;;  %v9597_v41 = vpop.f32.mrb[93].mxu0 }
0x2ead   : > { %v9598_v46 = vadd.f32 %v9597_v41, %v9468_v28  ;;  %v9599_v47 = vpop.f32.mrb[94].mxu0  ;;  %9815 = vmatprep.mubr.bf16.mxu1 %v9641_v44 }
0x2eae   : > { %v9600_v48 = vadd.f32 %v9599_v47, %v9464_v27  ;;  %v9601_v8 = vpop.f32.mrb[95].mxu0  ;;  %9816 = vmatmul.mubr.bf16.vlgmr.msra.gmra.mrb[88].mxu1 %v9640_v39  ;;  %v9628_v54 = vmax.f32 %v9596_v40, 0.0  ;;  %v11377_v39 = vld [vmem:[%s15920_s18 + $0x3] ss:$0 sm:$0xff] }
0x2eaf   : > { %v9602_v49 = vadd.f32 %v9601_v8, %v9468_v28  ;;  %v9629_v3 = vmax.f32 %v9598_v46, 0.0 }
0x2eb0   : > { %v9630_v55 = vmax.f32 %v9600_v48, 0.0 }
0x2eb1   : > { %v9631_v42 = vmax.f32 %v9602_v49, 0.0 }
0x2eb2   : > { %v9642_v43 = vpack.c.bf16 %v9630_v55, %v9628_v54 }
0x2eb3   : > { %v9643_v50 = vpack.c.bf16 %v9631_v42, %v9629_v3  ;;  %v9605_v52 = vpop.f32.mrb[96].mxu0 }
0x2eb4   : > { %v9606_v53 = vadd.f32 %v9605_v52, %v9464_v27  ;;  %v9607_v58 = vpop.f32.mrb[97].mxu0 }
0x2eb5   : > { %v9608_v59 = vadd.f32 %v9607_v58, %v9468_v28  ;;  %v9609_v4 = vpop.f32.mrb[98].mxu0  ;;  %9823 = vmatprep.mubr.bf16.mxu1 %v9643_v50 }
0x2eb6   : > { %v9610_v56 = vadd.f32 %v9609_v4, %v9464_v27  ;;  %v9611_v25 = vpop.f32.mrb[99].mxu0  ;;  %9824 = vmatmul.mubr.bf16.gmra.mrb[92].mxu1 %v9642_v43  ;;  %v9632_v15 = vmax.f32 %v9606_v53, 0.0 }
0x2eb7   : > { %v9612_v57 = vadd.f32 %v9611_v25, %v9468_v28  ;;  %v9633_v12 = vmax.f32 %v9608_v59, 0.0 }
0x2eb8   : > { %v9634_v17 = vmax.f32 %v9610_v56, 0.0 }
0x2eb9   : > { %v9635_v5 = vmax.f32 %v9612_v57, 0.0 }
0x2eba   : > { %v9644_v6 = vpack.c.bf16 %v9634_v17, %v9632_v15 }
0x2ebb   : > { %v9645_v7 = vpack.c.bf16 %v9635_v5, %v9633_v12  ;;  %v9615_v9 = vpop.f32.mrb[100].mxu0 }
0x2ebc   : > { %v9616_v11 = vadd.f32 %v9615_v9, %v9464_v27  ;;  %v9617_v14 = vpop.f32.mrb[101].mxu0 }
0x2ebd   : > { %v9618_v16 = vadd.f32 %v9617_v14, %v9468_v28  ;;  %v9619_v20 = vpop.f32.mrb[102].mxu0  ;;  %9831 = vmatprep.mubr.bf16.mxu1 %v9645_v7 }
0x2ebe   : > { %v9620_v21 = vadd.f32 %v9619_v20, %v9464_v27  ;;  %v9621_v29 = vpop.f32.mrb[103].mxu0  ;;  %9832 = vmatmul.mubr.bf16.gmra.mrb[96].mxu1 %v9644_v6  ;;  %v9636_v31 = vmax.f32 %v9616_v11, 0.0  ;;  %v14233_v27 = vld [vmem:[#allocation14 + $0x10] ss:$8 sps:$4 sm:$0xff]  }
0x2ebf   : > { %v9622_v30 = vadd.f32 %v9621_v29, %v9468_v28  ;;  %v9637_v18 = vmax.f32 %v9618_v16, 0.0  ;;  %v14238_v28 = vld [vmem:[#allocation14 + $0x24] ss:$8 sps:$4 sm:$0xff]   ;;  %10103 = vmatpush1.bf16.msra.mxu0 %v14233_v27 }
0x2ec0   : > { %v9638_v22 = vmax.f32 %v9620_v21, 0.0  ;;  %10104 = vmatprep.subr.bf16.mxu0 %v14238_v28 }
0x2ec1   : > { %v9639_v19 = vmax.f32 %v9622_v30, 0.0 }
0x2ec2   : > { %v9646_v23 = vpack.c.bf16 %v9638_v22, %v9636_v31 }
0x2ec3   : > { %v9647_v24 = vpack.c.bf16 %v9639_v19, %v9637_v18  ;;  %10105 = vmatpush1.bf16.msra.mxu0 %v14236_v37  ;;  %v15774_v27 = vpop.f32.mrb[104].mxu0 }
0x2ec4   : > { %10106 = vmatprep.subr.bf16.mxu0 %v14241_v60  ;;  %v13517_v28 = vpop.f32.mrb[105].mxu0 }
0x2ec5   : > { %9839 = vmatprep.mubr.bf16.mxu1 %v9647_v24  ;;  %v9930_v37 = vpop.f32.mrb[106].mxu0 }
0x2ec6   : > { %9840 = vmatmul.mubr.bf16.gmra.mrb[100].mxu1 %v9646_v23  ;;  %v13518_v60 = vpop.f32.mrb[107].mxu0 }
0x2ec7   : > { %13527 = vmatprep.mubr.msk.bf16.mxu1 %vm14654_vm1, %v14653_v0  ;;  %10107 = vmatpush1.bf16.msra.mxu0 %v14239_v61  ;;  %v14278_v61 = vld [vmem:[#allocation16 + $0x40] sm:$0xff]  }
0x2ec8   : > { %10108 = vmatprep.subr.bf16.mxu0 %v14244_v51  ;;  %v14279_v51 = vld [vmem:[#allocation16] sm:$0xff]  }
0x2ecb   : > { %10109 = vmatpush1.bf16.msra.mxu0 %v14242_v38  ;;  %v14280_v38 = vld [vmem:[#allocation16 + $0x48] sm:$0xff]  }
0x2ecc   : > { %10110 = vmatprep.subr.bf16.mxu0 %v14247_v32  ;;  %v14281_v32 = vld [vmem:[#allocation16 + $0x8] sm:$0xff]  }
0x2ecf   : > { %10111 = vmatpush1.bf16.msra.mxu0 %v14245_v33  ;;  %v14282_v33 = vld [vmem:[#allocation16 + $0x50] sm:$0xff]  }
0x2ed0   : > { %10112 = vmatprep.subr.bf16.mxu0 %v14250_v62  ;;  %v14283_v62 = vld [vmem:[#allocation16 + $0x10] sm:$0xff]  }
0x2ed3   : > { %10113 = vmatpush1.bf16.msra.mxu0 %v14248_v1  ;;  %v14284_v1 = vld [vmem:[#allocation16 + $0x58] sm:$0xff]  }
0x2ed4   : > { %10114 = vmatprep.subr.bf16.mxu0 %v14253_v26 }
0x2ed7   : > { %10115 = vmatpush1.bf16.msra.mxu0 %v14251_v34 }
0x2ed8   : > { %10223 = vmatprep.subr.bf16.mxu0 %v14256_v36 }
0x2f81   : > { %v12255_v2 = vpop.f32.mrb[88].mxu1 }
0x2f82   : > { %v12256_v44 = vpop.f32.mrb[89].mxu1 }
0x2f83   : > { %v12257_v45 = vadd.f32 %v12256_v44, %v12255_v2  ;;  %v12258_v40 = vpop.f32.mrb[90].mxu1  ;;  %v14285_v2 = vld [vmem:[#allocation16 + $0x18] sm:$0xff]   ;;  %v14287_v44 = vld [vmem:[#allocation16 + $0x20] sm:$0xff]  }
0x2f84   : > { %v12259_v41 = vpop.f32.mrb[91].mxu1 }
0x2f85   : > { %v9818_v46 = vadd.f32 %v12257_v45, %v11377_v39  ;;  %v12260_v47 = vadd.f32 %v12259_v41, %v12258_v40  ;;  %v14288_v45 = vld [vmem:[#allocation16 + $0x68] sm:$0xff]  }
0x2f87   : > { %v9821_v48 = vadd.f32 %v12260_v47, %v11377_v39  ;;  %v9872_v8 = vmax.f32 %v9818_v46, 0.0  ;;  %v14254_v47 = vld [vmem:[#allocation13] ss:$8 sps:$4 sm:$0xff]  }
0x2f89   : > { %v9873_v49 = vmax.f32 %v9821_v48, 0.0  ;;  %v12261_v54 = vpop.f32.mrb[92].mxu1 }
0x2f8a   : > { %v12262_v55 = vpop.f32.mrb[93].mxu1 }
0x2f8b   : > { %v9880_v3 = vpack.c.bf16 %v9873_v49, %v9872_v8  ;;  %v12263_v42 = vadd.f32 %v12262_v55, %v12261_v54  ;;  %v12264_v43 = vpop.f32.mrb[94].mxu1  ;;  %v14259_v49 = vld [vmem:[#allocation13 + $0x14] ss:$8 sps:$4 sm:$0xff]   ;;  %v14257_v54 = vld [vmem:[#allocation13 + $0x10] ss:$8 sps:$4 sm:$0xff]  }
0x2f8c   : > { %v12265_v50 = vpop.f32.mrb[95].mxu1  ;;  %v14262_v55 = vld [vmem:[#allocation13 + $0x24] ss:$8 sps:$4 sm:$0xff]  }
0x2f8d   : > { %v9826_v52 = vadd.f32 %v12263_v42, %v11377_v39  ;;  %v12266_v53 = vadd.f32 %v12265_v50, %v12264_v43  ;;  %13520 = vmatpush3.bf16.msra.mxu1 %v9880_v3  ;;  %v14260_v3 = vld [vmem:[#allocation13 + $0x20] ss:$8 sps:$4 sm:$0xff]   ;;  %v14265_v42 = vld [vmem:[#allocation13 + $0x34] ss:$8 sps:$4 sm:$0xff]   ;;  %v14263_v43 = vld [vmem:[#allocation13 + $0x30] ss:$8 sps:$4 sm:$0xff]  }
0x2f8e   : > { %13521 = vmatprep.subr.bf16.mxu1 %v14653_v0  ;;  %v14268_v50 = vld [vmem:[#allocation13 + $0x44] ss:$8 sps:$4 sm:$0xff]  }
0x2f8f   : > { %v9829_v58 = vadd.f32 %v12266_v53, %v11377_v39  ;;  %v9874_v59 = vmax.f32 %v9826_v52, 0.0  ;;  %v14266_v52 = vld [vmem:[#allocation13 + $0x40] ss:$8 sps:$4 sm:$0xff]   ;;  %v14271_v53 = vld [vmem:[#allocation13 + $0x54] ss:$8 sps:$4 sm:$0xff]  }
0x2f91   : > { %v9875_v4 = vmax.f32 %v9829_v58, 0.0  ;;  %v12267_v56 = vpop.f32.mrb[96].mxu1  ;;  %v14269_v58 = vld [vmem:[#allocation13 + $0x50] ss:$8 sps:$4 sm:$0xff]  }
0x2f92   : > { %v12268_v25 = vpop.f32.mrb[97].mxu1 }
0x2f93   : > { %v9881_v57 = vpack.c.bf16 %v9875_v4, %v9874_v59  ;;  %v12269_v15 = vadd.f32 %v12268_v25, %v12267_v56  ;;  %v12270_v17 = vpop.f32.mrb[98].mxu1  ;;  %v14274_v59 = vld [vmem:[#allocation13 + $0x64] ss:$8 sps:$4 sm:$0xff]   ;;  %v14277_v4 = vld [vmem:[#allocation13 + $0x74] ss:$8 sps:$4 sm:$0xff]  }
0x2f94   : > { %v12271_v12 = vpop.f32.mrb[99].mxu1  ;;  %v14275_v56 = vld [vmem:[#allocation13 + $0x70] ss:$8 sps:$4 sm:$0xff]   ;;  %v14289_v25 = vld [vmem:[#allocation16 + $0x28] sm:$0xff]  }
0x2f95   : > { %v9834_v5 = vadd.f32 %v12269_v15, %v11377_v39  ;;  %v12272_v6 = vadd.f32 %v12271_v12, %v12270_v17  ;;  %13522 = vmatpush3.bf16.msra.mxu1 %v9881_v57  ;;  %v14290_v57 = vld [vmem:[#allocation16 + $0x70] sm:$0xff]   ;;  %v14292_v17 = vld [vmem:[#allocation16 + $0x78] sm:$0xff]  }
0x2f96   : > { %13523 = vmatprep.subr.bf16.mxu1 %v14653_v0  ;;  %v14291_v15 = vld [vmem:[#allocation16 + $0x30] sm:$0xff]   ;;  %v14293_v12 = vld [vmem:[#allocation16 + $0x38] sm:$0xff]  }
0x2f97   : > { %v9837_v7 = vadd.f32 %v12272_v6, %v11377_v39  ;;  %v9876_v9 = vmax.f32 %v9834_v5, 0.0  ;;  %v10266_v5 = vld [vmem:[%s15921_s24] sm:$0x3] }
0x2f98   : > { %v10271_v6 = vrot.slane %v10266_v5, %v15265_v10 }
0x2f99   : > { %v9877_v11 = vmax.f32 %v9837_v7, 0.0  ;;  %v12273_v14 = vpop.f32.mrb[100].mxu1  ;;  %v10275_v7 = vrot.slane %v10266_v5, %v15270_v13  ;;  %v11433_v13 = vld [vmem:[%s15922_s26] ss:$0 sm:$0xff] }
0x2f9a   : > { %v12274_v16 = vpop.f32.mrb[101].mxu1 }
0x2f9b   : > { %v9882_v20 = vpack.c.bf16 %v9877_v11, %v9876_v9  ;;  %v12275_v21 = vadd.f32 %v12274_v16, %v12273_v14  ;;  %v12276_v29 = vpop.f32.mrb[102].mxu1 }
0x2f9c   : > { %v12277_v30 = vpop.f32.mrb[103].mxu1 }
0x2f9d   : > { %v9842_v31 = vadd.f32 %v12275_v21, %v11377_v39  ;;  %v12278_v22 = vadd.f32 %v12277_v30, %v12276_v29  ;;  %13524 = vmatpush3.bf16.msra.mxu1 %v9882_v20 }
0x2f9e   : > { %13525 = vmatprep.subr.bf16.mxu1 %v14653_v0  ;;  %v9986_v0 = vpack.c.bf16 %v9930_v37, %v15774_v27 }
0x2f9f   : > { %v9845_v18 = vadd.f32 %v12278_v22, %v11377_v39  ;;  %v9878_v19 = vmax.f32 %v9842_v31, 0.0  ;;  %v14286_v39 = vld [vmem:[#allocation16 + $0x60] sm:$0xff]  }
0x2fa1   : > { %v9879_v23 = vmax.f32 %v9845_v18, 0.0 }
0x2fa3   : > { %v9883_v24 = vpack.c.bf16 %v9879_v23, %v9878_v19 }
0x2fa5   : > { %13526 = vmatpush3.bf16.msra.mxu1 %v9883_v24 }
0x2fa6   : > { %12293 = vmatprep.subr.bf16.mxu1 %v14278_v61 }
0x2fa8   : > { %13528 = vmatmul.mubr.msk.bf16.vlgmr.msra.gmra.mrb[104].mxu1 %vm911_vm0, %v14228_v35 }
0x2fa9   : > { %12294 = vmatpush3.bf16.msra.mxu1 %v14279_v51 }
0x2faa   : > { %12295 = vmatprep.subr.bf16.mxu1 %v14280_v38 }
0x2fad   : > { %12296 = vmatpush3.bf16.msra.mxu1 %v14281_v32 }
0x2fae   : > { %12297 = vmatprep.subr.bf16.mxu1 %v14282_v33 }
0x2fb1   : > { %12298 = vmatpush3.bf16.msra.mxu1 %v14283_v62 }
0x2fb2   : > { %12299 = vmatprep.subr.bf16.mxu1 %v14284_v1 }
0x2fb5   : > { %12300 = vmatpush3.bf16.msra.mxu1 %v14285_v2 }
0x2fb6   : > { %12301 = vmatprep.subr.bf16.mxu1 %v14286_v39 }
0x2fb9   : > { %12302 = vmatpush3.bf16.msra.mxu1 %v14287_v44 }
0x2fba   : > { %12303 = vmatprep.subr.bf16.mxu1 %v14288_v45 }
0x2fbd   : > { %12304 = vmatpush3.bf16.msra.mxu1 %v14289_v25 }
0x2fbe   : > { %12305 = vmatprep.subr.bf16.mxu1 %v14290_v57 }
0x2fc1   : > { %12306 = vmatpush3.bf16.msra.mxu1 %v14291_v15 }
0x2fc2   : > { %12307 = vmatprep.subr.bf16.mxu1 %v14292_v17 }
0x2fc5   : > { %12308 = vmatpush3.bf16.msra.mxu1 %v14293_v12 }
0x307b   : > { %v9979_v40 = vpop.f32.mrb[104].mxu1 }
0x307c   : > { %v13529_v41 = vpop.f32.mrb[105].mxu1 }
0x307d   : > { %v9982_v46 = vpop.f32.mrb[106].mxu1 }
0x307e   : > { %v10003_v48 = vpack.c.bf16 %v9982_v46, %v9979_v40  ;;  %v13530_v8 = vpop.f32.mrb[107].mxu1 }
0x3080   : > { %10133 = vmatmul.mubr.bf16.vlgmr.msra.gmra.mrb[108].mxu0 %v10003_v48 }
0x3081   : > { %10224 = vmatpush1.bf16.msra.mxu0 %v14254_v47  ;;  %10255 = vmatprep.mubr.bf16.mxu0 %v14652_v63  ;;  %v14272_v63 = vld [vmem:[#allocation13 + $0x60] ss:$8 sps:$4 sm:$0xff]  }
0x3082   : > { %10225 = vmatprep.subr.bf16.mxu0 %v14259_v49 }
0x3085   : > { %10226 = vmatpush1.bf16.msra.mxu0 %v14257_v54 }
0x3086   : > { %10227 = vmatprep.subr.bf16.mxu0 %v14262_v55 }
0x3089   : > { %10228 = vmatpush1.bf16.msra.mxu0 %v14260_v3 }
0x308a   : > { %10229 = vmatprep.subr.bf16.mxu0 %v14265_v42 }
0x308d   : > { %10230 = vmatpush1.bf16.msra.mxu0 %v14263_v43 }
0x308e   : > { %10231 = vmatprep.subr.bf16.mxu0 %v14268_v50 }
0x3091   : > { %10232 = vmatpush1.bf16.msra.mxu0 %v14266_v52 }
0x3092   : > { %10233 = vmatprep.subr.bf16.mxu0 %v14271_v53 }
0x3095   : > { %10234 = vmatpush1.bf16.msra.mxu0 %v14269_v58 }
0x3096   : > { %10235 = vmatprep.subr.bf16.mxu0 %v14274_v59 }
0x3099   : > { %10236 = vmatpush1.bf16.msra.mxu0 %v14272_v63 }
0x309a   : > { %10237 = vmatprep.subr.bf16.mxu0 %v14277_v4 }
0x309d   : > { %10238 = vmatpush1.bf16.msra.mxu0 %v14275_v56 }
0x30a0   : > { %10256 = vmatmul.mubr.bf16.vlgmr.msra.gmra.mrb[108].mxu0 %v9986_v0 }
0x3173   : > { %v10257_v9 = vpop.f32.mrb[108].mxu0 }
0x3174   : > { %v10278_v11 = vadd.f32 %v10271_v6, %v10257_v9  ;;  %v10259_v14 = vpop.f32.mrb[109].mxu0 }
0x3175   : > { %v10279_v16 = vadd.f32 %v10275_v7, %v10259_v14  ;;  %v10261_v20 = vpop.f32.mrb[110].mxu0 }
0x3176   : > { %v10280_v21 = vadd.f32 %v10271_v6, %v10261_v20  ;;  %v10263_v29 = vpop.f32.mrb[111].mxu0  ;;  %v10282_v31 = vmax.f32 %v10278_v11, 0.0 }
0x3177   : > { %v10281_v30 = vadd.f32 %v10275_v7, %v10263_v29  ;;  %v10283_v18 = vmax.f32 %v10279_v16, 0.0 }
0x3178   : > { %v10284_v22 = vmax.f32 %v10280_v21, 0.0 }
0x3179   : > { %v10285_v19 = vmax.f32 %v10281_v30, 0.0 }
0x317a   : > { %v10286_v23 = vpack.c.bf16 %v10284_v22, %v10282_v31 }
0x317b   : > { %v10287_v24 = vpack.c.bf16 %v10285_v19, %v10283_v18 }
0x317d   : > { %10455 = vmatprep.mubr.bf16.mxu1 %v10287_v24 }
0x317e   : > { %10456 = vmatmul.mubr.bf16.vlgmr.msra.gmra.mrb[108].mxu1 %v10286_v23 }
0x3251   : > { %v12309_v10 = vpop.f32.mrb[108].mxu1 }
0x3252   : > { %v12310_v35 = vpop.f32.mrb[109].mxu1 }
0x3253   : > { %v12311_v26 = vadd.f32 %v12310_v35, %v12309_v10  ;;  %v12312_v34 = vpop.f32.mrb[110].mxu1 }
0x3254   : > { %v12313_v36 = vpop.f32.mrb[111].mxu1 }
0x3255   : > { %v10458_v27 = vadd.f32 %v12311_v26, %v11433_v13  ;;  %v12314_v28 = vadd.f32 %v12313_v36, %v12312_v34 }
0x3257   : > { %11450 = vst [vmem:[%s15324_s2 + $0x30] sm:$0xff] %v10458_v27  ;;  %v10461_v37 = vadd.f32 %v12314_v28, %v11433_v13 }
0x3259   : > { %11451 = vst [vmem:[%s15324_s2 + $0x38] sm:$0xff] %v10461_v37 }
0x325a   : > { %14564 = shalt.err (!%p14561_p12)
}
0x325b   : > { %s14565_s2 = scalar_lea.hbm %s15791_s5, 1024  ;;  %s14569_s14 = scalar_lea.hbm %s15923_s0, 4096 }
0x325c   : > { %p14566_p1 = scmp.ne.s32.totalorder %s15791_s5, %s14565_s2  ;;  %p14570_p6 = scmp.lt.u32.totalorder %s15791_s5, %s15923_s0 }
0x325d   : > { %p14571_p2 = scmp.lt.u32.totalorder %s14569_s14, %s14565_s2  ;;  %p14573_p10 = scmp.lt.u32.totalorder %s14565_s2, %s15791_s5 }
0x325e   : > { %p14567_p13 = pnand %p14566_p1, %p15924_p4 }
0x325f   : > { %p14572_p5 = por %p14571_p2, %p14570_p6 }
0x3260   : > { %p14568_p0 = pneg %p14567_p13 }
0x3261   : > { %p14574_p8 = por %p14573_p10, %p14572_p5 }
0x3263   : > { %p14575_p9 = pnand %p14574_p8, %p14568_p0 }
0x3265   : > { %14578 = shalt.err (!%p14575_p9)
}
0x3266   : > { %s14656_s13 = smov 128   ;;  %s14657_s1 = smov 8  }
0x3267   : > { %13579 = dma.vmem_to_hbm [thread:$0]  (%p15924_p4), %s15793_s15, 1024, %s15791_s5, %s10468_s25, %s14656_s13, %s14656_s13, %s14657_s1  }
0x3268 PF: > { %p13629_p7 = scmp.ge.s32.totalorder %s14637_s30, 2  ;;  %s10497_s8 = sand.u32 1, %s14625_s27  }
0x3269   : > { %p15925_p11 = scmp.ne.s32.totalorder %s15903_s22, 0  ;;  %s10498_s11 = scalar_lea.sflag [#allocation4], %s10497_s8 }
0x326b   : > { %p13611_p3 = pnand %p13629_p7, %p15925_p11 }
0x326d   : > { %14620 = dma.done.wait (!%p13611_p3), %s10498_s11, 1024  }
0x326e   : > { %14622 = vsyncadd (!%p13611_p3), %s10498_s11, 4294966272  ;;  %p37_p12 = scmp.ge.s32.totalorder %s14967_s21, 6   ;;  %s15926_s27 = smov %s14629_s28 }
0x326f   : > { %s15927_s28 = smov %s14633_s29  ;;  %s15928_s29 = smov %s14979_s12 }
0x3270   : > { %s15929_s30 = smov %s14967_s21  ;;  %39 = sbr.rel (!%p37_p12) target bundleno = 28 (0x1c), region = 213 }
0x3277   :  { %10503 = vsyncpa [#allocation3], 1 }
0x3278   :  { %10505 = vsyncpa [#allocation3 + $0x1], 1 }
0x3279   :  { %10506 = vsyncpa [#allocation6], 1 }
0x327a   :  { %10508 = vsyncpa [#allocation6 + $0x1], 1 }
0x327b   :  { %10509 = vsyncpa [#allocation9], 1 }
0x327c   :  { %10510 = vsyncpa [#allocation12], 1 }
0x327d   :  { %10511 = vsyncpa [#allocation15], 1 }
0x327e   :  { %10512 = vsyncpa [#allocation4], 1 }
0x327f   :  { %10514 = vsyncpa [#allocation4 + $0x1], 1 }

</bundles_post_ra>
